<compile_context>
chip_gen: v5e
topology: v5e:2x2
jax: 0.10.0
libtpu: 0.0.40
codegen_flags: <defaults>
</compile_context>

<pallas_src>
import functools

import jax
import jax.numpy as jnp
from jax.experimental import pallas as pl
from jax.experimental.pallas import tpu as pltpu

EMBED_DIM = 768            # self.num_channels in the PyTorch module
NUM_HEADS = 12             # nh in the PyTorch module
HEAD_DIM = EMBED_DIM // NUM_HEADS     # 64
PATCH = 14                 # dinov2_vitb14 patch size
MLP_HIDDEN = 4 * EMBED_DIM # 3072
LN_EPS = 1e-6              # dinov2 LayerNorm eps
PATCH_K_RAW = 3 * PATCH * PATCH   # 588
PATCH_K = 640              # padded to 5*128 lanes (zero rows in patch_w)
VMEM_LIMIT = 40 << 20      # explicit scoped-VMEM budget (fits v5e/v6e/v7x)
NEG_INF = -1e30


def _round_up(x, m):
    return ((x + m - 1) // m) * m


def _row_tile(M, cap=512):
    """Largest multiple-of-16 divisor of M that is <= cap (keeps bf16 (16,128)
    sublane tiling aligned); falls back to 8, then the full extent (legal)."""
    t = min(cap, M)
    t -= t % 16
    while t >= 16:
        if M % t == 0:
            return t
        t -= 16
    if M % 8 == 0:
        return 8
    return M


# --------------------------------------------------------------------------
# Pallas kernels
# --------------------------------------------------------------------------
def _linear_kernel(x_ref, w_ref, b_ref, o_ref):
    """o = x @ w + b ; bf16 operands, f32 accumulate, f32 epilogue."""
    acc = jnp.dot(x_ref[...].astype(jnp.bfloat16), w_ref[...],
                  preferred_element_type=jnp.float32)
    acc = acc + b_ref[...]
    o_ref[...] = acc.astype(o_ref.dtype)


def linear(x, w, b, *, out_dtype=jnp.float32):
    """x: (M, K) f32, w: (K, N) bf16, b: (N,) f32 -> (M, N)."""
    M, K = x.shape
    N = w.shape[1]
    tm = _row_tile(M, cap=512)
    tn = 256 if N % 256 == 0 else 128
    return pl.pallas_call(
        _linear_kernel,
        out_shape=jax.ShapeDtypeStruct((M, N), out_dtype),
        grid=(M // tm, N // tn),
        in_specs=[
            pl.BlockSpec((tm, K), lambda i, j: (i, 0)),
            pl.BlockSpec((K, tn), lambda i, j: (0, j)),
            pl.BlockSpec((1, tn), lambda i, j: (0, j)),
        ],
        out_specs=pl.BlockSpec((tm, tn), lambda i, j: (i, j)),
        compiler_params=pltpu.CompilerParams(
            dimension_semantics=("parallel", "parallel"),
            vmem_limit_bytes=VMEM_LIMIT),
    )(x, w, b.reshape(1, N))


def _ln_linear_kernel(x_ref, g_ref, b_ref, w_ref, bias_ref, o_ref, xn_ref,
                      *, act, slab_out):
    """o = act(LayerNorm(x) @ w + bias), LN fused as a prologue.

    The LN'd row tile (bf16) is computed once per row block (j == 0) into the
    VMEM scratch `xn_ref` and reused across the column axis (j "arbitrary").
    """
    @pl.when(pl.program_id(1) == 0)
    def _():
        x = x_ref[...].astype(jnp.float32)
        mean = jnp.mean(x, axis=-1, keepdims=True)
        xc = x - mean
        var = jnp.mean(xc * xc, axis=-1, keepdims=True)
        inv = jax.lax.rsqrt(var + LN_EPS)
        xn_ref[...] = (xc * inv * g_ref[...] + b_ref[...]).astype(xn_ref.dtype)

    acc = jnp.dot(xn_ref[...], w_ref[...], preferred_element_type=jnp.float32)
    acc = acc + bias_ref[...]
    if act == "gelu":  # exact (erf) GELU, like torch.nn.GELU default
        acc = 0.5 * acc * (1.0 + jax.lax.erf(acc * 0.7071067811865476))
    if slab_out:
        o_ref[0] = acc.astype(o_ref.dtype)
    else:
        o_ref[...] = acc.astype(o_ref.dtype)


def ln_linear(x, g, b, w, bias, *, act="none", out_dtype=jnp.float32,
              slab_out=False):
    """Fused LayerNorm + Linear.

    x: (M, K) f32, g/b: (K,), w: (K, N) bf16, bias: (N,).
    slab_out=False -> (M, N); slab_out=True -> (N//128, M, 128) 128-lane slabs
    (contiguous per-head-pair tiles for the attention kernel).
    """
    M, K = x.shape
    N = w.shape[1]
    # cap 256 keeps >=2 row blocks on the "parallel" axis for realistic M
    # (feeds v7x's 2 TensorCores) while bounding weight re-streaming to <=2x.
    tm = _row_tile(M, cap=256)
    tn = 128 if slab_out else (256 if N % 256 == 0 else 128)
    if slab_out:
        out_shape = jax.ShapeDtypeStruct((N // 128, M, 128), out_dtype)
        out_specs = pl.BlockSpec((1, tm, 128), lambda i, j: (j, i, 0))
    else:
        out_shape = jax.ShapeDtypeStruct((M, N), out_dtype)
        out_specs = pl.BlockSpec((tm, tn), lambda i, j: (i, j))
    return pl.pallas_call(
        functools.partial(_ln_linear_kernel, act=act, slab_out=slab_out),
        out_shape=out_shape,
        grid=(M // tm, N // tn),
        in_specs=[
            pl.BlockSpec((tm, K), lambda i, j: (i, 0)),
            pl.BlockSpec((1, K), lambda i, j: (0, 0)),
            pl.BlockSpec((1, K), lambda i, j: (0, 0)),
            pl.BlockSpec((K, tn), lambda i, j: (0, j)),
            pl.BlockSpec((1, tn), lambda i, j: (0, j)),
        ],
        out_specs=out_specs,
        scratch_shapes=[pltpu.VMEM((tm, K), jnp.bfloat16)],
        compiler_params=pltpu.CompilerParams(
            dimension_semantics=("parallel", "arbitrary"),
            vmem_limit_bytes=VMEM_LIMIT),
    )(x, g.reshape(1, K), b.reshape(1, K), w, bias.reshape(1, N))


def _linear_res_kernel(x_ref, w_ref, b_ref, res_ref, ls_ref, o_ref):
    """o = res + ls * (x @ w + b); bf16 matmul, f32 epilogue."""
    acc = jnp.dot(x_ref[...], w_ref[...], preferred_element_type=jnp.float32)
    acc = acc + b_ref[...]
    o_ref[...] = (res_ref[...] + ls_ref[...] * acc).astype(o_ref.dtype)


def linear_residual_layerscale(x, w, b, res, ls):
    """x: (M, K) bf16, w: (K, N) bf16, b/ls: (N,) f32, res: (M, N) f32."""
    M, K = x.shape
    N = w.shape[1]
    tm = _row_tile(M, cap=512)
    tn = 256 if N % 256 == 0 else 128
    return pl.pallas_call(
        _linear_res_kernel,
        out_shape=jax.ShapeDtypeStruct((M, N), res.dtype),
        grid=(M // tm, N // tn),
        in_specs=[
            pl.BlockSpec((tm, K), lambda i, j: (i, 0)),
            pl.BlockSpec((K, tn), lambda i, j: (0, j)),
            pl.BlockSpec((1, tn), lambda i, j: (0, j)),
            pl.BlockSpec((tm, tn), lambda i, j: (i, j)),
            pl.BlockSpec((1, tn), lambda i, j: (0, j)),
        ],
        out_specs=pl.BlockSpec((tm, tn), lambda i, j: (i, j)),
        compiler_params=pltpu.CompilerParams(
            dimension_semantics=("parallel", "parallel"),
            vmem_limit_bytes=VMEM_LIMIT),
    )(x, w, b.reshape(1, N), res, ls.reshape(1, N))


def _attn_kernel(q_ref, k_ref, v_ref, o_ref, *, n_tok, scale):
    """Attention for one batch element and 4 heads (two 128-lane slabs).

    q/k/v refs: (2, Tp, 128) bf16 contiguous slabs of the qkv output.
    Padded key positions (>= n_tok) are masked out of the softmax.
    """
    tp = q_ref.shape[1]
    kmask = jax.lax.broadcasted_iota(jnp.int32, (tp, tp), 1) < n_tok
    outs = []
    for s in range(2):                          # slab (2 heads each), unrolled
        q = q_ref[s]
        k = k_ref[s]
        v = v_ref[s]
        for h in range(2):
            sl = slice(h * HEAD_DIM, (h + 1) * HEAD_DIM)
            qh, kh, vh = q[:, sl], k[:, sl], v[:, sl]
            sc = jax.lax.dot_general(qh, kh, (((1,), (1,)), ((), ())),
                                     preferred_element_type=jnp.float32)
            sc = sc * scale
            sc = jnp.where(kmask, sc, NEG_INF)
            sc = sc - jnp.max(sc, axis=-1, keepdims=True)
            p = jnp.exp(sc)
            p = p / jnp.sum(p, axis=-1, keepdims=True)   # exact divide
            outs.append(jnp.dot(p.astype(jnp.bfloat16), vh,
                                preferred_element_type=jnp.float32))
    o_ref[...] = jnp.concatenate(outs, axis=-1).astype(o_ref.dtype)


def attention_from_qkv_slabs(qkv, batch, tp, n_tok):
    """qkv: (3*D/128, B*Tp, 128) bf16 slabs -> attention output (B*Tp, D) bf16.

    Slabs [0:6) are q, [6:12) k, [12:18) v (heads packed 2 per slab).
    """
    # TODO(synk): for real DINOv2 resolutions (Tp >~ 1000) convert this to a
    # KV-tiled online-softmax (flash) kernel instead of a full (Tp,Tp) score.
    n_pair_steps = EMBED_DIM // 256            # 3 steps of 4 heads each
    q0, k0, v0 = 0, EMBED_DIM // 256, EMBED_DIM // 128   # block offsets (2-slab blocks)

    def spec(off):
        return pl.BlockSpec((2, tp, 128), lambda b, p: (off + p, b, 0))

    return pl.pallas_call(
        functools.partial(_attn_kernel, n_tok=n_tok, scale=HEAD_DIM ** -0.5),
        out_shape=jax.ShapeDtypeStruct((batch * tp, EMBED_DIM), jnp.bfloat16),
        grid=(batch, n_pair_steps),
        in_specs=[spec(q0), spec(k0), spec(v0)],
        out_specs=pl.BlockSpec((tp, 256), lambda b, p: (b, p)),
        compiler_params=pltpu.CompilerParams(
            dimension_semantics=("parallel", "parallel"),
            vmem_limit_bytes=VMEM_LIMIT),
    )(qkv, qkv, qkv)


# --------------------------------------------------------------------------
# Synthetic DINOv2-style backbone built on top of the kernels
# --------------------------------------------------------------------------
def transformer_block(x2, blk, batch, tp, n_tok):
    """x2: (B*Tp, D) f32 residual stream -> (B*Tp, D) f32."""
    # attention branch: LN1 fused into the qkv matmul, slab output for attention
    qkv = ln_linear(x2, blk["ln1_g"], blk["ln1_b"], blk["qkv_w"], blk["qkv_b"],
                    out_dtype=jnp.bfloat16, slab_out=True)     # (18, M, 128) bf16
    attn = attention_from_qkv_slabs(qkv, batch, tp, n_tok)     # (M, 768) bf16
    x2 = linear_residual_layerscale(attn, blk["proj_w"], blk["proj_b"],
                                    x2, blk["ls1"])            # fused LS + residual
    # MLP branch: LN2 fused into fc1; hidden activation streamed in bf16
    hmid = ln_linear(x2, blk["ln2_g"], blk["ln2_b"], blk["fc1_w"], blk["fc1_b"],
                     act="gelu", out_dtype=jnp.bfloat16)       # (M, 3072) bf16
    x2 = linear_residual_layerscale(hmid, blk["fc2_w"], blk["fc2_b"],
                                    x2, blk["ls2"])            # fused LS + residual
    return x2


def dino_forward(params, tensors, mask, enc_output_layer):
    """Mirrors dino_model_with_hooks.forward (return_cls=False)."""
    B, C, H, W = tensors.shape
    h, w = H // PATCH, W // PATCH
    N = h * w
    T = N + 1
    Tp = _round_up(T, 16)          # padded token count; padded keys are masked

    # Patch embedding: Conv2d(3, 768, k=14, s=14) == unfold + matmul.
    patches = tensors.reshape(B, C, h, PATCH, w, PATCH)
    patches = patches.transpose(0, 2, 4, 1, 3, 5).reshape(B * N, PATCH_K_RAW)
    patches = jnp.pad(patches, ((0, 0), (0, PATCH_K - PATCH_K_RAW)))
    x = linear(patches, params["patch_w"], params["patch_b"],
               out_dtype=jnp.float32).reshape(B, N, EMBED_DIM)

    # CLS token + positional embedding, then pad tokens to a multiple of 16.
    cls = jnp.broadcast_to(params["cls_token"], (B, 1, EMBED_DIM))
    x = jnp.concatenate([cls, x], axis=1) + params["pos_embed"]
    x = jnp.pad(x, ((0, 0), (0, Tp - T), (0, 0)))
    x2 = x.reshape(B * Tp, EMBED_DIM)

    # Blocks before the hooked layer run in full.
    for layer in range(enc_output_layer):
        x2 = transformer_block(x2, params["blocks"][layer], B, Tp, T)

    # Hooked block: fused LN1 + the q columns of the qkv linear.  Only q is
    # used downstream, so the k/v columns are never computed.
    blk = params["blocks"][enc_output_layer]
    q = ln_linear(x2, blk["ln1_g"], blk["ln1_b"],
                  blk["qkv_w"][:, :EMBED_DIM], blk["qkv_b"][:EMBED_DIM],
                  out_dtype=jnp.float32)
    q = q.reshape(B, Tp, EMBED_DIM)
    # TODO(synk): backbone blocks > enc_output_layer and the final norm only
    # affect `xs`, whose values are never read by the reference forward
    # (only its shape) -> skipped.

    # Post-processing, exactly as in the PyTorch module: the reshape/permute
    # chain on the hook output reduces to taking the q columns head-ordered,
    # which is exactly the layout `q` already has.
    xs = q[:, 1:1 + N, :]                                          # drop CLS + padding
    x_out = xs.reshape(B, h, w, EMBED_DIM).transpose(0, 3, 1, 2)   # (B, 768, h, w)

    # F.interpolate(mask[None].float(), size=(h, w)) uses nearest neighbour.
    idx_h = jnp.floor(jnp.arange(h) * (H / h)).astype(jnp.int32)
    idx_w = jnp.floor(jnp.arange(w) * (W / w)).astype(jnp.int32)
    m = mask[:, idx_h][:, :, idx_w].astype(jnp.bool_)

    return {"layer_top": (x_out, m)}


# --------------------------------------------------------------------------
# Deterministic synthetic parameter initialization (weights in bf16)
# --------------------------------------------------------------------------
def init_params(key, num_patches, depth):
    def nrm(k, shape, std=0.02, dtype=jnp.float32):
        return (std * jax.random.normal(k, shape, dtype=jnp.float32)).astype(dtype)

    keys = iter(jax.random.split(key, 8 + 16 * depth))
    patch_w = jnp.zeros((PATCH_K, EMBED_DIM), jnp.float32)
    patch_w = patch_w.at[:PATCH_K_RAW].set(
        0.02 * jax.random.normal(next(keys), (PATCH_K_RAW, EMBED_DIM)))
    p = {
        "patch_w": patch_w.astype(jnp.bfloat16),
        "patch_b": nrm(next(keys), (EMBED_DIM,)),
        "cls_token": nrm(next(keys), (1, 1, EMBED_DIM)),
        "pos_embed": nrm(next(keys), (1, num_patches + 1, EMBED_DIM)),
        "blocks": [],
    }
    for _ in range(depth):
        p["blocks"].append({
            "ln1_g": jnp.ones((EMBED_DIM,), jnp.float32),
            "ln1_b": jnp.zeros((EMBED_DIM,), jnp.float32),
            "qkv_w": nrm(next(keys), (EMBED_DIM, 3 * EMBED_DIM), dtype=jnp.bfloat16),
            "qkv_b": nrm(next(keys), (3 * EMBED_DIM,)),
            "proj_w": nrm(next(keys), (EMBED_DIM, EMBED_DIM), dtype=jnp.bfloat16),
            "proj_b": nrm(next(keys), (EMBED_DIM,)),
            "ls1": jnp.ones((EMBED_DIM,), jnp.float32),
            "ln2_g": jnp.ones((EMBED_DIM,), jnp.float32),
            "ln2_b": jnp.zeros((EMBED_DIM,), jnp.float32),
            "fc1_w": nrm(next(keys), (EMBED_DIM, MLP_HIDDEN), dtype=jnp.bfloat16),
            "fc1_b": nrm(next(keys), (MLP_HIDDEN,)),
            "fc2_w": nrm(next(keys), (MLP_HIDDEN, EMBED_DIM), dtype=jnp.bfloat16),
            "fc2_b": nrm(next(keys), (EMBED_DIM,)),
            "ls2": jnp.ones((EMBED_DIM,), jnp.float32),
        })
    return p


if __name__ == "__main__":
    key = jax.random.PRNGKey(0)
    kx, km, kp = jax.random.split(key, 3)

    # Small shapes consistent with the module: H, W multiples of patch=14.
    B, C, H, W = 2, 3, 28, 28          # -> h = w = 2, N = 4 patch tokens, T = 5
    enc_output_layer = 1
    depth = enc_output_layer + 1       # blocks actually needed for the output

    tensors = jax.random.normal(kx, (B, C, H, W), dtype=jnp.float32)
    mask = jax.random.bernoulli(km, 0.3, (B, H, W))   # bool padding mask

    params = init_params(kp, (H // PATCH) * (W // PATCH), depth)

    fwd = jax.jit(functools.partial(dino_forward, enc_output_layer=enc_output_layer))
    out = fwd(params, tensors, mask)

    feat, m = out["layer_top"]
    jax.block_until_ready(feat)
    jax.block_until_ready(m)

    assert feat.shape == (B, EMBED_DIM, H // PATCH, W // PATCH)
    assert feat.dtype == jnp.float32
    assert m.shape == (B, H // PATCH, W // PATCH)
    assert m.dtype == jnp.bool_
    print("KERNEL_OK")
</pallas_src>

<mosaic_0001>
module attributes {stable_mosaic.version = 11 : i64} {
  func.func @_linear_kernel(%arg0: i32, %arg1: i32, %arg2: memref<8x640xf32, #tpu.memory_space<vmem>>, %arg3: memref<640x256xbf16, #tpu.memory_space<vmem>>, %arg4: memref<1x256xf32, #tpu.memory_space<vmem>>, %arg5: memref<8x256xf32, #tpu.memory_space<vmem>>) attributes {dimension_semantics = [#tpu.dimension_semantics<parallel>, #tpu.dimension_semantics<parallel>], iteration_bounds = array<i64: 1, 3>, scalar_prefetch = 0 : i64, scratch_operands = 0 : i64, tpu.core_type = #tpu.core_type<tc>, window_params = [{transform_indices = @transform_0, window_bounds = array<i64: 8, 640>}, {transform_indices = @transform_1, window_bounds = array<i64: 640, 256>}, {transform_indices = @transform_2, window_bounds = array<i64: 1, 256>}, {transform_indices = @transform_3, window_bounds = array<i64: 8, 256>}]} {
    %c0 = arith.constant 0 : index
    %c0_0 = arith.constant 0 : index
    %0 = vector.load %arg2[%c0, %c0_0] : memref<8x640xf32, #tpu.memory_space<vmem>>, vector<8x640xf32>
    %1 = arith.truncf %0 : vector<8x640xf32> to vector<8x640xbf16>
    %c0_1 = arith.constant 0 : index
    %c0_2 = arith.constant 0 : index
    %2 = vector.load %arg3[%c0_1, %c0_2] : memref<640x256xbf16, #tpu.memory_space<vmem>>, vector<640x256xbf16>
    %cst = arith.constant dense<0.000000e+00> : vector<8x256xf32>
    %3 = tpu.matmul %1, %2, %cst {dimension_numbers = #tpu.dot_dimension_numbers<[1], [0], [0], [1], [0, 0, 1, 1], [], []>} : vector<8x640xbf16>, vector<640x256xbf16>, vector<8x256xf32> -> vector<8x256xf32>
    %c0_3 = arith.constant 0 : index
    %c0_4 = arith.constant 0 : index
    %4 = vector.load %arg4[%c0_3, %c0_4] : memref<1x256xf32, #tpu.memory_space<vmem>>, vector<1x256xf32>
    %5 = vector.broadcast %4 : vector<1x256xf32> to vector<8x256xf32>
    %6 = arith.addf %3, %5 : vector<8x256xf32>
    %c0_5 = arith.constant 0 : index
    %c0_6 = arith.constant 0 : index
    %7 = vector.load %arg5[%c0_5, %c0_6] : memref<8x256xf32, #tpu.memory_space<vmem>>, vector<8x256xf32>
    tpu.vector_store %arg5[%c0_5, %c0_6], %6 {strides = array<i32>} : memref<8x256xf32, #tpu.memory_space<vmem>>, vector<8x256xf32>,
    return
  }
  func.func @transform_0(%arg0: i32, %arg1: i32) -> (i32, i32) {
    %c0_i32 = arith.constant 0 : i32
    %c0_i32_0 = arith.constant 0 : i32
    return %arg0, %c0_i32 : i32, i32
  }
  func.func @transform_1(%arg0: i32, %arg1: i32) -> (i32, i32) {
    %c0_i32 = arith.constant 0 : i32
    %c0_i32_0 = arith.constant 0 : i32
    return %c0_i32, %arg1 : i32, i32
  }
  func.func @transform_2(%arg0: i32, %arg1: i32) -> (i32, i32) {
    %c0_i32 = arith.constant 0 : i32
    %c0_i32_0 = arith.constant 0 : i32
    return %c0_i32, %arg1 : i32, i32
  }
  func.func @transform_3(%arg0: i32, %arg1: i32) -> (i32, i32) {
    %c0_i32 = arith.constant 0 : i32
    return %arg0, %arg1 : i32, i32
  }
}

module attributes {stable_mosaic.version = 11 : i64} {
  func.func @_ln_linear_kernel(%arg0: i32, %arg1: i32, %arg2: memref<32x768xf32, #tpu.memory_space<vmem>>, %arg3: memref<1x768xf32, #tpu.memory_space<vmem>>, %arg4: memref<1x768xf32, #tpu.memory_space<vmem>>, %arg5: memref<768x128xbf16, #tpu.memory_space<vmem>>, %arg6: memref<1x128xf32, #tpu.memory_space<vmem>>, %arg7: memref<1x32x128xbf16, #tpu.memory_space<vmem>>, %arg8: memref<32x768xbf16, #tpu.memory_space<vmem>>) attributes {dimension_semantics = [#tpu.dimension_semantics<parallel>, #tpu.dimension_semantics<arbitrary>], iteration_bounds = array<i64: 1, 18>, scalar_prefetch = 0 : i64, scratch_operands = 1 : i64, tpu.core_type = #tpu.core_type<tc>, window_params = [{transform_indices = @transform_0, window_bounds = array<i64: 32, 768>}, {pipeline_mode = #tpu.pipeline_mode<synchronous>, transform_indices = @transform_1, window_bounds = array<i64: 1, 768>}, {pipeline_mode = #tpu.pipeline_mode<synchronous>, transform_indices = @transform_2, window_bounds = array<i64: 1, 768>}, {transform_indices = @transform_3, window_bounds = array<i64: 768, 128>}, {transform_indices = @transform_4, window_bounds = array<i64: 1, 128>}, {transform_indices = @transform_5, window_bounds = array<i64: 1, 32, 128>}]} {
    %c0_i32 = arith.constant 0 : i32
    %0 = arith.cmpi eq, %arg1, %c0_i32 : i32
    %1 = arith.extui %0 : i1 to i32
    %c0_i32_0 = arith.constant 0 : i32
    %2 = arith.cmpi ne, %1, %c0_i32_0 : i32
    scf.if %2 {
      %c0_9 = arith.constant 0 : index
      %c0_10 = arith.constant 0 : index
      %13 = vector.load %arg2[%c0_9, %c0_10] : memref<32x768xf32, #tpu.memory_space<vmem>>, vector<32x768xf32>
      %cst_11 = arith.constant dense<0.000000e+00> : vector<32xf32>
      %14 = vector.multi_reduction <add>, %13, %cst_11 [1] : vector<32x768xf32> to vector<32xf32>
      %15 = vector.shape_cast %14 : vector<32xf32> to vector<32x1xf32>
      %cst_12 = arith.constant 7.680000e+02 : f32
      %16 = vector.broadcast %cst_12 : f32 to vector<32x1xf32>
      %17 = arith.divf %15, %16 : vector<32x1xf32>
      %18 = vector.broadcast %17 : vector<32x1xf32> to vector<32x768xf32>
      %19 = arith.subf %13, %18 : vector<32x768xf32>
      %20 = arith.mulf %19, %19 : vector<32x768xf32>
      %cst_13 = arith.constant dense<0.000000e+00> : vector<32xf32>
      %21 = vector.multi_reduction <add>, %20, %cst_13 [1] : vector<32x768xf32> to vector<32xf32>
      %22 = vector.shape_cast %21 : vector<32xf32> to vector<32x1xf32>
      %cst_14 = arith.constant 7.680000e+02 : f32
      %23 = vector.broadcast %cst_14 : f32 to vector<32x1xf32>
      %24 = arith.divf %22, %23 : vector<32x1xf32>
      %cst_15 = arith.constant 9.99999997E-7 : f32
      %25 = vector.broadcast %cst_15 : f32 to vector<32x1xf32>
      %26 = arith.addf %24, %25 : vector<32x1xf32>
      %27 = math.rsqrt %26 : vector<32x1xf32>
      %28 = vector.broadcast %27 : vector<32x1xf32> to vector<32x768xf32>
      %29 = arith.mulf %19, %28 : vector<32x768xf32>
      %c0_16 = arith.constant 0 : index
      %c0_17 = arith.constant 0 : index
      %30 = vector.load %arg3[%c0_16, %c0_17] : memref<1x768xf32, #tpu.memory_space<vmem>>, vector<1x768xf32>
      %31 = vector.broadcast %30 : vector<1x768xf32> to vector<32x768xf32>
      %32 = arith.mulf %29, %31 : vector<32x768xf32>
      %c0_18 = arith.constant 0 : index
      %c0_19 = arith.constant 0 : index
      %33 = vector.load %arg4[%c0_18, %c0_19] : memref<1x768xf32, #tpu.memory_space<vmem>>, vector<1x768xf32>
      %34 = vector.broadcast %33 : vector<1x768xf32> to vector<32x768xf32>
      %35 = arith.addf %32, %34 : vector<32x768xf32>
      %36 = arith.truncf %35 : vector<32x768xf32> to vector<32x768xbf16>
      %c0_20 = arith.constant 0 : index
      %c0_21 = arith.constant 0 : index
      %37 = vector.load %arg8[%c0_20, %c0_21] : memref<32x768xbf16, #tpu.memory_space<vmem>>, vector<32x768xbf16>
      tpu.vector_store %arg8[%c0_20, %c0_21], %36 {strides = array<i32>} : memref<32x768xbf16, #tpu.memory_space<vmem>>, vector<32x768xbf16>,
    } else {
    }
    %c0 = arith.constant 0 : index
    %c0_1 = arith.constant 0 : index
    %3 = vector.load %arg8[%c0, %c0_1] : memref<32x768xbf16, #tpu.memory_space<vmem>>, vector<32x768xbf16>
    %c0_2 = arith.constant 0 : index
    %c0_3 = arith.constant 0 : index
    %4 = vector.load %arg5[%c0_2, %c0_3] : memref<768x128xbf16, #tpu.memory_space<vmem>>, vector<768x128xbf16>
    %cst = arith.constant dense<0.000000e+00> : vector<32x128xf32>
    %5 = tpu.matmul %3, %4, %cst {dimension_numbers = #tpu.dot_dimension_numbers<[1], [0], [0], [1], [0, 0, 1, 1], [], []>} : vector<32x768xbf16>, vector<768x128xbf16>, vector<32x128xf32> -> vector<32x128xf32>
    %c0_4 = arith.constant 0 : index
    %c0_5 = arith.constant 0 : index
    %6 = vector.load %arg6[%c0_4, %c0_5] : memref<1x128xf32, #tpu.memory_space<vmem>>, vector<1x128xf32>
    %7 = vector.broadcast %6 : vector<1x128xf32> to vector<32x128xf32>
    %8 = arith.addf %5, %7 : vector<32x128xf32>
    %9 = arith.truncf %8 : vector<32x128xf32> to vector<32x128xbf16>
    %c0_6 = arith.constant 0 : index
    %c0_7 = arith.constant 0 : index
    %c0_8 = arith.constant 0 : index
    %10 = vector.load %arg7[%c0_6, %c0_7, %c0_8] : memref<1x32x128xbf16, #tpu.memory_space<vmem>>, vector<1x32x128xbf16>
    %11 = vector.shape_cast %10 : vector<1x32x128xbf16> to vector<32x128xbf16>
    %12 = vector.shape_cast %9 : vector<32x128xbf16> to vector<1x32x128xbf16>
    tpu.vector_store %arg7[%c0_6, %c0_7, %c0_8], %12 {strides = array<i32>} : memref<1x32x128xbf16, #tpu.memory_space<vmem>>, vector<1x32x128xbf16>,
    return
  }
  func.func @transform_0(%arg0: i32, %arg1: i32) -> (i32, i32) {
    %c0_i32 = arith.constant 0 : i32
    %c0_i32_0 = arith.constant 0 : i32
    return %arg0, %c0_i32 : i32, i32
  }
  func.func @transform_1(%arg0: i32, %arg1: i32) -> (i32, i32) {
    %c0_i32 = arith.constant 0 : i32
    %c0_i32_0 = arith.constant 0 : i32
    %c0_i32_1 = arith.constant 0 : i32
    return %c0_i32, %c0_i32_0 : i32, i32
  }
  func.func @transform_2(%arg0: i32, %arg1: i32) -> (i32, i32) {
    %c0_i32 = arith.constant 0 : i32
    %c0_i32_0 = arith.constant 0 : i32
    %c0_i32_1 = arith.constant 0 : i32
    return %c0_i32, %c0_i32_0 : i32, i32
  }
  func.func @transform_3(%arg0: i32, %arg1: i32) -> (i32, i32) {
    %c0_i32 = arith.constant 0 : i32
    %c0_i32_0 = arith.constant 0 : i32
    return %c0_i32, %arg1 : i32, i32
  }
  func.func @transform_4(%arg0: i32, %arg1: i32) -> (i32, i32) {
    %c0_i32 = arith.constant 0 : i32
    %c0_i32_0 = arith.constant 0 : i32
    return %c0_i32, %arg1 : i32, i32
  }
  func.func @transform_5(%arg0: i32, %arg1: i32) -> (i32, i32, i32) {
    %c0_i32 = arith.constant 0 : i32
    %c0_i32_0 = arith.constant 0 : i32
    return %arg1, %arg0, %c0_i32 : i32, i32, i32
  }
}

module attributes {stable_mosaic.version = 11 : i64} {
  func.func @_attn_kernel(%arg0: i32, %arg1: i32, %arg2: memref<2x16x128xbf16, #tpu.memory_space<vmem>>, %arg3: memref<2x16x128xbf16, #tpu.memory_space<vmem>>, %arg4: memref<2x16x128xbf16, #tpu.memory_space<vmem>>, %arg5: memref<16x256xbf16, #tpu.memory_space<vmem>>) attributes {dimension_semantics = [#tpu.dimension_semantics<parallel>, #tpu.dimension_semantics<parallel>], iteration_bounds = array<i64: 2, 3>, scalar_prefetch = 0 : i64, scratch_operands = 0 : i64, tpu.core_type = #tpu.core_type<tc>, window_params = [{transform_indices = @transform_0, window_bounds = array<i64: 2, 16, 128>}, {transform_indices = @transform_1, window_bounds = array<i64: 2, 16, 128>}, {transform_indices = @transform_2, window_bounds = array<i64: 2, 16, 128>}, {transform_indices = @transform_3, window_bounds = array<i64: 16, 256>}]} {
    %0 = tpu.iota {dimensions = array<i32: 1>} : vector<16x16xi32>
    %c5_i32 = arith.constant 5 : i32
    %1 = vector.broadcast %c5_i32 : i32 to vector<16x16xi32>
    %2 = arith.cmpi slt, %0, %1 : vector<16x16xi32>
    %c0 = arith.constant 0 : index
    %c0_0 = arith.constant 0 : index
    %c0_1 = arith.constant 0 : index
    %3 = vector.load %arg2[%c0, %c0_0, %c0_1] : memref<2x16x128xbf16, #tpu.memory_space<vmem>>, vector<1x16x128xbf16>
    %4 = vector.shape_cast %3 : vector<1x16x128xbf16> to vector<16x128xbf16>
    %c0_2 = arith.constant 0 : index
    %c0_3 = arith.constant 0 : index
    %c0_4 = arith.constant 0 : index
    %5 = vector.load %arg3[%c0_2, %c0_3, %c0_4] : memref<2x16x128xbf16, #tpu.memory_space<vmem>>, vector<1x16x128xbf16>
    %6 = vector.shape_cast %5 : vector<1x16x128xbf16> to vector<16x128xbf16>
    %c0_5 = arith.constant 0 : index
    %c0_6 = arith.constant 0 : index
    %c0_7 = arith.constant 0 : index
    %7 = vector.load %arg4[%c0_5, %c0_6, %c0_7] : memref<2x16x128xbf16, #tpu.memory_space<vmem>>, vector<1x16x128xbf16>
    %8 = vector.shape_cast %7 : vector<1x16x128xbf16> to vector<16x128xbf16>
    %9 = vector.extract_strided_slice %4 {offsets = [0, 0], sizes = [16, 64], strides = [1, 1]} : vector<16x128xbf16> to vector<16x64xbf16>
    %10 = vector.extract_strided_slice %6 {offsets = [0, 0], sizes = [16, 64], strides = [1, 1]} : vector<16x128xbf16> to vector<16x64xbf16>
    %11 = vector.extract_strided_slice %8 {offsets = [0, 0], sizes = [16, 64], strides = [1, 1]} : vector<16x128xbf16> to vector<16x64xbf16>
    %cst = arith.constant dense<0.000000e+00> : vector<16x16xf32>
    %12 = tpu.matmul %9, %10, %cst {dimension_numbers = #tpu.dot_dimension_numbers<[1], [1], [0], [0], [0, 0, 1, 0], [], []>} : vector<16x64xbf16>, vector<16x64xbf16>, vector<16x16xf32> -> vector<16x16xf32>
    %cst_8 = arith.constant 1.250000e-01 : f32
    %13 = vector.broadcast %cst_8 : f32 to vector<16x16xf32>
    %14 = arith.mulf %12, %13 : vector<16x16xf32>
    %cst_9 = arith.constant -1.000000e+30 : f32
    %15 = vector.broadcast %cst_9 : f32 to vector<16x16xf32>
    %16 = arith.select %2, %14, %15 : vector<16x16xi1>, vector<16x16xf32>
    %cst_10 = arith.constant dense<0xFF800000> : vector<16xf32>
    %17 = vector.multi_reduction <maximumf>, %16, %cst_10 [1] : vector<16x16xf32> to vector<16xf32>
    %18 = vector.shape_cast %17 : vector<16xf32> to vector<16x1xf32>
    %19 = vector.broadcast %18 : vector<16x1xf32> to vector<16x16xf32>
    %20 = arith.subf %16, %19 : vector<16x16xf32>
    %21 = math.exp %20 : vector<16x16xf32>
    %cst_11 = arith.constant dense<0.000000e+00> : vector<16xf32>
    %22 = vector.multi_reduction <add>, %21, %cst_11 [1] : vector<16x16xf32> to vector<16xf32>
    %23 = vector.shape_cast %22 : vector<16xf32> to vector<16x1xf32>
    %24 = vector.broadcast %23 : vector<16x1xf32> to vector<16x16xf32>
    %25 = arith.divf %21, %24 : vector<16x16xf32>
    %26 = arith.truncf %25 : vector<16x16xf32> to vector<16x16xbf16>
    %cst_12 = arith.constant dense<0.000000e+00> : vector<16x64xf32>
    %27 = tpu.matmul %26, %11, %cst_12 {dimension_numbers = #tpu.dot_dimension_numbers<[1], [0], [0], [1], [0, 0, 1, 1], [], []>} : vector<16x16xbf16>, vector<16x64xbf16>, vector<16x64xf32> -> vector<16x64xf32>
    %28 = vector.extract_strided_slice %4 {offsets = [0, 64], sizes = [16, 64], strides = [1, 1]} : vector<16x128xbf16> to vector<16x64xbf16>
    %29 = vector.extract_strided_slice %6 {offsets = [0, 64], sizes = [16, 64], strides = [1, 1]} : vector<16x128xbf16> to vector<16x64xbf16>
    %30 = vector.extract_strided_slice %8 {offsets = [0, 64], sizes = [16, 64], strides = [1, 1]} : vector<16x128xbf16> to vector<16x64xbf16>
    %cst_13 = arith.constant dense<0.000000e+00> : vector<16x16xf32>
    %31 = tpu.matmul %28, %29, %cst_13 {dimension_numbers = #tpu.dot_dimension_numbers<[1], [1], [0], [0], [0, 0, 1, 0], [], []>} : vector<16x64xbf16>, vector<16x64xbf16>, vector<16x16xf32> -> vector<16x16xf32>
    %cst_14 = arith.constant 1.250000e-01 : f32
    %32 = vector.broadcast %cst_14 : f32 to vector<16x16xf32>
    %33 = arith.mulf %31, %32 : vector<16x16xf32>
    %cst_15 = arith.constant -1.000000e+30 : f32
    %34 = vector.broadcast %cst_15 : f32 to vector<16x16xf32>
    %35 = arith.select %2, %33, %34 : vector<16x16xi1>, vector<16x16xf32>
    %cst_16 = arith.constant dense<0xFF800000> : vector<16xf32>
    %36 = vector.multi_reduction <maximumf>, %35, %cst_16 [1] : vector<16x16xf32> to vector<16xf32>
    %37 = vector.shape_cast %36 : vector<16xf32> to vector<16x1xf32>
    %38 = vector.broadcast %37 : vector<16x1xf32> to vector<16x16xf32>
    %39 = arith.subf %35, %38 : vector<16x16xf32>
    %40 = math.exp %39 : vector<16x16xf32>
    %cst_17 = arith.constant dense<0.000000e+00> : vector<16xf32>
    %41 = vector.multi_reduction <add>, %40, %cst_17 [1] : vector<16x16xf32> to vector<16xf32>
    %42 = vector.shape_cast %41 : vector<16xf32> to vector<16x1xf32>
    %43 = vector.broadcast %42 : vector<16x1xf32> to vector<16x16xf32>
    %44 = arith.divf %40, %43 : vector<16x16xf32>
    %45 = arith.truncf %44 : vector<16x16xf32> to vector<16x16xbf16>
    %cst_18 = arith.constant dense<0.000000e+00> : vector<16x64xf32>
    %46 = tpu.matmul %45, %30, %cst_18 {dimension_numbers = #tpu.dot_dimension_numbers<[1], [0], [0], [1], [0, 0, 1, 1], [], []>} : vector<16x16xbf16>, vector<16x64xbf16>, vector<16x64xf32> -> vector<16x64xf32>
    %c1 = arith.constant 1 : index
    %c0_19 = arith.constant 0 : index
    %c0_20 = arith.constant 0 : index
    %47 = vector.load %arg2[%c1, %c0_19, %c0_20] : memref<2x16x128xbf16, #tpu.memory_space<vmem>>, vector<1x16x128xbf16>
    %48 = vector.shape_cast %47 : vector<1x16x128xbf16> to vector<16x128xbf16>
    %c1_21 = arith.constant 1 : index
    %c0_22 = arith.constant 0 : index
    %c0_23 = arith.constant 0 : index
    %49 = vector.load %arg3[%c1_21, %c0_22, %c0_23] : memref<2x16x128xbf16, #tpu.memory_space<vmem>>, vector<1x16x128xbf16>
    %50 = vector.shape_cast %49 : vector<1x16x128xbf16> to vector<16x128xbf16>
    %c1_24 = arith.constant 1 : index
    %c0_25 = arith.constant 0 : index
    %c0_26 = arith.constant 0 : index
    %51 = vector.load %arg4[%c1_24, %c0_25, %c0_26] : memref<2x16x128xbf16, #tpu.memory_space<vmem>>, vector<1x16x128xbf16>
    %52 = vector.shape_cast %51 : vector<1x16x128xbf16> to vector<16x128xbf16>
    %53 = vector.extract_strided_slice %48 {offsets = [0, 0], sizes = [16, 64], strides = [1, 1]} : vector<16x128xbf16> to vector<16x64xbf16>
    %54 = vector.extract_strided_slice %50 {offsets = [0, 0], sizes = [16, 64], strides = [1, 1]} : vector<16x128xbf16> to vector<16x64xbf16>
    %55 = vector.extract_strided_slice %52 {offsets = [0, 0], sizes = [16, 64], strides = [1, 1]} : vector<16x128xbf16> to vector<16x64xbf16>
    %cst_27 = arith.constant dense<0.000000e+00> : vector<16x16xf32>
    %56 = tpu.matmul %53, %54, %cst_27 {dimension_numbers = #tpu.dot_dimension_numbers<[1], [1], [0], [0], [0, 0, 1, 0], [], []>} : vector<16x64xbf16>, vector<16x64xbf16>, vector<16x16xf32> -> vector<16x16xf32>
    %cst_28 = arith.constant 1.250000e-01 : f32
    %57 = vector.broadcast %cst_28 : f32 to vector<16x16xf32>
    %58 = arith.mulf %56, %57 : vector<16x16xf32>
    %cst_29 = arith.constant -1.000000e+30 : f32
    %59 = vector.broadcast %cst_29 : f32 to vector<16x16xf32>
    %60 = arith.select %2, %58, %59 : vector<16x16xi1>, vector<16x16xf32>
    %cst_30 = arith.constant dense<0xFF800000> : vector<16xf32>
    %61 = vector.multi_reduction <maximumf>, %60, %cst_30 [1] : vector<16x16xf32> to vector<16xf32>
    %62 = vector.shape_cast %61 : vector<16xf32> to vector<16x1xf32>
    %63 = vector.broadcast %62 : vector<16x1xf32> to vector<16x16xf32>
    %64 = arith.subf %60, %63 : vector<16x16xf32>
    %65 = math.exp %64 : vector<16x16xf32>
    %cst_31 = arith.constant dense<0.000000e+00> : vector<16xf32>
    %66 = vector.multi_reduction <add>, %65, %cst_31 [1] : vector<16x16xf32> to vector<16xf32>
    %67 = vector.shape_cast %66 : vector<16xf32> to vector<16x1xf32>
    %68 = vector.broadcast %67 : vector<16x1xf32> to vector<16x16xf32>
    %69 = arith.divf %65, %68 : vector<16x16xf32>
    %70 = arith.truncf %69 : vector<16x16xf32> to vector<16x16xbf16>
    %cst_32 = arith.constant dense<0.000000e+00> : vector<16x64xf32>
    %71 = tpu.matmul %70, %55, %cst_32 {dimension_numbers = #tpu.dot_dimension_numbers<[1], [0], [0], [1], [0, 0, 1, 1], [], []>} : vector<16x16xbf16>, vector<16x64xbf16>, vector<16x64xf32> -> vector<16x64xf32>
    %72 = vector.extract_strided_slice %48 {offsets = [0, 64], sizes = [16, 64], strides = [1, 1]} : vector<16x128xbf16> to vector<16x64xbf16>
    %73 = vector.extract_strided_slice %50 {offsets = [0, 64], sizes = [16, 64], strides = [1, 1]} : vector<16x128xbf16> to vector<16x64xbf16>
    %74 = vector.extract_strided_slice %52 {offsets = [0, 64], sizes = [16, 64], strides = [1, 1]} : vector<16x128xbf16> to vector<16x64xbf16>
    %cst_33 = arith.constant dense<0.000000e+00> : vector<16x16xf32>
    %75 = tpu.matmul %72, %73, %cst_33 {dimension_numbers = #tpu.dot_dimension_numbers<[1], [1], [0], [0], [0, 0, 1, 0], [], []>} : vector<16x64xbf16>, vector<16x64xbf16>, vector<16x16xf32> -> vector<16x16xf32>
    %cst_34 = arith.constant 1.250000e-01 : f32
    %76 = vector.broadcast %cst_34 : f32 to vector<16x16xf32>
    %77 = arith.mulf %75, %76 : vector<16x16xf32>
    %cst_35 = arith.constant -1.000000e+30 : f32
    %78 = vector.broadcast %cst_35 : f32 to vector<16x16xf32>
    %79 = arith.select %2, %77, %78 : vector<16x16xi1>, vector<16x16xf32>
    %cst_36 = arith.constant dense<0xFF800000> : vector<16xf32>
    %80 = vector.multi_reduction <maximumf>, %79, %cst_36 [1] : vector<16x16xf32> to vector<16xf32>
    %81 = vector.shape_cast %80 : vector<16xf32> to vector<16x1xf32>
    %82 = vector.broadcast %81 : vector<16x1xf32> to vector<16x16xf32>
    %83 = arith.subf %79, %82 : vector<16x16xf32>
    %84 = math.exp %83 : vector<16x16xf32>
    %cst_37 = arith.constant dense<0.000000e+00> : vector<16xf32>
    %85 = vector.multi_reduction <add>, %84, %cst_37 [1] : vector<16x16xf32> to vector<16xf32>
    %86 = vector.shape_cast %85 : vector<16xf32> to vector<16x1xf32>
    %87 = vector.broadcast %86 : vector<16x1xf32> to vector<16x16xf32>
    %88 = arith.divf %84, %87 : vector<16x16xf32>
    %89 = arith.truncf %88 : vector<16x16xf32> to vector<16x16xbf16>
    %cst_38 = arith.constant dense<0.000000e+00> : vector<16x64xf32>
    %90 = tpu.matmul %89, %74, %cst_38 {dimension_numbers = #tpu.dot_dimension_numbers<[1], [0], [0], [1], [0, 0, 1, 1], [], []>} : vector<16x16xbf16>, vector<16x64xbf16>, vector<16x64xf32> -> vector<16x64xf32>
    %91 = tpu.concatenate %27, %46, %71, %90 in 1 : vector<16x64xf32>, vector<16x64xf32>, vector<16x64xf32>, vector<16x64xf32> -> vector<16x256xf32>
    %92 = arith.truncf %91 : vector<16x256xf32> to vector<16x256xbf16>
    %c0_39 = arith.constant 0 : index
    %c0_40 = arith.constant 0 : index
    %93 = vector.load %arg5[%c0_39, %c0_40] : memref<16x256xbf16, #tpu.memory_space<vmem>>, vector<16x256xbf16>
    tpu.vector_store %arg5[%c0_39, %c0_40], %92 {strides = array<i32>} : memref<16x256xbf16, #tpu.memory_space<vmem>>, vector<16x256xbf16>,
    return
  }
  func.func @transform_0(%arg0: i32, %arg1: i32) -> (i32, i32, i32) {
    %c0_i32 = arith.constant 0 : i32
    %0 = arith.addi %c0_i32, %arg1 : i32
    %c0_i32_0 = arith.constant 0 : i32
    %c0_i32_1 = arith.constant 0 : i32
    return %0, %arg0, %c0_i32_0 : i32, i32, i32
  }
  func.func @transform_1(%arg0: i32, %arg1: i32) -> (i32, i32, i32) {
    %c3_i32 = arith.constant 3 : i32
    %0 = arith.addi %c3_i32, %arg1 : i32
    %c0_i32 = arith.constant 0 : i32
    %c0_i32_0 = arith.constant 0 : i32
    return %0, %arg0, %c0_i32 : i32, i32, i32
  }
  func.func @transform_2(%arg0: i32, %arg1: i32) -> (i32, i32, i32) {
    %c6_i32 = arith.constant 6 : i32
    %0 = arith.addi %c6_i32, %arg1 : i32
    %c0_i32 = arith.constant 0 : i32
    %c0_i32_0 = arith.constant 0 : i32
    return %0, %arg0, %c0_i32 : i32, i32, i32
  }
  func.func @transform_3(%arg0: i32, %arg1: i32) -> (i32, i32) {
    %c0_i32 = arith.constant 0 : i32
    return %arg0, %arg1 : i32, i32
  }
}

module attributes {stable_mosaic.version = 11 : i64} {
  func.func @_linear_res_kernel(%arg0: i32, %arg1: i32, %arg2: memref<32x768xbf16, #tpu.memory_space<vmem>>, %arg3: memref<768x256xbf16, #tpu.memory_space<vmem>>, %arg4: memref<1x256xf32, #tpu.memory_space<vmem>>, %arg5: memref<32x256xf32, #tpu.memory_space<vmem>>, %arg6: memref<1x256xf32, #tpu.memory_space<vmem>>, %arg7: memref<32x256xf32, #tpu.memory_space<vmem>>) attributes {dimension_semantics = [#tpu.dimension_semantics<parallel>, #tpu.dimension_semantics<parallel>], iteration_bounds = array<i64: 1, 3>, scalar_prefetch = 0 : i64, scratch_operands = 0 : i64, tpu.core_type = #tpu.core_type<tc>, window_params = [{transform_indices = @transform_0, window_bounds = array<i64: 32, 768>}, {transform_indices = @transform_1, window_bounds = array<i64: 768, 256>}, {transform_indices = @transform_2, window_bounds = array<i64: 1, 256>}, {transform_indices = @transform_3, window_bounds = array<i64: 32, 256>}, {transform_indices = @transform_4, window_bounds = array<i64: 1, 256>}, {transform_indices = @transform_5, window_bounds = array<i64: 32, 256>}]} {
    %c0 = arith.constant 0 : index
    %c0_0 = arith.constant 0 : index
    %0 = vector.load %arg2[%c0, %c0_0] : memref<32x768xbf16, #tpu.memory_space<vmem>>, vector<32x768xbf16>
    %c0_1 = arith.constant 0 : index
    %c0_2 = arith.constant 0 : index
    %1 = vector.load %arg3[%c0_1, %c0_2] : memref<768x256xbf16, #tpu.memory_space<vmem>>, vector<768x256xbf16>
    %cst = arith.constant dense<0.000000e+00> : vector<32x256xf32>
    %2 = tpu.matmul %0, %1, %cst {dimension_numbers = #tpu.dot_dimension_numbers<[1], [0], [0], [1], [0, 0, 1, 1], [], []>} : vector<32x768xbf16>, vector<768x256xbf16>, vector<32x256xf32> -> vector<32x256xf32>
    %c0_3 = arith.constant 0 : index
    %c0_4 = arith.constant 0 : index
    %3 = vector.load %arg4[%c0_3, %c0_4] : memref<1x256xf32, #tpu.memory_space<vmem>>, vector<1x256xf32>
    %4 = vector.broadcast %3 : vector<1x256xf32> to vector<32x256xf32>
    %5 = arith.addf %2, %4 : vector<32x256xf32>
    %c0_5 = arith.constant 0 : index
    %c0_6 = arith.constant 0 : index
    %6 = vector.load %arg5[%c0_5, %c0_6] : memref<32x256xf32, #tpu.memory_space<vmem>>, vector<32x256xf32>
    %c0_7 = arith.constant 0 : index
    %c0_8 = arith.constant 0 : index
    %7 = vector.load %arg6[%c0_7, %c0_8] : memref<1x256xf32, #tpu.memory_space<vmem>>, vector<1x256xf32>
    %8 = vector.broadcast %7 : vector<1x256xf32> to vector<32x256xf32>
    %9 = arith.mulf %8, %5 : vector<32x256xf32>
    %10 = arith.addf %6, %9 : vector<32x256xf32>
    %c0_9 = arith.constant 0 : index
    %c0_10 = arith.constant 0 : index
    %11 = vector.load %arg7[%c0_9, %c0_10] : memref<32x256xf32, #tpu.memory_space<vmem>>, vector<32x256xf32>
    tpu.vector_store %arg7[%c0_9, %c0_10], %10 {strides = array<i32>} : memref<32x256xf32, #tpu.memory_space<vmem>>, vector<32x256xf32>,
    return
  }
  func.func @transform_0(%arg0: i32, %arg1: i32) -> (i32, i32) {
    %c0_i32 = arith.constant 0 : i32
    %c0_i32_0 = arith.constant 0 : i32
    return %arg0, %c0_i32 : i32, i32
  }
  func.func @transform_1(%arg0: i32, %arg1: i32) -> (i32, i32) {
    %c0_i32 = arith.constant 0 : i32
    %c0_i32_0 = arith.constant 0 : i32
    return %c0_i32, %arg1 : i32, i32
  }
  func.func @transform_2(%arg0: i32, %arg1: i32) -> (i32, i32) {
    %c0_i32 = arith.constant 0 : i32
    %c0_i32_0 = arith.constant 0 : i32
    return %c0_i32, %arg1 : i32, i32
  }
  func.func @transform_3(%arg0: i32, %arg1: i32) -> (i32, i32) {
    %c0_i32 = arith.constant 0 : i32
    return %arg0, %arg1 : i32, i32
  }
  func.func @transform_4(%arg0: i32, %arg1: i32) -> (i32, i32) {
    %c0_i32 = arith.constant 0 : i32
    %c0_i32_0 = arith.constant 0 : i32
    return %c0_i32, %arg1 : i32, i32
  }
  func.func @transform_5(%arg0: i32, %arg1: i32) -> (i32, i32) {
    %c0_i32 = arith.constant 0 : i32
    return %arg0, %arg1 : i32, i32
  }
}

module attributes {stable_mosaic.version = 11 : i64} {
  func.func @_ln_linear_kernel(%arg0: i32, %arg1: i32, %arg2: memref<32x768xf32, #tpu.memory_space<vmem>>, %arg3: memref<1x768xf32, #tpu.memory_space<vmem>>, %arg4: memref<1x768xf32, #tpu.memory_space<vmem>>, %arg5: memref<768x256xbf16, #tpu.memory_space<vmem>>, %arg6: memref<1x256xf32, #tpu.memory_space<vmem>>, %arg7: memref<32x256xbf16, #tpu.memory_space<vmem>>, %arg8: memref<32x768xbf16, #tpu.memory_space<vmem>>) attributes {dimension_semantics = [#tpu.dimension_semantics<parallel>, #tpu.dimension_semantics<arbitrary>], iteration_bounds = array<i64: 1, 12>, scalar_prefetch = 0 : i64, scratch_operands = 1 : i64, tpu.core_type = #tpu.core_type<tc>, window_params = [{transform_indices = @transform_0, window_bounds = array<i64: 32, 768>}, {pipeline_mode = #tpu.pipeline_mode<synchronous>, transform_indices = @transform_1, window_bounds = array<i64: 1, 768>}, {pipeline_mode = #tpu.pipeline_mode<synchronous>, transform_indices = @transform_2, window_bounds = array<i64: 1, 768>}, {transform_indices = @transform_3, window_bounds = array<i64: 768, 256>}, {transform_indices = @transform_4, window_bounds = array<i64: 1, 256>}, {transform_indices = @transform_5, window_bounds = array<i64: 32, 256>}]} {
    %c0_i32 = arith.constant 0 : i32
    %0 = arith.cmpi eq, %arg1, %c0_i32 : i32
    %1 = arith.extui %0 : i1 to i32
    %c0_i32_0 = arith.constant 0 : i32
    %2 = arith.cmpi ne, %1, %c0_i32_0 : i32
    scf.if %2 {
      %c0_11 = arith.constant 0 : index
      %c0_12 = arith.constant 0 : index
      %19 = vector.load %arg2[%c0_11, %c0_12] : memref<32x768xf32, #tpu.memory_space<vmem>>, vector<32x768xf32>
      %cst_13 = arith.constant dense<0.000000e+00> : vector<32xf32>
      %20 = vector.multi_reduction <add>, %19, %cst_13 [1] : vector<32x768xf32> to vector<32xf32>
      %21 = vector.shape_cast %20 : vector<32xf32> to vector<32x1xf32>
      %cst_14 = arith.constant 7.680000e+02 : f32
      %22 = vector.broadcast %cst_14 : f32 to vector<32x1xf32>
      %23 = arith.divf %21, %22 : vector<32x1xf32>
      %24 = vector.broadcast %23 : vector<32x1xf32> to vector<32x768xf32>
      %25 = arith.subf %19, %24 : vector<32x768xf32>
      %26 = arith.mulf %25, %25 : vector<32x768xf32>
      %cst_15 = arith.constant dense<0.000000e+00> : vector<32xf32>
      %27 = vector.multi_reduction <add>, %26, %cst_15 [1] : vector<32x768xf32> to vector<32xf32>
      %28 = vector.shape_cast %27 : vector<32xf32> to vector<32x1xf32>
      %cst_16 = arith.constant 7.680000e+02 : f32
      %29 = vector.broadcast %cst_16 : f32 to vector<32x1xf32>
      %30 = arith.divf %28, %29 : vector<32x1xf32>
      %cst_17 = arith.constant 9.99999997E-7 : f32
      %31 = vector.broadcast %cst_17 : f32 to vector<32x1xf32>
      %32 = arith.addf %30, %31 : vector<32x1xf32>
      %33 = math.rsqrt %32 : vector<32x1xf32>
      %34 = vector.broadcast %33 : vector<32x1xf32> to vector<32x768xf32>
      %35 = arith.mulf %25, %34 : vector<32x768xf32>
      %c0_18 = arith.constant 0 : index
      %c0_19 = arith.constant 0 : index
      %36 = vector.load %arg3[%c0_18, %c0_19] : memref<1x768xf32, #tpu.memory_space<vmem>>, vector<1x768xf32>
      %37 = vector.broadcast %36 : vector<1x768xf32> to vector<32x768xf32>
      %38 = arith.mulf %35, %37 : vector<32x768xf32>
      %c0_20 = arith.constant 0 : index
      %c0_21 = arith.constant 0 : index
      %39 = vector.load %arg4[%c0_20, %c0_21] : memref<1x768xf32, #tpu.memory_space<vmem>>, vector<1x768xf32>
      %40 = vector.broadcast %39 : vector<1x768xf32> to vector<32x768xf32>
      %41 = arith.addf %38, %40 : vector<32x768xf32>
      %42 = arith.truncf %41 : vector<32x768xf32> to vector<32x768xbf16>
      %c0_22 = arith.constant 0 : index
      %c0_23 = arith.constant 0 : index
      %43 = vector.load %arg8[%c0_22, %c0_23] : memref<32x768xbf16, #tpu.memory_space<vmem>>, vector<32x768xbf16>
      tpu.vector_store %arg8[%c0_22, %c0_23], %42 {strides = array<i32>} : memref<32x768xbf16, #tpu.memory_space<vmem>>, vector<32x768xbf16>,
    } else {
    }
    %c0 = arith.constant 0 : index
    %c0_1 = arith.constant 0 : index
    %3 = vector.load %arg8[%c0, %c0_1] : memref<32x768xbf16, #tpu.memory_space<vmem>>, vector<32x768xbf16>
    %c0_2 = arith.constant 0 : index
    %c0_3 = arith.constant 0 : index
    %4 = vector.load %arg5[%c0_2, %c0_3] : memref<768x256xbf16, #tpu.memory_space<vmem>>, vector<768x256xbf16>
    %cst = arith.constant dense<0.000000e+00> : vector<32x256xf32>
    %5 = tpu.matmul %3, %4, %cst {dimension_numbers = #tpu.dot_dimension_numbers<[1], [0], [0], [1], [0, 0, 1, 1], [], []>} : vector<32x768xbf16>, vector<768x256xbf16>, vector<32x256xf32> -> vector<32x256xf32>
    %c0_4 = arith.constant 0 : index
    %c0_5 = arith.constant 0 : index
    %6 = vector.load %arg6[%c0_4, %c0_5] : memref<1x256xf32, #tpu.memory_space<vmem>>, vector<1x256xf32>
    %7 = vector.broadcast %6 : vector<1x256xf32> to vector<32x256xf32>
    %8 = arith.addf %5, %7 : vector<32x256xf32>
    %cst_6 = arith.constant 5.000000e-01 : f32
    %9 = vector.broadcast %cst_6 : f32 to vector<32x256xf32>
    %10 = arith.mulf %9, %8 : vector<32x256xf32>
    %cst_7 = arith.constant 0.707106769 : f32
    %11 = vector.broadcast %cst_7 : f32 to vector<32x256xf32>
    %12 = arith.mulf %8, %11 : vector<32x256xf32>
    %13 = math.erf %12 : vector<32x256xf32>
    %cst_8 = arith.constant 1.000000e+00 : f32
    %14 = vector.broadcast %cst_8 : f32 to vector<32x256xf32>
    %15 = arith.addf %14, %13 : vector<32x256xf32>
    %16 = arith.mulf %10, %15 : vector<32x256xf32>
    %17 = arith.truncf %16 : vector<32x256xf32> to vector<32x256xbf16>
    %c0_9 = arith.constant 0 : index
    %c0_10 = arith.constant 0 : index
    %18 = vector.load %arg7[%c0_9, %c0_10] : memref<32x256xbf16, #tpu.memory_space<vmem>>, vector<32x256xbf16>
    tpu.vector_store %arg7[%c0_9, %c0_10], %17 {strides = array<i32>} : memref<32x256xbf16, #tpu.memory_space<vmem>>, vector<32x256xbf16>,
    return
  }
  func.func @transform_0(%arg0: i32, %arg1: i32) -> (i32, i32) {
    %c0_i32 = arith.constant 0 : i32
    %c0_i32_0 = arith.constant 0 : i32
    return %arg0, %c0_i32 : i32, i32
  }
  func.func @transform_1(%arg0: i32, %arg1: i32) -> (i32, i32) {
    %c0_i32 = arith.constant 0 : i32
    %c0_i32_0 = arith.constant 0 : i32
    %c0_i32_1 = arith.constant 0 : i32
    return %c0_i32, %c0_i32_0 : i32, i32
  }
  func.func @transform_2(%arg0: i32, %arg1: i32) -> (i32, i32) {
    %c0_i32 = arith.constant 0 : i32
    %c0_i32_0 = arith.constant 0 : i32
    %c0_i32_1 = arith.constant 0 : i32
    return %c0_i32, %c0_i32_0 : i32, i32
  }
  func.func @transform_3(%arg0: i32, %arg1: i32) -> (i32, i32) {
    %c0_i32 = arith.constant 0 : i32
    %c0_i32_0 = arith.constant 0 : i32
    return %c0_i32, %arg1 : i32, i32
  }
  func.func @transform_4(%arg0: i32, %arg1: i32) -> (i32, i32) {
    %c0_i32 = arith.constant 0 : i32
    %c0_i32_0 = arith.constant 0 : i32
    return %c0_i32, %arg1 : i32, i32
  }
  func.func @transform_5(%arg0: i32, %arg1: i32) -> (i32, i32) {
    %c0_i32 = arith.constant 0 : i32
    return %arg0, %arg1 : i32, i32
  }
}

module attributes {stable_mosaic.version = 11 : i64} {
  func.func @_linear_res_kernel(%arg0: i32, %arg1: i32, %arg2: memref<32x3072xbf16, #tpu.memory_space<vmem>>, %arg3: memref<3072x256xbf16, #tpu.memory_space<vmem>>, %arg4: memref<1x256xf32, #tpu.memory_space<vmem>>, %arg5: memref<32x256xf32, #tpu.memory_space<vmem>>, %arg6: memref<1x256xf32, #tpu.memory_space<vmem>>, %arg7: memref<32x256xf32, #tpu.memory_space<vmem>>) attributes {dimension_semantics = [#tpu.dimension_semantics<parallel>, #tpu.dimension_semantics<parallel>], iteration_bounds = array<i64: 1, 3>, scalar_prefetch = 0 : i64, scratch_operands = 0 : i64, tpu.core_type = #tpu.core_type<tc>, window_params = [{transform_indices = @transform_0, window_bounds = array<i64: 32, 3072>}, {transform_indices = @transform_1, window_bounds = array<i64: 3072, 256>}, {transform_indices = @transform_2, window_bounds = array<i64: 1, 256>}, {transform_indices = @transform_3, window_bounds = array<i64: 32, 256>}, {transform_indices = @transform_4, window_bounds = array<i64: 1, 256>}, {transform_indices = @transform_5, window_bounds = array<i64: 32, 256>}]} {
    %c0 = arith.constant 0 : index
    %c0_0 = arith.constant 0 : index
    %0 = vector.load %arg2[%c0, %c0_0] : memref<32x3072xbf16, #tpu.memory_space<vmem>>, vector<32x3072xbf16>
    %c0_1 = arith.constant 0 : index
    %c0_2 = arith.constant 0 : index
    %1 = vector.load %arg3[%c0_1, %c0_2] : memref<3072x256xbf16, #tpu.memory_space<vmem>>, vector<3072x256xbf16>
    %cst = arith.constant dense<0.000000e+00> : vector<32x256xf32>
    %2 = tpu.matmul %0, %1, %cst {dimension_numbers = #tpu.dot_dimension_numbers<[1], [0], [0], [1], [0, 0, 1, 1], [], []>} : vector<32x3072xbf16>, vector<3072x256xbf16>, vector<32x256xf32> -> vector<32x256xf32>
    %c0_3 = arith.constant 0 : index
    %c0_4 = arith.constant 0 : index
    %3 = vector.load %arg4[%c0_3, %c0_4] : memref<1x256xf32, #tpu.memory_space<vmem>>, vector<1x256xf32>
    %4 = vector.broadcast %3 : vector<1x256xf32> to vector<32x256xf32>
    %5 = arith.addf %2, %4 : vector<32x256xf32>
    %c0_5 = arith.constant 0 : index
    %c0_6 = arith.constant 0 : index
    %6 = vector.load %arg5[%c0_5, %c0_6] : memref<32x256xf32, #tpu.memory_space<vmem>>, vector<32x256xf32>
    %c0_7 = arith.constant 0 : index
    %c0_8 = arith.constant 0 : index
    %7 = vector.load %arg6[%c0_7, %c0_8] : memref<1x256xf32, #tpu.memory_space<vmem>>, vector<1x256xf32>
    %8 = vector.broadcast %7 : vector<1x256xf32> to vector<32x256xf32>
    %9 = arith.mulf %8, %5 : vector<32x256xf32>
    %10 = arith.addf %6, %9 : vector<32x256xf32>
    %c0_9 = arith.constant 0 : index
    %c0_10 = arith.constant 0 : index
    %11 = vector.load %arg7[%c0_9, %c0_10] : memref<32x256xf32, #tpu.memory_space<vmem>>, vector<32x256xf32>
    tpu.vector_store %arg7[%c0_9, %c0_10], %10 {strides = array<i32>} : memref<32x256xf32, #tpu.memory_space<vmem>>, vector<32x256xf32>,
    return
  }
  func.func @transform_0(%arg0: i32, %arg1: i32) -> (i32, i32) {
    %c0_i32 = arith.constant 0 : i32
    %c0_i32_0 = arith.constant 0 : i32
    return %arg0, %c0_i32 : i32, i32
  }
  func.func @transform_1(%arg0: i32, %arg1: i32) -> (i32, i32) {
    %c0_i32 = arith.constant 0 : i32
    %c0_i32_0 = arith.constant 0 : i32
    return %c0_i32, %arg1 : i32, i32
  }
  func.func @transform_2(%arg0: i32, %arg1: i32) -> (i32, i32) {
    %c0_i32 = arith.constant 0 : i32
    %c0_i32_0 = arith.constant 0 : i32
    return %c0_i32, %arg1 : i32, i32
  }
  func.func @transform_3(%arg0: i32, %arg1: i32) -> (i32, i32) {
    %c0_i32 = arith.constant 0 : i32
    return %arg0, %arg1 : i32, i32
  }
  func.func @transform_4(%arg0: i32, %arg1: i32) -> (i32, i32) {
    %c0_i32 = arith.constant 0 : i32
    %c0_i32_0 = arith.constant 0 : i32
    return %c0_i32, %arg1 : i32, i32
  }
  func.func @transform_5(%arg0: i32, %arg1: i32) -> (i32, i32) {
    %c0_i32 = arith.constant 0 : i32
    return %arg0, %arg1 : i32, i32
  }
}

module attributes {stable_mosaic.version = 11 : i64} {
  func.func @_ln_linear_kernel(%arg0: i32, %arg1: i32, %arg2: memref<32x768xf32, #tpu.memory_space<vmem>>, %arg3: memref<1x768xf32, #tpu.memory_space<vmem>>, %arg4: memref<1x768xf32, #tpu.memory_space<vmem>>, %arg5: memref<768x256xbf16, #tpu.memory_space<vmem>>, %arg6: memref<1x256xf32, #tpu.memory_space<vmem>>, %arg7: memref<32x256xf32, #tpu.memory_space<vmem>>, %arg8: memref<32x768xbf16, #tpu.memory_space<vmem>>) attributes {dimension_semantics = [#tpu.dimension_semantics<parallel>, #tpu.dimension_semantics<arbitrary>], iteration_bounds = array<i64: 1, 3>, scalar_prefetch = 0 : i64, scratch_operands = 1 : i64, tpu.core_type = #tpu.core_type<tc>, window_params = [{transform_indices = @transform_0, window_bounds = array<i64: 32, 768>}, {pipeline_mode = #tpu.pipeline_mode<synchronous>, transform_indices = @transform_1, window_bounds = array<i64: 1, 768>}, {pipeline_mode = #tpu.pipeline_mode<synchronous>, transform_indices = @transform_2, window_bounds = array<i64: 1, 768>}, {transform_indices = @transform_3, window_bounds = array<i64: 768, 256>}, {transform_indices = @transform_4, window_bounds = array<i64: 1, 256>}, {transform_indices = @transform_5, window_bounds = array<i64: 32, 256>}]} {
    %c0_i32 = arith.constant 0 : i32
    %0 = arith.cmpi eq, %arg1, %c0_i32 : i32
    %1 = arith.extui %0 : i1 to i32
    %c0_i32_0 = arith.constant 0 : i32
    %2 = arith.cmpi ne, %1, %c0_i32_0 : i32
    scf.if %2 {
      %c0_8 = arith.constant 0 : index
      %c0_9 = arith.constant 0 : index
      %10 = vector.load %arg2[%c0_8, %c0_9] : memref<32x768xf32, #tpu.memory_space<vmem>>, vector<32x768xf32>
      %cst_10 = arith.constant dense<0.000000e+00> : vector<32xf32>
      %11 = vector.multi_reduction <add>, %10, %cst_10 [1] : vector<32x768xf32> to vector<32xf32>
      %12 = vector.shape_cast %11 : vector<32xf32> to vector<32x1xf32>
      %cst_11 = arith.constant 7.680000e+02 : f32
      %13 = vector.broadcast %cst_11 : f32 to vector<32x1xf32>
      %14 = arith.divf %12, %13 : vector<32x1xf32>
      %15 = vector.broadcast %14 : vector<32x1xf32> to vector<32x768xf32>
      %16 = arith.subf %10, %15 : vector<32x768xf32>
      %17 = arith.mulf %16, %16 : vector<32x768xf32>
      %cst_12 = arith.constant dense<0.000000e+00> : vector<32xf32>
      %18 = vector.multi_reduction <add>, %17, %cst_12 [1] : vector<32x768xf32> to vector<32xf32>
      %19 = vector.shape_cast %18 : vector<32xf32> to vector<32x1xf32>
      %cst_13 = arith.constant 7.680000e+02 : f32
      %20 = vector.broadcast %cst_13 : f32 to vector<32x1xf32>
      %21 = arith.divf %19, %20 : vector<32x1xf32>
      %cst_14 = arith.constant 9.99999997E-7 : f32
      %22 = vector.broadcast %cst_14 : f32 to vector<32x1xf32>
      %23 = arith.addf %21, %22 : vector<32x1xf32>
      %24 = math.rsqrt %23 : vector<32x1xf32>
      %25 = vector.broadcast %24 : vector<32x1xf32> to vector<32x768xf32>
      %26 = arith.mulf %16, %25 : vector<32x768xf32>
      %c0_15 = arith.constant 0 : index
      %c0_16 = arith.constant 0 : index
      %27 = vector.load %arg3[%c0_15, %c0_16] : memref<1x768xf32, #tpu.memory_space<vmem>>, vector<1x768xf32>
      %28 = vector.broadcast %27 : vector<1x768xf32> to vector<32x768xf32>
      %29 = arith.mulf %26, %28 : vector<32x768xf32>
      %c0_17 = arith.constant 0 : index
      %c0_18 = arith.constant 0 : index
      %30 = vector.load %arg4[%c0_17, %c0_18] : memref<1x768xf32, #tpu.memory_space<vmem>>, vector<1x768xf32>
      %31 = vector.broadcast %30 : vector<1x768xf32> to vector<32x768xf32>
      %32 = arith.addf %29, %31 : vector<32x768xf32>
      %33 = arith.truncf %32 : vector<32x768xf32> to vector<32x768xbf16>
      %c0_19 = arith.constant 0 : index
      %c0_20 = arith.constant 0 : index
      %34 = vector.load %arg8[%c0_19, %c0_20] : memref<32x768xbf16, #tpu.memory_space<vmem>>, vector<32x768xbf16>
      tpu.vector_store %arg8[%c0_19, %c0_20], %33 {strides = array<i32>} : memref<32x768xbf16, #tpu.memory_space<vmem>>, vector<32x768xbf16>,
    } else {
    }
    %c0 = arith.constant 0 : index
    %c0_1 = arith.constant 0 : index
    %3 = vector.load %arg8[%c0, %c0_1] : memref<32x768xbf16, #tpu.memory_space<vmem>>, vector<32x768xbf16>
    %c0_2 = arith.constant 0 : index
    %c0_3 = arith.constant 0 : index
    %4 = vector.load %arg5[%c0_2, %c0_3] : memref<768x256xbf16, #tpu.memory_space<vmem>>, vector<768x256xbf16>
    %cst = arith.constant dense<0.000000e+00> : vector<32x256xf32>
    %5 = tpu.matmul %3, %4, %cst {dimension_numbers = #tpu.dot_dimension_numbers<[1], [0], [0], [1], [0, 0, 1, 1], [], []>} : vector<32x768xbf16>, vector<768x256xbf16>, vector<32x256xf32> -> vector<32x256xf32>
    %c0_4 = arith.constant 0 : index
    %c0_5 = arith.constant 0 : index
    %6 = vector.load %arg6[%c0_4, %c0_5] : memref<1x256xf32, #tpu.memory_space<vmem>>, vector<1x256xf32>
    %7 = vector.broadcast %6 : vector<1x256xf32> to vector<32x256xf32>
    %8 = arith.addf %5, %7 : vector<32x256xf32>
    %c0_6 = arith.constant 0 : index
    %c0_7 = arith.constant 0 : index
    %9 = vector.load %arg7[%c0_6, %c0_7] : memref<32x256xf32, #tpu.memory_space<vmem>>, vector<32x256xf32>
    tpu.vector_store %arg7[%c0_6, %c0_7], %8 {strides = array<i32>} : memref<32x256xf32, #tpu.memory_space<vmem>>, vector<32x256xf32>,
    return
  }
  func.func @transform_0(%arg0: i32, %arg1: i32) -> (i32, i32) {
    %c0_i32 = arith.constant 0 : i32
    %c0_i32_0 = arith.constant 0 : i32
    return %arg0, %c0_i32 : i32, i32
  }
  func.func @transform_1(%arg0: i32, %arg1: i32) -> (i32, i32) {
    %c0_i32 = arith.constant 0 : i32
    %c0_i32_0 = arith.constant 0 : i32
    %c0_i32_1 = arith.constant 0 : i32
    return %c0_i32, %c0_i32_0 : i32, i32
  }
  func.func @transform_2(%arg0: i32, %arg1: i32) -> (i32, i32) {
    %c0_i32 = arith.constant 0 : i32
    %c0_i32_0 = arith.constant 0 : i32
    %c0_i32_1 = arith.constant 0 : i32
    return %c0_i32, %c0_i32_0 : i32, i32
  }
  func.func @transform_3(%arg0: i32, %arg1: i32) -> (i32, i32) {
    %c0_i32 = arith.constant 0 : i32
    %c0_i32_0 = arith.constant 0 : i32
    return %c0_i32, %arg1 : i32, i32
  }
  func.func @transform_4(%arg0: i32, %arg1: i32) -> (i32, i32) {
    %c0_i32 = arith.constant 0 : i32
    %c0_i32_0 = arith.constant 0 : i32
    return %c0_i32, %arg1 : i32, i32
  }
  func.func @transform_5(%arg0: i32, %arg1: i32) -> (i32, i32) {
    %c0_i32 = arith.constant 0 : i32
    return %arg0, %arg1 : i32, i32
  }
}

</mosaic_0001>

<bundles_post_ra>
// kernel: dino_forward.7
= control target key start
LH: loop header
LB: loop body
LE: loop exit
PB: predicated region body
PF: predicated region fallthrough
CT: control target
= control target key end

     0   :  { %8 = vsyncpa [#allocation3], 0  ;;  %s1860_s0 = inlined_call_operand.vmem [shape: f32[8,640], index: 0, kind: input, shape index: {}]   ;;  %s1861_s1 = inlined_call_operand.hbm [shape: bf16[640,768], index: 1, kind: input, shape index: {}]   ;;  %s1862_s2 = inlined_call_operand.vmem [shape: f32[1,768], index: 2, kind: input, shape index: {}]   ;;  %s1863_s3 = inlined_call_operand.vmem [shape: f32[8,768], index: 3, kind: output, shape index: {}]  }
   0x1   :  { %10 = vsyncpa [#allocation3 + $0x1], 0  ;;  %s1579_s12 = smov 0   ;;  %s1581_s13 = smov 0  }
   0x2   :  { %s1583_s14 = smov 0   ;;  %s1585_s15 = smov 0  }
   0x3   :  { %s1587_s16 = smov 0   ;;  %s1589_s17 = smov 0  }
   0x4 LB: > { %s1000_s18 = sadd.s32 4294967295, %s1554_s17   ;;  %s25_s19 = sadd.s32 1, %s1550_s16  ;;  %s1554_s17 = sphi %s1589_s17, %s16_s17   ;;  %s1550_s16 = sphi %s1587_s16, %s1869_s16   ;;  %s1546_s15 = sphi %s1585_s15, %s1868_s15   ;;  %s1542_s14 = sphi %s1583_s14, %s1867_s14   ;;  %s1538_s13 = sphi %s1581_s13, %s1866_s13   ;;  %s1534_s12 = sphi %s1579_s12, %s1865_s12  }
   0x5   : > { %p26_p0 = scmp.ge.s32.totalorder %s25_s19, 3  ;;  %s61_s20 = sadd.s32 1, %s1542_s14 }
   0x6   : > { %p68_p1 = scmp.ne.s32.totalorder %s1542_s14, %s1538_s13  ;;  %p69_p2 = scmp.eq.s32.totalorder %s1554_s17, 0 }
   0x7   : > { %s1871_s19 = smov (%p26_p0, %s25_s19), 0  ;;  %p74_p4 = scmp.ne.s32.totalorder %s1538_s13, %s1534_s12 }
   0x8   : > { %p70_p3 = por %p69_p2, %p68_p1  ;;  %s58_s21 = ssub.s32 %s1550_s16, %s1871_s19 }
   0x9   : > { %p75_p5 = scmp.eq.s32.totalorder %s1000_s18, 0  ;;  %p59_p6 = scmp.eq.s32.totalorder %s58_s21, 0 }
   0xa   : > { %p1422_p8 = scmp.lt.s32.totalorder %s1554_s17, 3  ;;  %s160_s24 = sand.u32 1, %s1542_s14  }
   0xb   : > { %p1618_p7 = por %p75_p5, %p74_p4  ;;  %s1333_s25 = sshll.u32 %s1550_s16, 3 }
   0xc   : > { %s1624_s23 = scalar_select %p59_p6, %s1542_s14, %s61_s20  }
   0xd   : > { %s1414_s26 = smul.u32 640, %s160_s24  ;;  %s169_s29 = scalar_lea.hbm %s1861_s1, %s1333_s25 }
   0xe   : > { %p1419_p9 = pnand %p1422_p8, %p70_p3  ;;  %s170_s30 = sshll.u32 %s169_s29, 4  ;;  %s171_s30 = int_to_ptr.hbm [resolvable:$true] %s170_s30 }
   0xf   : > { %s164_s4 = scalar_lea.vmem [#allocation2], %s1414_s26  ;;  %p1007_p10 = scmp.ge.s32.totalorder %s1554_s17, 1 }
  0x10   : > { %s172_s5 = sshll.u32 %s164_s4, 4  ;;  %s161_s6 = scalar_lea.sflag [#allocation3], %s160_s24  ;;  %s173_s5 = int_to_ptr.vmem [resolvable:$true] %s172_s5 }
  0x11   : > { %s1556_s7 = smov 384   ;;  %s1557_s8 = smov 128  }
  0x12   : > { %s1558_s9 = smov 8   ;;  %p188_p11 = scmp.lt.s32.totalorder %s1554_s17, 4 }
  0x13   : > { %1421 = dma.hbm_to_vmem [thread:$0]  (!%p1419_p9), %s171_s30, 10240, %s173_s5, %s161_s6, %s1556_s7, %s1557_s8, %s1558_s9  }
  0x14   : > { %p189_p12 = pnand %p1007_p10, %p188_p11 }
  0x15   : > { %s194_s10 = sand.u32 (!%p189_p12), 1, %s1538_s13  }
  0x16   : > { %192 = sbr.rel (%p189_p12) target bundleno = 261 (0x105), region = 32  ;;  %s195_s12 = scalar_lea.sflag (!%p189_p12), [#allocation3], %s194_s10 }
  0x17   : > { %s1415_s11 = smul.u32 (!%p189_p12), 640, %s194_s10 }
  0x19   : > { %s1634_s18 = scalar_lea.vmem (!%p189_p12), [#allocation2], %s1415_s11 }
  0x1b   : > { %1529 = dma.done.wait (%p1618_p7), %s195_s12, 10240  }
  0x1c   : > { %1531 = vsyncadd (%p1618_p7), %s195_s12, 4294957056  ;;  %v1069_v0 = vld [vmem:[%s1634_s18 + $0x70] sm:$0xf]  ;;  %v1349_v1 = vld [vmem:[%s1634_s18 + $0x74] sm:$0xf0]  ;;  %s1008_s4 = sshll.u32 %s1546_s15, 1 }
  0x1d   : > { %v1133_v2 = vld [vmem:[%s1634_s18 + $0xf0] sm:$0xf]  ;;  %v1070_v3 = vor.u32 %v1349_v1, %v1069_v0  ;;  %v1365_v4 = vld [vmem:[%s1634_s18 + $0xf4] sm:$0xf0]  ;;  %v1061_v5 = vld [vmem:[%s1634_s18 + $0x60] sm:$0xf] }
  0x1e   : > { %v1347_v6 = vld [vmem:[%s1634_s18 + $0x64] sm:$0xf0]  ;;  %v1134_v7 = vor.u32 %v1365_v4, %v1133_v2  ;;  %v1125_v8 = vld [vmem:[%s1634_s18 + $0xe0] sm:$0xf]  ;;  %v1053_v11 = vld [vmem:[%s1634_s18 + $0x50] sm:$0xf] }
  0x1f   : > { %v1363_v9 = vld [vmem:[%s1634_s18 + $0xe4] sm:$0xf0]  ;;  %752 = vmatpush.bf16.msra.mxu0 %v1070_v3  ;;  %v1062_v10 = vor.u32 %v1347_v6, %v1061_v5  ;;  %v1345_v12 = vld [vmem:[%s1634_s18 + $0x54] sm:$0xf0]  ;;  %v1197_v14 = vld [vmem:[%s1634_s18 + $0x170] sm:$0xf] }
  0x20   : > { %765 = vmatpush.bf16.msra.mxu1 %v1134_v7  ;;  %v1126_v13 = vor.u32 %v1363_v9, %v1125_v8  ;;  %v1381_v15 = vld [vmem:[%s1634_s18 + $0x174] sm:$0xf0]  ;;  %v1261_v16 = vld [vmem:[%s1634_s18 + $0x1f0] sm:$0xf]  ;;  %v1189_v22 = vld [vmem:[%s1634_s18 + $0x160] sm:$0xf]  ;;  %v1054_v23 = vor.u32 %v1345_v12, %v1053_v11 }
  0x21   : > { %v1117_v17 = vld [vmem:[%s1634_s18 + $0xd0] sm:$0xf]  ;;  %v1361_v18 = vld [vmem:[%s1634_s18 + $0xd4] sm:$0xf0]  ;;  %v1198_v19 = vor.u32 %v1381_v15, %v1197_v14  ;;  %v1379_v24 = vld [vmem:[%s1634_s18 + $0x164] sm:$0xf0] }
  0x22   : > { %v1397_v20 = vld [vmem:[%s1634_s18 + $0x1f4] sm:$0xf0]  ;;  %v1253_v25 = vld [vmem:[%s1634_s18 + $0x1e0] sm:$0xf]  ;;  %v1395_v26 = vld [vmem:[%s1634_s18 + $0x1e4] sm:$0xf0]  ;;  %v1118_v27 = vor.u32 %v1361_v18, %v1117_v17  ;;  %v1190_v31 = vor.u32 %v1379_v24, %v1189_v22 }
  0x23   : > { %v1262_v21 = vor.u32 %v1397_v20, %v1261_v16  ;;  %753 = vmatpush.bf16.msra.mxu0 %v1062_v10  ;;  %778 = vmatpush.bf16.msra.mxu2 %v1198_v19  ;;  %v1045_v28 = vld [vmem:[%s1634_s18 + $0x40] sm:$0xf]  ;;  %v1343_v29 = vld [vmem:[%s1634_s18 + $0x44] sm:$0xf0]  ;;  %v1254_v32 = vor.u32 %v1395_v26, %v1253_v25  ;;  %v1181_v34 = vld [vmem:[%s1634_s18 + $0x150] sm:$0xf] }
  0x24   : > { %766 = vmatpush.bf16.msra.mxu1 %v1126_v13  ;;  %v1109_v30 = vld [vmem:[%s1634_s18 + $0xc0] sm:$0xf]  ;;  %v1359_v33 = vld [vmem:[%s1634_s18 + $0xc4] sm:$0xf0]  ;;  %v1377_v35 = vld [vmem:[%s1634_s18 + $0x154] sm:$0xf0]  ;;  %v1046_v38 = vor.u32 %v1343_v29, %v1045_v28 }
  0x25   : > { %791 = vmatpush.bf16.msra.mxu3 %v1262_v21  ;;  %v1245_v36 = vld [vmem:[%s1634_s18 + $0x1d0] sm:$0xf]  ;;  %v1393_v37 = vld [vmem:[%s1634_s18 + $0x1d4] sm:$0xf0]  ;;  %v1182_v41 = vor.u32 %v1377_v35, %v1181_v34  ;;  %v1110_v42 = vor.u32 %v1359_v33, %v1109_v30  ;;  %v1173_v45 = vld [vmem:[%s1634_s18 + $0x140] sm:$0xf] }
  0x26   : > { %v1037_v39 = vld [vmem:[%s1634_s18 + $0x30] sm:$0xf]  ;;  %v1341_v40 = vld [vmem:[%s1634_s18 + $0x34] sm:$0xf0]  ;;  %v1246_v44 = vor.u32 %v1393_v37, %v1245_v36  ;;  %v1375_v46 = vld [vmem:[%s1634_s18 + $0x144] sm:$0xf0] }
  0x27   : > { %754 = vmatpush.bf16.msra.mxu0 %v1054_v23  ;;  %779 = vmatpush.bf16.msra.mxu2 %v1190_v31  ;;  %v1101_v43 = vld [vmem:[%s1634_s18 + $0xb0] sm:$0xf]  ;;  %v1357_v47 = vld [vmem:[%s1634_s18 + $0xb4] sm:$0xf0]  ;;  %v1237_v48 = vld [vmem:[%s1634_s18 + $0x1c0] sm:$0xf]  ;;  %v1038_v50 = vor.u32 %v1341_v40, %v1037_v39  ;;  %v1174_v53 = vor.u32 %v1375_v46, %v1173_v45 }
  0x28   : > { %767 = vmatpush.bf16.msra.mxu1 %v1118_v27  ;;  %v1391_v49 = vld [vmem:[%s1634_s18 + $0x1c4] sm:$0xf0]  ;;  %v1029_v51 = vld [vmem:[%s1634_s18 + $0x20] sm:$0xf]  ;;  %v1102_v54 = vor.u32 %v1357_v47, %v1101_v43  ;;  %v1165_v57 = vld [vmem:[%s1634_s18 + $0x130] sm:$0xf] }
  0x29   : > { %792 = vmatpush.bf16.msra.mxu3 %v1254_v32  ;;  %v1339_v52 = vld [vmem:[%s1634_s18 + $0x24] sm:$0xf0]  ;;  %v1093_v55 = vld [vmem:[%s1634_s18 + $0xa0] sm:$0xf]  ;;  %v1238_v56 = vor.u32 %v1391_v49, %v1237_v48  ;;  %v1373_v58 = vld [vmem:[%s1634_s18 + $0x134] sm:$0xf0] }
  0x2a   : > { %v1355_v59 = vld [vmem:[%s1634_s18 + $0xa4] sm:$0xf0]  ;;  %v1229_v60 = vld [vmem:[%s1634_s18 + $0x1b0] sm:$0xf]  ;;  %v1389_v61 = vld [vmem:[%s1634_s18 + $0x1b4] sm:$0xf0]  ;;  %v1030_v62 = vor.u32 %v1339_v52, %v1029_v51  ;;  %v1166_v1 = vor.u32 %v1373_v58, %v1165_v57 }
  0x2b   : > { %755 = vmatpush.bf16.msra.mxu0 %v1046_v38  ;;  %780 = vmatpush.bf16.msra.mxu2 %v1182_v41  ;;  %v1021_v63 = vld [vmem:[%s1634_s18 + $0x10] sm:$0xf]  ;;  %v1337_v0 = vld [vmem:[%s1634_s18 + $0x14] sm:$0xf0]  ;;  %v1094_v2 = vor.u32 %v1355_v59, %v1093_v55  ;;  %v1230_v4 = vor.u32 %v1389_v61, %v1229_v60  ;;  %v1157_v5 = vld [vmem:[%s1634_s18 + $0x120] sm:$0xf] }
  0x2c   : > { %768 = vmatpush.bf16.msra.mxu1 %v1110_v42  ;;  %v1085_v3 = vld [vmem:[%s1634_s18 + $0x90] sm:$0xf]  ;;  %v1371_v6 = vld [vmem:[%s1634_s18 + $0x124] sm:$0xf0]  ;;  %v1353_v7 = vld [vmem:[%s1634_s18 + $0x94] sm:$0xf0]  ;;  %v1022_v10 = vor.u32 %v1337_v0, %v1021_v63 }
  0x2d   : > { %793 = vmatpush.bf16.msra.mxu3 %v1246_v44  ;;  %v1221_v8 = vld [vmem:[%s1634_s18 + $0x1a0] sm:$0xf]  ;;  %v1387_v9 = vld [vmem:[%s1634_s18 + $0x1a4] sm:$0xf0]  ;;  %v1158_v14 = vor.u32 %v1371_v6, %v1157_v5  ;;  %v1086_v15 = vor.u32 %v1353_v7, %v1085_v3  ;;  %v1149_v18 = vld [vmem:[%s1634_s18 + $0x110] sm:$0xf] }
  0x2e   : > { %v1013_v11 = vld [vmem:[%s1634_s18] sm:$0xf]  ;;  %v1335_v12 = vld [vmem:[%s1634_s18 + $0x4] sm:$0xf0]  ;;  %v1222_v17 = vor.u32 %v1387_v9, %v1221_v8  ;;  %v1369_v19 = vld [vmem:[%s1634_s18 + $0x114] sm:$0xf0] }
  0x2f   : > { %756 = vmatpush.bf16.msra.mxu0 %v1038_v50  ;;  %781 = vmatpush.bf16.msra.mxu2 %v1174_v53  ;;  %v1077_v13 = vld [vmem:[%s1634_s18 + $0x80] sm:$0xf]  ;;  %v1351_v16 = vld [vmem:[%s1634_s18 + $0x84] sm:$0xf0]  ;;  %v1325_v20 = vld [vmem:[%s1634_s18 + $0x270] sm:$0xf]  ;;  %v1014_v26 = vor.u32 %v1335_v12, %v1013_v11  ;;  %v1150_v27 = vor.u32 %v1369_v19, %v1149_v18 }
  0x30   : > { %769 = vmatpush.bf16.msra.mxu1 %v1102_v54  ;;  %v1413_v21 = vld [vmem:[%s1634_s18 + $0x274] sm:$0xf0]  ;;  %v1348_v22 = vld [vmem:[%s1634_s18 + $0x74] sm:$0xf]  ;;  %v1071_v23 = vld [vmem:[%s1634_s18 + $0x78] sm:$0xf0]  ;;  %v1078_v29 = vor.u32 %v1351_v16, %v1077_v13 }
  0x31   : > { %794 = vmatpush.bf16.msra.mxu3 %v1238_v56  ;;  %v1213_v24 = vld [vmem:[%s1634_s18 + $0x190] sm:$0xf]  ;;  %v1385_v25 = vld [vmem:[%s1634_s18 + $0x194] sm:$0xf0]  ;;  %v1317_v28 = vld [vmem:[%s1634_s18 + $0x260] sm:$0xf]  ;;  %v1326_v30 = vor.u32 %v1413_v21, %v1325_v20  ;;  %v1074_v34 = vor.u32 %v1348_v22, %v1071_v23 }
  0x32   : > { %v1411_v31 = vld [vmem:[%s1634_s18 + $0x264] sm:$0xf0]  ;;  %v1141_v32 = vld [vmem:[%s1634_s18 + $0x100] sm:$0xf]  ;;  %v1346_v35 = vld [vmem:[%s1634_s18 + $0x64] sm:$0xf]  ;;  %v1214_v36 = vor.u32 %v1385_v25, %v1213_v24 }
  0x33   : > { %757 = vmatpush.bf16.msra.mxu0 %v1030_v62  ;;  %782 = vmatpush.bf16.msra.mxu2 %v1166_v1  ;;  %v1367_v33 = vld [vmem:[%s1634_s18 + $0x104] sm:$0xf0]  ;;  %v1364_v37 = vld [vmem:[%s1634_s18 + $0xf4] sm:$0xf]  ;;  %v1135_v38 = vld [vmem:[%s1634_s18 + $0xf8] sm:$0xf0]  ;;  %v1318_v46 = vor.u32 %v1411_v31, %v1317_v28 }
  0x34   : > { %770 = vmatpush.bf16.msra.mxu1 %v1094_v2  ;;  %v1063_v39 = vld [vmem:[%s1634_s18 + $0x68] sm:$0xf0]  ;;  %v1205_v40 = vld [vmem:[%s1634_s18 + $0x180] sm:$0xf]  ;;  %v1383_v41 = vld [vmem:[%s1634_s18 + $0x184] sm:$0xf0]  ;;  %v1142_v42 = vor.u32 %v1367_v33, %v1141_v32  ;;  %v1138_v48 = vor.u32 %v1364_v37, %v1135_v38 }
  0x35   : > { %795 = vmatpush.bf16.msra.mxu3 %v1230_v4  ;;  %v1380_v43 = vld [vmem:[%s1634_s18 + $0x174] sm:$0xf]  ;;  %v1199_v44 = vld [vmem:[%s1634_s18 + $0x178] sm:$0xf0]  ;;  %v256_v45 = vld [vmem:[%s1860_s0] sm:$0xff]  ;;  %v1066_v51 = vor.u32 %v1346_v35, %v1063_v39  ;;  %v1206_v53 = vor.u32 %v1383_v41, %v1205_v40  ;;  %p242_p13 = scmp.lt.s32.totalorder %s1008_s4, 5 }
  0x36   : > { %v1309_v47 = vld [vmem:[%s1634_s18 + $0x250] sm:$0xf]  ;;  %v1720_v49 = vpack.c.bf16 %v256_v45, %v256_v45  ;;  %v257_v50 = vld [vmem:[%s1860_s0 + $0x8] sm:$0xff]  ;;  %v1409_v52 = vld [vmem:[%s1634_s18 + $0x254] sm:$0xf0]  ;;  %v1202_v59 = vor.u32 %v1380_v43, %v1199_v44 }
  0x37   : > { %758 = vmatpush.bf16.msra.mxu0 %v1022_v10  ;;  %783 = vmatpush.bf16.msra.mxu2 %v1158_v14  ;;  %v1362_v54 = vld [vmem:[%s1634_s18 + $0xe4] sm:$0xf]  ;;  %v1127_v55 = vld [vmem:[%s1634_s18 + $0xe8] sm:$0xf0]  ;;  %v1728_v56 = vpack.c.bf16 %v257_v50, %v257_v50  ;;  %v1344_v57 = vld [vmem:[%s1634_s18 + $0x54] sm:$0xf]  ;;  %v1310_v63 = vor.u32 %v1409_v52, %v1309_v47 }
  0x38   : > { %771 = vmatpush.bf16.msra.mxu1 %v1086_v15  ;;  %v1055_v58 = vld [vmem:[%s1634_s18 + $0x58] sm:$0xf0]  ;;  %v1378_v60 = vld [vmem:[%s1634_s18 + $0x164] sm:$0xf]  ;;  %v1191_v61 = vld [vmem:[%s1634_s18 + $0x168] sm:$0xf0]  ;;  %v1130_v2 = vor.u32 %v1362_v54, %v1127_v55 }
  0x39   : > { %796 = vmatpush.bf16.msra.mxu3 %v1222_v17  ;;  %v258_v62 = vld [vmem:[%s1860_s0 + $0x10] sm:$0xff]  ;;  %v1301_v0 = vld [vmem:[%s1634_s18 + $0x240] sm:$0xf]  ;;  %v1407_v1 = vld [vmem:[%s1634_s18 + $0x244] sm:$0xf0]  ;;  %v1058_v4 = vor.u32 %v1344_v57, %v1055_v58  ;;  %v1194_v10 = vor.u32 %v1378_v60, %v1191_v61  ;;  %s1873_s4 = smov (!%p242_p13, %s1008_s4), 5 }
  0x3a   : > { %v1741_v3 = vpack.c.bf16 %v258_v62, %v258_v62  ;;  %v1360_v5 = vld [vmem:[%s1634_s18 + $0xd4] sm:$0xf]  ;;  %v1119_v6 = vld [vmem:[%s1634_s18 + $0xd8] sm:$0xf0]  ;;  %v1342_v8 = vld [vmem:[%s1634_s18 + $0x44] sm:$0xf]  ;;  %v1302_v14 = vor.u32 %v1407_v1, %v1301_v0  ;;  %s244_s7 = scalar_lea.vmem %s1862_s2, %s1873_s4 }
  0x3b   : > { %759 = vmatpush.bf16.msra.mxu0 %v1014_v26  ;;  %784 = vmatpush.bf16.msra.mxu2 %v1150_v27  ;;  %v259_v7 = vld [vmem:[%s1860_s0 + $0x18] sm:$0xff]  ;;  %v1047_v9 = vld [vmem:[%s1634_s18 + $0x48] sm:$0xf0]  ;;  %v1376_v12 = vld [vmem:[%s1634_s18 + $0x154] sm:$0xf]  ;;  %v1122_v16 = vor.u32 %v1360_v5, %v1119_v6  ;;  %s1010_s15 = sshll.u32 %s1873_s4, 3 }
  0x3c   : > { %772 = vmatpush.bf16.msra.mxu1 %v1078_v29  ;;  %v1751_v11 = vpack.c.bf16 %v259_v7, %v259_v7  ;;  %v1183_v13 = vld [vmem:[%s1634_s18 + $0x158] sm:$0xf0]  ;;  %v1293_v15 = vld [vmem:[%s1634_s18 + $0x230] sm:$0xf]  ;;  %v1050_v17 = vor.u32 %v1342_v8, %v1047_v9  ;;  %v1405_v18 = vld [vmem:[%s1634_s18 + $0x234] sm:$0xf0]  ;;  %s254_s10 = scalar_lea.vmem %s1863_s3, %s1010_s15 }
  0x3d   : > { %797 = vmatpush.bf16.msra.mxu3 %v1214_v36  ;;  %v1358_v19 = vld [vmem:[%s1634_s18 + $0xc4] sm:$0xf]  ;;  %v1111_v20 = vld [vmem:[%s1634_s18 + $0xc8] sm:$0xf0]  ;;  %v1340_v21 = vld [vmem:[%s1634_s18 + $0x34] sm:$0xf]  ;;  %v1186_v23 = vor.u32 %v1376_v12, %v1183_v13  ;;  %v1294_v26 = vor.u32 %v1405_v18, %v1293_v15 }
  0x3e   : > { %760 = vmatmul.bf16.vlgmr.msra.gmra.mxu0 %v1720_v49  ;;  %v1039_v22 = vld [vmem:[%s1634_s18 + $0x38] sm:$0xf0]  ;;  %v1374_v24 = vld [vmem:[%s1634_s18 + $0x144] sm:$0xf]  ;;  %v1175_v25 = vld [vmem:[%s1634_s18 + $0x148] sm:$0xf0]  ;;  %v1114_v28 = vor.u32 %v1358_v19, %v1111_v20 }
  0x3f   : > { %804 = vmatpush.bf16.msrb.mxu0 %v1326_v30  ;;  %785 = vmatpush.bf16.msra.mxu2 %v1142_v42  ;;  %v1285_v27 = vld [vmem:[%s1634_s18 + $0x220] sm:$0xf]  ;;  %v1042_v29 = vor.u32 %v1340_v21, %v1039_v22  ;;  %v1403_v30 = vld [vmem:[%s1634_s18 + $0x224] sm:$0xf0]  ;;  %v1356_v31 = vld [vmem:[%s1634_s18 + $0xb4] sm:$0xf]  ;;  %v1178_v35 = vor.u32 %v1374_v24, %v1175_v25 }
  0x40   : > { %817 = vmatpush.bf16.msrb.mxu1 %v1074_v34  ;;  %v1103_v32 = vld [vmem:[%s1634_s18 + $0xb8] sm:$0xf0]  ;;  %v1338_v33 = vld [vmem:[%s1634_s18 + $0x24] sm:$0xf]  ;;  %v1031_v34 = vld [vmem:[%s1634_s18 + $0x28] sm:$0xf0]  ;;  %v1286_v38 = vor.u32 %v1403_v30, %v1285_v27 }
  0x41   : > { %773 = vmatmul.bf16.vlgmr.msra.gmra.mxu1 %v1728_v56  ;;  %798 = vmatpush.bf16.msra.mxu3 %v1206_v53  ;;  %v1372_v36 = vld [vmem:[%s1634_s18 + $0x134] sm:$0xf]  ;;  %v1167_v37 = vld [vmem:[%s1634_s18 + $0x138] sm:$0xf0]  ;;  %v1277_v39 = vld [vmem:[%s1634_s18 + $0x210] sm:$0xf]  ;;  %v1106_v40 = vor.u32 %v1356_v31, %v1103_v32  ;;  %v1034_v41 = vor.u32 %v1338_v33, %v1031_v34 }
  0x42   : > { %786 = vmatmul.bf16.vlgmr.msra.gmra.mxu2 %v1741_v3  ;;  %v1401_v42 = vld [vmem:[%s1634_s18 + $0x214] sm:$0xf0]  ;;  %v1354_v43 = vld [vmem:[%s1634_s18 + $0xa4] sm:$0xf]  ;;  %v1095_v44 = vld [vmem:[%s1634_s18 + $0xa8] sm:$0xf0]  ;;  %v1170_v47 = vor.u32 %v1372_v36, %v1167_v37 }
  0x43   : > { %805 = vmatpush.bf16.msrb.mxu0 %v1318_v46  ;;  %830 = vmatpush.bf16.msrb.mxu2 %v1138_v48  ;;  %v1336_v45 = vld [vmem:[%s1634_s18 + $0x14] sm:$0xf]  ;;  %v1023_v46 = vld [vmem:[%s1634_s18 + $0x18] sm:$0xf0]  ;;  %v1370_v48 = vld [vmem:[%s1634_s18 + $0x124] sm:$0xf]  ;;  %v1098_v55 = vor.u32 %v1354_v43, %v1095_v44 }
  0x44   : > { %818 = vmatpush.bf16.msrb.mxu1 %v1066_v51  ;;  %799 = vmatmul.bf16.vlgmr.msra.gmra.mxu3 %v1751_v11  ;;  %v1159_v50 = vld [vmem:[%s1634_s18 + $0x128] sm:$0xf0]  ;;  %v1278_v51 = vor.u32 %v1401_v42, %v1277_v39  ;;  %v1269_v52 = vld [vmem:[%s1634_s18 + $0x200] sm:$0xf]  ;;  %v1399_v53 = vld [vmem:[%s1634_s18 + $0x204] sm:$0xf0]  ;;  %v1026_v57 = vor.u32 %v1336_v45, %v1023_v46 }
  0x45   : > { %843 = vmatpush.bf16.msrb.mxu3 %v1202_v59  ;;  %v1334_v54 = vld [vmem:[%s1634_s18 + $0x4] sm:$0xf]  ;;  %v1015_v58 = vld [vmem:[%s1634_s18 + $0x8] sm:$0xf0]  ;;  %v1352_v59 = vld [vmem:[%s1634_s18 + $0x94] sm:$0xf]  ;;  %v1162_v0 = vor.u32 %v1370_v48, %v1159_v50  ;;  %v1270_v5 = vor.u32 %v1399_v53, %v1269_v52 }
  0x46   : > { %v1087_v60 = vld [vmem:[%s1634_s18 + $0x98] sm:$0xf0]  ;;  %v1396_v61 = vld [vmem:[%s1634_s18 + $0x1f4] sm:$0xf]  ;;  %v260_v7 = vld [vmem:[%s1860_s0 + $0x20] sm:$0xff]  ;;  %v1018_v8 = vor.u32 %v1334_v54, %v1015_v58 }
  0x47   : > { %806 = vmatpush.bf16.msrb.mxu0 %v1310_v63  ;;  %831 = vmatpush.bf16.msrb.mxu2 %v1130_v2  ;;  %v1263_v62 = vld [vmem:[%s1634_s18 + $0x1f8] sm:$0xf0]  ;;  %v1412_v63 = vld [vmem:[%s1634_s18 + $0x274] sm:$0xf]  ;;  %v1090_v6 = vor.u32 %v1352_v59, %v1087_v60  ;;  %v1079_v12 = vld [vmem:[%s1634_s18 + $0x88] sm:$0xf0]  ;;  %v1801_v19 = vpack.c.bf16 %v260_v7, %v260_v7 }
  0x48   : > { %819 = vmatpush.bf16.msrb.mxu1 %v1058_v4  ;;  %v1327_v1 = vld [vmem:[%s1634_s18 + $0x278] sm:$0xf0]  ;;  %v1368_v2 = vld [vmem:[%s1634_s18 + $0x114] sm:$0xf]  ;;  %v1266_v9 = vor.u32 %v1396_v61, %v1263_v62  ;;  %v1255_v15 = vld [vmem:[%s1634_s18 + $0x1e8] sm:$0xf0] }
  0x49   : > { %844 = vmatpush.bf16.msrb.mxu3 %v1194_v10  ;;  %v1151_v4 = vld [vmem:[%s1634_s18 + $0x118] sm:$0xf0]  ;;  %v1350_v10 = vld [vmem:[%s1634_s18 + $0x84] sm:$0xf]  ;;  %v1330_v13 = vor.u32 %v1412_v63, %v1327_v1  ;;  %v1319_v18 = vld [vmem:[%s1634_s18 + $0x268] sm:$0xf0] }
  0x4a   : > { %v1366_v20 = vld [vmem:[%s1634_s18 + $0x104] sm:$0xf]  ;;  %v1143_v21 = vld [vmem:[%s1634_s18 + $0x108] sm:$0xf0]  ;;  %v1082_v22 = vor.u32 %v1350_v10, %v1079_v12  ;;  %v1392_v25 = vld [vmem:[%s1634_s18 + $0x1d4] sm:$0xf] }
  0x4b   : > { %807 = vmatpush.bf16.msrb.mxu0 %v1302_v14  ;;  %832 = vmatpush.bf16.msrb.mxu2 %v1122_v16  ;;  %v1394_v14 = vld [vmem:[%s1634_s18 + $0x1e4] sm:$0xf]  ;;  %v1146_v27 = vor.u32 %v1366_v20, %v1143_v21  ;;  %v1239_v33 = vld [vmem:[%s1634_s18 + $0x1c8] sm:$0xf0]  ;;  %v1388_v37 = vld [vmem:[%s1634_s18 + $0x1b4] sm:$0xf] }
  0x4c   : > { %820 = vmatpush.bf16.msrb.mxu1 %v1050_v17  ;;  %v1410_v16 = vld [vmem:[%s1634_s18 + $0x264] sm:$0xf]  ;;  %v1154_v17 = vor.u32 %v1368_v2, %v1151_v4  ;;  %v1404_v39 = vld [vmem:[%s1634_s18 + $0x234] sm:$0xf]  ;;  %v1223_v43 = vld [vmem:[%s1634_s18 + $0x1a8] sm:$0xf0] }
  0x4d   : > { %845 = vmatpush.bf16.msrb.mxu3 %v1186_v23  ;;  %v1258_v23 = vor.u32 %v1394_v14, %v1255_v15  ;;  %v1322_v24 = vor.u32 %v1410_v16, %v1319_v18  ;;  %v1390_v32 = vld [vmem:[%s1634_s18 + $0x1c4] sm:$0xf]  ;;  %v1215_v48 = vld [vmem:[%s1634_s18 + $0x198] sm:$0xf0]  ;;  %v1400_v50 = vld [vmem:[%s1634_s18 + $0x214] sm:$0xf] }
  0x4e   : > { %v1406_v34 = vld [vmem:[%s1634_s18 + $0x244] sm:$0xf]  ;;  %v1271_v58 = vld [vmem:[%s1634_s18 + $0x208] sm:$0xf0]  ;;  %v346_v63 = vld [vmem:[%s244_s7] sm:$0x3] }
  0x4f   : > { %808 = vmatpush.bf16.msrb.mxu0 %v1294_v26  ;;  %833 = vmatpush.bf16.msrb.mxu2 %v1114_v28  ;;  %v1247_v26 = vld [vmem:[%s1634_s18 + $0x1d8] sm:$0xf0]  ;;  %v1408_v28 = vld [vmem:[%s1634_s18 + $0x254] sm:$0xf]  ;;  %v1386_v42 = vld [vmem:[%s1634_s18 + $0x1a4] sm:$0xf] }
  0x50   : > { %821 = vmatpush.bf16.msrb.mxu1 %v1042_v29  ;;  %v1311_v29 = vld [vmem:[%s1634_s18 + $0x258] sm:$0xf0]  ;;  %v1250_v30 = vor.u32 %v1392_v25, %v1247_v26  ;;  %v1402_v44 = vld [vmem:[%s1634_s18 + $0x224] sm:$0xf]  ;;  %v1226_v45 = vor.u32 %v1386_v42, %v1223_v43  ;;  %v348_v2 = vperm.slane %v346_v63, 0 }
  0x51   : > { %846 = vmatpush.bf16.msrb.mxu3 %v1178_v35  ;;  %v1314_v31 = vor.u32 %v1408_v28, %v1311_v29  ;;  %v1303_v35 = vld [vmem:[%s1634_s18 + $0x248] sm:$0xf0]  ;;  %v1382_v54 = vld [vmem:[%s1634_s18 + $0x184] sm:$0xf] }
  0x52   : > { %v1306_v36 = vor.u32 %v1406_v34, %v1303_v35 }
  0x53   : > { %809 = vmatpush.bf16.msrb.mxu0 %v1286_v38  ;;  %834 = vmatpush.bf16.msrb.mxu2 %v1106_v40  ;;  %v1231_v38 = vld [vmem:[%s1634_s18 + $0x1b8] sm:$0xf0] }
  0x54   : > { %822 = vmatpush.bf16.msrb.mxu1 %v1034_v41  ;;  %v1295_v40 = vld [vmem:[%s1634_s18 + $0x238] sm:$0xf0] }
  0x55   : > { %847 = vmatpush.bf16.msrb.mxu3 %v1170_v47  ;;  %v1298_v41 = vor.u32 %v1404_v39, %v1295_v40  ;;  %v1384_v47 = vld [vmem:[%s1634_s18 + $0x194] sm:$0xf] }
  0x56   : > { %v1218_v52 = vor.u32 %v1384_v47, %v1215_v48 }
  0x57   : > { %810 = vmatpush.bf16.msrb.mxu0 %v1278_v51  ;;  %835 = vmatpush.bf16.msrb.mxu2 %v1098_v55  ;;  %v1279_v51 = vld [vmem:[%s1634_s18 + $0x218] sm:$0xf0]  ;;  %v1207_v55 = vld [vmem:[%s1634_s18 + $0x188] sm:$0xf0] }
  0x58   : > { %823 = vmatpush.bf16.msrb.mxu1 %v1026_v57  ;;  %v1282_v53 = vor.u32 %v1400_v50, %v1279_v51  ;;  %v1398_v57 = vld [vmem:[%s1634_s18 + $0x204] sm:$0xf]  ;;  %v1210_v59 = vor.u32 %v1382_v54, %v1207_v55 }
  0x59   : > { %848 = vmatpush.bf16.msrb.mxu3 %v1162_v0  ;;  %v1274_v60 = vor.u32 %v1398_v57, %v1271_v58 }
  0x5b   : > { %811 = vmatpush.bf16.msrb.mxu0 %v1270_v5  ;;  %836 = vmatpush.bf16.msrb.mxu2 %v1090_v6 }
  0x5c   : > { %824 = vmatpush.bf16.msrb.mxu1 %v1018_v8 }
  0x5d   : > { %849 = vmatpush.bf16.msrb.mxu3 %v1154_v17 }
  0x5e   : > { %812 = vmatmul.bf16.vlgmr.msrb.gmra.mxu0 %v1801_v19 }
  0x5f   : > { %856 = vmatpush.bf16.msra.mxu0 %v1266_v9  ;;  %825 = vmatmul.bf16.vlgmr.msrb.gmra.mxu1 %v1720_v49  ;;  %v1242_v49 = vor.u32 %v1390_v32, %v1239_v33 }
  0x60   : > { %869 = vmatpush.bf16.msra.mxu1 %v1330_v13  ;;  %837 = vmatpush.bf16.msrb.mxu2 %v1082_v22 }
  0x61   : > { %850 = vmatpush.bf16.msrb.mxu3 %v1146_v27 }
  0x63   : > { %857 = vmatpush.bf16.msra.mxu0 %v1258_v23  ;;  %838 = vmatmul.bf16.vlgmr.msrb.gmra.mxu2 %v1728_v56  ;;  %v1234_v56 = vor.u32 %v1388_v37, %v1231_v38 }
  0x64   : > { %870 = vmatpush.bf16.msra.mxu1 %v1322_v24  ;;  %851 = vmatmul.bf16.vlgmr.msrb.gmra.mxu3 %v1741_v3  ;;  %v1287_v3 = vld [vmem:[%s1634_s18 + $0x228] sm:$0xf0] }
  0x65   : > { %v1290_v46 = vor.u32 %v1402_v44, %v1287_v3 }
  0x67   : > { %858 = vmatpush.bf16.msra.mxu0 %v1250_v30 }
  0x68   : > { %871 = vmatpush.bf16.msra.mxu1 %v1314_v31 }
  0x6b   : > { %859 = vmatpush.bf16.msra.mxu0 %v1242_v49 }
  0x6c   : > { %872 = vmatpush.bf16.msra.mxu1 %v1306_v36 }
  0x6f   : > { %860 = vmatpush.bf16.msra.mxu0 %v1234_v56 }
  0x70   : > { %873 = vmatpush.bf16.msra.mxu1 %v1298_v41 }
  0x73   : > { %861 = vmatpush.bf16.msra.mxu0 %v1226_v45 }
  0x74   : > { %874 = vmatpush.bf16.msra.mxu1 %v1290_v46 }
  0x77   : > { %862 = vmatpush.bf16.msra.mxu0 %v1218_v52 }
  0x78   : > { %875 = vmatpush.bf16.msra.mxu1 %v1282_v53 }
  0x7b   : > { %863 = vmatpush.bf16.msra.mxu0 %v1210_v59 }
  0x7c   : > { %876 = vmatpush.bf16.msra.mxu1 %v1274_v60 }
  0x7e   : > { %864 = vmatmul.bf16.vlgmr.msra.gmra.mxu0 %v1751_v11 }
  0x7f   : > { %877 = vmatmul.bf16.vlgmr.msra.gmra.mxu1 %v1801_v19  ;;  %v349_v19 = vperm.slane %v346_v63, 1 }
  0xbb   : > { %v761_v61 = vpop.f32.mrf.mxu0 }
  0xbc   : > { %v762_v6 = vadd.f32 %v761_v61, %v348_v2 }
  0xbe   : > { %v774_v62 = vpop.f32.mrf.mxu1 }
  0xbf   : > { %v775_v7 = vadd.f32 %v774_v62, %v762_v6 }
  0xc3   : > { %v763_v0 = vpop.f32.mrf.mxu0 }
  0xc5   : > { %v787_v4 = vpop.f32.mrf.mxu2 }
  0xc6   : > { %v776_v1 = vpop.f32.mrf.mxu1  ;;  %v788_v9 = vadd.f32 %v787_v4, %v775_v7 }
  0xc7   : > { %v800_v5 = vpop.f32.mrf.mxu3 }
  0xc8   : > { %v801_v10 = vadd.f32 %v800_v5, %v788_v9 }
  0xcd   : > { %v789_v11 = vpop.f32.mrf.mxu2 }
  0xcf   : > { %v802_v8 = vpop.f32.mrf.mxu3 }
  0xdb   : > { %v813_v12 = vpop.f32.mrf.mxu0 }
  0xdc   : > { %v814_v13 = vadd.f32 %v813_v12, %v801_v10  ;;  %v826_v14 = vpop.f32.mrf.mxu1 }
  0xdd   : > { %v827_v21 = vadd.f32 %v826_v14, %v349_v19 }
  0xde   : > { %882 = vst [vmem:[%s254_s10] sm:$0xff] %v814_v13 }
  0xe3   : > { %v815_v15 = vpop.f32.mrf.mxu0 }
  0xe4   : > { %v828_v16 = vpop.f32.mrf.mxu1 }
  0xe6   : > { %v839_v17 = vpop.f32.mrf.mxu2 }
  0xe7   : > { %v852_v18 = vpop.f32.mrf.mxu3  ;;  %v840_v23 = vadd.f32 %v839_v17, %v827_v21 }
  0xe9   : > { %v853_v24 = vadd.f32 %v852_v18, %v840_v23 }
  0xee   : > { %v841_v20 = vpop.f32.mrf.mxu2 }
  0xef   : > { %v854_v22 = vpop.f32.mrf.mxu3 }
  0xfb   : > { %v865_v25 = vpop.f32.mrf.mxu0 }
  0xfc   : > { %v866_v26 = vadd.f32 %v865_v25, %v853_v24  ;;  %v878_v27 = vpop.f32.mrf.mxu1 }
  0xfe   : > { %v879_v28 = vadd.f32 %v878_v27, %v866_v26 }
 0x100   : > { %883 = vst [vmem:[%s254_s10 + $0x8] sm:$0xff] %v879_v28 }
 0x103   : > { %v867_v29 = vpop.f32.mrf.mxu0 }
 0x104   : > { %v880_v30 = vpop.f32.mrf.mxu1 }
 0x105 PF: > { %s16_s17 = sadd.s32 1, %s1554_s17   ;;  %s1865_s12 = smov %s1538_s13 }
 0x106   : > { %p13_p0 = scmp.ge.s32.totalorder %s16_s17, 5   ;;  %s1866_s13 = smov %s1542_s14 }
 0x107   : > { %s1867_s14 = smov %s1624_s23  ;;  %s1868_s15 = smov %s1550_s16 }
 0x108   : > { %s1869_s16 = smov %s1871_s19  ;;  %15 = sbr.rel (!%p13_p0) target bundleno = 4 (0x4), region = 78 }
 0x10d   :  { %914 = vsyncpa [#allocation3], 1 }
 0x10e   :  { %916 = vsyncpa [#allocation3 + $0x1], 1 }

// kernel: dino_forward.9
= control target key start
LH: loop header
LB: loop body
LE: loop exit
PB: predicated region body
PF: predicated region fallthrough
CT: control target
= control target key end

     0   :  { %s1676_s0 = inlined_call_operand.vmem [shape: bf16[18,32,128], index: 0, kind: input, shape index: {}, may-alias: {0,1,2}]   ;;  %s1677_s1 = inlined_call_operand.vmem [shape: bf16[18,32,128], index: 1, kind: input, shape index: {}, may-alias: {0,1,2}]   ;;  %s1678_s2 = inlined_call_operand.vmem [shape: bf16[18,32,128], index: 2, kind: input, shape index: {}, may-alias: {0,1,2}]   ;;  %s1679_s3 = inlined_call_operand.vmem [shape: bf16[32,768], index: 3, kind: output, shape index: {}]  }
   0x1   :  { %1682 = sst [smem:[#allocation9_spill]] %s1679_s3 }
   0x2   :  { %s1360_s12 = smov 0   ;;  %s1362_s13 = smov 0  }
   0x3   :  { %s1364_s14 = smov 0   ;;  %s1366_s15 = smov 0  }
   0x4   :  { %s1368_s16 = smov 0   ;;  %s1370_s17 = smov 0  }
   0x5   :  { %s1372_s18 = smov 0   ;;  %s1374_s19 = smov 0  }
   0x6   :  { %s1376_s20 = smov 0   ;;  %s1378_s21 = smov 0  }
   0x7   :  { %s1380_s22 = smov 0  }
   0x8 LB: > { %s22_s24 = sadd.s32 1, %s1329_s20  ;;  %s25_s25 = sadd.s32 1, %s1333_s21  ;;  %s1337_s22 = sphi %s1380_s22, %s13_s22   ;;  %s1333_s21 = sphi %s1378_s21, %s1706_s21   ;;  %s1329_s20 = sphi %s1376_s20, %s1705_s20   ;;  %s1325_s19 = sphi %s1374_s19, %s1704_s19   ;;  %s1321_s18 = sphi %s1372_s18, %s1703_s18   ;;  %s1317_s17 = sphi %s1370_s17, %s1702_s17   ;;  %s1313_s16 = sphi %s1368_s16, %s1701_s16   ;;  %s1309_s15 = sphi %s1366_s15, %s1700_s15   ;;  %s1305_s14 = sphi %s1364_s14, %s1699_s14   ;;  %s1301_s13 = sphi %s1362_s13, %s1698_s13   ;;  %s1297_s12 = sphi %s1360_s12, %s1697_s12  }
   0x9   : > { %p23_p0 = scmp.ge.s32.totalorder %s22_s24, 3  ;;  %s34_s26 = sadd.s32 1, %s1317_s17 }
   0xa   : > { %p41_p1 = scmp.ne.s32.totalorder %s1317_s17, %s1313_s16  ;;  %p42_p2 = scmp.eq.s32.totalorder %s1337_s22, 0 }
   0xb   : > { %s1708_s24 = smov (%p23_p0, %s22_s24), 0  ;;  %s1710_s25 = smov (!%p23_p0, %s25_s25), %s1333_s21 }
   0xc   : > { %1683 = sst [smem:[#allocation6_spill]] %s1708_s24  ;;  %s29_s27 = ssub.s32 %s1329_s20, %s1708_s24 }
   0xd   : > { %p27_p3 = scmp.ge.s32.totalorder %s1710_s25, 2  ;;  %s57_s28 = sadd.s32 3, %s1329_s20 }
   0xe   : > { %p1433_p4 = por %p42_p2, %p41_p1  ;;  %s58_s30 = sadd.s32 3, %s1708_s24 }
   0xf   : > { %s1712_s25 = smov (%p27_p3, %s1710_s25), 0  ;;  %s59_s4 = ssub.s32 %s57_s28, %s58_s30 }
  0x10   : > { %1685 = sst [smem:[#allocation7_spill]] %s1712_s25  ;;  %s64_s5 = sadd.s32 1, %s1309_s15 }
  0x11   : > { %s30_s6 = ssub.s32 %s1333_s21, %s1712_s25  ;;  %p71_p5 = scmp.ne.s32.totalorder %s1309_s15, %s1305_s14 }
  0x12   : > { %s31_s7 = sor.u32 %s30_s6, %s29_s27  ;;  %s61_s8 = sor.u32 %s59_s4, %s30_s6 }
  0x13   : > { %p32_p6 = scmp.eq.s32.totalorder %s31_s7, 0  ;;  %p62_p7 = scmp.eq.s32.totalorder %s61_s8, 0 }
  0x14   : > { %p1447_p8 = por %p71_p5, %p42_p2  ;;  %s87_s10 = sadd.s32 6, %s1329_s20 }
  0x15   : > { %s1453_s11 = scalar_select %p32_p6, %s1317_s17, %s34_s26  }
  0x16   : > { %s1456_s28 = scalar_select %p62_p7, %s1309_s15, %s64_s5  }
  0x17   : > { %1687 = sst [smem:[#allocation8_spill]] %s1453_s11  ;;  %s88_s30 = sadd.s32 6, %s1708_s24 }
  0x18   : > { %s94_s23 = sadd.s32 1, %s1301_s13  ;;  %s89_s25 = ssub.s32 %s87_s10, %s88_s30 }
  0x19   : > { %p101_p9 = scmp.ne.s32.totalorder %s1301_s13, %s1297_s12  ;;  %s91_s27 = sor.u32 %s89_s25, %s30_s6 }
  0x1a   : > { %s1688_s3 = sadd.s32 4294967295, %s1337_s22   ;;  %p92_p11 = scmp.eq.s32.totalorder %s91_s27, 0 }
  0x1b   : > { %p133_p10 = scmp.eq.s32.totalorder %s1688_s3, 5  ;;  %p1466_p12 = por %p101_p9, %p42_p2 }
  0x1c   : > { %s1478_s26 = scalar_select %p92_p11, %s1301_s13, %s94_s23  }
  0x1d   : > { %p1473_p13 = por %p133_p10, %p41_p1  ;;  %p1040_p0 = scmp.ge.s32.totalorder %s1337_s22, 6 }
  0x1f   : > { %155 = sbr.rel (%p1040_p0) target bundleno = 63 (0x3f), region = 16 }
  0x24   : > { %158 = sbr.rel (!%p1433_p4) target bundleno = 45 (0x2d), region = 20  ;;  %s160_s3 = sand.u32 (%p1433_p4), 1, %s1317_s17  }
  0x25   : > { %s1043_s25 = sshll.u32 (%p1433_p4), %s1333_s21, 1  ;;  %s1041_s5 = sshll.u32 (%p1433_p4), %s160_s3, 4 }
  0x26   : > { %s1112_s6 = sshll.u32 (%p1433_p4), %s1329_s20, 3  ;;  %s162_s24 = scalar_lea.vmem (%p1433_p4), [#allocation2], %s1041_s5 }
  0x27   : > { %s166_s8 = sadd.s32 (%p1433_p4), %s1112_s6, %s1043_s25 }
  0x28   : > { %s1045_s10 = sshll.u32 (%p1433_p4), %s166_s8, 2 }
  0x29   : > { %s168_s23 = scalar_lea.vmem %s1676_s0, %s1045_s10 }
  0x2a   : > { %v185_v0 = vld [vmem:[%s168_s23] sm:$0xff]   ;;  %v189_v1 = vld [vmem:[%s168_s23 + $0x10] sm:$0xff]  }
  0x2b   : > { %186 = vst [vmem:[%s162_s24] sm:$0xff] %v185_v0  }
  0x2c   : > { %190 = vst [vmem:[%s162_s24 + $0x8] sm:$0xff] %v189_v1  }
  0x2d PF: > { %224 = sbr.rel (!%p1447_p8) target bundleno = 54 (0x36), region = 61  ;;  %s226_s29 = sand.u32 (%p1447_p8), 1, %s1309_s15  }
  0x2e   : > { %s1047_s3 = sshll.u32 (%p1447_p8), %s1333_s21, 1  ;;  %s1046_s25 = sshll.u32 (%p1447_p8), %s226_s29, 4 }
  0x2f   : > { %s1048_s6 = sshll.u32 (%p1447_p8), %s1329_s20, 3  ;;  %s228_s24 = scalar_lea.vmem (%p1447_p8), [#allocation3], %s1046_s25 }
  0x30   : > { %s942_s8 = sadd.s32 (%p1447_p8), %s1048_s6, %s1047_s3 }
  0x31   : > { %s1049_s11 = sshll.u32 (%p1447_p8), %s942_s8, 2 }
  0x32   : > { %s944_s27 = scalar_lea.vmem %s1677_s1, %s1049_s11 }
  0x33   : > { %v1050_v2 = vld [vmem:[%s944_s27 + $0x60] sm:$0xff]   ;;  %v1052_v3 = vld [vmem:[%s944_s27 + $0x70] sm:$0xff]  }
  0x34   : > { %253 = vst [vmem:[%s228_s24] sm:$0xff] %v1050_v2  }
  0x35   : > { %257 = vst [vmem:[%s228_s24 + $0x8] sm:$0xff] %v1052_v3  }
  0x36 PF: > { %291 = sbr.rel (!%p1466_p12) target bundleno = 63 (0x3f), region = 102  ;;  %s293_s9 = sand.u32 (%p1466_p12), 1, %s1301_s13  }
  0x37   : > { %s1055_s5 = sshll.u32 (%p1466_p12), %s1333_s21, 1  ;;  %s1054_s23 = sshll.u32 (%p1466_p12), %s293_s9, 4 }
  0x38   : > { %s1056_s29 = sshll.u32 (%p1466_p12), %s1329_s20, 3  ;;  %s295_s25 = scalar_lea.vmem (%p1466_p12), [#allocation4], %s1054_s23 }
  0x39   : > { %s950_s3 = sadd.s32 (%p1466_p12), %s1056_s29, %s1055_s5 }
  0x3a   : > { %s1057_s6 = sshll.u32 (%p1466_p12), %s950_s3, 2 }
  0x3b   : > { %s952_s30 = scalar_lea.vmem %s1678_s2, %s1057_s6 }
  0x3c   : > { %v1058_v4 = vld [vmem:[%s952_s30 + $0xc0] sm:$0xff]   ;;  %v1060_v5 = vld [vmem:[%s952_s30 + $0xd0] sm:$0xff]  }
  0x3d   : > { %320 = vst [vmem:[%s295_s25] sm:$0xff] %v1058_v4  }
  0x3e   : > { %324 = vst [vmem:[%s295_s25 + $0x8] sm:$0xff] %v1060_v5  }
  0x3f PF: > { %p1062_p1 = scmp.ge.s32.totalorder %s1337_s22, 1  ;;  %p357_p2 = scmp.lt.s32.totalorder %s1337_s22, 7 }
  0x41   : > { %p358_p3 = pnand %p1062_p1, %p357_p2 }
  0x42   : > { %s371_s4 = sand.u32 (!%p358_p3), 1, %s1305_s14   ;;  %s364_s27 = sand.u32 (!%p358_p3), 1, %s1313_s16  }
  0x43   : > { %361 = sbr.rel (%p358_p3) target bundleno = 1055 (0x41f), region = 143  ;;  %s1064_s10 = sshll.u32 (!%p358_p3), %s371_s4, 4 }
  0x44   : > { %s1509_s24 = sshll.u32 (!%p358_p3), %s364_s27, 4  ;;  %s373_s9 = scalar_lea.vmem (!%p358_p3), [#allocation3], %s1064_s10 }
  0x45   : > { %s366_s5 = scalar_lea.vmem (!%p358_p3), [#allocation2], %s1509_s24  ;;  %s1339_s23 = smov (!%p358_p3), 64  }
  0x46   : > { %s378_s14 = sand.u32 (!%p358_p3), 1, %s1297_s12   ;;  %s407_s12 = scalar_lea.vmem (!%p358_p3), [#allocation5], %s1509_s24 }
  0x47   : > { %s1561_s16 = sshll.u32 (!%p358_p3), %s378_s14, 4 }
  0x48   : > { %vm438_vm0 = vcmask 523264   ;;  %v1114_v6 = vld [vmem:[%s373_s9] sm:$0xff]  ;;  %v1515_v9 = vld [vmem:[%s373_s9 + $0x8] sm:$0xff]  ;;  %v419_v16 = vlaneseq  ;;  %vm463_vm2 = vcmask 130048   ;;  %s380_s29 = scalar_lea.vmem [#allocation4], %s1561_s16  ;;  %s1107_s3 = sshll.u32 (%p1473_p13), %s1321_s18, 1 }
  0x49   : > { %v1113_v7 = vld [vmem:[%s366_s5] sm:$0xff]  ;;  %538 = vrot.lane.b32.xlu1 %v1114_v6, %s1339_s23  ;;  %v443_v8 = vsel %vm438_vm0, %v1114_v6, 0  ;;  %v1517_v10 = vld [vmem:[%s366_s5 + $0x8] sm:$0xff]  ;;  %v656_v57 = vsel %vm438_vm0, %v1515_v9, 0  ;;  %s1119_s6 = smul.u32 (%p1473_p13), 12, %s1325_s19  ;;  %s1693_s4 = sld [smem:[#allocation9_spill]] (%p1473_p13) }
  0x4a   : > { %452 = vmatpush.bf16.xpose.msra.mxu0 %v443_v8  ;;  %536 = vrot.lane.b32.xlu2 %v1113_v7, %s1339_s23  ;;  %v1527_v18 = vand.u32 127, %v419_v16  ;;  %v1566_v55 = vld [vmem:[%s380_s29] sm:$0xff] }
  0x4b   : > { %529 = vmatpush.bf16.msra.mxu1 %v1566_v55  ;;  %s879_s8 = sadd.s32 (%p1473_p13), %s1119_s6, %s1107_s3 }
  0x4c   : > { %vm421_vm1 = vcmp.lt.s32.totalorder %v1527_v18, 5  ;;  %s1109_s11 = sshll.u32 (%p1473_p13), %s879_s8, 2 }
  0x4f   : > { %665 = vmatpush.bf16.xpose.msrb.mxu1 %v656_v57  ;;  %s881_s10 = scalar_lea.vmem (%p1473_p13), %s1693_s4, %s1109_s11 }
  0x51   : > { %1075 = vmatmul.msk.bf16.vlgmr.msra.gmra.mxu0 %vm438_vm0, %v1113_v7  ;;  %750 = vrot.lane.b32.xlu1 %v1515_v9, %s1339_s23 }
  0x52   : > { %748 = vrot.lane.b32.xlu2 %v1517_v10, %s1339_s23 }
  0xa4   : > { %v537_v13 = vpop.permute.xlu2 %536 }
  0xac   : > { %v749_v17 = vpop.permute.xlu2 %748 }
  0xbb   : > { %v539_v11 = vpop.permute.xlu1 %538 }
  0xbc   : > { %v544_v12 = vsel %vm438_vm0, %v539_v11, 0 }
  0xbd   : > { %553 = vmatpush.bf16.xpose.msra.mxu2 %v544_v12 }
  0xc3   : > { %v751_v14 = vpop.permute.xlu1 %750 }
  0xc4   : > { %1081 = vmatmul.msk.bf16.vlgmr.msra.gmra.mxu2 %vm438_vm0, %v537_v13  ;;  %v756_v15 = vsel %vm438_vm0, %v751_v14, 0 }
  0xc5   : > { %765 = vmatpush.bf16.xpose.msrb.mxu0 %v756_v15 }
  0xcc   : > { %1103 = vmatmul.msk.bf16.vlgmr.msrb.gmra.mxu0 %vm438_vm0, %v749_v17 }
  0xce   : > { %v454_v19 = vpop.f32.mrf.mxu0 }
  0xcf   : > { %v459_v20 = vmul.f32 0.125, %v454_v19 }
  0xd1   : > { %v461_v21 = vsel %vm421_vm1, %v459_v20, -1e+30 }
  0xd2   : > { %v464_v22 = vsel %vm463_vm2, %v461_v21, -inf }
  0xd3   : > { %465 = vmax.xlane.f32.xlu0 %v464_v22 }
  0xd6   : > { %v456_v23 = vpop.f32.mrf.mxu0 }
  0xd7   : > { %v460_v24 = vmul.f32 0.125, %v456_v23 }
  0xd9   : > { %v462_v25 = vsel %vm421_vm1, %v460_v24, -1e+30 }
  0xda   : > { %v467_v26 = vsel %vm463_vm2, %v462_v25, -inf }
  0xdb   : > { %468 = vmax.xlane.f32.xlu0 %v467_v26 }
 0x146   : > { %v466_v27 = vpop.xlane.xlu0 %465 }
 0x147   : > { %v470_v28 = vsub.f32 %v461_v21, %v466_v27  ;;  %v555_v29 = vpop.f32.mrf.mxu2 }
 0x148   : > { %v560_v30 = vmul.f32 0.125, %v555_v29 }
 0x149   : > { %v472_v31 = vmul.f32 1.442695, %v470_v28  ;;  %v767_v41 = vpop.f32.mrf.mxu0 }
 0x14a   : > { %v562_v32 = vsel %vm421_vm1, %v560_v30, -1e+30  ;;  %v772_v45 = vmul.f32 0.125, %v767_v41 }
 0x14b   : > { %1219 = vpow2.f32 %v472_v31  ;;  %v564_v33 = vsel %vm463_vm2, %v562_v32, -inf }
 0x14c   : > { %565 = vmax.xlane.f32.xlu2 %v564_v33  ;;  %v774_v47 = vsel %vm421_vm1, %v772_v45, -1e+30 }
 0x14d   : > { %v776_v49 = vsel %vm463_vm2, %v774_v47, -inf }
 0x14e   : > { %v469_v34 = vpop.xlane.xlu0 %468 }
 0x14f   : > { %v471_v35 = vsub.f32 %v462_v25, %v469_v34  ;;  %v557_v36 = vpop.f32.mrf.mxu2 }
 0x150   : > { %v561_v39 = vmul.f32 0.125, %v557_v36 }
 0x151   : > { %v1540_v37 = vpop.eup %1219  ;;  %v474_v38 = vmul.f32 1.442695, %v471_v35  ;;  %v769_v48 = vpop.f32.mrf.mxu0 }
 0x152   : > { %v476_v40 = vsel %vm463_vm2, %v1540_v37, 0.0  ;;  %v563_v42 = vsel %vm421_vm1, %v561_v39, -1e+30  ;;  %v773_v50 = vmul.f32 0.125, %v769_v48 }
 0x153   : > { %1221 = vpow2.f32 %v474_v38  ;;  %477 = vadd.xlane.f32.xlu0 %v476_v40  ;;  %v567_v43 = vsel %vm463_vm2, %v563_v42, -inf }
 0x154   : > { %v1556_v51 = vsel %vm421_vm1, %v773_v50, -1e+30 }
 0x155   : > { %v779_v52 = vsel %vm463_vm2, %v1556_v51, -inf }
 0x159   : > { %v1547_v44 = vpop.eup %1221 }
 0x15a   : > { %v479_v46 = vsel %vm463_vm2, %v1547_v44, 0.0 }
 0x15b   : > { %568 = vmax.xlane.f32.xlu0 %v567_v43  ;;  %480 = vadd.xlane.f32.xlu1 %v479_v46 }
 0x163   : > { %777 = vmax.xlane.f32.xlu0 %v776_v49 }
 0x16b   : > { %780 = vmax.xlane.f32.xlu0 %v779_v52 }
 0x1bf   : > { %v566_v53 = vpop.xlane.xlu2 %565 }
 0x1c0   : > { %v570_v54 = vsub.f32 %v562_v32, %v566_v53 }
 0x1c2   : > { %v572_v56 = vmul.f32 1.442695, %v570_v54 }
 0x1c4   : > { %1223 = vpow2.f32 %v572_v56 }
 0x1c6   : > { %v478_v58 = vpop.xlane.xlu0 %477 }
 0x1c7   : > { %1225 = vrcp.f32 %v478_v58  ;;  %v493_v9 = vand.u32 2147483648, %v478_v58  ;;  %vm487_vm4 = vweird.f32 %v478_v58  ;;  %v491_v12 = vand.u32 2147483647, %v478_v58 }
 0x1c9   : > { %v494_v22 = vor.u32 1.1754944e-38, %v493_v9  ;;  %vm492_vm7 = vcmp.eq.f32.partialorder %v491_v12, 8.507059e+37 }
 0x1ca   : > { %v1571_v59 = vpop.eup %1223 }
 0x1cb   : > { %v576_v60 = vsel %vm463_vm2, %v1571_v59, 0.0 }
 0x1cc   : > { %577 = vadd.xlane.f32.xlu2 %v576_v60 }
 0x1cd   : > { %v1226_v61 = vpop.eup %1225 }
 0x1ce   : > { %v483_v62 = vmul.f32 %v1226_v61, %v478_v58  ;;  %v481_v63 = vpop.xlane.xlu1 %480  ;;  %v569_v0 = vpop.xlane.xlu0 %568  ;;  %vm488_vm3 = vweird.f32 %v1226_v61 }
 0x1cf   : > { %1227 = vrcp.f32 %v481_v63  ;;  %v571_v2 = vsub.f32 %v563_v42, %v569_v0  ;;  %vm1575_vm5 = vmor %vm487_vm4, %vm488_vm3  ;;  %v508_v15 = vand.u32 2147483648, %v481_v63  ;;  %v506_v20 = vand.u32 2147483647, %v481_v63 }
 0x1d0   : > { %v484_v1 = vsub.f32 1.0, %v483_v62  ;;  %vm502_vm8 = vweird.f32 %v481_v63 }
 0x1d1   : > { %v574_v4 = vmul.f32 1.442695, %v571_v2  ;;  %v509_v25 = vor.u32 1.1754944e-38, %v508_v15  ;;  %vm507_vm10 = vcmp.eq.f32.partialorder %v506_v20, 8.507059e+37 }
 0x1d2   : > { %v485_v3 = vmul.f32 %v1226_v61, %v484_v1  ;;  %v1118_v1 = vld [vmem:[%s380_s29 + $0x8] sm:$0xff] }
 0x1d3   : > { %1229 = vpow2.f32 %v574_v4 }
 0x1d4   : > { %v486_v6 = vadd.f32 %v1226_v61, %v485_v3 }
 0x1d5   : > { %v1228_v5 = vpop.eup %1227 }
 0x1d6   : > { %v498_v7 = vmul.f32 %v1228_v5, %v481_v63  ;;  %v778_v8 = vpop.xlane.xlu0 %777  ;;  %vm503_vm6 = vweird.f32 %v1228_v5  ;;  %v490_v21 = vsel %vm1575_vm5, %v1226_v61, %v486_v6 }
 0x1d7   : > { %v782_v11 = vsub.f32 %v774_v47, %v778_v8  ;;  %vm504_vm9 = vmor %vm502_vm8, %vm503_vm6  ;;  %v495_v26 = vsel %vm492_vm7, %v494_v22, %v490_v21 }
 0x1d8   : > { %v499_v13 = vsub.f32 1.0, %v498_v7  ;;  %v496_v31 = vmul.f32 %v1540_v37, %v495_v26 }
 0x1d9   : > { %v784_v16 = vmul.f32 1.442695, %v782_v11  ;;  %v1579_v17 = vpop.eup %1229 }
 0x1da   : > { %v500_v19 = vmul.f32 %v1228_v5, %v499_v13  ;;  %v579_v23 = vsel %vm463_vm2, %v1579_v17, 0.0 }
 0x1db   : > { %1231 = vpow2.f32 %v784_v16  ;;  %580 = vadd.xlane.f32.xlu1 %v579_v23 }
 0x1dc   : > { %v501_v24 = vadd.f32 %v1228_v5, %v500_v19 }
 0x1de   : > { %v781_v27 = vpop.xlane.xlu0 %780  ;;  %v505_v28 = vsel %vm504_vm9, %v1228_v5, %v501_v24 }
 0x1df   : > { %v783_v29 = vsub.f32 %v1556_v51, %v781_v27  ;;  %v510_v30 = vsel %vm507_vm10, %v509_v25, %v505_v28 }
 0x1e0   : > { %v511_v32 = vmul.f32 %v1547_v44, %v510_v30 }
 0x1e1   : > { %v1588_v33 = vpop.eup %1231  ;;  %v786_v34 = vmul.f32 1.442695, %v783_v29 }
 0x1e2   : > { %v788_v35 = vsel %vm463_vm2, %v1588_v33, 0.0  ;;  %v512_v36 = vpack.c.bf16 %v511_v32, %v496_v31 }
 0x1e3   : > { %1233 = vpow2.f32 %v786_v34  ;;  %789 = vadd.xlane.f32.xlu0 %v788_v35 }
 0x1e4   : > { %1080 = vmatmul.msk.bf16.vlgmr.msra.gmra.mxu1 %vm463_vm2, %v512_v36 }
 0x1e9   : > { %v1593_v38 = vpop.eup %1233 }
 0x1ea   : > { %v791_v39 = vsel %vm463_vm2, %v1593_v38, 0.0 }
 0x1eb   : > { %792 = vadd.xlane.f32.xlu2 %v791_v39 }
 0x1f4   : > { %1097 = vmatmul.msk.bf16.vlgmr.msrb.gmra.mxu1 %vm438_vm0, %v1517_v10  ;;  %613 = vrot.lane.b32.xlu1 %v1566_v55, %s1339_s23 }
 0x23f   : > { %v578_v37 = vpop.xlane.xlu2 %577 }
 0x240   : > { %1235 = vrcp.f32 %v578_v37  ;;  %vm587_vm13 = vweird.f32 %v578_v37  ;;  %v593_v50 = vand.u32 2147483648, %v578_v37  ;;  %v591_v52 = vand.u32 2147483647, %v578_v37 }
 0x242   : > { %v594_v55 = vor.u32 1.1754944e-38, %v593_v50  ;;  %vm592_vm5 = vcmp.eq.f32.partialorder %v591_v52, 8.507059e+37 }
 0x246   : > { %v1236_v40 = vpop.eup %1235 }
 0x247   : > { %v583_v42 = vmul.f32 %v1236_v40, %v578_v37  ;;  %vm588_vm14 = vweird.f32 %v1236_v40 }
 0x248   : > { %vm589_vm3 = vmor %vm587_vm13, %vm588_vm14 }
 0x249   : > { %v584_v43 = vsub.f32 1.0, %v583_v42 }
 0x24b   : > { %v585_v46 = vmul.f32 %v1236_v40, %v584_v43 }
 0x24d   : > { %v586_v51 = vadd.f32 %v1236_v40, %v585_v46 }
 0x24e   : > { %v581_v41 = vpop.xlane.xlu1 %580 }
 0x24f   : > { %1237 = vrcp.f32 %v581_v41  ;;  %vm602_vm11 = vweird.f32 %v581_v41  ;;  %v608_v48 = vand.u32 2147483648, %v581_v41  ;;  %v606_v49 = vand.u32 2147483647, %v581_v41 }
 0x250   : > { %v590_v58 = vsel %vm589_vm3, %v1236_v40, %v586_v51 }
 0x251   : > { %v609_v54 = vor.u32 1.1754944e-38, %v608_v48  ;;  %vm607_vm4 = vcmp.eq.f32.partialorder %v606_v49, 8.507059e+37  ;;  %v595_v61 = vsel %vm592_vm5, %v594_v55, %v590_v58 }
 0x252   : > { %v596_v0 = vmul.f32 %v1571_v59, %v595_v61 }
 0x255   : > { %v1238_v44 = vpop.eup %1237 }
 0x256   : > { %v598_v45 = vmul.f32 %v1238_v44, %v581_v41  ;;  %vm603_vm12 = vweird.f32 %v1238_v44  ;;  %v790_v13 = vpop.xlane.xlu0 %789 }
 0x257   : > { %vm604_vm15 = vmor %vm602_vm11, %vm603_vm12  ;;  %vm799_vm7 = vweird.f32 %v790_v13  ;;  %v805_v34 = vand.u32 2147483648, %v790_v13  ;;  %v803_v36 = vand.u32 2147483647, %v790_v13 }
 0x258   : > { %v599_v47 = vsub.f32 1.0, %v598_v45 }
 0x259   : > { %v806_v41 = vor.u32 1.1754944e-38, %v805_v34  ;;  %vm804_vm12 = vcmp.eq.f32.partialorder %v803_v36, 8.507059e+37 }
 0x25a   : > { %v600_v10 = vmul.f32 %v1238_v44, %v599_v47 }
 0x25c   : > { %v601_v53 = vadd.f32 %v1238_v44, %v600_v10 }
 0x25e   : > { %v605_v56 = vsel %vm604_vm15, %v1238_v44, %v601_v53  ;;  %v793_v12 = vpop.xlane.xlu2 %792 }
 0x25f   : > { %v610_v60 = vsel %vm607_vm4, %v609_v54, %v605_v56  ;;  %1239 = vrcp.f32 %v793_v12  ;;  %v820_v30 = vand.u32 2147483648, %v793_v12  ;;  %v818_v32 = vand.u32 2147483647, %v793_v12 }
 0x260   : > { %v611_v62 = vmul.f32 %v1579_v17, %v610_v60  ;;  %1241 = vrcp.f32 %v790_v13 }
 0x261   : > { %v1601_v57 = vpop.f32.mrf.mxu1  ;;  %v821_v39 = vor.u32 1.1754944e-38, %v820_v30  ;;  %vm819_vm11 = vcmp.eq.f32.partialorder %v818_v32, 8.507059e+37 }
 0x262   : > { %v612_v3 = vpack.c.bf16 %v611_v62, %v596_v0 }
 0x265   : > { %v1240_v14 = vpop.eup %1239 }
 0x266   : > { %v614_v63 = vpop.permute.xlu1 %613  ;;  %v1242_v17 = vpop.eup %1241  ;;  %v810_v19 = vmul.f32 %v1240_v14, %v793_v12  ;;  %vm815_vm6 = vweird.f32 %v1240_v14 }
 0x267   : > { %626 = vmatpush.bf16.msra.mxu3 %v614_v63  ;;  %v795_v21 = vmul.f32 %v1242_v17, %v790_v13  ;;  %vm800_vm8 = vweird.f32 %v1242_v17 }
 0x268   : > { %v811_v22 = vsub.f32 1.0, %v810_v19  ;;  %vm801_vm10 = vmor %vm799_vm7, %vm800_vm8 }
 0x269   : > { %v1607_v2 = vpop.f32.mrf.mxu1  ;;  %v796_v23 = vsub.f32 1.0, %v795_v21 }
 0x26a   : > { %1082 = vmatmul.msk.bf16.vlgmr.msra.gmra.mxu3 %vm463_vm2, %v612_v3  ;;  %v812_v26 = vmul.f32 %v1240_v14, %v811_v22 }
 0x26b   : > { %741 = vmatpush.bf16.msrb.mxu3 %v1118_v1  ;;  %v797_v29 = vmul.f32 %v1242_v17, %v796_v23 }
 0x26c   : > { %v813_v31 = vadd.f32 %v1240_v14, %v812_v26 }
 0x26d   : > { %v798_v35 = vadd.f32 %v1242_v17, %v797_v29 }
 0x26f   : > { %v802_v43 = vsel %vm801_vm10, %v1242_v17, %v798_v35 }
 0x270   : > { %v807_v45 = vsel %vm804_vm12, %v806_v41, %v802_v43 }
 0x271   : > { %v667_v4 = vpop.f32.mrf.mxu1  ;;  %v808_v48 = vmul.f32 %v1588_v33, %v807_v45 }
 0x272   : > { %v672_v5 = vmul.f32 0.125, %v667_v4 }
 0x274   : > { %v674_v6 = vsel %vm421_vm1, %v672_v5, -1e+30 }
 0x275   : > { %v676_v7 = vsel %vm463_vm2, %v674_v6, -inf }
 0x276   : > { %677 = vmax.xlane.f32.xlu0 %v676_v7 }
 0x279   : > { %v669_v8 = vpop.f32.mrf.mxu1 }
 0x27a   : > { %v673_v9 = vmul.f32 0.125, %v669_v8 }
 0x27c   : > { %v675_v59 = vsel %vm421_vm1, %v673_v9, -1e+30  ;;  %vm814_vm1 = vweird.f32 %v793_v12 }
 0x27d   : > { %v679_v11 = vsel %vm463_vm2, %v675_v59, -inf  ;;  %vm816_vm9 = vmor %vm814_vm1, %vm815_vm6 }
 0x27e   : > { %680 = vmax.xlane.f32.xlu0 %v679_v11  ;;  %v817_v40 = vsel %vm816_vm9, %v1240_v14, %v813_v31 }
 0x27f   : > { %v822_v44 = vsel %vm819_vm11, %v821_v39, %v817_v40 }
 0x280   : > { %v823_v46 = vmul.f32 %v1593_v38, %v822_v44 }
 0x282   : > { %v824_v10 = vpack.c.bf16 %v823_v46, %v808_v48 }
 0x292   : > { %825 = vrot.lane.b32.xlu0 %v1118_v1, %s1339_s23 }
 0x2e9   : > { %v678_v15 = vpop.xlane.xlu0 %677 }
 0x2ea   : > { %v682_v16 = vsub.f32 %v674_v6, %v678_v15 }
 0x2ec   : > { %v684_v20 = vmul.f32 1.442695, %v682_v16 }
 0x2ed   : > { %v628_v49 = vpop.f32.mrf.mxu3 }
 0x2ee   : > { %1243 = vpow2.f32 %v684_v20 }
 0x2f1   : > { %v681_v18 = vpop.xlane.xlu0 %680 }
 0x2f2   : > { %v683_v24 = vsub.f32 %v675_v59, %v681_v18 }
 0x2f4   : > { %v1617_v25 = vpop.eup %1243  ;;  %v686_v27 = vmul.f32 1.442695, %v683_v24 }
 0x2f5   : > { %v688_v28 = vsel %vm463_vm2, %v1617_v25, 0.0  ;;  %v630_v50 = vpop.f32.mrf.mxu3 }
 0x2f6   : > { %1245 = vpow2.f32 %v686_v27  ;;  %689 = vadd.xlane.f32.xlu2 %v688_v28  ;;  %v1209_v51 = vpack.i.bf16 %v630_v50, %v628_v49 }
 0x2fc   : > { %v1246_v37 = vpop.eup %1245 }
 0x2fd   : > { %v691_v42 = vsel %vm463_vm2, %v1246_v37, 0.0 }
 0x2fe   : > { %692 = vadd.xlane.f32.xlu2 %v691_v42 }
 0x304   : > { %v826_v47 = vpop.permute.xlu0 %825 }
 0x305   : > { %838 = vmatpush.bf16.msrb.mxu2 %v826_v47 }
 0x308   : > { %1104 = vmatmul.msk.bf16.vlgmr.msrb.gmra.mxu2 %vm463_vm2, %v824_v10 }
 0x316   : > { %1210 = vrot.lane.b32.xlu2 %v1209_v51, %s1339_s23 }
 0x369   : > { %v690_v52 = vpop.xlane.xlu2 %689 }
 0x36a   : > { %1247 = vrcp.f32 %v690_v52  ;;  %v705_v61 = vand.u32 2147483648, %v690_v52  ;;  %vm699_vm14 = vweird.f32 %v690_v52  ;;  %v703_v62 = vand.u32 2147483647, %v690_v52 }
 0x36c   : > { %v706_v5 = vor.u32 1.1754944e-38, %v705_v61  ;;  %vm704_vm4 = vcmp.eq.f32.partialorder %v703_v62, 8.507059e+37 }
 0x370   : > { %v1248_v53 = vpop.eup %1247 }
 0x371   : > { %v695_v54 = vmul.f32 %v1248_v53, %v690_v52  ;;  %v693_v55 = vpop.xlane.xlu2 %692  ;;  %vm700_vm13 = vweird.f32 %v1248_v53 }
 0x372   : > { %1249 = vrcp.f32 %v693_v55  ;;  %vm701_vm15 = vmor %vm699_vm14, %vm700_vm13  ;;  %v720_v0 = vand.u32 2147483648, %v693_v55  ;;  %v718_v4 = vand.u32 2147483647, %v693_v55  ;;  %vm714_vm5 = vweird.f32 %v693_v55 }
 0x373   : > { %v696_v56 = vsub.f32 1.0, %v695_v54 }
 0x374   : > { %v721_v7 = vor.u32 1.1754944e-38, %v720_v0  ;;  %vm719_vm6 = vcmp.eq.f32.partialorder %v718_v4, 8.507059e+37 }
 0x375   : > { %v697_v38 = vmul.f32 %v1248_v53, %v696_v56 }
 0x377   : > { %v698_v60 = vadd.f32 %v1248_v53, %v697_v38 }
 0x378   : > { %v1250_v58 = vpop.eup %1249 }
 0x379   : > { %v710_v33 = vmul.f32 %v1250_v58, %v693_v55  ;;  %v702_v1 = vsel %vm701_vm15, %v1248_v53, %v698_v60  ;;  %vm715_vm3 = vweird.f32 %v1250_v58  ;;  %v1211_v17 = vpop.permute.xlu2 %1210 }
 0x37a   : > { %vm716_vm1 = vmor %vm714_vm5, %vm715_vm3  ;;  %v707_v8 = vsel %vm704_vm4, %v706_v5, %v702_v1  ;;  %v1212_v19 = vunpack.i.l.bf16 %v1211_v17 }
 0x37b   : > { %v711_v63 = vsub.f32 1.0, %v710_v33  ;;  %v708_v11 = vmul.f32 %v1617_v25, %v707_v8  ;;  %v1213_v25 = vunpack.i.h.bf16 %v1211_v17 }
 0x37c   : > { %v861_v18 = vsel %vm438_vm0, %v1601_v57, %v1212_v19 }
 0x37d   : > { %v712_v3 = vmul.f32 %v1250_v58, %v711_v63  ;;  %v862_v28 = vsel %vm438_vm0, %v1607_v2, %v1213_v25 }
 0x37f   : > { %v713_v6 = vadd.f32 %v1250_v58, %v712_v3 }
 0x381   : > { %v717_v9 = vsel %vm716_vm1, %v1250_v58, %v713_v6 }
 0x382   : > { %v722_v59 = vsel %vm719_vm6, %v721_v7, %v717_v9 }
 0x383   : > { %v723_v12 = vmul.f32 %v1246_v37, %v722_v59 }
 0x385   : > { %v724_v13 = vpack.c.bf16 %v723_v12, %v708_v11 }
 0x387   : > { %1102 = vmatmul.msk.bf16.vlgmr.msrb.gmra.mxu3 %vm463_vm2, %v724_v13 }
 0x38b   : > { %v840_v14 = vpop.f32.mrf.mxu2 }
 0x393   : > { %v842_v15 = vpop.f32.mrf.mxu2 }
 0x394   : > { %v1214_v16 = vpack.i.bf16 %v842_v15, %v840_v14 }
 0x396   : > { %1215 = vrot.lane.b32.xlu1 %v1214_v16, %s1339_s23 }
 0x408   : > { %v1216_v20 = vpop.permute.xlu1 %1215 }
 0x409   : > { %v1217_v21 = vunpack.i.l.bf16 %v1216_v20  ;;  %v1218_v26 = vunpack.i.h.bf16 %v1216_v20 }
 0x40a   : > { %v743_v22 = vpop.f32.mrf.mxu3 }
 0x40b   : > { %v863_v23 = vsel %vm438_vm0, %v743_v22, %v1217_v21 }
 0x40c   : > { %v865_v24 = vpack.c.bf16 %v863_v23, %v861_v18 }
 0x40e   : > { %867 = vst [vmem:[%s407_s12] sm:$0xff] %v865_v24 }
 0x412   : > { %v745_v27 = vpop.f32.mrf.mxu3  ;;  %875 = sbr.rel (!%p1473_p13) target bundleno = 1055 (0x41f), region = 159 }
 0x413   : > { %v864_v29 = vsel %vm438_vm0, %v745_v27, %v1218_v26 }
 0x414   : > { %v866_v30 = vpack.c.bf16 %v864_v29, %v862_v28 }
 0x415   : > { %v912_v57 = vld [vmem:[%s407_s12] sm:$0xff] (%p1473_p13) }
 0x416   : > { %868 = vst [vmem:[%s407_s12 + $0x8] sm:$0xff] %v866_v30 }
 0x417   : > { %913 = vst [vmem:[%s881_s10] sm:$0xff] %v912_v57 }
 0x41d   : > { %v914_v31 = vld [vmem:[%s407_s12 + $0x8] sm:$0xff] }
 0x41e   : > { %915 = vst [vmem:[%s881_s10 + $0x18] sm:$0xff] %v914_v31 }
 0x41f PF: > { %s13_s22 = sadd.s32 1, %s1337_s22   ;;  %s1694_s18 = sld [smem:[#allocation8_spill]] }
 0x420   : > { %p10_p4 = scmp.ge.s32.totalorder %s13_s22, 8   ;;  %s1695_s7 = sld [smem:[#allocation6_spill]] }
 0x421   : > { %s1696_s27 = sld [smem:[#allocation7_spill]]  ;;  %s1697_s12 = smov %s1301_s13 }
 0x422   : > { %s1698_s13 = smov %s1478_s26  ;;  %s1699_s14 = smov %s1309_s15 }
 0x423   : > { %s1700_s15 = smov %s1456_s28  ;;  %s1701_s16 = smov %s1317_s17 }
 0x424   : > { %s1704_s19 = smov %s1333_s21  ;;  %12 = sbr.rel (!%p10_p4) target bundleno = 8 (0x8), region = 247 }
 0x425   : > { %s1702_s17 = smov %s1694_s18  ;;  %s1703_s18 = smov %s1329_s20 }
 0x426   : > { %s1705_s20 = smov %s1695_s7 }
 0x427   : > { %s1706_s21 = smov %s1696_s27 }

// kernel: dino_forward.8
= control target key start
LH: loop header
LB: loop body
LE: loop exit
PB: predicated region body
PF: predicated region fallthrough
CT: control target
= control target key end

     0   :  { %10 = vsyncpa [#allocation4], 0  ;;  %s2377_s0 = inlined_call_operand.vmem [shape: f32[32,768], index: 0, kind: input, shape index: {}]   ;;  %s2378_s1 = inlined_call_operand.vmem [shape: f32[1,768], index: 1, kind: input, shape index: {}]   ;;  %s2379_s2 = inlined_call_operand.vmem [shape: f32[1,768], index: 2, kind: input, shape index: {}]   ;;  %s2380_s3 = inlined_call_operand.hbm [shape: bf16[768,2304], index: 3, kind: input, shape index: {}]   ;;  %s2381_s4 = inlined_call_operand.vmem [shape: f32[1,2304], index: 4, kind: input, shape index: {}]   ;;  %s2382_s5 = inlined_call_operand.vmem [shape: bf16[18,32,128], index: 5, kind: output, shape index: {}]  }
   0x1   :  { %12 = vsyncpa [#allocation4 + $0x1], 0  ;;  %s1849_s18 = smov 0   ;;  %s1851_s19 = smov 0  }
   0x2   :  { %s1853_s20 = smov 0   ;;  %s1855_s21 = smov 0  }
   0x3   :  { %s1857_s22 = smov 0   ;;  %s1859_s23 = smov 0  }
   0x4 LB: > { %s1321_s24 = sadd.s32 4294967295, %s1813_s23   ;;  %s27_s25 = sadd.s32 1, %s1809_s22  ;;  %s1813_s23 = sphi %s1859_s23, %s18_s23   ;;  %s1809_s22 = sphi %s1857_s22, %s2388_s22   ;;  %s1805_s21 = sphi %s1855_s21, %s2387_s21   ;;  %s1801_s20 = sphi %s1853_s20, %s2386_s20   ;;  %s1797_s19 = sphi %s1851_s19, %s2385_s19   ;;  %s1793_s18 = sphi %s1849_s18, %s2384_s18  }
   0x5   : > { %p28_p0 = scmp.ge.s32.totalorder %s27_s25, 18  ;;  %s105_s26 = sadd.s32 1, %s1801_s20 }
   0x6   : > { %p112_p1 = scmp.ne.s32.totalorder %s1801_s20, %s1797_s19  ;;  %p113_p2 = scmp.eq.s32.totalorder %s1813_s23, 0 }
   0x7   : > { %s2390_s25 = smov (%p28_p0, %s27_s25), 0  ;;  %p118_p4 = scmp.ne.s32.totalorder %s1797_s19, %s1793_s18 }
   0x8   : > { %p114_p3 = por %p113_p2, %p112_p1  ;;  %s102_s27 = ssub.s32 %s1809_s22, %s2390_s25 }
   0x9   : > { %p119_p5 = scmp.eq.s32.totalorder %s1321_s24, 0  ;;  %p103_p6 = scmp.eq.s32.totalorder %s102_s27, 0 }
   0xa   : > { %p1669_p8 = scmp.lt.s32.totalorder %s1813_s23, 18  ;;  %s212_s30 = sand.u32 1, %s1801_s20  }
   0xb   : > { %p1888_p7 = por %p119_p5, %p118_p4  ;;  %s1326_s6 = sshll.u32 %s1809_s22, 2 }
   0xc   : > { %s1894_s29 = scalar_select %p103_p6, %s1801_s20, %s105_s26  }
   0xd   : > { %s1661_s7 = smul.u32 384, %s212_s30  ;;  %s220_s10 = scalar_lea.hbm %s2380_s3, %s1326_s6 }
   0xe   : > { %p1666_p9 = pnand %p1669_p8, %p114_p3  ;;  %s221_s11 = sshll.u32 %s220_s10, 4  ;;  %s222_s11 = int_to_ptr.hbm [resolvable:$true] %s221_s11 }
   0xf   : > { %s216_s12 = scalar_lea.vmem [#allocation3], %s1661_s7  ;;  %p1327_p10 = scmp.ge.s32.totalorder %s1813_s23, 1 }
  0x10   : > { %s223_s13 = sshll.u32 %s216_s12, 4  ;;  %s213_s14 = scalar_lea.sflag [#allocation4], %s212_s30  ;;  %s224_s13 = int_to_ptr.vmem [resolvable:$true] %s223_s13 }
  0x11   : > { %s1815_s15 = smov 1152   ;;  %s1816_s16 = smov 64  }
  0x12   : > { %s1817_s17 = smov 4   ;;  %p237_p11 = scmp.lt.s32.totalorder %s1813_s23, 19 }
  0x13   : > { %1668 = dma.hbm_to_vmem [thread:$0]  (!%p1666_p9), %s222_s11, 6144, %s224_s13, %s213_s14, %s1815_s15, %s1816_s16, %s1817_s17  }
  0x14   : > { %p238_p12 = pnand %p1327_p10, %p237_p11 }
  0x15   : > { %s243_s18 = sand.u32 (!%p238_p12), 1, %s1797_s19  }
  0x16   : > { %241 = sbr.rel (%p238_p12) target bundleno = 564 (0x234), region = 40  ;;  %s244_s26 = scalar_lea.sflag (!%p238_p12), [#allocation4], %s243_s18 }
  0x17   : > { %s1662_s24 = smul.u32 (!%p238_p12), 384, %s243_s18 }
  0x19   : > { %s1904_s27 = scalar_lea.vmem (!%p238_p12), [#allocation3], %s1662_s24 }
  0x1b   : > { %1788 = dma.done.wait (%p1888_p7), %s244_s26, 6144  }
  0x1c   : > { %1790 = vsyncadd (%p1888_p7), %s244_s26, 4294961152  ;;  %p295_p13 = scmp.lt.s32.totalorder %s1805_s21, 17  ;;  %p1330_p0 = scmp.ne.s32.totalorder %s1805_s21, 0 }
  0x1e   : > { %s1912_s30 = scalar_select %p295_p13, %s1805_s21, 17 }
  0x1f   : > { %311 = sbr.rel (%p1330_p0) target bundleno = 351 (0x15f), region = 48 }
  0x20   : > { %s297_s8 = scalar_lea.vmem %s2381_s4, %s1912_s30  ;;  %s1573_s9 = sshll.u32 %s1912_s30, 4 }
  0x21   : > { %s1922_s12 = scalar_lea.vmem %s2382_s5, %s1573_s9 }
  0x24   : > { %v324_v0 = vld [vmem:[%s2377_s0 + $0x60] sm:$0xff]  ;;  %v325_v1 = vld [vmem:[%s2377_s0 + $0x68] sm:$0xff]  ;;  %v326_v2 = vld [vmem:[%s2377_s0 + $0x70] sm:$0xff]  ;;  %v1818_v44 = vmov 768.0  }
  0x25   : > { %v327_v3 = vld [vmem:[%s2377_s0 + $0x78] sm:$0xff]  ;;  %v350_v4 = vadd.f32 %v325_v1, %v324_v0  ;;  %v1940_v5 = vld [vmem:[%s2377_s0] sm:$0xff]  ;;  %v1945_v6 = vld [vmem:[%s2377_s0 + $0x8] sm:$0xff]  ;;  %1722 = vrcp.f32 %v1818_v44 }
  0x26   : > { %v1950_v7 = vld [vmem:[%s2377_s0 + $0x10] sm:$0xff]  ;;  %v328_v8 = vld [vmem:[%s2377_s0 + $0x80] sm:$0xff]  ;;  %v1958_v10 = vld [vmem:[%s2377_s0 + $0x18] sm:$0xff]  ;;  %v336_v11 = vadd.f32 %v1945_v6, %v1940_v5 }
  0x27   : > { %v351_v9 = vadd.f32 %v350_v4, %v326_v2  ;;  %v1965_v12 = vld [vmem:[%s2377_s0 + $0x90] sm:$0xff]  ;;  %v1970_v13 = vld [vmem:[%s2377_s0 + $0x98] sm:$0xff]  ;;  %v1975_v14 = vld [vmem:[%s2377_s0 + $0xa0] sm:$0xff] }
  0x28   : > { %v329_v15 = vld [vmem:[%s2377_s0 + $0x88] sm:$0xff]  ;;  %v1983_v17 = vld [vmem:[%s2377_s0 + $0x20] sm:$0xff]  ;;  %v337_v18 = vadd.f32 %v336_v11, %v1950_v7  ;;  %v357_v20 = vadd.f32 %v1970_v13, %v1965_v12  ;;  %v1996_v21 = vld [vmem:[%s2377_s0 + $0x30] sm:$0xff] }
  0x29   : > { %v352_v16 = vadd.f32 %v351_v9, %v327_v3  ;;  %v1989_v19 = vld [vmem:[%s2377_s0 + $0xa8] sm:$0xff]  ;;  %v2001_v22 = vld [vmem:[%s2377_s0 + $0x38] sm:$0xff]  ;;  %v2006_v23 = vld [vmem:[%s2377_s0 + $0x40] sm:$0xff] }
  0x2a   : > { %v338_v25 = vadd.f32 %v337_v18, %v1958_v10  ;;  %v358_v26 = vadd.f32 %v357_v20, %v1975_v14  ;;  %v343_v27 = vadd.f32 %v2001_v22, %v1996_v21  ;;  %v2015_v28 = vld [vmem:[%s2377_s0 + $0x28] sm:$0xff]  ;;  %v2020_v29 = vld [vmem:[%s2377_s0 + $0xb0] sm:$0xff]  ;;  %v2041_v39 = vld [vmem:[%s2377_s0 + $0xb8] sm:$0xff] }
  0x2b   : > { %v353_v24 = vadd.f32 %v352_v16, %v328_v8  ;;  %v2025_v30 = vld [vmem:[%s2377_s0 + $0x48] sm:$0xff]  ;;  %v2033_v35 = vld [vmem:[%s2377_s0 + $0x50] sm:$0xff]  ;;  %v2047_v41 = vld [vmem:[%s2377_s0 + $0x58] sm:$0xff]  ;;  %v1723_v45 = vpop.eup %1722 }
  0x2c   : > { %v339_v32 = vadd.f32 %v338_v25, %v1983_v17  ;;  %v359_v33 = vadd.f32 %v358_v26, %v1989_v19  ;;  %v344_v34 = vadd.f32 %v343_v27, %v2006_v23  ;;  %v365_v46 = vmul.f32 768.0, %v1723_v45 }
  0x2d   : > { %v354_v31 = vadd.f32 %v353_v24, %v329_v15  ;;  %vm369_vm0 = vweird.f32 %v1723_v45 }
  0x2e   : > { %v340_v36 = vadd.f32 %v339_v32, %v2015_v28  ;;  %v360_v37 = vadd.f32 %v359_v33, %v2020_v29  ;;  %v345_v38 = vadd.f32 %v344_v34, %v2025_v30  ;;  %v366_v47 = vsub.f32 1.0, %v365_v46 }
  0x2f   : > { %355 = vadd.xlane.f32.xlu1 %v354_v31 }
  0x30   : > { %341 = vadd.xlane.f32.xlu0 %v340_v36  ;;  %v346_v40 = vadd.f32 %v345_v38, %v2033_v35  ;;  %v361_v42 = vadd.f32 %v360_v37, %v2041_v39  ;;  %v367_v48 = vmul.f32 %v1723_v45, %v366_v47 }
  0x32   : > { %v347_v43 = vadd.f32 %v346_v40, %v2047_v41  ;;  %v368_v49 = vadd.f32 %v1723_v45, %v367_v48 }
  0x34   : > { %v2051_v50 = vsel %vm369_vm0, %v1723_v45, %v368_v49 }
  0x37   : > { %362 = vadd.xlane.f32.xlu1 %v361_v42 }
  0x38   : > { %348 = vadd.xlane.f32.xlu0 %v347_v43 }
  0xa2   : > { %v356_v51 = vpop.xlane.xlu1 %355 }
  0xa3   : > { %v373_v52 = vmul.f32 %v2051_v50, %v356_v51  ;;  %v342_v53 = vpop.xlane.xlu0 %341 }
  0xa4   : > { %v371_v54 = vmul.f32 %v2051_v50, %v342_v53 }
  0xa5   : > { %v2055_v55 = vsub.f32 %v324_v0, %v373_v52  ;;  %v2057_v56 = vsub.f32 %v325_v1, %v373_v52  ;;  %v2059_v57 = vsub.f32 %v326_v2, %v373_v52  ;;  %v2061_v58 = vsub.f32 %v327_v3, %v373_v52 }
  0xa6   : > { %v2063_v59 = vsub.f32 %v328_v8, %v373_v52  ;;  %v2070_v62 = vsub.f32 %v1940_v5, %v371_v54  ;;  %v2072_v63 = vsub.f32 %v329_v15, %v373_v52  ;;  %v2075_v0 = vsub.f32 %v1945_v6, %v371_v54 }
  0xa7   : > { %v411_v60 = vmul.f32 %v2055_v55, %v2055_v55  ;;  %v412_v61 = vmul.f32 %v2057_v56, %v2057_v56  ;;  %v413_v1 = vmul.f32 %v2059_v57, %v2059_v57  ;;  %v2080_v3 = vsub.f32 %v1950_v7, %v371_v54 }
  0xa8   : > { %v2083_v8 = vsub.f32 %v1958_v10, %v371_v54  ;;  %v399_v5 = vmul.f32 %v2070_v62, %v2070_v62  ;;  %v400_v9 = vmul.f32 %v2075_v0, %v2075_v0  ;;  %v414_v11 = vmul.f32 %v2061_v58, %v2061_v58 }
  0xa9   : > { %v437_v2 = vadd.f32 %v412_v61, %v411_v60  ;;  %v415_v15 = vmul.f32 %v2063_v59, %v2063_v59  ;;  %v416_v10 = vmul.f32 %v2072_v63, %v2072_v63  ;;  %v2097_v18 = vsub.f32 %v1983_v17, %v371_v54 }
  0xaa   : > { %v363_v4 = vpop.xlane.xlu1 %362  ;;  %v401_v20 = vmul.f32 %v2080_v3, %v2080_v3  ;;  %v423_v24 = vadd.f32 %v400_v9, %v399_v5  ;;  %v2109_v32 = vsub.f32 %v2015_v28, %v371_v54  ;;  %v402_v17 = vmul.f32 %v2083_v8, %v2083_v8 }
  0xab   : > { %v374_v6 = vmul.f32 %v2051_v50, %v363_v4  ;;  %v438_v7 = vadd.f32 %v437_v2, %v413_v1  ;;  %v349_v16 = vpop.xlane.xlu0 %348  ;;  %v403_v28 = vmul.f32 %v2097_v18, %v2097_v18 }
  0xac   : > { %v372_v25 = vmul.f32 %v2051_v50, %v349_v16  ;;  %v424_v33 = vadd.f32 %v423_v24, %v401_v20  ;;  %v404_v44 = vmul.f32 %v2109_v32, %v2109_v32 }
  0xad   : > { %v439_v26 = vadd.f32 %v438_v7, %v414_v11  ;;  %v2103_v27 = vsub.f32 %v1965_v12, %v374_v6  ;;  %v2106_v31 = vsub.f32 %v1970_v13, %v374_v6  ;;  %v2114_v34 = vsub.f32 %v1975_v14, %v374_v6 }
  0xae   : > { %v2117_v37 = vsub.f32 %v1989_v19, %v374_v6  ;;  %v425_v38 = vadd.f32 %v424_v33, %v402_v17  ;;  %v2126_v40 = vsub.f32 %v2020_v29, %v374_v6  ;;  %v2131_v19 = vsub.f32 %v1996_v21, %v372_v25 }
  0xaf   : > { %v440_v36 = vadd.f32 %v439_v26, %v415_v15  ;;  %v417_v12 = vmul.f32 %v2103_v27, %v2103_v27  ;;  %v418_v13 = vmul.f32 %v2106_v31, %v2106_v31  ;;  %v419_v14 = vmul.f32 %v2114_v34, %v2114_v34 }
  0xb0   : > { %v426_v45 = vadd.f32 %v425_v38, %v403_v28  ;;  %v2136_v46 = vsub.f32 %v2001_v22, %v372_v25  ;;  %v2139_v47 = vsub.f32 %v2006_v23, %v372_v25  ;;  %v2142_v29 = vsub.f32 %v2041_v39, %v374_v6 }
  0xb1   : > { %v441_v42 = vadd.f32 %v440_v36, %v416_v10  ;;  %v444_v43 = vadd.f32 %v418_v13, %v417_v12  ;;  %v420_v48 = vmul.f32 %v2117_v37, %v2117_v37  ;;  %v405_v21 = vmul.f32 %v2131_v19, %v2131_v19  ;;  %v523_v12 = vld [vmem:[%s2378_s1] sm:$0x3f] }
  0xb2   : > { %v427_v51 = vadd.f32 %v426_v45, %v404_v44  ;;  %v2149_v52 = vsub.f32 %v2025_v30, %v372_v25  ;;  %v406_v22 = vmul.f32 %v2136_v46, %v2136_v46  ;;  %v421_v23 = vmul.f32 %v2126_v40, %v2126_v40  ;;  %v561_v45 = vld [vmem:[%s2379_s2] sm:$0x3f] }
  0xb3   : > { %442 = vadd.xlane.f32.xlu0 %v441_v42  ;;  %v445_v49 = vadd.f32 %v444_v43, %v419_v14  ;;  %v2156_v39 = vsub.f32 %v2033_v35, %v372_v25  ;;  %v407_v54 = vmul.f32 %v2139_v47, %v2139_v47  ;;  %v422_v61 = vmul.f32 %v2142_v29, %v2142_v29 }
  0xb4   : > { %428 = vadd.xlane.f32.xlu2 %v427_v51  ;;  %v430_v60 = vadd.f32 %v406_v22, %v405_v21  ;;  %v2163_v1 = vsub.f32 %v2047_v41, %v372_v25  ;;  %v408_v2 = vmul.f32 %v2149_v52, %v2149_v52  ;;  %v2181_v43 = vperm.slane %v523_v12, 0 }
  0xb5   : > { %v446_v53 = vadd.f32 %v445_v49, %v420_v48  ;;  %v409_v35 = vmul.f32 %v2156_v39, %v2156_v39  ;;  %v2183_v44 = vperm.slane %v523_v12, 1  ;;  %v2188_v49 = vperm.slane %v523_v12, 2 }
  0xb6   : > { %v431_v4 = vadd.f32 %v430_v60, %v407_v54  ;;  %v410_v6 = vmul.f32 %v2163_v1, %v2163_v1  ;;  %v2190_v21 = vperm.slane %v523_v12, 3  ;;  %v2192_v51 = vperm.slane %v523_v12, 4 }
  0xb7   : > { %v447_v30 = vadd.f32 %v446_v53, %v421_v23  ;;  %v2194_v23 = vperm.slane %v523_v12, 5  ;;  %v2200_v60 = vperm.slane %v561_v45, 0 }
  0xb8   : > { %v432_v9 = vadd.f32 %v431_v4, %v408_v2  ;;  %v2206_v4 = vperm.slane %v561_v45, 3 }
  0xb9   : > { %v448_v5 = vadd.f32 %v447_v30, %v422_v61  ;;  %v2202_v61 = vperm.slane %v561_v45, 1  ;;  %v2204_v30 = vperm.slane %v561_v45, 2 }
  0xba   : > { %v433_v11 = vadd.f32 %v432_v9, %v409_v35  ;;  %v2210_v9 = vperm.slane %v561_v45, 4 }
  0xbb   : > { %449 = vadd.xlane.f32.xlu1 %v448_v5 }
  0xbc   : > { %v434_v15 = vadd.f32 %v433_v11, %v410_v6  ;;  %v2212_v6 = vperm.slane %v561_v45, 5 }
  0xbe   : > { %435 = vadd.xlane.f32.xlu2 %v434_v15 }
 0x126   : > { %v443_v7 = vpop.xlane.xlu0 %442 }
 0x127   : > { %v453_v41 = vmul.f32 %v443_v7, %v2051_v50  ;;  %v429_v16 = vpop.xlane.xlu2 %428 }
 0x128   : > { %v451_v20 = vmul.f32 %v429_v16, %v2051_v50 }
 0x129   : > { %v457_v10 = vadd.f32 1e-06, %v453_v41 }
 0x12a   : > { %v455_v24 = vadd.f32 1e-06, %v451_v20 }
 0x12b   : > { %1724 = vrsqrt.f32 %v457_v10  ;;  %vm485_vm2 = vweird.f32 %v457_v10 }
 0x12c   : > { %1726 = vrsqrt.f32 %v455_v24  ;;  %vm465_vm5 = vweird.f32 %v455_v24 }
 0x12e   : > { %v450_v25 = vpop.xlane.xlu1 %449 }
 0x12f   : > { %v454_v26 = vmul.f32 %v450_v25, %v2051_v50 }
 0x131   : > { %v1725_v17 = vpop.eup %1724  ;;  %v2174_v33 = vadd.f32 1e-06, %v454_v26  ;;  %v436_v13 = vpop.xlane.xlu2 %435 }
 0x132   : > { %v480_v36 = vmul.f32 %v1725_v17, %v457_v10  ;;  %v1727_v28 = vpop.eup %1726  ;;  %v452_v42 = vmul.f32 %v436_v13, %v2051_v50  ;;  %vm486_vm1 = vweird.f32 %v1725_v17 }
 0x133   : > { %1728 = vrsqrt.f32 %v2174_v33  ;;  %v460_v14 = vmul.f32 %v1727_v28, %v455_v24  ;;  %vm466_vm3 = vweird.f32 %v1727_v28  ;;  %vm487_vm4 = vmor %vm485_vm2, %vm486_vm1  ;;  %vm495_vm8 = vweird.f32 %v2174_v33 }
 0x134   : > { %v481_v38 = vmul.f32 %v1725_v17, %v480_v36  ;;  %v2196_v53 = vadd.f32 1e-06, %v452_v42  ;;  %vm467_vm6 = vmor %vm465_vm5, %vm466_vm3 }
 0x135   : > { %v461_v22 = vmul.f32 %v1727_v28, %v460_v14 }
 0x136   : > { %v482_v48 = vmul.f32 0.5, %v481_v38  ;;  %1730 = vrsqrt.f32 %v2196_v53  ;;  %vm475_vm11 = vweird.f32 %v2196_v53 }
 0x137   : > { %v462_v2 = vmul.f32 0.5, %v461_v22 }
 0x138   : > { %v483_v50 = vsub.f32 1.5, %v482_v48 }
 0x139   : > { %v2198_v54 = vpop.eup %1728  ;;  %v463_v11 = vsub.f32 1.5, %v462_v2 }
 0x13a   : > { %v484_v5 = vmul.f32 %v1725_v17, %v483_v50  ;;  %v490_v35 = vmul.f32 %v2198_v54, %v2174_v33  ;;  %vm496_vm7 = vweird.f32 %v2198_v54 }
 0x13b   : > { %v464_v41 = vmul.f32 %v1727_v28, %v463_v11  ;;  %vm497_vm9 = vmor %vm495_vm8, %vm496_vm7 }
 0x13c   : > { %v488_v15 = vsel %vm487_vm4, %v1725_v17, %v484_v5  ;;  %v491_v7 = vmul.f32 %v2198_v54, %v490_v35  ;;  %v2235_v14 = vpop.eup %1730 }
 0x13d   : > { %v511_v16 = vmul.f32 %v488_v15, %v2055_v55  ;;  %v512_v10 = vmul.f32 %v488_v15, %v2057_v56  ;;  %v513_v20 = vmul.f32 %v488_v15, %v2059_v57  ;;  %v514_v25 = vmul.f32 %v488_v15, %v2061_v58 }
 0x13e   : > { %v515_v26 = vmul.f32 %v488_v15, %v2063_v59  ;;  %v516_v36 = vmul.f32 %v488_v15, %v2072_v63  ;;  %v492_v24 = vmul.f32 0.5, %v491_v7  ;;  %v468_v17 = vsel %vm467_vm6, %v1727_v28, %v464_v41 }
 0x13f   : > { %v549_v12 = vmul.f32 %v2181_v43, %v511_v16  ;;  %v550_v13 = vmul.f32 %v2183_v44, %v512_v10  ;;  %v551_v38 = vmul.f32 %v2188_v49, %v513_v20  ;;  %v499_v55 = vmul.f32 %v468_v17, %v2070_v62 }
 0x140   : > { %v500_v56 = vmul.f32 %v468_v17, %v2075_v0  ;;  %v501_v57 = vmul.f32 %v468_v17, %v2080_v3  ;;  %v502_v58 = vmul.f32 %v468_v17, %v2083_v8  ;;  %v503_v59 = vmul.f32 %v468_v17, %v2097_v18 }
 0x141   : > { %v504_v63 = vmul.f32 %v468_v17, %v2109_v32  ;;  %v552_v28 = vmul.f32 %v2190_v21, %v514_v25  ;;  %v553_v42 = vmul.f32 %v2192_v51, %v515_v26  ;;  %v537_v45 = vmul.f32 %v2181_v43, %v499_v55 }
 0x142   : > { %v538_v62 = vmul.f32 %v2183_v44, %v500_v56  ;;  %v539_v0 = vmul.f32 %v2188_v49, %v501_v57  ;;  %v540_v3 = vmul.f32 %v2190_v21, %v502_v58  ;;  %v541_v8 = vmul.f32 %v2192_v51, %v503_v59 }
 0x143   : > { %v542_v18 = vmul.f32 %v2194_v23, %v504_v63  ;;  %v554_v32 = vmul.f32 %v2194_v23, %v516_v36  ;;  %v587_v48 = vadd.f32 %v2200_v60, %v549_v12  ;;  %v575_v22 = vadd.f32 %v2200_v60, %v537_v45 }
 0x144   : > { %v576_v50 = vadd.f32 %v2202_v61, %v538_v62  ;;  %v577_v2 = vadd.f32 %v2204_v30, %v539_v0  ;;  %v578_v5 = vadd.f32 %v2206_v4, %v540_v3  ;;  %v579_v35 = vadd.f32 %v2210_v9, %v541_v8 }
 0x145   : > { %v580_v11 = vadd.f32 %v2212_v6, %v542_v18  ;;  %v588_v15 = vadd.f32 %v2202_v61, %v550_v13  ;;  %v589_v7 = vadd.f32 %v2204_v30, %v551_v38  ;;  %v590_v10 = vadd.f32 %v2206_v4, %v552_v28 }
 0x146   : > { %v599_v41 = vpack.c.bf16 %v576_v50, %v575_v22  ;;  %v600_v16 = vpack.c.bf16 %v578_v5, %v577_v2  ;;  %v591_v20 = vadd.f32 %v2210_v9, %v553_v42  ;;  %v592_v26 = vadd.f32 %v2212_v6, %v554_v32 }
 0x147   : > { %v601_v25 = vpack.c.bf16 %v580_v11, %v579_v35  ;;  %v605_v36 = vpack.c.bf16 %v588_v15, %v587_v48  ;;  %v493_v17 = vsub.f32 1.5, %v492_v24  ;;  %v606_v12 = vpack.c.bf16 %v590_v10, %v589_v7 }
 0x148   : > { %611 = vst [vmem:[#allocation2] sm:$0xff] %v599_v41  ;;  %v470_v55 = vmul.f32 %v2235_v14, %v2196_v53  ;;  %v607_v13 = vpack.c.bf16 %v592_v26, %v591_v20  ;;  %vm476_vm10 = vweird.f32 %v2235_v14 }
 0x149   : > { %612 = vst [vmem:[#allocation2 + $0x8] sm:$0xff] %v600_v16  ;;  %v494_v38 = vmul.f32 %v2198_v54, %v493_v17  ;;  %vm477_vm12 = vmor %vm475_vm11, %vm476_vm10 }
 0x14a   : > { %613 = vst [vmem:[#allocation2 + $0x10] sm:$0xff] %v601_v25  ;;  %v471_v56 = vmul.f32 %v2235_v14, %v470_v55 }
 0x14b   : > { %617 = vst [vmem:[#allocation2 + $0x30] sm:$0xff] %v605_v36  ;;  %v498_v24 = vsel %vm497_vm9, %v2198_v54, %v494_v38 }
 0x14c   : > { %618 = vst [vmem:[#allocation2 + $0x38] sm:$0xff] %v606_v12  ;;  %v517_v57 = vmul.f32 %v498_v24, %v2103_v27  ;;  %v518_v58 = vmul.f32 %v498_v24, %v2106_v31  ;;  %v519_v59 = vmul.f32 %v498_v24, %v2114_v34  ;;  %v520_v63 = vmul.f32 %v498_v24, %v2117_v37 }
 0x14d   : > { %619 = vst [vmem:[#allocation2 + $0x40] sm:$0xff] %v607_v13  ;;  %v521_v33 = vmul.f32 %v498_v24, %v2126_v40  ;;  %v522_v28 = vmul.f32 %v498_v24, %v2142_v29  ;;  %v472_v42 = vmul.f32 0.5, %v471_v56 }
 0x14e   : > { %v555_v45 = vmul.f32 %v2181_v43, %v517_v57  ;;  %v556_v62 = vmul.f32 %v2183_v44, %v518_v58  ;;  %v557_v54 = vmul.f32 %v2188_v49, %v519_v59  ;;  %v558_v27 = vmul.f32 %v2190_v21, %v520_v63 }
 0x14f   : > { %v559_v31 = vmul.f32 %v2192_v51, %v521_v33  ;;  %v560_v34 = vmul.f32 %v2194_v23, %v522_v28  ;;  %v473_v0 = vsub.f32 1.5, %v472_v42 }
 0x150   : > { %v593_v37 = vadd.f32 %v2200_v60, %v555_v45  ;;  %v594_v40 = vadd.f32 %v2202_v61, %v556_v62  ;;  %v595_v29 = vadd.f32 %v2204_v30, %v557_v54  ;;  %v596_v3 = vadd.f32 %v2206_v4, %v558_v27 }
 0x151   : > { %v597_v8 = vadd.f32 %v2210_v9, %v559_v31  ;;  %v598_v18 = vadd.f32 %v2212_v6, %v560_v34  ;;  %v474_v32 = vmul.f32 %v2235_v14, %v473_v0 }
 0x152   : > { %v608_v48 = vpack.c.bf16 %v594_v40, %v593_v37  ;;  %v609_v22 = vpack.c.bf16 %v596_v3, %v595_v29 }
 0x153   : > { %v610_v50 = vpack.c.bf16 %v598_v18, %v597_v8  ;;  %v478_v2 = vsel %vm477_vm12, %v2235_v14, %v474_v32 }
 0x154   : > { %620 = vst [vmem:[#allocation2 + $0x48] sm:$0xff] %v608_v48  ;;  %v505_v5 = vmul.f32 %v478_v2, %v2131_v19  ;;  %v506_v35 = vmul.f32 %v478_v2, %v2136_v46  ;;  %v507_v11 = vmul.f32 %v478_v2, %v2139_v47  ;;  %v508_v15 = vmul.f32 %v478_v2, %v2149_v52 }
 0x155   : > { %621 = vst [vmem:[#allocation2 + $0x50] sm:$0xff] %v609_v22  ;;  %v509_v7 = vmul.f32 %v478_v2, %v2156_v39  ;;  %v510_v53 = vmul.f32 %v478_v2, %v2163_v1 }
 0x156   : > { %622 = vst [vmem:[#allocation2 + $0x58] sm:$0xff] %v610_v50  ;;  %v543_v41 = vmul.f32 %v2181_v43, %v505_v5  ;;  %v544_v16 = vmul.f32 %v2183_v44, %v506_v35  ;;  %v545_v14 = vmul.f32 %v2188_v49, %v507_v11  ;;  %v546_v19 = vmul.f32 %v2190_v21, %v508_v15 }
 0x157   : > { %v547_v46 = vmul.f32 %v2192_v51, %v509_v7  ;;  %v548_v47 = vmul.f32 %v2194_v23, %v510_v53 }
 0x158   : > { %v581_v52 = vadd.f32 %v2200_v60, %v543_v41  ;;  %v582_v10 = vadd.f32 %v2202_v61, %v544_v16  ;;  %v583_v39 = vadd.f32 %v2204_v30, %v545_v14  ;;  %v584_v1 = vadd.f32 %v2206_v4, %v546_v19 }
 0x159   : > { %v585_v43 = vadd.f32 %v2210_v9, %v547_v46  ;;  %v586_v44 = vadd.f32 %v2212_v6, %v548_v47 }
 0x15a   : > { %v602_v20 = vpack.c.bf16 %v582_v10, %v581_v52  ;;  %v603_v49 = vpack.c.bf16 %v584_v1, %v583_v39 }
 0x15b   : > { %v604_v25 = vpack.c.bf16 %v586_v44, %v585_v43 }
 0x15c   : > { %614 = vst [vmem:[#allocation2 + $0x18] sm:$0xff] %v602_v20 }
 0x15d   : > { %615 = vst [vmem:[#allocation2 + $0x20] sm:$0xff] %v603_v49 }
 0x15e   : > { %616 = vst [vmem:[#allocation2 + $0x28] sm:$0xff] %v604_v25 }
 0x15f PF: > { %v1593_v21 = vld [vmem:[%s1904_s27 + $0x38] sm:$0xff]  ;;  %v1592_v61 = vld [vmem:[%s1904_s27 + $0x30] sm:$0xff]  ;;  %v1591_v6 = vld [vmem:[%s1904_s27 + $0x28] sm:$0xff] }
 0x160   : > { %v1601_v51 = vld [vmem:[%s1904_s27 + $0x78] sm:$0xff]  ;;  %1083 = vmatpush.bf16.msra.mxu0 %v1593_v21  ;;  %v1600_v30 = vld [vmem:[%s1904_s27 + $0x70] sm:$0xff]  ;;  %v1599_v26 = vld [vmem:[%s1904_s27 + $0x68] sm:$0xff] }
 0x161   : > { %v1609_v23 = vld [vmem:[%s1904_s27 + $0xb8] sm:$0xff]  ;;  %1102 = vmatpush.bf16.msra.mxu1 %v1601_v51  ;;  %v1608_v4 = vld [vmem:[%s1904_s27 + $0xb0] sm:$0xff]  ;;  %v1607_v36 = vld [vmem:[%s1904_s27 + $0xa8] sm:$0xff] }
 0x162   : > { %v1617_v60 = vld [vmem:[%s1904_s27 + $0xf8] sm:$0xff]  ;;  %1121 = vmatpush.bf16.msra.mxu2 %v1609_v23  ;;  %v1616_v9 = vld [vmem:[%s1904_s27 + $0xf0] sm:$0xff]  ;;  %v1615_v17 = vld [vmem:[%s1904_s27 + $0xe8] sm:$0xff] }
 0x163   : > { %1140 = vmatpush.bf16.msra.mxu3 %v1617_v60  ;;  %v1590_v12 = vld [vmem:[%s1904_s27 + $0x20] sm:$0xff]  ;;  %v1589_v56 = vld [vmem:[%s1904_s27 + $0x18] sm:$0xff]  ;;  %v1588_v59 = vld [vmem:[%s1904_s27 + $0x10] sm:$0xff] }
 0x164   : > { %1084 = vmatpush.bf16.msra.mxu0 %v1592_v61  ;;  %v1598_v55 = vld [vmem:[%s1904_s27 + $0x60] sm:$0xff]  ;;  %v1597_v24 = vld [vmem:[%s1904_s27 + $0x58] sm:$0xff]  ;;  %v1596_v63 = vld [vmem:[%s1904_s27 + $0x50] sm:$0xff] }
 0x165   : > { %1103 = vmatpush.bf16.msra.mxu1 %v1600_v30  ;;  %v1606_v13 = vld [vmem:[%s1904_s27 + $0xa0] sm:$0xff]  ;;  %v1605_v57 = vld [vmem:[%s1904_s27 + $0x98] sm:$0xff]  ;;  %v1604_v33 = vld [vmem:[%s1904_s27 + $0x90] sm:$0xff] }
 0x166   : > { %1122 = vmatpush.bf16.msra.mxu2 %v1608_v4  ;;  %v1614_v38 = vld [vmem:[%s1904_s27 + $0xe0] sm:$0xff]  ;;  %v1613_v58 = vld [vmem:[%s1904_s27 + $0xd8] sm:$0xff]  ;;  %v1612_v28 = vld [vmem:[%s1904_s27 + $0xd0] sm:$0xff] }
 0x167   : > { %1141 = vmatpush.bf16.msra.mxu3 %v1616_v9  ;;  %v1587_v42 = vld [vmem:[%s1904_s27 + $0x8] sm:$0xff]  ;;  %v1586_v27 = vld [vmem:[%s1904_s27] sm:$0xff]  ;;  %v1577_v40 = vld [vmem:[#allocation2 + $0x14] sm:$0xf0] }
 0x168   : > { %1085 = vmatpush.bf16.msra.mxu0 %v1591_v6  ;;  %v1595_v45 = vld [vmem:[%s1904_s27 + $0x48] sm:$0xff]  ;;  %v1594_v31 = vld [vmem:[%s1904_s27 + $0x40] sm:$0xff]  ;;  %v1335_v3 = vld [vmem:[#allocation2 + $0x18] sm:$0xf0] }
 0x169   : > { %1104 = vmatpush.bf16.msra.mxu1 %v1599_v26  ;;  %v1603_v62 = vld [vmem:[%s1904_s27 + $0x88] sm:$0xff]  ;;  %v1602_v34 = vld [vmem:[%s1904_s27 + $0x80] sm:$0xff]  ;;  %v1625_v22 = vld [vmem:[%s1904_s27 + $0x138] sm:$0xff] }
 0x16a   : > { %1123 = vmatpush.bf16.msra.mxu2 %v1607_v36  ;;  %v1611_v54 = vld [vmem:[%s1904_s27 + $0xc8] sm:$0xff]  ;;  %v1610_v0 = vld [vmem:[%s1904_s27 + $0xc0] sm:$0xff]  ;;  %v1633_v11 = vld [vmem:[%s1904_s27 + $0x178] sm:$0xff] }
 0x16b   : > { %1142 = vmatpush.bf16.msra.mxu3 %v1615_v17  ;;  %v1333_v37 = vld [vmem:[#allocation2] sm:$0xf]  ;;  %v1574_v29 = vld [vmem:[#allocation2 + $0x4] sm:$0xf]  ;;  %v1341_v8 = vld [vmem:[#allocation2 + $0x8] sm:$0xf] }
 0x16c   : > { %1086 = vmatpush.bf16.msra.mxu0 %v1590_v12  ;;  %v1578_v18 = vld [vmem:[#allocation2 + $0x1c] sm:$0xf0]  ;;  %v1575_v32 = vld [vmem:[#allocation2 + $0xc] sm:$0xf]  ;;  %v1343_v48 = vld [vmem:[#allocation2 + $0x20] sm:$0xf0]  ;;  %v1334_v50 = vor.u32 %v1577_v40, %v1333_v37  ;;  %v1338_v2 = vor.u32 %v1574_v29, %v1335_v3 }
 0x16d   : > { %1105 = vmatpush.bf16.msra.mxu1 %v1598_v55  ;;  %v1342_v5 = vor.u32 %v1578_v18, %v1341_v8  ;;  %v1346_v35 = vor.u32 %v1575_v32, %v1343_v48  ;;  %v1624_v15 = vld [vmem:[%s1904_s27 + $0x130] sm:$0xff]  ;;  %v1623_v53 = vld [vmem:[%s1904_s27 + $0x128] sm:$0xff]  ;;  %v1622_v16 = vld [vmem:[%s1904_s27 + $0x120] sm:$0xff] }
 0x16e   : > { %1124 = vmatpush.bf16.msra.mxu2 %v1606_v13  ;;  %v1632_v7 = vld [vmem:[%s1904_s27 + $0x170] sm:$0xff]  ;;  %v1631_v41 = vld [vmem:[%s1904_s27 + $0x168] sm:$0xff]  ;;  %v1630_v14 = vld [vmem:[%s1904_s27 + $0x160] sm:$0xff] }
 0x16f   : > { %1143 = vmatpush.bf16.msra.mxu3 %v1614_v38  ;;  %v1357_v19 = vld [vmem:[#allocation2 + $0x30] sm:$0xf]  ;;  %v1583_v46 = vld [vmem:[#allocation2 + $0x44] sm:$0xf0]  ;;  %v1580_v47 = vld [vmem:[#allocation2 + $0x34] sm:$0xf] }
 0x170   : > { %1087 = vmatpush.bf16.msra.mxu0 %v1589_v56  ;;  %v1359_v52 = vld [vmem:[#allocation2 + $0x48] sm:$0xf0]  ;;  %v1365_v10 = vld [vmem:[#allocation2 + $0x38] sm:$0xf]  ;;  %v1584_v39 = vld [vmem:[#allocation2 + $0x4c] sm:$0xf0]  ;;  %v1358_v20 = vor.u32 %v1583_v46, %v1357_v19 }
 0x171   : > { %1106 = vmatpush.bf16.msra.mxu1 %v1597_v24  ;;  %v1581_v1 = vld [vmem:[#allocation2 + $0x3c] sm:$0xf]  ;;  %v1367_v43 = vld [vmem:[#allocation2 + $0x50] sm:$0xf0]  ;;  %v1362_v49 = vor.u32 %v1580_v47, %v1359_v52  ;;  %v1366_v25 = vor.u32 %v1584_v39, %v1365_v10  ;;  %v1619_v61 = vld [vmem:[%s1904_s27 + $0x108] sm:$0xff] }
 0x172   : > { %1125 = vmatpush.bf16.msra.mxu2 %v1605_v57  ;;  %v1621_v44 = vld [vmem:[%s1904_s27 + $0x118] sm:$0xff]  ;;  %v1370_v21 = vor.u32 %v1581_v1, %v1367_v43  ;;  %v1620_v23 = vld [vmem:[%s1904_s27 + $0x110] sm:$0xff]  ;;  %v1627_v30 = vld [vmem:[%s1904_s27 + $0x148] sm:$0xff] }
 0x173   : > { %1144 = vmatpush.bf16.msra.mxu3 %v1613_v58  ;;  %v1629_v51 = vld [vmem:[%s1904_s27 + $0x158] sm:$0xff]  ;;  %v1628_v60 = vld [vmem:[%s1904_s27 + $0x150] sm:$0xff]  ;;  %v1618_v4 = vld [vmem:[%s1904_s27 + $0x100] sm:$0xff] }
 0x174   : > { %1088 = vmatpush.bf16.msra.mxu0 %v1588_v59  ;;  %v1626_v9 = vld [vmem:[%s1904_s27 + $0x140] sm:$0xff]  ;;  %v1349_v6 = vld [vmem:[#allocation2 + $0x10] sm:$0xf]  ;;  %v1579_v26 = vld [vmem:[#allocation2 + $0x24] sm:$0xf0] }
 0x175   : > { %1107 = vmatpush.bf16.msra.mxu1 %v1596_v63  ;;  %v1373_v36 = vld [vmem:[#allocation2 + $0x40] sm:$0xf]  ;;  %v1585_v17 = vld [vmem:[#allocation2 + $0x54] sm:$0xf0]  ;;  %v1576_v12 = vld [vmem:[#allocation2 + $0x14] sm:$0xf]  ;;  %v1350_v56 = vor.u32 %v1579_v26, %v1349_v6 }
 0x176   : > { %1126 = vmatpush.bf16.msra.mxu2 %v1604_v33  ;;  %v1351_v55 = vld [vmem:[#allocation2 + $0x28] sm:$0xf0]  ;;  %v1582_v13 = vld [vmem:[#allocation2 + $0x44] sm:$0xf]  ;;  %v1375_v38 = vld [vmem:[#allocation2 + $0x58] sm:$0xf0]  ;;  %v1374_v24 = vor.u32 %v1585_v17, %v1373_v36 }
 0x177   : > { %1145 = vmatpush.bf16.msra.mxu3 %v1612_v28  ;;  %v1354_v57 = vor.u32 %v1576_v12, %v1351_v55  ;;  %v1378_v58 = vor.u32 %v1582_v13, %v1375_v38 }
 0x178   : > { %1089 = vmatpush.bf16.msra.mxu0 %v1587_v42 }
 0x179   : > { %1108 = vmatpush.bf16.msra.mxu1 %v1595_v45 }
 0x17a   : > { %1127 = vmatpush.bf16.msra.mxu2 %v1603_v62 }
 0x17b   : > { %1146 = vmatpush.bf16.msra.mxu3 %v1611_v54 }
 0x17c   : > { %1090 = vmatpush.bf16.msra.mxu0 %v1586_v27 }
 0x17d   : > { %1109 = vmatpush.bf16.msra.mxu1 %v1594_v31 }
 0x17e   : > { %1128 = vmatpush.bf16.msra.mxu2 %v1602_v34  ;;  %v1732_v34 = vld [vmem:[%s297_s8] ss:$0 sm:$0xff] }
 0x17f   : > { %1147 = vmatpush.bf16.msra.mxu3 %v1610_v0  ;;  %1091 = vmatmul.bf16.vlgmr.msra.gmra.mxu0 %v1334_v50 }
 0x180   : > { %1159 = vmatpush.bf16.msrb.mxu0 %v1625_v22  ;;  %1110 = vmatmul.bf16.vlgmr.msra.gmra.mxu1 %v1338_v2 }
 0x181   : > { %1129 = vmatmul.bf16.vlgmr.msra.gmra.mxu2 %v1342_v5  ;;  %1178 = vmatpush.bf16.msrb.mxu1 %v1633_v11 }
 0x182   : > { %1645 = vmatpush.bf16.msrb.mxu2 %v1625_v22  ;;  %1148 = vmatmul.bf16.vlgmr.msra.gmra.mxu3 %v1346_v35 }
 0x183   : > { %1653 = vmatpush.bf16.msrb.mxu3 %v1633_v11 }
 0x184   : > { %1160 = vmatpush.bf16.msrb.mxu0 %v1624_v15 }
 0x185   : > { %1179 = vmatpush.bf16.msrb.mxu1 %v1632_v7 }
 0x186   : > { %1646 = vmatpush.bf16.msrb.mxu2 %v1624_v15 }
 0x187   : > { %1654 = vmatpush.bf16.msrb.mxu3 %v1632_v7 }
 0x188   : > { %1161 = vmatpush.bf16.msrb.mxu0 %v1623_v53 }
 0x189   : > { %1180 = vmatpush.bf16.msrb.mxu1 %v1631_v41 }
 0x18a   : > { %1647 = vmatpush.bf16.msrb.mxu2 %v1623_v53 }
 0x18b   : > { %1655 = vmatpush.bf16.msrb.mxu3 %v1631_v41 }
 0x18c   : > { %1162 = vmatpush.bf16.msrb.mxu0 %v1622_v16 }
 0x18d   : > { %1181 = vmatpush.bf16.msrb.mxu1 %v1630_v14 }
 0x18e   : > { %1648 = vmatpush.bf16.msrb.mxu2 %v1622_v16 }
 0x18f   : > { %1656 = vmatpush.bf16.msrb.mxu3 %v1630_v14  ;;  %1096 = vmatmul.bf16.gmra.mxu0 %v1358_v20 }
 0x190   : > { %1163 = vmatpush.bf16.msrb.mxu0 %v1621_v44  ;;  %1115 = vmatmul.bf16.gmra.mxu1 %v1362_v49 }
 0x191   : > { %1134 = vmatmul.bf16.gmra.mxu2 %v1366_v25  ;;  %1182 = vmatpush.bf16.msrb.mxu1 %v1629_v51 }
 0x192   : > { %1649 = vmatpush.bf16.msrb.mxu2 %v1621_v44  ;;  %1153 = vmatmul.bf16.gmra.mxu3 %v1370_v21 }
 0x193   : > { %1657 = vmatpush.bf16.msrb.mxu3 %v1629_v51 }
 0x194   : > { %1164 = vmatpush.bf16.msrb.mxu0 %v1620_v23 }
 0x195   : > { %1183 = vmatpush.bf16.msrb.mxu1 %v1628_v60 }
 0x196   : > { %1650 = vmatpush.bf16.msrb.mxu2 %v1620_v23 }
 0x197   : > { %1658 = vmatpush.bf16.msrb.mxu3 %v1628_v60 }
 0x198   : > { %1165 = vmatpush.bf16.msrb.mxu0 %v1619_v61 }
 0x199   : > { %1184 = vmatpush.bf16.msrb.mxu1 %v1627_v30 }
 0x19a   : > { %1651 = vmatpush.bf16.msrb.mxu2 %v1619_v61 }
 0x19b   : > { %1659 = vmatpush.bf16.msrb.mxu3 %v1627_v30 }
 0x19c   : > { %1166 = vmatpush.bf16.msrb.mxu0 %v1618_v4 }
 0x19d   : > { %1185 = vmatpush.bf16.msrb.mxu1 %v1626_v9 }
 0x19e   : > { %1652 = vmatpush.bf16.msrb.mxu2 %v1618_v4 }
 0x19f   : > { %1660 = vmatpush.bf16.msrb.mxu3 %v1626_v9  ;;  %1167 = vmatmul.bf16.vlgmr.msrb.gmra.mxu0 %v1350_v56 }
 0x1a0   : > { %1186 = vmatmul.bf16.vlgmr.msrb.gmra.mxu1 %v1354_v57 }
 0x1a1   : > { %1172 = vmatmul.bf16.vlgmr.msrb.gmra.mxu2 %v1374_v24 }
 0x1a2   : > { %1191 = vmatmul.bf16.vlgmr.msrb.gmra.mxu3 %v1378_v58 }
 0x1fc   : > { %v1092_v59 = vpop.f32.mrf.mxu0 }
 0x1fd   : > { %v1111_v63 = vpop.f32.mrf.mxu1  ;;  %v1093_v3 = vadd.f32 %v1732_v34, %v1092_v59 }
 0x1ff   : > { %v1112_v8 = vadd.f32 %v1111_v63, %v1093_v3 }
 0x204   : > { %v1130_v33 = vpop.f32.mrf.mxu2  ;;  %v1094_v42 = vpop.f32.mrf.mxu0 }
 0x205   : > { %v1149_v28 = vpop.f32.mrf.mxu3  ;;  %v1113_v45 = vpop.f32.mrf.mxu1  ;;  %v1095_v18 = vadd.f32 %v1732_v34, %v1094_v42  ;;  %v1131_v2 = vadd.f32 %v1130_v33, %v1112_v8 }
 0x207   : > { %v1114_v5 = vadd.f32 %v1113_v45, %v1095_v18  ;;  %v1150_v53 = vadd.f32 %v1149_v28, %v1131_v2 }
 0x20c   : > { %v1132_v62 = vpop.f32.mrf.mxu2  ;;  %v1097_v27 = vpop.f32.mrf.mxu0 }
 0x20d   : > { %v1151_v54 = vpop.f32.mrf.mxu3  ;;  %v1116_v31 = vpop.f32.mrf.mxu1  ;;  %v1098_v22 = vadd.f32 %v1732_v34, %v1097_v27  ;;  %v1133_v11 = vadd.f32 %v1132_v62, %v1114_v5 }
 0x20f   : > { %v1117_v15 = vadd.f32 %v1116_v31, %v1098_v22  ;;  %v1152_v41 = vadd.f32 %v1151_v54, %v1133_v11 }
 0x214   : > { %v1135_v0 = vpop.f32.mrf.mxu2  ;;  %v1099_v40 = vpop.f32.mrf.mxu0 }
 0x215   : > { %v1154_v37 = vpop.f32.mrf.mxu3  ;;  %v1118_v29 = vpop.f32.mrf.mxu1  ;;  %v1100_v7 = vadd.f32 %v1732_v34, %v1099_v40  ;;  %v1136_v19 = vadd.f32 %v1135_v0, %v1117_v15 }
 0x217   : > { %v1119_v46 = vadd.f32 %v1118_v29, %v1100_v7  ;;  %v1155_v20 = vadd.f32 %v1154_v37, %v1136_v19 }
 0x21c   : > { %v1137_v32 = vpop.f32.mrf.mxu2  ;;  %v1168_v50 = vpop.f32.mrf.mxu0 }
 0x21d   : > { %v1156_v48 = vpop.f32.mrf.mxu3  ;;  %v1187_v35 = vpop.f32.mrf.mxu1  ;;  %v1169_v16 = vadd.f32 %v1168_v50, %v1150_v53  ;;  %v1138_v39 = vadd.f32 %v1137_v32, %v1119_v46 }
 0x21f   : > { %v1188_v43 = vadd.f32 %v1187_v35, %v1169_v16  ;;  %v1157_v25 = vadd.f32 %v1156_v48, %v1138_v39 }
 0x224   : > { %v1173_v14 = vpop.f32.mrf.mxu2  ;;  %v1170_v52 = vpop.f32.mrf.mxu0 }
 0x225   : > { %v1192_v47 = vpop.f32.mrf.mxu3  ;;  %v1171_v10 = vadd.f32 %v1170_v52, %v1152_v41  ;;  %v1189_v1 = vpop.f32.mrf.mxu1  ;;  %v1174_v21 = vadd.f32 %v1173_v14, %v1155_v20 }
 0x227   : > { %v1190_v44 = vadd.f32 %v1189_v1, %v1171_v10  ;;  %v1193_v61 = vadd.f32 %v1192_v47, %v1174_v21 }
 0x229   : > { %v1637_v49 = vpack.c.bf16 %v1190_v44, %v1188_v43 }
 0x22b   : > { %1638 = vst [vmem:[%s1922_s12] sm:$0xff] %v1637_v49  }
 0x22c   : > { %v1175_v51 = vpop.f32.mrf.mxu2 }
 0x22d   : > { %v1176_v23 = vadd.f32 %v1175_v51, %v1157_v25  ;;  %v1194_v60 = vpop.f32.mrf.mxu3 }
 0x22f   : > { %v1195_v30 = vadd.f32 %v1194_v60, %v1176_v23 }
 0x231   : > { %v1642_v4 = vpack.c.bf16 %v1195_v30, %v1193_v61 }
 0x233   : > { %1644 = vst [vmem:[%s1922_s12 + $0x8] sm:$0xff] %v1642_v4  }
 0x234 PF: > { %s18_s23 = sadd.s32 1, %s1813_s23   ;;  %s2384_s18 = smov %s1797_s19 }
 0x235   : > { %p15_p1 = scmp.ge.s32.totalorder %s18_s23, 20   ;;  %s2385_s19 = smov %s1801_s20 }
 0x236   : > { %s2386_s20 = smov %s1894_s29  ;;  %s2387_s21 = smov %s1809_s22 }
 0x237   : > { %s2388_s22 = smov %s2390_s25  ;;  %17 = sbr.rel (!%p15_p1) target bundleno = 4 (0x4), region = 90 }
 0x23c   :  { %1235 = vsyncpa [#allocation4], 1 }
 0x23d   :  { %1237 = vsyncpa [#allocation4 + $0x1], 1 }

// kernel: dino_forward.10
= control target key start
LH: loop header
LB: loop body
LE: loop exit
PB: predicated region body
PF: predicated region fallthrough
CT: control target
= control target key end

     0   :  { %10 = vsyncpa [#allocation3], 0  ;;  %s2653_s0 = inlined_call_operand.vmem [shape: bf16[32,768], index: 0, kind: input, shape index: {}]   ;;  %s2654_s1 = inlined_call_operand.hbm [shape: bf16[768,768], index: 1, kind: input, shape index: {}]   ;;  %s2655_s2 = inlined_call_operand.vmem [shape: f32[1,768], index: 2, kind: input, shape index: {}]   ;;  %s2656_s3 = inlined_call_operand.vmem [shape: f32[32,768], index: 3, kind: input, shape index: {}]   ;;  %s2657_s4 = inlined_call_operand.vmem [shape: f32[1,768], index: 4, kind: input, shape index: {}]   ;;  %s2658_s5 = inlined_call_operand.vmem [shape: f32[32,768], index: 5, kind: output, shape index: {}]  }
   0x1   :  { %12 = vsyncpa [#allocation3 + $0x1], 0  ;;  %s2204_s18 = smov 0   ;;  %s2206_s19 = smov 0  }
   0x2   :  { %s2208_s20 = smov 0   ;;  %s2210_s21 = smov 0  }
   0x3   :  { %s2212_s22 = smov 0   ;;  %s2214_s23 = smov 0  }
   0x4 LB: > { %s1473_s24 = sadd.s32 4294967295, %s2169_s23   ;;  %s27_s25 = sadd.s32 1, %s2165_s22  ;;  %s2169_s23 = sphi %s2214_s23, %s18_s23   ;;  %s2165_s22 = sphi %s2212_s22, %s2669_s22   ;;  %s2161_s21 = sphi %s2210_s21, %s2668_s21   ;;  %s2157_s20 = sphi %s2208_s20, %s2667_s20   ;;  %s2153_s19 = sphi %s2206_s19, %s2666_s19   ;;  %s2149_s18 = sphi %s2204_s18, %s2665_s18  }
   0x5   : > { %p28_p0 = scmp.ge.s32.totalorder %s27_s25, 3  ;;  %s63_s26 = sadd.s32 1, %s2157_s20 }
   0x6   : > { %p70_p1 = scmp.ne.s32.totalorder %s2157_s20, %s2153_s19  ;;  %p71_p2 = scmp.eq.s32.totalorder %s2169_s23, 0 }
   0x7   : > { %s2671_s25 = smov (%p28_p0, %s27_s25), 0  ;;  %p76_p4 = scmp.ne.s32.totalorder %s2153_s19, %s2149_s18 }
   0x8   : > { %2660 = sst [smem:[#allocation7_spill]] %s2671_s25  ;;  %p2240_p3 = por %p71_p2, %p70_p1 }
   0x9   : > { %s60_s28 = ssub.s32 %s2165_s22, %s2671_s25  ;;  %p77_p5 = scmp.eq.s32.totalorder %s1473_s24, 0 }
   0xa   : > { %p61_p6 = scmp.eq.s32.totalorder %s60_s28, 0  ;;  %p182_p7 = scmp.eq.s32.totalorder %s1473_s24, 2 }
   0xb   : > { %p2247_p8 = por %p77_p5, %p76_p4  ;;  %p1477_p10 = scmp.ge.s32.totalorder %s2169_s23, 3 }
   0xc   : > { %s2252_s30 = scalar_select %p61_p6, %s2157_s20, %s63_s26  }
   0xd   : > { %p2254_p9 = por %p182_p7, %p70_p1  ;;  %214 = sbr.rel (%p1477_p10) target bundleno = 32 (0x20), region = 20 }
   0xe   : > { %s218_s7 = sand.u32 (!%p1477_p10), 1, %s2157_s20   ;;  %s1925_s8 = sshll.u32 (!%p1477_p10), %s2165_s22, 3 }
   0xf   : > { %s2036_s9 = smul.u32 (!%p1477_p10), 768, %s218_s7  ;;  %s227_s12 = scalar_lea.hbm (!%p1477_p10), %s2654_s1, %s1925_s8 }
  0x10   : > { %s228_s13 = sshll.u32 (!%p1477_p10), %s227_s12, 4  ;;  %s219_s16 = scalar_lea.sflag (!%p1477_p10), [#allocation3], %s218_s7  ;;  %s229_s13 = int_to_ptr.hbm [resolvable:$true] %s228_s13 }
  0x11   : > { %s222_s14 = scalar_lea.vmem (!%p1477_p10), [#allocation2], %s2036_s9  ;;  %s2171_s17 = smov (!%p1477_p10), 384  }
  0x12   : > { %s230_s15 = sshll.u32 %s222_s14, 4  ;;  %s2172_s18 = smov 128   ;;  %s231_s15 = int_to_ptr.vmem [resolvable:$true] %s230_s15 }
  0x13   : > { %s2173_s24 = smov 8   ;;  %247 = sbr.rel (!%p2240_p3) target bundleno = 32 (0x20), region = 32 }
  0x14   : > { %2038 = dma.hbm_to_vmem [thread:$0]  (%p2240_p3), %s229_s13, 12288, %s231_s15, %s219_s16, %s2171_s17, %s2172_s18, %s2173_s24  }
  0x15   : > { %s1480_s26 = sshll.u32 (%p2240_p3), %s218_s7, 6  ;;  %s1926_s28 = sshll.u32 (%p2240_p3), %s2165_s22, 4 }
  0x16   : > { %s257_s8 = scalar_lea.vmem (%p2240_p3), %s2656_s3, %s1926_s28  ;;  %s251_s9 = scalar_lea.vmem (%p2240_p3), [#allocation4], %s1480_s26 }
  0x17   : > { %v270_v0 = vld [vmem:[%s257_s8] sm:$0xff] (%p2240_p3)  ;;  %v272_v1 = vld [vmem:[%s257_s8 + $0x8] sm:$0xff] (%p2240_p3)  ;;  %v274_v2 = vld [vmem:[%s257_s8 + $0x30] sm:$0xff] (%p2240_p3) }
  0x18   : > { %271 = vst [vmem:[%s251_s9] sm:$0xff] %v270_v0  ;;  %v276_v3 = vld [vmem:[%s257_s8 + $0x38] sm:$0xff]  ;;  %v278_v4 = vld [vmem:[%s257_s8 + $0x60] sm:$0xff]  ;;  %v280_v5 = vld [vmem:[%s257_s8 + $0x68] sm:$0xff] }
  0x19   : > { %273 = vst [vmem:[%s251_s9 + $0x8] sm:$0xff] %v272_v1  ;;  %v282_v6 = vld [vmem:[%s257_s8 + $0x90] sm:$0xff]  ;;  %v284_v7 = vld [vmem:[%s257_s8 + $0x98] sm:$0xff] }
  0x1a   : > { %275 = vst [vmem:[%s251_s9 + $0x10] sm:$0xff] %v274_v2 }
  0x1b   : > { %277 = vst [vmem:[%s251_s9 + $0x18] sm:$0xff] %v276_v3 }
  0x1c   : > { %279 = vst [vmem:[%s251_s9 + $0x20] sm:$0xff] %v278_v4 }
  0x1d   : > { %281 = vst [vmem:[%s251_s9 + $0x28] sm:$0xff] %v280_v5 }
  0x1e   : > { %283 = vst [vmem:[%s251_s9 + $0x30] sm:$0xff] %v282_v6 }
  0x1f   : > { %285 = vst [vmem:[%s251_s9 + $0x38] sm:$0xff] %v284_v7 }
  0x20 PF: > { %p1483_p11 = scmp.ge.s32.totalorder %s2169_s23, 1  ;;  %p298_p12 = scmp.lt.s32.totalorder %s2169_s23, 4 }
  0x22   : > { %p299_p13 = pnand %p1483_p11, %p298_p12 }
  0x23   : > { %s2275_s25 = sand.u32 (!%p299_p13), 1, %s2153_s19  }
  0x24   : > { %302 = sbr.rel (%p299_p13) target bundleno = 315 (0x13b), region = 59  ;;  %s305_s7 = scalar_lea.sflag (!%p299_p13), [#allocation3], %s2275_s25 }
  0x25   : > { %s2037_s27 = smul.u32 (!%p299_p13), 768, %s2275_s25 }
  0x27   : > { %s2279_s11 = scalar_lea.vmem (!%p299_p13), [#allocation2], %s2037_s27 }
  0x29   : > { %2144 = dma.done.wait (%p2247_p8), %s305_s7, 12288  }
  0x2a   : > { %2146 = vsyncadd (%p2247_p8), %s305_s7, 4294955008  ;;  %v1594_v8 = vld [vmem:[%s2279_s11 + $0x70] sm:$0xf]  ;;  %v1954_v9 = vld [vmem:[%s2279_s11 + $0x74] sm:$0xf0]  ;;  %s1484_s17 = sshll.u32 %s2275_s25, 6 }
  0x2b   : > { %v1658_v10 = vld [vmem:[%s2279_s11 + $0xf0] sm:$0xf]  ;;  %v1595_v11 = vor.u32 %v1954_v9, %v1594_v8  ;;  %v1970_v12 = vld [vmem:[%s2279_s11 + $0xf4] sm:$0xf0]  ;;  %v1586_v19 = vld [vmem:[%s2279_s11 + $0x60] sm:$0xf] }
  0x2c   : > { %v1722_v13 = vld [vmem:[%s2279_s11 + $0x170] sm:$0xf]  ;;  %v1986_v14 = vld [vmem:[%s2279_s11 + $0x174] sm:$0xf0]  ;;  %v1659_v15 = vor.u32 %v1970_v12, %v1658_v10  ;;  %v1952_v21 = vld [vmem:[%s2279_s11 + $0x64] sm:$0xf0] }
  0x2d   : > { %v1723_v16 = vor.u32 %v1986_v14, %v1722_v13  ;;  %v1786_v17 = vld [vmem:[%s2279_s11 + $0x1f0] sm:$0xf]  ;;  %v2002_v18 = vld [vmem:[%s2279_s11 + $0x1f4] sm:$0xf0]  ;;  %1036 = vmatpush.bf16.msra.mxu0 %v1595_v11  ;;  %v1650_v22 = vld [vmem:[%s2279_s11 + $0xe0] sm:$0xf]  ;;  %v1587_v24 = vor.u32 %v1952_v21, %v1586_v19 }
  0x2e   : > { %v1787_v20 = vor.u32 %v2002_v18, %v1786_v17  ;;  %v1968_v23 = vld [vmem:[%s2279_s11 + $0xe4] sm:$0xf0]  ;;  %1055 = vmatpush.bf16.msra.mxu1 %v1659_v15  ;;  %v1714_v26 = vld [vmem:[%s2279_s11 + $0x160] sm:$0xf]  ;;  %v1578_v31 = vld [vmem:[%s2279_s11 + $0x50] sm:$0xf] }
  0x2f   : > { %1074 = vmatpush.bf16.msra.mxu2 %v1723_v16  ;;  %v1651_v25 = vor.u32 %v1968_v23, %v1650_v22  ;;  %v1984_v27 = vld [vmem:[%s2279_s11 + $0x164] sm:$0xf0]  ;;  %v1778_v28 = vld [vmem:[%s2279_s11 + $0x1e0] sm:$0xf]  ;;  %v1950_v32 = vld [vmem:[%s2279_s11 + $0x54] sm:$0xf0] }
  0x30   : > { %1093 = vmatpush.bf16.msra.mxu3 %v1787_v20  ;;  %v1715_v29 = vor.u32 %v1984_v27, %v1714_v26  ;;  %v2000_v30 = vld [vmem:[%s2279_s11 + $0x1e4] sm:$0xf0]  ;;  %v1642_v34 = vld [vmem:[%s2279_s11 + $0xd0] sm:$0xf]  ;;  %v1966_v35 = vld [vmem:[%s2279_s11 + $0xd4] sm:$0xf0]  ;;  %v1579_v37 = vor.u32 %v1950_v32, %v1578_v31 }
  0x31   : > { %v1779_v33 = vor.u32 %v2000_v30, %v1778_v28  ;;  %v1706_v36 = vld [vmem:[%s2279_s11 + $0x150] sm:$0xf]  ;;  %1037 = vmatpush.bf16.msra.mxu0 %v1587_v24  ;;  %v1982_v38 = vld [vmem:[%s2279_s11 + $0x154] sm:$0xf0]  ;;  %v1643_v41 = vor.u32 %v1966_v35, %v1642_v34  ;;  %v1570_v43 = vld [vmem:[%s2279_s11 + $0x40] sm:$0xf] }
  0x32   : > { %v1770_v39 = vld [vmem:[%s2279_s11 + $0x1d0] sm:$0xf]  ;;  %v1998_v40 = vld [vmem:[%s2279_s11 + $0x1d4] sm:$0xf0]  ;;  %1056 = vmatpush.bf16.msra.mxu1 %v1651_v25  ;;  %v1707_v42 = vor.u32 %v1982_v38, %v1706_v36  ;;  %v1948_v44 = vld [vmem:[%s2279_s11 + $0x44] sm:$0xf0] }
  0x33   : > { %1075 = vmatpush.bf16.msra.mxu2 %v1715_v29  ;;  %v1634_v45 = vld [vmem:[%s2279_s11 + $0xc0] sm:$0xf]  ;;  %v1771_v46 = vor.u32 %v1998_v40, %v1770_v39  ;;  %v1964_v47 = vld [vmem:[%s2279_s11 + $0xc4] sm:$0xf0]  ;;  %v1571_v52 = vor.u32 %v1948_v44, %v1570_v43  ;;  %v1562_v55 = vld [vmem:[%s2279_s11 + $0x30] sm:$0xf] }
  0x34   : > { %1094 = vmatpush.bf16.msra.mxu3 %v1779_v33  ;;  %v1698_v48 = vld [vmem:[%s2279_s11 + $0x140] sm:$0xf]  ;;  %v1980_v49 = vld [vmem:[%s2279_s11 + $0x144] sm:$0xf0]  ;;  %v1635_v53 = vor.u32 %v1964_v47, %v1634_v45  ;;  %v1946_v56 = vld [vmem:[%s2279_s11 + $0x34] sm:$0xf0] }
  0x35   : > { %v1762_v50 = vld [vmem:[%s2279_s11 + $0x1c0] sm:$0xf]  ;;  %v1996_v51 = vld [vmem:[%s2279_s11 + $0x1c4] sm:$0xf0]  ;;  %1038 = vmatpush.bf16.msra.mxu0 %v1579_v37  ;;  %v1699_v54 = vor.u32 %v1980_v49, %v1698_v48  ;;  %v1626_v57 = vld [vmem:[%s2279_s11 + $0xb0] sm:$0xf]  ;;  %v1563_v0 = vor.u32 %v1946_v56, %v1562_v55 }
  0x36   : > { %1057 = vmatpush.bf16.msra.mxu1 %v1643_v41  ;;  %v1763_v58 = vor.u32 %v1996_v51, %v1762_v50  ;;  %v1962_v59 = vld [vmem:[%s2279_s11 + $0xb4] sm:$0xf0]  ;;  %v1690_v60 = vld [vmem:[%s2279_s11 + $0x130] sm:$0xf]  ;;  %v1554_v3 = vld [vmem:[%s2279_s11 + $0x20] sm:$0xf] }
  0x37   : > { %1076 = vmatpush.bf16.msra.mxu2 %v1707_v42  ;;  %v1978_v61 = vld [vmem:[%s2279_s11 + $0x134] sm:$0xf0]  ;;  %v1754_v62 = vld [vmem:[%s2279_s11 + $0x1b0] sm:$0xf]  ;;  %v1627_v1 = vor.u32 %v1962_v59, %v1626_v57  ;;  %v1944_v4 = vld [vmem:[%s2279_s11 + $0x24] sm:$0xf0] }
  0x38   : > { %1095 = vmatpush.bf16.msra.mxu3 %v1771_v46  ;;  %v1994_v63 = vld [vmem:[%s2279_s11 + $0x1b4] sm:$0xf0]  ;;  %v1691_v2 = vor.u32 %v1978_v61, %v1690_v60  ;;  %v1618_v5 = vld [vmem:[%s2279_s11 + $0xa0] sm:$0xf]  ;;  %v1960_v7 = vld [vmem:[%s2279_s11 + $0xa4] sm:$0xf0]  ;;  %v1555_v12 = vor.u32 %v1944_v4, %v1554_v3 }
  0x39   : > { %1039 = vmatpush.bf16.msra.mxu0 %v1571_v52  ;;  %v1755_v6 = vor.u32 %v1994_v63, %v1754_v62  ;;  %v1682_v8 = vld [vmem:[%s2279_s11 + $0x120] sm:$0xf]  ;;  %v1976_v9 = vld [vmem:[%s2279_s11 + $0x124] sm:$0xf0]  ;;  %v1619_v13 = vor.u32 %v1960_v7, %v1618_v5  ;;  %v1546_v15 = vld [vmem:[%s2279_s11 + $0x10] sm:$0xf] }
  0x3a   : > { %1058 = vmatpush.bf16.msra.mxu1 %v1635_v53  ;;  %v1746_v10 = vld [vmem:[%s2279_s11 + $0x1a0] sm:$0xf]  ;;  %v1992_v11 = vld [vmem:[%s2279_s11 + $0x1a4] sm:$0xf0]  ;;  %v1683_v14 = vor.u32 %v1976_v9, %v1682_v8  ;;  %v1942_v16 = vld [vmem:[%s2279_s11 + $0x14] sm:$0xf0] }
  0x3b   : > { %1077 = vmatpush.bf16.msra.mxu2 %v1699_v54  ;;  %v1610_v17 = vld [vmem:[%s2279_s11 + $0x90] sm:$0xf]  ;;  %v1747_v18 = vor.u32 %v1992_v11, %v1746_v10  ;;  %v1958_v19 = vld [vmem:[%s2279_s11 + $0x94] sm:$0xf0]  ;;  %v1538_v24 = vld [vmem:[%s2279_s11] sm:$0xf]  ;;  %v1547_v25 = vor.u32 %v1942_v16, %v1546_v15 }
  0x3c   : > { %1096 = vmatpush.bf16.msra.mxu3 %v1763_v58  ;;  %v1674_v20 = vld [vmem:[%s2279_s11 + $0x110] sm:$0xf]  ;;  %v1974_v21 = vld [vmem:[%s2279_s11 + $0x114] sm:$0xf0]  ;;  %v1940_v26 = vld [vmem:[%s2279_s11 + $0x4] sm:$0xf0]  ;;  %v1611_v29 = vor.u32 %v1958_v19, %v1610_v17 }
  0x3d   : > { %1040 = vmatpush.bf16.msra.mxu0 %v1563_v0  ;;  %v1738_v22 = vld [vmem:[%s2279_s11 + $0x190] sm:$0xf]  ;;  %v1990_v23 = vld [vmem:[%s2279_s11 + $0x194] sm:$0xf0]  ;;  %v1602_v27 = vld [vmem:[%s2279_s11 + $0x80] sm:$0xf]  ;;  %v1675_v30 = vor.u32 %v1974_v21, %v1674_v20  ;;  %v1539_v42 = vor.u32 %v1940_v26, %v1538_v24 }
  0x3e   : > { %1059 = vmatpush.bf16.msra.mxu1 %v1627_v1  ;;  %v1956_v28 = vld [vmem:[%s2279_s11 + $0x84] sm:$0xf0]  ;;  %v1666_v31 = vld [vmem:[%s2279_s11 + $0x100] sm:$0xf]  ;;  %v1739_v34 = vor.u32 %v1990_v23, %v1738_v22  ;;  %v1930_v37 = vld [vmem:[%s2653_s0 + $0x14] sm:$0xf0] }
  0x3f   : > { %1078 = vmatpush.bf16.msra.mxu2 %v1691_v2  ;;  %v1972_v32 = vld [vmem:[%s2279_s11 + $0x104] sm:$0xf0]  ;;  %v1730_v33 = vld [vmem:[%s2279_s11 + $0x180] sm:$0xf]  ;;  %v1927_v38 = vld [vmem:[%s2653_s0 + $0x4] sm:$0xf]  ;;  %v1603_v46 = vor.u32 %v1956_v28, %v1602_v27 }
  0x40   : > { %1097 = vmatpush.bf16.msra.mxu3 %v1755_v6  ;;  %v1988_v35 = vld [vmem:[%s2279_s11 + $0x184] sm:$0xf0]  ;;  %v1490_v36 = vld [vmem:[%s2653_s0] sm:$0xf]  ;;  %v1492_v39 = vld [vmem:[%s2653_s0 + $0x18] sm:$0xf0]  ;;  %v1667_v47 = vor.u32 %v1972_v32, %v1666_v31 }
  0x41   : > { %1041 = vmatpush.bf16.msra.mxu0 %v1555_v12  ;;  %v1953_v40 = vld [vmem:[%s2279_s11 + $0x74] sm:$0xf]  ;;  %v1596_v41 = vld [vmem:[%s2279_s11 + $0x78] sm:$0xf0]  ;;  %v1498_v43 = vld [vmem:[%s2653_s0 + $0x8] sm:$0xf]  ;;  %v1731_v51 = vor.u32 %v1988_v35, %v1730_v33  ;;  %v2380_v56 = vor.u32 %v1930_v37, %v1490_v36  ;;  %v2385_v61 = vor.u32 %v1927_v38, %v1492_v39 }
  0x42   : > { %1060 = vmatpush.bf16.msra.mxu1 %v1619_v13  ;;  %v1914_v44 = vld [vmem:[%s2279_s11 + $0x2f0] sm:$0xf]  ;;  %v2034_v45 = vld [vmem:[%s2279_s11 + $0x2f4] sm:$0xf0]  ;;  %v1931_v48 = vld [vmem:[%s2653_s0 + $0x1c] sm:$0xf0]  ;;  %v1599_v52 = vor.u32 %v1953_v40, %v1596_v41 }
  0x43   : > { %1079 = vmatpush.bf16.msra.mxu2 %v1683_v14  ;;  %v1928_v49 = vld [vmem:[%s2653_s0 + $0xc] sm:$0xf]  ;;  %v1500_v50 = vld [vmem:[%s2653_s0 + $0x20] sm:$0xf0]  ;;  %v1850_v53 = vld [vmem:[%s2279_s11 + $0x270] sm:$0xf]  ;;  %v1915_v57 = vor.u32 %v2034_v45, %v1914_v44  ;;  %v2387_v62 = vor.u32 %v1931_v48, %v1498_v43 }
  0x44   : > { %1098 = vmatpush.bf16.msra.mxu3 %v1747_v18  ;;  %v2018_v54 = vld [vmem:[%s2279_s11 + $0x274] sm:$0xf0]  ;;  %v1969_v55 = vld [vmem:[%s2279_s11 + $0xf4] sm:$0xf]  ;;  %v1660_v58 = vld [vmem:[%s2279_s11 + $0xf8] sm:$0xf0]  ;;  %v2391_v1 = vor.u32 %v1928_v49, %v1500_v50 }
  0x45   : > { %1042 = vmatpush.bf16.msra.mxu0 %v1547_v25  ;;  %v1951_v59 = vld [vmem:[%s2279_s11 + $0x64] sm:$0xf]  ;;  %v1588_v60 = vld [vmem:[%s2279_s11 + $0x68] sm:$0xf0]  ;;  %v1906_v63 = vld [vmem:[%s2279_s11 + $0x2e0] sm:$0xf]  ;;  %v1851_v2 = vor.u32 %v2018_v54, %v1850_v53  ;;  %v1663_v3 = vor.u32 %v1969_v55, %v1660_v58 }
  0x46   : > { %1061 = vmatpush.bf16.msra.mxu1 %v1611_v29  ;;  %v2032_v0 = vld [vmem:[%s2279_s11 + $0x2e4] sm:$0xf0]  ;;  %v1591_v4 = vor.u32 %v1951_v59, %v1588_v60  ;;  %v1842_v5 = vld [vmem:[%s2279_s11 + $0x260] sm:$0xf]  ;;  %v1967_v7 = vld [vmem:[%s2279_s11 + $0xe4] sm:$0xf] }
  0x47   : > { %1080 = vmatpush.bf16.msra.mxu2 %v1675_v30  ;;  %v2016_v6 = vld [vmem:[%s2279_s11 + $0x264] sm:$0xf0]  ;;  %v1907_v8 = vor.u32 %v2032_v0, %v1906_v63  ;;  %v1652_v9 = vld [vmem:[%s2279_s11 + $0xe8] sm:$0xf0]  ;;  %v1949_v10 = vld [vmem:[%s2279_s11 + $0x54] sm:$0xf] }
  0x48   : > { %1099 = vmatpush.bf16.msra.mxu3 %v1739_v34  ;;  %v1580_v11 = vld [vmem:[%s2279_s11 + $0x58] sm:$0xf0]  ;;  %v1898_v12 = vld [vmem:[%s2279_s11 + $0x2d0] sm:$0xf]  ;;  %v2030_v13 = vld [vmem:[%s2279_s11 + $0x2d4] sm:$0xf0]  ;;  %v1843_v14 = vor.u32 %v2016_v6, %v1842_v5  ;;  %v1655_v15 = vor.u32 %v1967_v7, %v1652_v9 }
  0x49   : > { %1043 = vmatpush.bf16.msra.mxu0 %v1539_v42  ;;  %v1583_v16 = vor.u32 %v1949_v10, %v1580_v11  ;;  %v1834_v17 = vld [vmem:[%s2279_s11 + $0x250] sm:$0xf]  ;;  %v2014_v18 = vld [vmem:[%s2279_s11 + $0x254] sm:$0xf0]  ;;  %v1965_v19 = vld [vmem:[%s2279_s11 + $0xd4] sm:$0xf]  ;;  %v1899_v20 = vor.u32 %v2030_v13, %v1898_v12 }
  0x4a   : > { %1062 = vmatpush.bf16.msra.mxu1 %v1603_v46  ;;  %v1644_v21 = vld [vmem:[%s2279_s11 + $0xd8] sm:$0xf0]  ;;  %v1947_v22 = vld [vmem:[%s2279_s11 + $0x44] sm:$0xf]  ;;  %v1572_v23 = vld [vmem:[%s2279_s11 + $0x48] sm:$0xf0]  ;;  %v1835_v26 = vor.u32 %v2014_v18, %v1834_v17 }
  0x4b   : > { %1081 = vmatpush.bf16.msra.mxu2 %v1667_v47  ;;  %v1890_v24 = vld [vmem:[%s2279_s11 + $0x2c0] sm:$0xf]  ;;  %v2028_v25 = vld [vmem:[%s2279_s11 + $0x2c4] sm:$0xf0]  ;;  %v1963_v29 = vld [vmem:[%s2279_s11 + $0xc4] sm:$0xf]  ;;  %v1647_v30 = vor.u32 %v1965_v19, %v1644_v21  ;;  %v1575_v31 = vor.u32 %v1947_v22, %v1572_v23 }
  0x4c   : > { %1100 = vmatpush.bf16.msra.mxu3 %v1731_v51  ;;  %1044 = vmatmul.bf16.vlgmr.msra.gmra.mxu0 %v2380_v56  ;;  %v1826_v27 = vld [vmem:[%s2279_s11 + $0x240] sm:$0xf]  ;;  %v2012_v28 = vld [vmem:[%s2279_s11 + $0x244] sm:$0xf0]  ;;  %v1636_v32 = vld [vmem:[%s2279_s11 + $0xc8] sm:$0xf0]  ;;  %v1891_v35 = vor.u32 %v2028_v25, %v1890_v24 }
  0x4d   : > { %1063 = vmatmul.bf16.vlgmr.msra.gmra.mxu1 %v2385_v61  ;;  %1112 = vmatpush.bf16.msrb.mxu0 %v1851_v2  ;;  %v1514_v33 = vld [vmem:[%s2653_s0 + $0x30] sm:$0xf]  ;;  %v1936_v34 = vld [vmem:[%s2653_s0 + $0x44] sm:$0xf0]  ;;  %v1933_v36 = vld [vmem:[%s2653_s0 + $0x34] sm:$0xf]  ;;  %v1827_v43 = vor.u32 %v2012_v28, %v1826_v27  ;;  %v1639_v47 = vor.u32 %v1963_v29, %v1636_v32 }
  0x4e   : > { %1131 = vmatpush.bf16.msrb.mxu1 %v1915_v57  ;;  %1082 = vmatmul.bf16.vlgmr.msra.gmra.mxu2 %v2387_v62  ;;  %v1516_v37 = vld [vmem:[%s2653_s0 + $0x48] sm:$0xf0]  ;;  %v1945_v38 = vld [vmem:[%s2279_s11 + $0x34] sm:$0xf]  ;;  %v1564_v39 = vld [vmem:[%s2279_s11 + $0x38] sm:$0xf0] }
  0x4f   : > { %1150 = vmatpush.bf16.msrb.mxu2 %v1599_v52  ;;  %1101 = vmatmul.bf16.vlgmr.msra.gmra.mxu3 %v2391_v1  ;;  %v1522_v40 = vld [vmem:[%s2653_s0 + $0x38] sm:$0xf]  ;;  %v1882_v41 = vld [vmem:[%s2279_s11 + $0x2b0] sm:$0xf]  ;;  %v1934_v45 = vld [vmem:[%s2653_s0 + $0x3c] sm:$0xf]  ;;  %v1567_v48 = vor.u32 %v1945_v38, %v1564_v39  ;;  %v2448_v52 = vor.u32 %v1936_v34, %v1514_v33  ;;  %v2453_v58 = vor.u32 %v1933_v36, %v1516_v37 }
  0x50   : > { %1169 = vmatpush.bf16.msrb.mxu3 %v1663_v3  ;;  %v2026_v42 = vld [vmem:[%s2279_s11 + $0x2b4] sm:$0xf0]  ;;  %v1937_v44 = vld [vmem:[%s2653_s0 + $0x4c] sm:$0xf0]  ;;  %v1524_v46 = vld [vmem:[%s2653_s0 + $0x50] sm:$0xf0] }
  0x51   : > { %1113 = vmatpush.bf16.msrb.mxu0 %v1843_v14  ;;  %v1818_v49 = vld [vmem:[%s2279_s11 + $0x230] sm:$0xf]  ;;  %v2010_v50 = vld [vmem:[%s2279_s11 + $0x234] sm:$0xf0]  ;;  %v1961_v51 = vld [vmem:[%s2279_s11 + $0xb4] sm:$0xf]  ;;  %v1883_v53 = vor.u32 %v2026_v42, %v1882_v41  ;;  %v2455_v59 = vor.u32 %v1937_v44, %v1522_v40  ;;  %v2459_v0 = vor.u32 %v1934_v45, %v1524_v46 }
  0x52   : > { %1132 = vmatpush.bf16.msrb.mxu1 %v1907_v8  ;;  %v1628_v54 = vld [vmem:[%s2279_s11 + $0xb8] sm:$0xf0]  ;;  %v1943_v55 = vld [vmem:[%s2279_s11 + $0x24] sm:$0xf]  ;;  %v1556_v57 = vld [vmem:[%s2279_s11 + $0x28] sm:$0xf0]  ;;  %v1819_v2 = vor.u32 %v2010_v50, %v1818_v49 }
  0x53   : > { %1151 = vmatpush.bf16.msrb.mxu2 %v1591_v4  ;;  %v1874_v60 = vld [vmem:[%s2279_s11 + $0x2a0] sm:$0xf]  ;;  %v2024_v63 = vld [vmem:[%s2279_s11 + $0x2a4] sm:$0xf0]  ;;  %v1631_v3 = vor.u32 %v1961_v51, %v1628_v54  ;;  %v1559_v4 = vor.u32 %v1943_v55, %v1556_v57  ;;  %v1959_v7 = vld [vmem:[%s2279_s11 + $0xa4] sm:$0xf] }
  0x54   : > { %1170 = vmatpush.bf16.msrb.mxu3 %v1655_v15  ;;  %v1810_v5 = vld [vmem:[%s2279_s11 + $0x220] sm:$0xf]  ;;  %v2008_v6 = vld [vmem:[%s2279_s11 + $0x224] sm:$0xf0]  ;;  %v1875_v8 = vor.u32 %v2024_v63, %v1874_v60  ;;  %v1620_v9 = vld [vmem:[%s2279_s11 + $0xa8] sm:$0xf0] }
  0x55   : > { %1114 = vmatpush.bf16.msrb.mxu0 %v1835_v26  ;;  %v1941_v10 = vld [vmem:[%s2279_s11 + $0x14] sm:$0xf]  ;;  %v1548_v11 = vld [vmem:[%s2279_s11 + $0x18] sm:$0xf0]  ;;  %v1866_v12 = vld [vmem:[%s2279_s11 + $0x290] sm:$0xf]  ;;  %v1811_v14 = vor.u32 %v2008_v6, %v1810_v5 }
  0x56   : > { %1133 = vmatpush.bf16.msrb.mxu1 %v1899_v20  ;;  %v2022_v13 = vld [vmem:[%s2279_s11 + $0x294] sm:$0xf0]  ;;  %v1802_v15 = vld [vmem:[%s2279_s11 + $0x210] sm:$0xf]  ;;  %v1551_v17 = vor.u32 %v1941_v10, %v1548_v11  ;;  %v1957_v19 = vld [vmem:[%s2279_s11 + $0x94] sm:$0xf] }
  0x57   : > { %1152 = vmatpush.bf16.msrb.mxu2 %v1583_v16  ;;  %v1623_v16 = vor.u32 %v1959_v7, %v1620_v9  ;;  %v2006_v18 = vld [vmem:[%s2279_s11 + $0x214] sm:$0xf0]  ;;  %v1612_v20 = vld [vmem:[%s2279_s11 + $0x98] sm:$0xf0]  ;;  %v1867_v21 = vor.u32 %v2022_v13, %v1866_v12  ;;  %v1939_v22 = vld [vmem:[%s2279_s11 + $0x4] sm:$0xf] }
  0x58   : > { %1171 = vmatpush.bf16.msrb.mxu3 %v1647_v30  ;;  %v1540_v23 = vld [vmem:[%s2279_s11 + $0x8] sm:$0xf0]  ;;  %v1858_v24 = vld [vmem:[%s2279_s11 + $0x280] sm:$0xf]  ;;  %v2020_v25 = vld [vmem:[%s2279_s11 + $0x284] sm:$0xf0]  ;;  %v1803_v28 = vor.u32 %v2006_v18, %v1802_v15  ;;  %v1615_v32 = vor.u32 %v1957_v19, %v1612_v20 }
  0x59   : > { %1115 = vmatpush.bf16.msrb.mxu0 %v1827_v43  ;;  %v2017_v26 = vld [vmem:[%s2279_s11 + $0x274] sm:$0xf]  ;;  %v1852_v27 = vld [vmem:[%s2279_s11 + $0x278] sm:$0xf0]  ;;  %v1794_v29 = vld [vmem:[%s2279_s11 + $0x200] sm:$0xf]  ;;  %v1543_v33 = vor.u32 %v1939_v22, %v1540_v23  ;;  %v1859_v37 = vor.u32 %v2020_v25, %v1858_v24 }
  0x5a   : > { %1134 = vmatpush.bf16.msrb.mxu1 %v1891_v35  ;;  %v2001_v30 = vld [vmem:[%s2279_s11 + $0x1f4] sm:$0xf]  ;;  %v2004_v34 = vld [vmem:[%s2279_s11 + $0x204] sm:$0xf0]  ;;  %v1955_v35 = vld [vmem:[%s2279_s11 + $0x84] sm:$0xf]  ;;  %v1855_v39 = vor.u32 %v2017_v26, %v1852_v27 }
  0x5b   : > { %1153 = vmatpush.bf16.msrb.mxu2 %v1575_v31  ;;  %v1788_v31 = vld [vmem:[%s2279_s11 + $0x1f8] sm:$0xf0]  ;;  %v1604_v36 = vld [vmem:[%s2279_s11 + $0x88] sm:$0xf0]  ;;  %v1506_v38 = vld [vmem:[%s2653_s0 + $0x10] sm:$0xf] }
  0x5c   : > { %1172 = vmatpush.bf16.msrb.mxu3 %v1639_v47  ;;  %1049 = vmatmul.bf16.gmra.mxu0 %v2448_v52  ;;  %v1985_v40 = vld [vmem:[%s2279_s11 + $0x174] sm:$0xf]  ;;  %v1724_v41 = vld [vmem:[%s2279_s11 + $0x178] sm:$0xf0]  ;;  %v1791_v43 = vor.u32 %v2001_v30, %v1788_v31  ;;  %v2015_v45 = vld [vmem:[%s2279_s11 + $0x264] sm:$0xf]  ;;  %v1795_v47 = vor.u32 %v2004_v34, %v1794_v29  ;;  %v1607_v51 = vor.u32 %v1955_v35, %v1604_v36 }
  0x5d   : > { %1068 = vmatmul.bf16.gmra.mxu1 %v2453_v58  ;;  %1116 = vmatpush.bf16.msrb.mxu0 %v1819_v2  ;;  %v2033_v42 = vld [vmem:[%s2279_s11 + $0x2f4] sm:$0xf]  ;;  %v1916_v44 = vld [vmem:[%s2279_s11 + $0x2f8] sm:$0xf0]  ;;  %v1844_v46 = vld [vmem:[%s2279_s11 + $0x268] sm:$0xf0] }
  0x5e   : > { %1135 = vmatpush.bf16.msrb.mxu1 %v1883_v53  ;;  %1087 = vmatmul.bf16.gmra.mxu2 %v2455_v59  ;;  %v1929_v49 = vld [vmem:[%s2653_s0 + $0x14] sm:$0xf]  ;;  %v1508_v50 = vld [vmem:[%s2653_s0 + $0x28] sm:$0xf0]  ;;  %v1727_v53 = vor.u32 %v1985_v40, %v1724_v41  ;;  %v1983_v54 = vld [vmem:[%s2279_s11 + $0x164] sm:$0xf]  ;;  %v1919_v57 = vor.u32 %v2033_v42, %v1916_v44  ;;  %v1847_v60 = vor.u32 %v2015_v45, %v1844_v46 }
  0x5f   : > { %1154 = vmatpush.bf16.msrb.mxu2 %v1567_v48  ;;  %1106 = vmatmul.bf16.gmra.mxu3 %v2459_v0  ;;  %v1932_v48 = vld [vmem:[%s2653_s0 + $0x24] sm:$0xf0]  ;;  %v1716_v55 = vld [vmem:[%s2279_s11 + $0x168] sm:$0xf0]  ;;  %v1999_v63 = vld [vmem:[%s2279_s11 + $0x1e4] sm:$0xf]  ;;  %v2514_v5 = vor.u32 %v1929_v49, %v1508_v50 }
  0x60   : > { %1173 = vmatpush.bf16.msrb.mxu3 %v1631_v3  ;;  %v1780_v2 = vld [vmem:[%s2279_s11 + $0x1e8] sm:$0xf0]  ;;  %v2031_v3 = vld [vmem:[%s2279_s11 + $0x2e4] sm:$0xf]  ;;  %v2013_v7 = vld [vmem:[%s2279_s11 + $0x254] sm:$0xf]  ;;  %v1719_v9 = vor.u32 %v1983_v54, %v1716_v55 }
  0x61   : > { %1117 = vmatpush.bf16.msrb.mxu0 %v1811_v14  ;;  %v1908_v6 = vld [vmem:[%s2279_s11 + $0x2e8] sm:$0xf0]  ;;  %v1783_v10 = vor.u32 %v1999_v63, %v1780_v2  ;;  %v1981_v11 = vld [vmem:[%s2279_s11 + $0x154] sm:$0xf]  ;;  %v1708_v12 = vld [vmem:[%s2279_s11 + $0x158] sm:$0xf0] }
  0x62   : > { %1136 = vmatpush.bf16.msrb.mxu1 %v1875_v8  ;;  %v1836_v8 = vld [vmem:[%s2279_s11 + $0x258] sm:$0xf0]  ;;  %v1911_v13 = vor.u32 %v2031_v3, %v1908_v6  ;;  %v1997_v15 = vld [vmem:[%s2279_s11 + $0x1d4] sm:$0xf]  ;;  %v2011_v19 = vld [vmem:[%s2279_s11 + $0x244] sm:$0xf] }
  0x63   : > { %1155 = vmatpush.bf16.msrb.mxu2 %v1559_v4  ;;  %v2512_v4 = vor.u32 %v1932_v48, %v1506_v38  ;;  %v1839_v14 = vor.u32 %v2013_v7, %v1836_v8  ;;  %v1900_v18 = vld [vmem:[%s2279_s11 + $0x2d8] sm:$0xf0]  ;;  %v1828_v20 = vld [vmem:[%s2279_s11 + $0x248] sm:$0xf0]  ;;  %v1979_v23 = vld [vmem:[%s2279_s11 + $0x144] sm:$0xf] }
  0x64   : > { %1174 = vmatpush.bf16.msrb.mxu3 %v1623_v16  ;;  %v1772_v16 = vld [vmem:[%s2279_s11 + $0x1d8] sm:$0xf0]  ;;  %v1700_v24 = vld [vmem:[%s2279_s11 + $0x148] sm:$0xf0]  ;;  %v1831_v26 = vor.u32 %v2011_v19, %v1828_v20  ;;  %v1995_v27 = vld [vmem:[%s2279_s11 + $0x1c4] sm:$0xf] }
  0x65   : > { %1118 = vmatpush.bf16.msrb.mxu0 %v1803_v28  ;;  %v1775_v22 = vor.u32 %v1997_v15, %v1772_v16  ;;  %v1764_v28 = vld [vmem:[%s2279_s11 + $0x1c8] sm:$0xf0]  ;;  %v1820_v30 = vld [vmem:[%s2279_s11 + $0x238] sm:$0xf0]  ;;  %v1703_v31 = vor.u32 %v1979_v23, %v1700_v24  ;;  %v1530_v36 = vld [vmem:[%s2653_s0 + $0x40] sm:$0xf] }
  0x66   : > { %1137 = vmatpush.bf16.msrb.mxu1 %v1867_v21  ;;  %v1711_v21 = vor.u32 %v1981_v11, %v1708_v12  ;;  %v1892_v29 = vld [vmem:[%s2279_s11 + $0x2c8] sm:$0xf0]  ;;  %v1692_v34 = vld [vmem:[%s2279_s11 + $0x138] sm:$0xf0]  ;;  %v1993_v38 = vld [vmem:[%s2279_s11 + $0x1b4] sm:$0xf] }
  0x67   : > { %1156 = vmatpush.bf16.msrb.mxu2 %v1551_v17  ;;  %v2029_v17 = vld [vmem:[%s2279_s11 + $0x2d4] sm:$0xf]  ;;  %v1884_v41 = vld [vmem:[%s2279_s11 + $0x2b8] sm:$0xf0]  ;;  %v2007_v42 = vld [vmem:[%s2279_s11 + $0x224] sm:$0xf] }
  0x68   : > { %1175 = vmatpush.bf16.msrb.mxu3 %v1615_v32  ;;  %v1903_v25 = vor.u32 %v2029_v17, %v1900_v18  ;;  %v1767_v32 = vor.u32 %v1995_v27, %v1764_v28  ;;  %v2025_v40 = vld [vmem:[%s2279_s11 + $0x2b4] sm:$0xf]  ;;  %v1938_v44 = vld [vmem:[%s2653_s0 + $0x54] sm:$0xf0]  ;;  %v1935_v45 = vld [vmem:[%s2653_s0 + $0x44] sm:$0xf] }
  0x69   : > { %1119 = vmatpush.bf16.msrb.mxu0 %v1795_v47  ;;  %v1532_v46 = vld [vmem:[%s2653_s0 + $0x58] sm:$0xf0]  ;;  %v1975_v49 = vld [vmem:[%s2279_s11 + $0x124] sm:$0xf]  ;;  %v1684_v50 = vld [vmem:[%s2279_s11 + $0x128] sm:$0xf0] }
  0x6a   : > { %1138 = vmatpush.bf16.msrb.mxu1 %v1859_v37  ;;  %v1991_v54 = vld [vmem:[%s2279_s11 + $0x1a4] sm:$0xf]  ;;  %v1748_v55 = vld [vmem:[%s2279_s11 + $0x1a8] sm:$0xf0]  ;;  %v1535_v63 = vor.u32 %v1935_v45, %v1532_v46  ;;  %v2005_v3 = vld [vmem:[%s2279_s11 + $0x214] sm:$0xf]  ;;  %v1687_v7 = vor.u32 %v1975_v49, %v1684_v50 }
  0x6b   : > { %1157 = vmatpush.bf16.msrb.mxu2 %v1543_v33  ;;  %v1977_v33 = vld [vmem:[%s2279_s11 + $0x134] sm:$0xf]  ;;  %v1876_v2 = vld [vmem:[%s2279_s11 + $0x2a8] sm:$0xf0]  ;;  %v1804_v6 = vld [vmem:[%s2279_s11 + $0x218] sm:$0xf0]  ;;  %v1751_v8 = vor.u32 %v1991_v54, %v1748_v55 }
  0x6c   : > { %1176 = vmatpush.bf16.msrb.mxu3 %v1607_v51  ;;  %1120 = vmatmul.bf16.vlgmr.msrb.gmra.mxu0 %v2512_v4  ;;  %v1695_v47 = vor.u32 %v1977_v33, %v1692_v34  ;;  %v1887_v51 = vor.u32 %v2025_v40, %v1884_v41  ;;  %v1807_v12 = vor.u32 %v2005_v3, %v1804_v6  ;;  %v2021_v15 = vld [vmem:[%s2279_s11 + $0x294] sm:$0xf]  ;;  %v1868_v16 = vld [vmem:[%s2279_s11 + $0x298] sm:$0xf0]  ;;  %v2003_v17 = vld [vmem:[%s2279_s11 + $0x204] sm:$0xf] }
  0x6d   : > { %1188 = vmatpush.bf16.msra.mxu0 %v1727_v53  ;;  %1139 = vmatmul.bf16.vlgmr.msrb.gmra.mxu1 %v2514_v5  ;;  %v1796_v18 = vld [vmem:[%s2279_s11 + $0x208] sm:$0xf0]  ;;  %v2019_v27 = vld [vmem:[%s2279_s11 + $0x284] sm:$0xf]  ;;  %s2600_s18 = scalar_lea.vmem [#allocation4], %s1484_s17  ;;  %s2603_s25 = scalar_lea.vmem [#allocation5], %s1484_s17 }
  0x6e   : > { %1207 = vmatpush.bf16.msra.mxu1 %v1791_v43  ;;  %1158 = vmatmul.bf16.vlgmr.msrb.gmra.mxu2 %v2380_v56  ;;  %v2027_v56 = vld [vmem:[%s2279_s11 + $0x2c4] sm:$0xf]  ;;  %v1812_v43 = vld [vmem:[%s2279_s11 + $0x228] sm:$0xf0]  ;;  %v1799_v23 = vor.u32 %v2003_v17, %v1796_v18  ;;  %s2035_s24 = sshll.u32 (%p2254_p9), %s2161_s21, 4 }
  0x6f   : > { %1226 = vmatpush.bf16.msra.mxu2 %v1855_v39  ;;  %1177 = vmatmul.bf16.vlgmr.msrb.gmra.mxu3 %v2385_v61  ;;  %v2009_v61 = vld [vmem:[%s2279_s11 + $0x234] sm:$0xf]  ;;  %v1895_v35 = vor.u32 %v2027_v56, %v1892_v29  ;;  %v1756_v39 = vld [vmem:[%s2279_s11 + $0x1b8] sm:$0xf0]  ;;  %v1815_v53 = vor.u32 %v2007_v42, %v1812_v43  ;;  %v1668_v24 = vld [vmem:[%s2279_s11 + $0x108] sm:$0xf0]  ;;  %s1314_s10 = scalar_lea.vmem (%p2254_p9), %s2658_s5, %s2035_s24 }
  0x70   : > { %1245 = vmatpush.bf16.msra.mxu3 %v1919_v57  ;;  %v1823_v37 = vor.u32 %v2009_v61, %v1820_v30  ;;  %v1759_v48 = vor.u32 %v1993_v38, %v1756_v39  ;;  %v2023_v57 = vld [vmem:[%s2279_s11 + $0x2a4] sm:$0xf]  ;;  %v1860_v28 = vld [vmem:[%s2279_s11 + $0x288] sm:$0xf0] }
  0x71   : > { %1189 = vmatpush.bf16.msra.mxu0 %v1719_v9  ;;  %v1973_v9 = vld [vmem:[%s2279_s11 + $0x114] sm:$0xf]  ;;  %v1879_v11 = vor.u32 %v2023_v57, %v1876_v2  ;;  %v1264_v55 = vld [vmem:[%s2600_s18] sm:$0xff] }
  0x72   : > { %1208 = vmatpush.bf16.msra.mxu1 %v1783_v10  ;;  %v1676_v10 = vld [vmem:[%s2279_s11 + $0x118] sm:$0xf0] }
  0x73   : > { %1227 = vmatpush.bf16.msra.mxu2 %v1847_v60  ;;  %v1531_v60 = vor.u32 %v1938_v44, %v1530_v36  ;;  %v1679_v19 = vor.u32 %v1973_v9, %v1676_v10 }
  0x74   : > { %1246 = vmatpush.bf16.msra.mxu3 %v1911_v13  ;;  %v1989_v13 = vld [vmem:[%s2279_s11 + $0x194] sm:$0xf] }
  0x75   : > { %1190 = vmatpush.bf16.msra.mxu0 %v1711_v21  ;;  %v1971_v21 = vld [vmem:[%s2279_s11 + $0x104] sm:$0xf] }
  0x76   : > { %1209 = vmatpush.bf16.msra.mxu1 %v1775_v22  ;;  %v1871_v22 = vor.u32 %v2021_v15, %v1868_v16  ;;  %v1671_v56 = vor.u32 %v1971_v21, %v1668_v24 }
  0x77   : > { %1228 = vmatpush.bf16.msra.mxu2 %v1839_v14  ;;  %v1740_v14 = vld [vmem:[%s2279_s11 + $0x198] sm:$0xf0] }
  0x78   : > { %1247 = vmatpush.bf16.msra.mxu3 %v1903_v25  ;;  %v1743_v20 = vor.u32 %v1989_v13, %v1740_v14  ;;  %v1987_v25 = vld [vmem:[%s2279_s11 + $0x184] sm:$0xf] }
  0x79   : > { %1191 = vmatpush.bf16.msra.mxu0 %v1703_v31 }
  0x7a   : > { %1210 = vmatpush.bf16.msra.mxu1 %v1767_v32 }
  0x7b   : > { %1229 = vmatpush.bf16.msra.mxu2 %v1831_v26  ;;  %v1732_v26 = vld [vmem:[%s2279_s11 + $0x188] sm:$0xf0]  ;;  %s1486_s11 = sshll.u32 %s2161_s21, 1 }
  0x7c   : > { %1248 = vmatpush.bf16.msra.mxu3 %v1895_v35  ;;  %1125 = vmatmul.bf16.gmra.mxu0 %v1531_v60  ;;  %p369_p0 = scmp.lt.s32.totalorder %s1486_s11, 5 }
  0x7d   : > { %1192 = vmatpush.bf16.msra.mxu0 %v1695_v47  ;;  %1144 = vmatmul.bf16.gmra.mxu1 %v1535_v63 }
  0x7e   : > { %1211 = vmatpush.bf16.msra.mxu1 %v1759_v48  ;;  %1163 = vmatmul.bf16.gmra.mxu2 %v2448_v52  ;;  %v1735_v52 = vor.u32 %v1987_v25, %v1732_v26  ;;  %s2673_s11 = smov (!%p369_p0, %s1486_s11), 5  ;;  %v1268_v25 = vld [vmem:[%s2600_s18 + $0x20] sm:$0xff] }
  0x7f   : > { %1230 = vmatpush.bf16.msra.mxu2 %v1823_v37  ;;  %1182 = vmatmul.bf16.gmra.mxu3 %v2453_v58  ;;  %v1863_v58 = vor.u32 %v2019_v27, %v1860_v28  ;;  %s371_s13 = scalar_lea.vmem %s2655_s2, %s2673_s11  ;;  %s378_s16 = scalar_lea.vmem %s2657_s4, %s2673_s11 }
  0x80   : > { %1249 = vmatpush.bf16.msra.mxu3 %v1887_v51  ;;  %v2597_v43 = vld [vmem:[%s378_s16] sm:$0x3] }
  0x81   : > { %1193 = vmatpush.bf16.msra.mxu0 %v1687_v7  ;;  %v1274_v50 = vperm.slane %v2597_v43, 0 }
  0x82   : > { %1212 = vmatpush.bf16.msra.mxu1 %v1751_v8 }
  0x83   : > { %1231 = vmatpush.bf16.msra.mxu2 %v1815_v53 }
  0x84   : > { %1250 = vmatpush.bf16.msra.mxu3 %v1879_v11 }
  0x85   : > { %1194 = vmatpush.bf16.msra.mxu0 %v1679_v19 }
  0x86   : > { %1213 = vmatpush.bf16.msra.mxu1 %v1743_v20 }
  0x87   : > { %1232 = vmatpush.bf16.msra.mxu2 %v1807_v12  ;;  %v1266_v12 = vld [vmem:[%s2600_s18 + $0x10] sm:$0xff] }
  0x88   : > { %1251 = vmatpush.bf16.msra.mxu3 %v1871_v22 }
  0x89   : > { %1195 = vmatpush.bf16.msra.mxu0 %v1671_v56 }
  0x8a   : > { %1214 = vmatpush.bf16.msra.mxu1 %v1735_v52 }
  0x8b   : > { %1233 = vmatpush.bf16.msra.mxu2 %v1799_v23 }
  0x8c   : > { %1252 = vmatpush.bf16.msra.mxu3 %v1863_v58  ;;  %1196 = vmatmul.bf16.vlgmr.msra.gmra.mxu0 %v2387_v62 }
  0x8d   : > { %1215 = vmatmul.bf16.vlgmr.msra.gmra.mxu1 %v2391_v1  ;;  %v490_v1 = vld [vmem:[%s371_s13] sm:$0x3] }
  0x8e   : > { %1234 = vmatmul.bf16.vlgmr.msra.gmra.mxu2 %v2512_v4  ;;  %v492_v4 = vperm.slane %v490_v1, 0  ;;  %v493_v58 = vperm.slane %v490_v1, 1 }
  0x8f   : > { %1253 = vmatmul.bf16.vlgmr.msra.gmra.mxu3 %v2514_v5 }
  0x9c   : > { %1201 = vmatmul.bf16.gmra.mxu0 %v2455_v59 }
  0x9d   : > { %1220 = vmatmul.bf16.gmra.mxu1 %v2459_v0 }
  0x9e   : > { %1239 = vmatmul.bf16.gmra.mxu2 %v1531_v60 }
  0x9f   : > { %1258 = vmatmul.bf16.gmra.mxu3 %v1535_v63 }
  0xc9   : > { %v1045_v29 = vpop.f32.mrf.mxu0 }
  0xca   : > { %v1064_v61 = vpop.f32.mrf.mxu1  ;;  %v1046_v34 = vadd.f32 %v1045_v29, %v492_v4 }
  0xcc   : > { %v1065_v36 = vadd.f32 %v1064_v61, %v1046_v34 }
  0xd1   : > { %v1083_v30 = vpop.f32.mrf.mxu2  ;;  %v1047_v62 = vpop.f32.mrf.mxu0 }
  0xd2   : > { %v1102_v31 = vpop.f32.mrf.mxu3  ;;  %v1066_v32 = vpop.f32.mrf.mxu1  ;;  %v1084_v40 = vadd.f32 %v1083_v30, %v1065_v36  ;;  %v1048_v41 = vadd.f32 %v1047_v62, %v492_v4 }
  0xd4   : > { %v1103_v44 = vadd.f32 %v1102_v31, %v1084_v40  ;;  %v1067_v48 = vadd.f32 %v1066_v32, %v1048_v41  ;;  %v1270_v32 = vld [vmem:[%s2600_s18 + $0x30] sm:$0xff] }
  0xd9   : > { %v1085_v59 = vpop.f32.mrf.mxu2  ;;  %v1050_v5 = vpop.f32.mrf.mxu0 }
  0xda   : > { %v1104_v0 = vpop.f32.mrf.mxu3  ;;  %v1069_v33 = vpop.f32.mrf.mxu1  ;;  %v1086_v51 = vadd.f32 %v1085_v59, %v1067_v48  ;;  %v1051_v53 = vadd.f32 %v1050_v5, %v492_v4  ;;  %v1265_v48 = vld [vmem:[%s2600_s18 + $0x8] sm:$0xff] }
  0xdc   : > { %v1105_v60 = vadd.f32 %v1104_v0, %v1086_v51  ;;  %v1070_v63 = vadd.f32 %v1069_v33, %v1051_v53 }
  0xe1   : > { %v1088_v35 = vpop.f32.mrf.mxu2  ;;  %v1052_v38 = vpop.f32.mrf.mxu0 }
  0xe2   : > { %v1107_v37 = vpop.f32.mrf.mxu3  ;;  %v1071_v39 = vpop.f32.mrf.mxu1  ;;  %v1089_v10 = vadd.f32 %v1088_v35, %v1070_v63  ;;  %v1053_v13 = vadd.f32 %v1052_v38, %v492_v4 }
  0xe4   : > { %v1108_v15 = vadd.f32 %v1107_v37, %v1089_v10  ;;  %v1072_v21 = vadd.f32 %v1071_v39, %v1053_v13 }
  0xe9   : > { %v1090_v42 = vpop.f32.mrf.mxu2  ;;  %v1121_v46 = vpop.f32.mrf.mxu0 }
  0xea   : > { %v1109_v45 = vpop.f32.mrf.mxu3  ;;  %v1140_v47 = vpop.f32.mrf.mxu1  ;;  %v1122_v49 = vadd.f32 %v1121_v46, %v1103_v44  ;;  %v1091_v23 = vadd.f32 %v1090_v42, %v1072_v21  ;;  %v1275_v42 = vperm.slane %v2597_v43, 1 }
  0xec   : > { %v1141_v54 = vadd.f32 %v1140_v47, %v1122_v49  ;;  %v1110_v27 = vadd.f32 %v1109_v45, %v1091_v23 }
  0xee   : > { %v1278_v57 = vmul.f32 %v1274_v50, %v1141_v54 }
  0xf0   : > { %v1286_v2 = vadd.f32 %v1278_v57, %v1264_v55 }
  0xf1   : > { %v1159_v3 = vpop.f32.mrf.mxu2  ;;  %v1123_v7 = vpop.f32.mrf.mxu0 }
  0xf2   : > { %v1178_v6 = vpop.f32.mrf.mxu3  ;;  %v1142_v8 = vpop.f32.mrf.mxu1  ;;  %1294 = vst [vmem:[%s2603_s25] sm:$0xff] %v1286_v2  ;;  %v1124_v9 = vadd.f32 %v1123_v7, %v1105_v60  ;;  %v1160_v62 = vadd.f32 %v1159_v3, %v493_v58  ;;  %v1267_v3 = vld [vmem:[%s2600_s18 + $0x18] sm:$0xff] }
  0xf4   : > { %v1143_v11 = vadd.f32 %v1142_v8, %v1124_v9  ;;  %v1179_v33 = vadd.f32 %v1178_v6, %v1160_v62 }
  0xf6   : > { %v1280_v14 = vmul.f32 %v1274_v50, %v1143_v11 }
  0xf8   : > { %v1288_v16 = vadd.f32 %v1280_v14, %v1266_v12 }
  0xf9   : > { %v1161_v17 = vpop.f32.mrf.mxu2  ;;  %v1126_v19 = vpop.f32.mrf.mxu0 }
  0xfa   : > { %v1180_v18 = vpop.f32.mrf.mxu3  ;;  %v1145_v20 = vpop.f32.mrf.mxu1  ;;  %1296 = vst [vmem:[%s2603_s25 + $0x10] sm:$0xff] %v1288_v16  ;;  %v1127_v22 = vadd.f32 %v1126_v19, %v1108_v15  ;;  %v1162_v37 = vadd.f32 %v1161_v17, %v493_v58 }
  0xfc   : > { %v1146_v24 = vadd.f32 %v1145_v20, %v1127_v22  ;;  %v1181_v40 = vadd.f32 %v1180_v18, %v1162_v37  ;;  %v1269_v18 = vld [vmem:[%s2600_s18 + $0x28] sm:$0xff] }
  0xfe   : > { %v1282_v26 = vmul.f32 %v1274_v50, %v1146_v24 }
 0x100   : > { %v1290_v28 = vadd.f32 %v1282_v26, %v1268_v25 }
 0x101   : > { %v1164_v56 = vpop.f32.mrf.mxu2  ;;  %v1128_v29 = vpop.f32.mrf.mxu0 }
 0x102   : > { %v1183_v52 = vpop.f32.mrf.mxu3  ;;  %v1147_v61 = vpop.f32.mrf.mxu1  ;;  %1298 = vst [vmem:[%s2603_s25 + $0x20] sm:$0xff] %v1290_v28  ;;  %v1129_v30 = vadd.f32 %v1128_v29, %v1110_v27  ;;  %v1165_v49 = vadd.f32 %v1164_v56, %v493_v58  ;;  %v1271_v27 = vld [vmem:[%s2600_s18 + $0x38] sm:$0xff]  ;;  %v1331_v29 = vld [vmem:[%s2603_s25 + $0x10] sm:$0xff] (%p2254_p9) }
 0x103   : > { %1332 = vst [vmem:[%s1314_s10 + $0x30] sm:$0xff] (%p2254_p9), %v1331_v29 }
 0x104   : > { %v1148_v31 = vadd.f32 %v1147_v61, %v1129_v30  ;;  %v1184_v57 = vadd.f32 %v1183_v52, %v1165_v49  ;;  %v1327_v52 = vld [vmem:[%s2603_s25] sm:$0xff] (%p2254_p9) }
 0x105   : > { %1328 = vst [vmem:[%s1314_s10] sm:$0xff] (%p2254_p9), %v1327_v52 }
 0x106   : > { %v1284_v59 = vmul.f32 %v1274_v50, %v1148_v31 }
 0x108   : > { %v1292_v4 = vadd.f32 %v1284_v59, %v1270_v32 }
 0x109   : > { %v1166_v0 = vpop.f32.mrf.mxu2  ;;  %v1197_v34 = vpop.f32.mrf.mxu0  ;;  %v1335_v30 = vld [vmem:[%s2603_s25 + $0x20] sm:$0xff] (%p2254_p9) }
 0x10a   : > { %v1185_v5 = vpop.f32.mrf.mxu3  ;;  %v1216_v35 = vpop.f32.mrf.mxu1  ;;  %1300 = vst [vmem:[%s2603_s25 + $0x30] sm:$0xff] %v1292_v4  ;;  %v1198_v36 = vadd.f32 %v1197_v34, %v1179_v33  ;;  %v1167_v7 = vadd.f32 %v1166_v0, %v493_v58 }
 0x10b   : > { %1336 = vst [vmem:[%s1314_s10 + $0x60] sm:$0xff] (%p2254_p9), %v1335_v30 }
 0x10c   : > { %v1217_v38 = vadd.f32 %v1216_v35, %v1198_v36  ;;  %v1186_v13 = vadd.f32 %v1185_v5, %v1167_v7 }
 0x111   : > { %v1235_v1 = vpop.f32.mrf.mxu2  ;;  %v1199_v44 = vpop.f32.mrf.mxu0  ;;  %v1339_v62 = vld [vmem:[%s2603_s25 + $0x30] sm:$0xff] (%p2254_p9) }
 0x112   : > { %v1254_v39 = vpop.f32.mrf.mxu3  ;;  %v1236_v41 = vadd.f32 %v1235_v1, %v1217_v38  ;;  %v1218_v45 = vpop.f32.mrf.mxu1  ;;  %v1200_v47 = vadd.f32 %v1199_v44, %v1181_v40  ;;  %1340 = vst [vmem:[%s1314_s10 + $0x90] sm:$0xff] (%p2254_p9), %v1339_v62 }
 0x114   : > { %v1255_v46 = vadd.f32 %v1254_v39, %v1236_v41  ;;  %v1219_v53 = vadd.f32 %v1218_v45, %v1200_v47 }
 0x116   : > { %v1279_v50 = vmul.f32 %v1275_v42, %v1255_v46 }
 0x118   : > { %v1287_v51 = vadd.f32 %v1279_v50, %v1265_v48 }
 0x119   : > { %v1237_v54 = vpop.f32.mrf.mxu2  ;;  %v1202_v63 = vpop.f32.mrf.mxu0 }
 0x11a   : > { %v1256_v55 = vpop.f32.mrf.mxu3  ;;  %1295 = vst [vmem:[%s2603_s25 + $0x8] sm:$0xff] %v1287_v51  ;;  %v1238_v60 = vadd.f32 %v1237_v54, %v1219_v53  ;;  %v1203_v43 = vadd.f32 %v1202_v63, %v1184_v57  ;;  %v1221_v6 = vpop.f32.mrf.mxu1 }
 0x11c   : > { %v1257_v2 = vadd.f32 %v1256_v55, %v1238_v60  ;;  %v1222_v10 = vadd.f32 %v1221_v6, %v1203_v43 }
 0x11e   : > { %v1281_v8 = vmul.f32 %v1275_v42, %v1257_v2 }
 0x120   : > { %v1289_v9 = vadd.f32 %v1281_v8, %v1267_v3 }
 0x121   : > { %v1240_v11 = vpop.f32.mrf.mxu2  ;;  %v1204_v15 = vpop.f32.mrf.mxu0  ;;  %v1329_v58 = vld [vmem:[%s2603_s25 + $0x8] sm:$0xff] (%p2254_p9) }
 0x122   : > { %v1259_v12 = vpop.f32.mrf.mxu3  ;;  %1297 = vst [vmem:[%s2603_s25 + $0x18] sm:$0xff] %v1289_v9  ;;  %v1241_v14 = vadd.f32 %v1240_v11, %v1222_v10  ;;  %v1205_v17 = vadd.f32 %v1204_v15, %v1186_v13  ;;  %v1223_v20 = vpop.f32.mrf.mxu1 }
 0x123   : > { %1330 = vst [vmem:[%s1314_s10 + $0x8] sm:$0xff] (%p2254_p9), %v1329_v58 }
 0x124   : > { %v1260_v16 = vadd.f32 %v1259_v12, %v1241_v14  ;;  %v1224_v22 = vadd.f32 %v1223_v20, %v1205_v17 }
 0x126   : > { %v1283_v19 = vmul.f32 %v1275_v42, %v1260_v16 }
 0x128   : > { %v1291_v21 = vadd.f32 %v1283_v19, %v1269_v18 }
 0x129   : > { %v1242_v23 = vpop.f32.mrf.mxu2  ;;  %v1333_v61 = vld [vmem:[%s2603_s25 + $0x18] sm:$0xff] (%p2254_p9) }
 0x12a   : > { %1299 = vst [vmem:[%s2603_s25 + $0x28] sm:$0xff] %v1291_v21  ;;  %v1243_v24 = vadd.f32 %v1242_v23, %v1224_v22  ;;  %v1261_v25 = vpop.f32.mrf.mxu3 }
 0x12b   : > { %1334 = vst [vmem:[%s1314_s10 + $0x38] sm:$0xff] (%p2254_p9), %v1333_v61 }
 0x12c   : > { %v1262_v26 = vadd.f32 %v1261_v25, %v1243_v24 }
 0x12e   : > { %v1285_v28 = vmul.f32 %v1275_v42, %v1262_v26  ;;  %1308 = sbr.rel (!%p2254_p9) target bundleno = 315 (0x13b), region = 71 }
 0x130   : > { %v1293_v56 = vadd.f32 %v1285_v28, %v1271_v27 }
 0x131   : > { %v1337_v31 = vld [vmem:[%s2603_s25 + $0x28] sm:$0xff] (%p2254_p9) }
 0x132   : > { %1301 = vst [vmem:[%s2603_s25 + $0x38] sm:$0xff] %v1293_v56 }
 0x133   : > { %1338 = vst [vmem:[%s1314_s10 + $0x68] sm:$0xff] %v1337_v31 }
 0x139   : > { %v1341_v32 = vld [vmem:[%s2603_s25 + $0x38] sm:$0xff] }
 0x13a   : > { %1342 = vst [vmem:[%s1314_s10 + $0x98] sm:$0xff] %v1341_v32 }
 0x13b PF: > { %s18_s23 = sadd.s32 1, %s2169_s23   ;;  %s2664_s6 = sld [smem:[#allocation7_spill]] }
 0x13c   : > { %p15_p1 = scmp.ge.s32.totalorder %s18_s23, 5   ;;  %s2665_s18 = smov %s2153_s19 }
 0x13d   : > { %s2666_s19 = smov %s2157_s20  ;;  %s2667_s20 = smov %s2252_s30 }
 0x13e   : > { %s2668_s21 = smov %s2165_s22  ;;  %17 = sbr.rel (!%p15_p1) target bundleno = 4 (0x4), region = 143 }
 0x141   : > { %s2669_s22 = smov %s2664_s6 }
 0x143   :  { %1358 = vsyncpa [#allocation3], 1 }
 0x144   :  { %1360 = vsyncpa [#allocation3 + $0x1], 1 }

// kernel: dino_forward.11
= control target key start
LH: loop header
LB: loop body
LE: loop exit
PB: predicated region body
PF: predicated region fallthrough
CT: control target
= control target key end

     0   :  { %s3942_s0 = inlined_call_operand.vmem [shape: f32[32,768], index: 0, kind: input, shape index: {}]   ;;  %s3943_s1 = inlined_call_operand.vmem [shape: f32[1,768], index: 1, kind: input, shape index: {}]   ;;  %s3944_s2 = inlined_call_operand.vmem [shape: f32[1,768], index: 2, kind: input, shape index: {}]   ;;  %s3945_s3 = inlined_call_operand.hbm [shape: bf16[768,3072], index: 3, kind: input, shape index: {}]   ;;  %s3946_s4 = inlined_call_operand.hbm [shape: f32[1,3072], index: 4, kind: input, shape index: {}]   ;;  %s3947_s5 = inlined_call_operand.vmem [shape: bf16[32,3072], index: 5, kind: output, shape index: {}]  }
   0x1   :  { %3948 = sst [smem:[#allocation10_spill]] %s3945_s3 }
   0x2   :  { %10 = vsyncpa [#allocation4], 0 }
   0x3   :  { %12 = vsyncpa [#allocation4 + $0x1], 0 }
   0x4   :  { %13 = vsyncpa [#allocation6], 0 }
   0x5   :  { %15 = vsyncpa [#allocation6 + $0x1], 0  ;;  %s2859_s18 = smov 0   ;;  %s2861_s19 = smov 0  }
   0x6   :  { %s2863_s20 = smov 0   ;;  %s2865_s21 = smov 0  }
   0x7   :  { %s2867_s22 = smov 0   ;;  %s2869_s23 = smov 0  }
   0x8 LB: > { %s2049_s24 = sadd.s32 4294967295, %s2823_s23   ;;  %s30_s25 = sadd.s32 1, %s2819_s22  ;;  %s2823_s23 = sphi %s2869_s23, %s21_s23   ;;  %s2819_s22 = sphi %s2867_s22, %s3970_s22   ;;  %s2815_s21 = sphi %s2865_s21, %s3969_s21   ;;  %s2811_s20 = sphi %s2863_s20, %s3968_s20   ;;  %s2807_s19 = sphi %s2861_s19, %s3967_s19   ;;  %s2803_s18 = sphi %s2859_s18, %s3966_s18  }
   0x9   : > { %p31_p0 = scmp.ge.s32.totalorder %s30_s25, 12  ;;  %s108_s26 = sadd.s32 1, %s2811_s20 }
   0xa   : > { %p115_p1 = scmp.ne.s32.totalorder %s2811_s20, %s2807_s19  ;;  %p116_p2 = scmp.eq.s32.totalorder %s2823_s23, 0 }
   0xb   : > { %s3972_s25 = smov (%p31_p0, %s30_s25), 0  ;;  %p121_p4 = scmp.ne.s32.totalorder %s2807_s19, %s2803_s18 }
   0xc   : > { %p2895_p3 = por %p116_p2, %p115_p1  ;;  %s105_s28 = ssub.s32 %s2819_s22, %s3972_s25 }
   0xd   : > { %p122_p5 = scmp.eq.s32.totalorder %s2049_s24, 0  ;;  %p106_p6 = scmp.eq.s32.totalorder %s105_s28, 0 }
   0xe   : > { %p173_p7 = scmp.eq.s32.totalorder %s2049_s24, 11  ;;  %p2630_p10 = scmp.lt.s32.totalorder %s2823_s23, 12 }
   0xf   : > { %p2902_p8 = por %p122_p5, %p121_p4  ;;  %s2915_s7 = sand.u32 1, %s2811_s20  }
  0x10   : > { %s2907_s30 = scalar_select %p106_p6, %s2811_s20, %s108_s26  }
  0x11   : > { %p2909_p9 = por %p173_p7, %p115_p1  ;;  %s2507_s8 = sshll.u32 %s2819_s22, 3 }
  0x12   : > { %s2617_s9 = smul.u32 768, %s2915_s7  ;;  %s3952_s3 = sld [smem:[#allocation10_spill]] }
  0x13   : > { %p2924_p11 = pnand %p2630_p10, %p2895_p3  ;;  %p2058_p12 = scmp.ge.s32.totalorder %s2823_s23, 1 }
  0x14   : > { %s219_s15 = scalar_lea.vmem [#allocation3], %s2617_s9  ;;  %s216_s17 = scalar_lea.sflag [#allocation4], %s2915_s7 }
  0x15   : > { %s227_s16 = sshll.u32 %s219_s15, 4  ;;  %s2825_s18 = smov 1536   ;;  %s228_s16 = int_to_ptr.vmem [resolvable:$true] %s227_s16 }
  0x16   : > { %s2826_s24 = smov 128   ;;  %s2827_s26 = smov 8  }
  0x17   : > { %p254_p13 = scmp.lt.s32.totalorder %s2823_s23, 13  ;;  %s2056_s27 = sshll.u32 %s2915_s7, 1 }
  0x18   : > { %s224_s12 = scalar_lea.hbm %s3952_s3, %s2507_s8  ;;  %s2057_s28 = sshll.u32 %s2819_s22, 1 }
  0x19   : > { %s225_s14 = sshll.u32 %s224_s12, 4  ;;  %p255_p0 = pnand %p2058_p12, %p254_p13  ;;  %s226_s14 = int_to_ptr.hbm [resolvable:$true] %s225_s14 }
  0x1a   : > { %2626 = dma.hbm_to_vmem [thread:$0]  (!%p2924_p11), %s226_s14, 12288, %s228_s16, %s216_s17, %s2825_s18, %s2826_s24, %s2827_s26  }
  0x1b   : > { %s245_s11 = scalar_lea.hbm %s3946_s4, %s2057_s28  ;;  %s241_s9 = scalar_lea.vmem [#allocation5], %s2056_s27 }
  0x1c   : > { %s249_s12 = sshll.u32 %s241_s9, 4  ;;  %s247_s15 = sshll.u32 %s245_s11, 4  ;;  %s250_s12 = int_to_ptr.vmem [resolvable:$true] %s249_s12  ;;  %s248_s15 = int_to_ptr.hbm [resolvable:$true] %s247_s15 }
  0x1d   : > { %s238_s3 = scalar_lea.sflag [#allocation6], %s2915_s7  ;;  %258 = sbr.rel (%p255_p0) target bundleno = 685 (0x2ad), region = 40 }
  0x1e   : > { %2629 = dma.hbm_to_vmem [thread:$0]  (!%p2924_p11), %s248_s15, 32, %s250_s12, %s238_s3  }
  0x1f   : > { %s260_s14 = sand.u32 (!%p255_p0), 1, %s2807_s19  }
  0x20   : > { %s2618_s16 = smul.u32 (!%p255_p0), 768, %s260_s14  ;;  %s261_s17 = scalar_lea.sflag (!%p255_p0), [#allocation4], %s260_s14 }
  0x22   : > { %s2942_s18 = scalar_lea.vmem [#allocation3], %s2618_s16 }
  0x23   : > { %2794 = dma.done.wait (%p2902_p8), %s261_s17, 12288  }
  0x24   : > { %2796 = vsyncadd (%p2902_p8), %s261_s17, 4294955008  ;;  %s2059_s24 = sshll.u32 %s260_s14, 1  ;;  %s271_s26 = scalar_lea.sflag [#allocation6], %s260_s14 }
  0x25   : > { %s2948_s27 = scalar_lea.vmem [#allocation5], %s2059_s24 }
  0x26   : > { %2798 = dma.done.wait (%p2902_p8), %s271_s26, 32  }
  0x27   : > { %2800 = vsyncadd (%p2902_p8), %s271_s26, 4294967264  ;;  %s2060_s3 = sshll.u32 %s260_s14, 5  ;;  %p2061_p1 = scmp.ne.s32.totalorder %s2815_s21, 0 }
  0x28   : > { %s2954_s7 = scalar_lea.vmem [#allocation7], %s2060_s3 }
  0x29   : > { %326 = sbr.rel (%p2061_p1) target bundleno = 361 (0x169), region = 52 }
  0x2e   : > { %v339_v0 = vld [vmem:[%s3942_s0 + $0x60] sm:$0xff]  ;;  %v340_v1 = vld [vmem:[%s3942_s0 + $0x68] sm:$0xff]  ;;  %v341_v2 = vld [vmem:[%s3942_s0 + $0x70] sm:$0xff]  ;;  %v2828_v44 = vmov 768.0  }
  0x2f   : > { %v342_v3 = vld [vmem:[%s3942_s0 + $0x78] sm:$0xff]  ;;  %v365_v4 = vadd.f32 %v340_v1, %v339_v0  ;;  %v2972_v5 = vld [vmem:[%s3942_s0] sm:$0xff]  ;;  %v2977_v6 = vld [vmem:[%s3942_s0 + $0x8] sm:$0xff]  ;;  %2683 = vrcp.f32 %v2828_v44 }
  0x30   : > { %v2982_v7 = vld [vmem:[%s3942_s0 + $0x10] sm:$0xff]  ;;  %v343_v8 = vld [vmem:[%s3942_s0 + $0x80] sm:$0xff]  ;;  %v2990_v10 = vld [vmem:[%s3942_s0 + $0x18] sm:$0xff]  ;;  %v351_v11 = vadd.f32 %v2977_v6, %v2972_v5 }
  0x31   : > { %v366_v9 = vadd.f32 %v365_v4, %v341_v2  ;;  %v2997_v12 = vld [vmem:[%s3942_s0 + $0x90] sm:$0xff]  ;;  %v3002_v13 = vld [vmem:[%s3942_s0 + $0x98] sm:$0xff]  ;;  %v3007_v14 = vld [vmem:[%s3942_s0 + $0xa0] sm:$0xff] }
  0x32   : > { %v344_v15 = vld [vmem:[%s3942_s0 + $0x88] sm:$0xff]  ;;  %v3015_v17 = vld [vmem:[%s3942_s0 + $0x20] sm:$0xff]  ;;  %v352_v18 = vadd.f32 %v351_v11, %v2982_v7  ;;  %v372_v20 = vadd.f32 %v3002_v13, %v2997_v12  ;;  %v3028_v21 = vld [vmem:[%s3942_s0 + $0x30] sm:$0xff] }
  0x33   : > { %v367_v16 = vadd.f32 %v366_v9, %v342_v3  ;;  %v3021_v19 = vld [vmem:[%s3942_s0 + $0xa8] sm:$0xff]  ;;  %v3033_v22 = vld [vmem:[%s3942_s0 + $0x38] sm:$0xff]  ;;  %v3038_v23 = vld [vmem:[%s3942_s0 + $0x40] sm:$0xff] }
  0x34   : > { %v353_v25 = vadd.f32 %v352_v18, %v2990_v10  ;;  %v373_v26 = vadd.f32 %v372_v20, %v3007_v14  ;;  %v358_v27 = vadd.f32 %v3033_v22, %v3028_v21  ;;  %v3047_v28 = vld [vmem:[%s3942_s0 + $0x28] sm:$0xff]  ;;  %v3052_v29 = vld [vmem:[%s3942_s0 + $0xb0] sm:$0xff]  ;;  %v3073_v39 = vld [vmem:[%s3942_s0 + $0xb8] sm:$0xff] }
  0x35   : > { %v368_v24 = vadd.f32 %v367_v16, %v343_v8  ;;  %v3057_v30 = vld [vmem:[%s3942_s0 + $0x48] sm:$0xff]  ;;  %v3065_v35 = vld [vmem:[%s3942_s0 + $0x50] sm:$0xff]  ;;  %v3079_v41 = vld [vmem:[%s3942_s0 + $0x58] sm:$0xff]  ;;  %v2684_v45 = vpop.eup %2683 }
  0x36   : > { %v354_v32 = vadd.f32 %v353_v25, %v3015_v17  ;;  %v374_v33 = vadd.f32 %v373_v26, %v3021_v19  ;;  %v359_v34 = vadd.f32 %v358_v27, %v3038_v23  ;;  %v380_v46 = vmul.f32 768.0, %v2684_v45 }
  0x37   : > { %v369_v31 = vadd.f32 %v368_v24, %v344_v15  ;;  %vm384_vm0 = vweird.f32 %v2684_v45 }
  0x38   : > { %v355_v36 = vadd.f32 %v354_v32, %v3047_v28  ;;  %v375_v37 = vadd.f32 %v374_v33, %v3052_v29  ;;  %v360_v38 = vadd.f32 %v359_v34, %v3057_v30  ;;  %v381_v47 = vsub.f32 1.0, %v380_v46 }
  0x39   : > { %370 = vadd.xlane.f32.xlu1 %v369_v31 }
  0x3a   : > { %356 = vadd.xlane.f32.xlu0 %v355_v36  ;;  %v361_v40 = vadd.f32 %v360_v38, %v3065_v35  ;;  %v376_v42 = vadd.f32 %v375_v37, %v3073_v39  ;;  %v382_v48 = vmul.f32 %v2684_v45, %v381_v47 }
  0x3c   : > { %v362_v43 = vadd.f32 %v361_v40, %v3079_v41  ;;  %v383_v49 = vadd.f32 %v2684_v45, %v382_v48 }
  0x3e   : > { %v3083_v50 = vsel %vm384_vm0, %v2684_v45, %v383_v49 }
  0x41   : > { %377 = vadd.xlane.f32.xlu1 %v376_v42 }
  0x42   : > { %363 = vadd.xlane.f32.xlu0 %v362_v43 }
  0xac   : > { %v371_v51 = vpop.xlane.xlu1 %370 }
  0xad   : > { %v388_v52 = vmul.f32 %v3083_v50, %v371_v51  ;;  %v357_v53 = vpop.xlane.xlu0 %356 }
  0xae   : > { %v386_v54 = vmul.f32 %v3083_v50, %v357_v53 }
  0xaf   : > { %v3087_v55 = vsub.f32 %v339_v0, %v388_v52  ;;  %v3089_v56 = vsub.f32 %v340_v1, %v388_v52  ;;  %v3091_v57 = vsub.f32 %v341_v2, %v388_v52  ;;  %v3093_v58 = vsub.f32 %v342_v3, %v388_v52 }
  0xb0   : > { %v3095_v59 = vsub.f32 %v343_v8, %v388_v52  ;;  %v3102_v62 = vsub.f32 %v2972_v5, %v386_v54  ;;  %v3104_v63 = vsub.f32 %v344_v15, %v388_v52  ;;  %v3107_v0 = vsub.f32 %v2977_v6, %v386_v54 }
  0xb1   : > { %v426_v60 = vmul.f32 %v3087_v55, %v3087_v55  ;;  %v427_v61 = vmul.f32 %v3089_v56, %v3089_v56  ;;  %v428_v1 = vmul.f32 %v3091_v57, %v3091_v57  ;;  %v3112_v3 = vsub.f32 %v2982_v7, %v386_v54 }
  0xb2   : > { %v3115_v8 = vsub.f32 %v2990_v10, %v386_v54  ;;  %v414_v5 = vmul.f32 %v3102_v62, %v3102_v62  ;;  %v415_v9 = vmul.f32 %v3107_v0, %v3107_v0  ;;  %v429_v11 = vmul.f32 %v3093_v58, %v3093_v58 }
  0xb3   : > { %v452_v2 = vadd.f32 %v427_v61, %v426_v60  ;;  %v430_v15 = vmul.f32 %v3095_v59, %v3095_v59  ;;  %v431_v10 = vmul.f32 %v3104_v63, %v3104_v63  ;;  %v3129_v18 = vsub.f32 %v3015_v17, %v386_v54 }
  0xb4   : > { %v378_v4 = vpop.xlane.xlu1 %377  ;;  %v416_v20 = vmul.f32 %v3112_v3, %v3112_v3  ;;  %v438_v24 = vadd.f32 %v415_v9, %v414_v5  ;;  %v3141_v32 = vsub.f32 %v3047_v28, %v386_v54  ;;  %v417_v17 = vmul.f32 %v3115_v8, %v3115_v8 }
  0xb5   : > { %v389_v6 = vmul.f32 %v3083_v50, %v378_v4  ;;  %v453_v7 = vadd.f32 %v452_v2, %v428_v1  ;;  %v364_v16 = vpop.xlane.xlu0 %363  ;;  %v418_v28 = vmul.f32 %v3129_v18, %v3129_v18 }
  0xb6   : > { %v387_v25 = vmul.f32 %v3083_v50, %v364_v16  ;;  %v439_v33 = vadd.f32 %v438_v24, %v416_v20  ;;  %v419_v44 = vmul.f32 %v3141_v32, %v3141_v32 }
  0xb7   : > { %v454_v26 = vadd.f32 %v453_v7, %v429_v11  ;;  %v3135_v27 = vsub.f32 %v2997_v12, %v389_v6  ;;  %v3138_v31 = vsub.f32 %v3002_v13, %v389_v6  ;;  %v3146_v34 = vsub.f32 %v3007_v14, %v389_v6 }
  0xb8   : > { %v3149_v37 = vsub.f32 %v3021_v19, %v389_v6  ;;  %v440_v38 = vadd.f32 %v439_v33, %v417_v17  ;;  %v3158_v40 = vsub.f32 %v3052_v29, %v389_v6  ;;  %v3163_v19 = vsub.f32 %v3028_v21, %v387_v25 }
  0xb9   : > { %v455_v36 = vadd.f32 %v454_v26, %v430_v15  ;;  %v432_v12 = vmul.f32 %v3135_v27, %v3135_v27  ;;  %v433_v13 = vmul.f32 %v3138_v31, %v3138_v31  ;;  %v434_v14 = vmul.f32 %v3146_v34, %v3146_v34 }
  0xba   : > { %v441_v45 = vadd.f32 %v440_v38, %v418_v28  ;;  %v3168_v46 = vsub.f32 %v3033_v22, %v387_v25  ;;  %v3171_v47 = vsub.f32 %v3038_v23, %v387_v25  ;;  %v3174_v29 = vsub.f32 %v3073_v39, %v389_v6 }
  0xbb   : > { %v456_v42 = vadd.f32 %v455_v36, %v431_v10  ;;  %v459_v43 = vadd.f32 %v433_v13, %v432_v12  ;;  %v435_v48 = vmul.f32 %v3149_v37, %v3149_v37  ;;  %v420_v21 = vmul.f32 %v3163_v19, %v3163_v19  ;;  %v538_v12 = vld [vmem:[%s3943_s1] sm:$0x3f] }
  0xbc   : > { %v442_v51 = vadd.f32 %v441_v45, %v419_v44  ;;  %v3181_v52 = vsub.f32 %v3057_v30, %v387_v25  ;;  %v421_v22 = vmul.f32 %v3168_v46, %v3168_v46  ;;  %v436_v23 = vmul.f32 %v3158_v40, %v3158_v40  ;;  %v576_v45 = vld [vmem:[%s3944_s2] sm:$0x3f] }
  0xbd   : > { %457 = vadd.xlane.f32.xlu0 %v456_v42  ;;  %v460_v49 = vadd.f32 %v459_v43, %v434_v14  ;;  %v3188_v39 = vsub.f32 %v3065_v35, %v387_v25  ;;  %v422_v54 = vmul.f32 %v3171_v47, %v3171_v47  ;;  %v437_v61 = vmul.f32 %v3174_v29, %v3174_v29 }
  0xbe   : > { %443 = vadd.xlane.f32.xlu2 %v442_v51  ;;  %v445_v60 = vadd.f32 %v421_v22, %v420_v21  ;;  %v3195_v1 = vsub.f32 %v3079_v41, %v387_v25  ;;  %v423_v2 = vmul.f32 %v3181_v52, %v3181_v52  ;;  %v3213_v43 = vperm.slane %v538_v12, 0 }
  0xbf   : > { %v461_v53 = vadd.f32 %v460_v49, %v435_v48  ;;  %v424_v35 = vmul.f32 %v3188_v39, %v3188_v39  ;;  %v3215_v44 = vperm.slane %v538_v12, 1  ;;  %v3220_v49 = vperm.slane %v538_v12, 2 }
  0xc0   : > { %v446_v4 = vadd.f32 %v445_v60, %v422_v54  ;;  %v425_v6 = vmul.f32 %v3195_v1, %v3195_v1  ;;  %v3222_v21 = vperm.slane %v538_v12, 3  ;;  %v3224_v51 = vperm.slane %v538_v12, 4 }
  0xc1   : > { %v462_v30 = vadd.f32 %v461_v53, %v436_v23  ;;  %v3226_v23 = vperm.slane %v538_v12, 5  ;;  %v3232_v60 = vperm.slane %v576_v45, 0 }
  0xc2   : > { %v447_v9 = vadd.f32 %v446_v4, %v423_v2  ;;  %v3238_v4 = vperm.slane %v576_v45, 3 }
  0xc3   : > { %v463_v5 = vadd.f32 %v462_v30, %v437_v61  ;;  %v3234_v61 = vperm.slane %v576_v45, 1  ;;  %v3236_v30 = vperm.slane %v576_v45, 2 }
  0xc4   : > { %v448_v11 = vadd.f32 %v447_v9, %v424_v35  ;;  %v3242_v9 = vperm.slane %v576_v45, 4 }
  0xc5   : > { %464 = vadd.xlane.f32.xlu1 %v463_v5 }
  0xc6   : > { %v449_v15 = vadd.f32 %v448_v11, %v425_v6  ;;  %v3244_v6 = vperm.slane %v576_v45, 5 }
  0xc8   : > { %450 = vadd.xlane.f32.xlu2 %v449_v15 }
 0x130   : > { %v458_v7 = vpop.xlane.xlu0 %457 }
 0x131   : > { %v468_v41 = vmul.f32 %v458_v7, %v3083_v50  ;;  %v444_v16 = vpop.xlane.xlu2 %443 }
 0x132   : > { %v466_v20 = vmul.f32 %v444_v16, %v3083_v50 }
 0x133   : > { %v472_v10 = vadd.f32 1e-06, %v468_v41 }
 0x134   : > { %v470_v24 = vadd.f32 1e-06, %v466_v20 }
 0x135   : > { %2685 = vrsqrt.f32 %v472_v10  ;;  %vm500_vm2 = vweird.f32 %v472_v10 }
 0x136   : > { %2687 = vrsqrt.f32 %v470_v24  ;;  %vm480_vm5 = vweird.f32 %v470_v24 }
 0x138   : > { %v465_v25 = vpop.xlane.xlu1 %464 }
 0x139   : > { %v469_v26 = vmul.f32 %v465_v25, %v3083_v50 }
 0x13b   : > { %v2686_v17 = vpop.eup %2685  ;;  %v3206_v33 = vadd.f32 1e-06, %v469_v26  ;;  %v451_v13 = vpop.xlane.xlu2 %450 }
 0x13c   : > { %v495_v36 = vmul.f32 %v2686_v17, %v472_v10  ;;  %v2688_v28 = vpop.eup %2687  ;;  %v467_v42 = vmul.f32 %v451_v13, %v3083_v50  ;;  %vm501_vm1 = vweird.f32 %v2686_v17 }
 0x13d   : > { %2689 = vrsqrt.f32 %v3206_v33  ;;  %v475_v14 = vmul.f32 %v2688_v28, %v470_v24  ;;  %vm481_vm3 = vweird.f32 %v2688_v28  ;;  %vm502_vm4 = vmor %vm500_vm2, %vm501_vm1  ;;  %vm510_vm8 = vweird.f32 %v3206_v33 }
 0x13e   : > { %v496_v38 = vmul.f32 %v2686_v17, %v495_v36  ;;  %v3228_v53 = vadd.f32 1e-06, %v467_v42  ;;  %vm482_vm6 = vmor %vm480_vm5, %vm481_vm3 }
 0x13f   : > { %v476_v22 = vmul.f32 %v2688_v28, %v475_v14 }
 0x140   : > { %v497_v48 = vmul.f32 0.5, %v496_v38  ;;  %2691 = vrsqrt.f32 %v3228_v53  ;;  %vm490_vm11 = vweird.f32 %v3228_v53 }
 0x141   : > { %v477_v2 = vmul.f32 0.5, %v476_v22 }
 0x142   : > { %v498_v50 = vsub.f32 1.5, %v497_v48 }
 0x143   : > { %v3230_v54 = vpop.eup %2689  ;;  %v478_v11 = vsub.f32 1.5, %v477_v2 }
 0x144   : > { %v499_v5 = vmul.f32 %v2686_v17, %v498_v50  ;;  %v505_v35 = vmul.f32 %v3230_v54, %v3206_v33  ;;  %vm511_vm7 = vweird.f32 %v3230_v54 }
 0x145   : > { %v479_v41 = vmul.f32 %v2688_v28, %v478_v11  ;;  %vm512_vm9 = vmor %vm510_vm8, %vm511_vm7 }
 0x146   : > { %v503_v15 = vsel %vm502_vm4, %v2686_v17, %v499_v5  ;;  %v506_v7 = vmul.f32 %v3230_v54, %v505_v35  ;;  %v3267_v14 = vpop.eup %2691 }
 0x147   : > { %v526_v16 = vmul.f32 %v503_v15, %v3087_v55  ;;  %v527_v10 = vmul.f32 %v503_v15, %v3089_v56  ;;  %v528_v20 = vmul.f32 %v503_v15, %v3091_v57  ;;  %v529_v25 = vmul.f32 %v503_v15, %v3093_v58 }
 0x148   : > { %v530_v26 = vmul.f32 %v503_v15, %v3095_v59  ;;  %v531_v36 = vmul.f32 %v503_v15, %v3104_v63  ;;  %v507_v24 = vmul.f32 0.5, %v506_v7  ;;  %v483_v17 = vsel %vm482_vm6, %v2688_v28, %v479_v41 }
 0x149   : > { %v564_v12 = vmul.f32 %v3213_v43, %v526_v16  ;;  %v565_v13 = vmul.f32 %v3215_v44, %v527_v10  ;;  %v566_v38 = vmul.f32 %v3220_v49, %v528_v20  ;;  %v514_v55 = vmul.f32 %v483_v17, %v3102_v62 }
 0x14a   : > { %v515_v56 = vmul.f32 %v483_v17, %v3107_v0  ;;  %v516_v57 = vmul.f32 %v483_v17, %v3112_v3  ;;  %v517_v58 = vmul.f32 %v483_v17, %v3115_v8  ;;  %v518_v59 = vmul.f32 %v483_v17, %v3129_v18 }
 0x14b   : > { %v519_v63 = vmul.f32 %v483_v17, %v3141_v32  ;;  %v567_v28 = vmul.f32 %v3222_v21, %v529_v25  ;;  %v568_v42 = vmul.f32 %v3224_v51, %v530_v26  ;;  %v552_v45 = vmul.f32 %v3213_v43, %v514_v55 }
 0x14c   : > { %v553_v62 = vmul.f32 %v3215_v44, %v515_v56  ;;  %v554_v0 = vmul.f32 %v3220_v49, %v516_v57  ;;  %v555_v3 = vmul.f32 %v3222_v21, %v517_v58  ;;  %v556_v8 = vmul.f32 %v3224_v51, %v518_v59 }
 0x14d   : > { %v557_v18 = vmul.f32 %v3226_v23, %v519_v63  ;;  %v569_v32 = vmul.f32 %v3226_v23, %v531_v36  ;;  %v602_v48 = vadd.f32 %v3232_v60, %v564_v12  ;;  %v590_v22 = vadd.f32 %v3232_v60, %v552_v45 }
 0x14e   : > { %v591_v50 = vadd.f32 %v3234_v61, %v553_v62  ;;  %v592_v2 = vadd.f32 %v3236_v30, %v554_v0  ;;  %v593_v5 = vadd.f32 %v3238_v4, %v555_v3  ;;  %v594_v35 = vadd.f32 %v3242_v9, %v556_v8 }
 0x14f   : > { %v595_v11 = vadd.f32 %v3244_v6, %v557_v18  ;;  %v603_v15 = vadd.f32 %v3234_v61, %v565_v13  ;;  %v604_v7 = vadd.f32 %v3236_v30, %v566_v38  ;;  %v605_v10 = vadd.f32 %v3238_v4, %v567_v28 }
 0x150   : > { %v614_v41 = vpack.c.bf16 %v591_v50, %v590_v22  ;;  %v615_v16 = vpack.c.bf16 %v593_v5, %v592_v2  ;;  %v606_v20 = vadd.f32 %v3242_v9, %v568_v42  ;;  %v607_v26 = vadd.f32 %v3244_v6, %v569_v32 }
 0x151   : > { %v616_v25 = vpack.c.bf16 %v595_v11, %v594_v35  ;;  %v620_v36 = vpack.c.bf16 %v603_v15, %v602_v48  ;;  %v508_v17 = vsub.f32 1.5, %v507_v24  ;;  %v621_v12 = vpack.c.bf16 %v605_v10, %v604_v7 }
 0x152   : > { %626 = vst [vmem:[#allocation2] sm:$0xff] %v614_v41  ;;  %v485_v55 = vmul.f32 %v3267_v14, %v3228_v53  ;;  %v622_v13 = vpack.c.bf16 %v607_v26, %v606_v20  ;;  %vm491_vm10 = vweird.f32 %v3267_v14 }
 0x153   : > { %627 = vst [vmem:[#allocation2 + $0x8] sm:$0xff] %v615_v16  ;;  %v509_v38 = vmul.f32 %v3230_v54, %v508_v17  ;;  %vm492_vm12 = vmor %vm490_vm11, %vm491_vm10 }
 0x154   : > { %628 = vst [vmem:[#allocation2 + $0x10] sm:$0xff] %v616_v25  ;;  %v486_v56 = vmul.f32 %v3267_v14, %v485_v55 }
 0x155   : > { %632 = vst [vmem:[#allocation2 + $0x30] sm:$0xff] %v620_v36  ;;  %v513_v24 = vsel %vm512_vm9, %v3230_v54, %v509_v38 }
 0x156   : > { %633 = vst [vmem:[#allocation2 + $0x38] sm:$0xff] %v621_v12  ;;  %v532_v57 = vmul.f32 %v513_v24, %v3135_v27  ;;  %v533_v58 = vmul.f32 %v513_v24, %v3138_v31  ;;  %v534_v59 = vmul.f32 %v513_v24, %v3146_v34  ;;  %v535_v63 = vmul.f32 %v513_v24, %v3149_v37 }
 0x157   : > { %634 = vst [vmem:[#allocation2 + $0x40] sm:$0xff] %v622_v13  ;;  %v536_v33 = vmul.f32 %v513_v24, %v3158_v40  ;;  %v537_v28 = vmul.f32 %v513_v24, %v3174_v29  ;;  %v487_v42 = vmul.f32 0.5, %v486_v56 }
 0x158   : > { %v570_v45 = vmul.f32 %v3213_v43, %v532_v57  ;;  %v571_v62 = vmul.f32 %v3215_v44, %v533_v58  ;;  %v572_v54 = vmul.f32 %v3220_v49, %v534_v59  ;;  %v573_v27 = vmul.f32 %v3222_v21, %v535_v63 }
 0x159   : > { %v574_v31 = vmul.f32 %v3224_v51, %v536_v33  ;;  %v575_v34 = vmul.f32 %v3226_v23, %v537_v28  ;;  %v488_v0 = vsub.f32 1.5, %v487_v42 }
 0x15a   : > { %v608_v37 = vadd.f32 %v3232_v60, %v570_v45  ;;  %v609_v40 = vadd.f32 %v3234_v61, %v571_v62  ;;  %v610_v29 = vadd.f32 %v3236_v30, %v572_v54  ;;  %v611_v3 = vadd.f32 %v3238_v4, %v573_v27 }
 0x15b   : > { %v612_v8 = vadd.f32 %v3242_v9, %v574_v31  ;;  %v613_v18 = vadd.f32 %v3244_v6, %v575_v34  ;;  %v489_v32 = vmul.f32 %v3267_v14, %v488_v0 }
 0x15c   : > { %v623_v48 = vpack.c.bf16 %v609_v40, %v608_v37  ;;  %v624_v22 = vpack.c.bf16 %v611_v3, %v610_v29 }
 0x15d   : > { %v625_v50 = vpack.c.bf16 %v613_v18, %v612_v8  ;;  %v493_v2 = vsel %vm492_vm12, %v3267_v14, %v489_v32 }
 0x15e   : > { %635 = vst [vmem:[#allocation2 + $0x48] sm:$0xff] %v623_v48  ;;  %v520_v5 = vmul.f32 %v493_v2, %v3163_v19  ;;  %v521_v35 = vmul.f32 %v493_v2, %v3168_v46  ;;  %v522_v11 = vmul.f32 %v493_v2, %v3171_v47  ;;  %v523_v15 = vmul.f32 %v493_v2, %v3181_v52 }
 0x15f   : > { %636 = vst [vmem:[#allocation2 + $0x50] sm:$0xff] %v624_v22  ;;  %v524_v7 = vmul.f32 %v493_v2, %v3188_v39  ;;  %v525_v53 = vmul.f32 %v493_v2, %v3195_v1 }
 0x160   : > { %637 = vst [vmem:[#allocation2 + $0x58] sm:$0xff] %v625_v50  ;;  %v558_v41 = vmul.f32 %v3213_v43, %v520_v5  ;;  %v559_v16 = vmul.f32 %v3215_v44, %v521_v35  ;;  %v560_v14 = vmul.f32 %v3220_v49, %v522_v11  ;;  %v561_v19 = vmul.f32 %v3222_v21, %v523_v15 }
 0x161   : > { %v562_v46 = vmul.f32 %v3224_v51, %v524_v7  ;;  %v563_v47 = vmul.f32 %v3226_v23, %v525_v53 }
 0x162   : > { %v596_v52 = vadd.f32 %v3232_v60, %v558_v41  ;;  %v597_v10 = vadd.f32 %v3234_v61, %v559_v16  ;;  %v598_v39 = vadd.f32 %v3236_v30, %v560_v14  ;;  %v599_v1 = vadd.f32 %v3238_v4, %v561_v19 }
 0x163   : > { %v600_v43 = vadd.f32 %v3242_v9, %v562_v46  ;;  %v601_v44 = vadd.f32 %v3244_v6, %v563_v47 }
 0x164   : > { %v617_v20 = vpack.c.bf16 %v597_v10, %v596_v52  ;;  %v618_v49 = vpack.c.bf16 %v599_v1, %v598_v39 }
 0x165   : > { %v619_v25 = vpack.c.bf16 %v601_v44, %v600_v43 }
 0x166   : > { %629 = vst [vmem:[#allocation2 + $0x18] sm:$0xff] %v617_v20 }
 0x167   : > { %630 = vst [vmem:[#allocation2 + $0x20] sm:$0xff] %v618_v49 }
 0x168   : > { %631 = vst [vmem:[#allocation2 + $0x28] sm:$0xff] %v619_v25 }
 0x169 PF: > { %v2168_v21 = vld [vmem:[%s2942_s18 + $0x70] sm:$0xf]  ;;  %v2535_v51 = vld [vmem:[%s2942_s18 + $0x74] sm:$0xf0]  ;;  %v2160_v17 = vld [vmem:[%s2942_s18 + $0x60] sm:$0xf] }
 0x16a   : > { %v2232_v23 = vld [vmem:[%s2942_s18 + $0xf0] sm:$0xf]  ;;  %v2169_v60 = vor.u32 %v2535_v51, %v2168_v21  ;;  %v2551_v61 = vld [vmem:[%s2942_s18 + $0xf4] sm:$0xf0]  ;;  %v2533_v55 = vld [vmem:[%s2942_s18 + $0x64] sm:$0xf0] }
 0x16b   : > { %v2296_v30 = vld [vmem:[%s2942_s18 + $0x170] sm:$0xf]  ;;  %v2567_v4 = vld [vmem:[%s2942_s18 + $0x174] sm:$0xf0]  ;;  %v2233_v9 = vor.u32 %v2551_v61, %v2232_v23  ;;  %v2224_v13 = vld [vmem:[%s2942_s18 + $0xe0] sm:$0xf]  ;;  %v2161_v56 = vor.u32 %v2533_v55, %v2160_v17 }
 0x16c   : > { %v2297_v6 = vor.u32 %v2567_v4, %v2296_v30  ;;  %v2360_v26 = vld [vmem:[%s2942_s18 + $0x1f0] sm:$0xf]  ;;  %v2583_v36 = vld [vmem:[%s2942_s18 + $0x1f4] sm:$0xf0]  ;;  %1292 = vmatpush.bf16.msra.mxu0 %v2169_v60  ;;  %v2549_v38 = vld [vmem:[%s2942_s18 + $0xe4] sm:$0xf0] }
 0x16d   : > { %v2361_v12 = vor.u32 %v2583_v36, %v2360_v26  ;;  %1311 = vmatpush.bf16.msra.mxu1 %v2233_v9  ;;  %v2225_v24 = vor.u32 %v2549_v38, %v2224_v13  ;;  %v2288_v57 = vld [vmem:[%s2942_s18 + $0x160] sm:$0xf]  ;;  %v2565_v58 = vld [vmem:[%s2942_s18 + $0x164] sm:$0xf0]  ;;  %v2152_v28 = vld [vmem:[%s2942_s18 + $0x50] sm:$0xf] }
 0x16e   : > { %1330 = vmatpush.bf16.msra.mxu2 %v2297_v6  ;;  %v2352_v59 = vld [vmem:[%s2942_s18 + $0x1e0] sm:$0xf]  ;;  %v2289_v63 = vor.u32 %v2565_v58, %v2288_v57  ;;  %v2581_v33 = vld [vmem:[%s2942_s18 + $0x1e4] sm:$0xf0]  ;;  %v2531_v42 = vld [vmem:[%s2942_s18 + $0x54] sm:$0xf0] }
 0x16f   : > { %1349 = vmatpush.bf16.msra.mxu3 %v2361_v12  ;;  %v2353_v45 = vor.u32 %v2581_v33, %v2352_v59  ;;  %v2216_v62 = vld [vmem:[%s2942_s18 + $0xd0] sm:$0xf]  ;;  %v2547_v54 = vld [vmem:[%s2942_s18 + $0xd4] sm:$0xf0]  ;;  %v2153_v31 = vor.u32 %v2531_v42, %v2152_v28  ;;  %v2144_v3 = vld [vmem:[%s2942_s18 + $0x40] sm:$0xf] }
 0x170   : > { %v2280_v27 = vld [vmem:[%s2942_s18 + $0x150] sm:$0xf]  ;;  %1293 = vmatpush.bf16.msra.mxu0 %v2161_v56  ;;  %v2563_v34 = vld [vmem:[%s2942_s18 + $0x154] sm:$0xf0]  ;;  %v2217_v40 = vor.u32 %v2547_v54, %v2216_v62  ;;  %v2529_v8 = vld [vmem:[%s2942_s18 + $0x44] sm:$0xf0] }
 0x171   : > { %v2344_v0 = vld [vmem:[%s2942_s18 + $0x1d0] sm:$0xf]  ;;  %v2579_v37 = vld [vmem:[%s2942_s18 + $0x1d4] sm:$0xf0]  ;;  %1312 = vmatpush.bf16.msra.mxu1 %v2225_v24  ;;  %v2281_v29 = vor.u32 %v2563_v34, %v2280_v27  ;;  %v2208_v18 = vld [vmem:[%s2942_s18 + $0xc0] sm:$0xf]  ;;  %v2145_v35 = vor.u32 %v2529_v8, %v2144_v3 }
 0x172   : > { %1331 = vmatpush.bf16.msra.mxu2 %v2289_v63  ;;  %v2345_v32 = vor.u32 %v2579_v37, %v2344_v0  ;;  %v2545_v48 = vld [vmem:[%s2942_s18 + $0xc4] sm:$0xf0]  ;;  %v2272_v22 = vld [vmem:[%s2942_s18 + $0x140] sm:$0xf]  ;;  %v2136_v7 = vld [vmem:[%s2942_s18 + $0x30] sm:$0xf] }
 0x173   : > { %1350 = vmatpush.bf16.msra.mxu3 %v2353_v45  ;;  %v2561_v50 = vld [vmem:[%s2942_s18 + $0x144] sm:$0xf0]  ;;  %v2336_v2 = vld [vmem:[%s2942_s18 + $0x1c0] sm:$0xf]  ;;  %v2209_v11 = vor.u32 %v2545_v48, %v2208_v18  ;;  %v2527_v53 = vld [vmem:[%s2942_s18 + $0x34] sm:$0xf0] }
 0x174   : > { %v2577_v5 = vld [vmem:[%s2942_s18 + $0x1c4] sm:$0xf0]  ;;  %1294 = vmatpush.bf16.msra.mxu0 %v2153_v31  ;;  %v2273_v15 = vor.u32 %v2561_v50, %v2272_v22  ;;  %v2200_v41 = vld [vmem:[%s2942_s18 + $0xb0] sm:$0xf]  ;;  %v2543_v14 = vld [vmem:[%s2942_s18 + $0xb4] sm:$0xf0]  ;;  %v2137_v10 = vor.u32 %v2527_v53, %v2136_v7 }
 0x175   : > { %1313 = vmatpush.bf16.msra.mxu1 %v2217_v40  ;;  %v2337_v16 = vor.u32 %v2577_v5, %v2336_v2  ;;  %v2264_v19 = vld [vmem:[%s2942_s18 + $0x130] sm:$0xf]  ;;  %v2559_v46 = vld [vmem:[%s2942_s18 + $0x134] sm:$0xf0]  ;;  %v2201_v39 = vor.u32 %v2543_v14, %v2200_v41  ;;  %v2128_v43 = vld [vmem:[%s2942_s18 + $0x20] sm:$0xf] }
 0x176   : > { %1332 = vmatpush.bf16.msra.mxu2 %v2281_v29  ;;  %v2328_v47 = vld [vmem:[%s2942_s18 + $0x1b0] sm:$0xf]  ;;  %v2575_v52 = vld [vmem:[%s2942_s18 + $0x1b4] sm:$0xf0]  ;;  %v2265_v1 = vor.u32 %v2559_v46, %v2264_v19  ;;  %v2525_v44 = vld [vmem:[%s2942_s18 + $0x24] sm:$0xf0] }
 0x177   : > { %1351 = vmatpush.bf16.msra.mxu3 %v2345_v32  ;;  %v2192_v20 = vld [vmem:[%s2942_s18 + $0xa0] sm:$0xf]  ;;  %v2329_v49 = vor.u32 %v2575_v52, %v2328_v47  ;;  %v2541_v25 = vld [vmem:[%s2942_s18 + $0xa4] sm:$0xf0]  ;;  %v2129_v61 = vor.u32 %v2525_v44, %v2128_v43  ;;  %v2120_v9 = vld [vmem:[%s2942_s18 + $0x10] sm:$0xf] }
 0x178   : > { %1295 = vmatpush.bf16.msra.mxu0 %v2145_v35  ;;  %v2256_v21 = vld [vmem:[%s2942_s18 + $0x120] sm:$0xf]  ;;  %v2557_v51 = vld [vmem:[%s2942_s18 + $0x124] sm:$0xf0]  ;;  %v2193_v30 = vor.u32 %v2541_v25, %v2192_v20  ;;  %v2523_v6 = vld [vmem:[%s2942_s18 + $0x14] sm:$0xf0] }
 0x179   : > { %1314 = vmatpush.bf16.msra.mxu1 %v2209_v11  ;;  %v2320_v23 = vld [vmem:[%s2942_s18 + $0x1a0] sm:$0xf]  ;;  %v2573_v60 = vld [vmem:[%s2942_s18 + $0x1a4] sm:$0xf0]  ;;  %v2257_v4 = vor.u32 %v2557_v51, %v2256_v21  ;;  %v2184_v26 = vld [vmem:[%s2942_s18 + $0x90] sm:$0xf]  ;;  %v2121_v24 = vor.u32 %v2523_v6, %v2120_v9 }
 0x17a   : > { %1333 = vmatpush.bf16.msra.mxu2 %v2273_v15  ;;  %v2321_v36 = vor.u32 %v2573_v60, %v2320_v23  ;;  %v2539_v17 = vld [vmem:[%s2942_s18 + $0x94] sm:$0xf0]  ;;  %v2248_v12 = vld [vmem:[%s2942_s18 + $0x110] sm:$0xf]  ;;  %v2112_v56 = vld [vmem:[%s2942_s18] sm:$0xf] }
 0x17b   : > { %1352 = vmatpush.bf16.msra.mxu3 %v2337_v16  ;;  %v2555_v55 = vld [vmem:[%s2942_s18 + $0x114] sm:$0xf0]  ;;  %v2312_v13 = vld [vmem:[%s2942_s18 + $0x190] sm:$0xf]  ;;  %v2521_v57 = vld [vmem:[%s2942_s18 + $0x4] sm:$0xf0]  ;;  %v2185_v63 = vor.u32 %v2539_v17, %v2184_v26 }
 0x17c   : > { %1296 = vmatpush.bf16.msra.mxu0 %v2137_v10  ;;  %v2571_v38 = vld [vmem:[%s2942_s18 + $0x194] sm:$0xf0]  ;;  %v2176_v58 = vld [vmem:[%s2942_s18 + $0x80] sm:$0xf]  ;;  %v2537_v59 = vld [vmem:[%s2942_s18 + $0x84] sm:$0xf0]  ;;  %v2249_v33 = vor.u32 %v2555_v55, %v2248_v12  ;;  %v2113_v29 = vor.u32 %v2521_v57, %v2112_v56 }
 0x17d   : > { %1315 = vmatpush.bf16.msra.mxu1 %v2201_v39  ;;  %v2240_v28 = vld [vmem:[%s2942_s18 + $0x100] sm:$0xf]  ;;  %v2553_v42 = vld [vmem:[%s2942_s18 + $0x104] sm:$0xf0]  ;;  %v2313_v62 = vor.u32 %v2571_v38, %v2312_v13  ;;  %v2511_v31 = vld [vmem:[#allocation2 + $0x14] sm:$0xf0]  ;;  %v2177_v32 = vor.u32 %v2537_v59, %v2176_v58 }
 0x17e   : > { %1334 = vmatpush.bf16.msra.mxu2 %v2265_v1  ;;  %v2304_v45 = vld [vmem:[%s2942_s18 + $0x180] sm:$0xf]  ;;  %v2569_v54 = vld [vmem:[%s2942_s18 + $0x184] sm:$0xf0]  ;;  %v2508_v34 = vld [vmem:[#allocation2 + $0x4] sm:$0xf]  ;;  %v2241_v48 = vor.u32 %v2553_v42, %v2240_v28 }
 0x17f   : > { %1353 = vmatpush.bf16.msra.mxu3 %v2329_v49  ;;  %v2064_v27 = vld [vmem:[#allocation2] sm:$0xf]  ;;  %v2066_v0 = vld [vmem:[#allocation2 + $0x18] sm:$0xf0]  ;;  %v2534_v37 = vld [vmem:[%s2942_s18 + $0x74] sm:$0xf]  ;;  %v2305_v5 = vor.u32 %v2569_v54, %v2304_v45 }
 0x180   : > { %1297 = vmatpush.bf16.msra.mxu0 %v2129_v61  ;;  %v2170_v40 = vld [vmem:[%s2942_s18 + $0x78] sm:$0xf0]  ;;  %v2072_v3 = vld [vmem:[#allocation2 + $0x8] sm:$0xf]  ;;  %v2488_v8 = vld [vmem:[%s2942_s18 + $0x2f0] sm:$0xf]  ;;  %v3407_v53 = vor.u32 %v2511_v31, %v2064_v27  ;;  %v3412_v46 = vor.u32 %v2508_v34, %v2066_v0 }
 0x181   : > { %1316 = vmatpush.bf16.msra.mxu1 %v2193_v30  ;;  %v2615_v18 = vld [vmem:[%s2942_s18 + $0x2f4] sm:$0xf0]  ;;  %v2512_v22 = vld [vmem:[#allocation2 + $0x1c] sm:$0xf0]  ;;  %v2509_v50 = vld [vmem:[#allocation2 + $0xc] sm:$0xf]  ;;  %v2173_v35 = vor.u32 %v2534_v37, %v2170_v40 }
 0x182   : > { %1335 = vmatpush.bf16.msra.mxu2 %v2257_v4  ;;  %v2074_v2 = vld [vmem:[#allocation2 + $0x20] sm:$0xf0]  ;;  %v2424_v11 = vld [vmem:[%s2942_s18 + $0x270] sm:$0xf]  ;;  %v2599_v15 = vld [vmem:[%s2942_s18 + $0x274] sm:$0xf0]  ;;  %v2489_v41 = vor.u32 %v2615_v18, %v2488_v8  ;;  %v3414_v47 = vor.u32 %v2512_v22, %v2072_v3 }
 0x183   : > { %1354 = vmatpush.bf16.msra.mxu3 %v2321_v36  ;;  %v2550_v7 = vld [vmem:[%s2942_s18 + $0xf4] sm:$0xf]  ;;  %v2234_v16 = vld [vmem:[%s2942_s18 + $0xf8] sm:$0xf0]  ;;  %v2532_v14 = vld [vmem:[%s2942_s18 + $0x64] sm:$0xf]  ;;  %v3418_v39 = vor.u32 %v2509_v50, %v2074_v2  ;;  %v2425_v1 = vor.u32 %v2599_v15, %v2424_v11 }
 0x184   : > { %1298 = vmatpush.bf16.msra.mxu0 %v2121_v24  ;;  %v2162_v19 = vld [vmem:[%s2942_s18 + $0x68] sm:$0xf0]  ;;  %v2480_v52 = vld [vmem:[%s2942_s18 + $0x2e0] sm:$0xf]  ;;  %v2613_v10 = vld [vmem:[%s2942_s18 + $0x2e4] sm:$0xf0]  ;;  %v2237_v43 = vor.u32 %v2550_v7, %v2234_v16 }
 0x185   : > { %1317 = vmatpush.bf16.msra.mxu1 %v2185_v63  ;;  %v2165_v44 = vor.u32 %v2532_v14, %v2162_v19  ;;  %v2416_v20 = vld [vmem:[%s2942_s18 + $0x260] sm:$0xf]  ;;  %v2597_v49 = vld [vmem:[%s2942_s18 + $0x264] sm:$0xf0]  ;;  %v2548_v25 = vld [vmem:[%s2942_s18 + $0xe4] sm:$0xf]  ;;  %v2481_v21 = vor.u32 %v2613_v10, %v2480_v52 }
 0x186   : > { %1336 = vmatpush.bf16.msra.mxu2 %v2249_v33  ;;  %v2226_v51 = vld [vmem:[%s2942_s18 + $0xe8] sm:$0xf0]  ;;  %v2530_v23 = vld [vmem:[%s2942_s18 + $0x54] sm:$0xf]  ;;  %v2154_v60 = vld [vmem:[%s2942_s18 + $0x58] sm:$0xf0]  ;;  %v2417_v4 = vor.u32 %v2597_v49, %v2416_v20 }
 0x187   : > { %1355 = vmatpush.bf16.msra.mxu3 %v2313_v62  ;;  %v2472_v61 = vld [vmem:[%s2942_s18 + $0x2d0] sm:$0xf]  ;;  %v2611_v30 = vld [vmem:[%s2942_s18 + $0x2d4] sm:$0xf0]  ;;  %v2229_v9 = vor.u32 %v2548_v25, %v2226_v51  ;;  %v2157_v6 = vor.u32 %v2530_v23, %v2154_v60  ;;  %v2546_v17 = vld [vmem:[%s2942_s18 + $0xd4] sm:$0xf] }
 0x188   : > { %1299 = vmatpush.bf16.msra.mxu0 %v2113_v29  ;;  %v2408_v26 = vld [vmem:[%s2942_s18 + $0x250] sm:$0xf]  ;;  %v2595_v36 = vld [vmem:[%s2942_s18 + $0x254] sm:$0xf0]  ;;  %v2473_v12 = vor.u32 %v2611_v30, %v2472_v61  ;;  %v2218_v55 = vld [vmem:[%s2942_s18 + $0xd8] sm:$0xf0] }
 0x189   : > { %1318 = vmatpush.bf16.msra.mxu1 %v2177_v32  ;;  %v2528_v13 = vld [vmem:[%s2942_s18 + $0x44] sm:$0xf]  ;;  %v2146_v38 = vld [vmem:[%s2942_s18 + $0x48] sm:$0xf0]  ;;  %v2464_v56 = vld [vmem:[%s2942_s18 + $0x2c0] sm:$0xf]  ;;  %v2409_v57 = vor.u32 %v2595_v36, %v2408_v26  ;;  %v2221_v33 = vor.u32 %v2546_v17, %v2218_v55 }
 0x18a   : > { %1337 = vmatpush.bf16.msra.mxu2 %v2241_v48  ;;  %v2609_v24 = vld [vmem:[%s2942_s18 + $0x2c4] sm:$0xf0]  ;;  %v2400_v58 = vld [vmem:[%s2942_s18 + $0x240] sm:$0xf]  ;;  %v2544_v63 = vld [vmem:[%s2942_s18 + $0xc4] sm:$0xf]  ;;  %v2149_v28 = vor.u32 %v2528_v13, %v2146_v38 }
 0x18b   : > { %1356 = vmatpush.bf16.msra.mxu3 %v2305_v5  ;;  %1300 = vmatmul.bf16.vlgmr.msra.gmra.mxu0 %v3407_v53  ;;  %v2593_v59 = vld [vmem:[%s2942_s18 + $0x244] sm:$0xf0]  ;;  %v2210_v42 = vld [vmem:[%s2942_s18 + $0xc8] sm:$0xf0]  ;;  %v2088_v45 = vld [vmem:[#allocation2 + $0x30] sm:$0xf]  ;;  %v2465_v54 = vor.u32 %v2609_v24, %v2464_v56 }
 0x18c   : > { %1319 = vmatmul.bf16.vlgmr.msra.gmra.mxu1 %v3412_v46  ;;  %1368 = vmatpush.bf16.msrb.mxu0 %v2425_v1  ;;  %v2517_v62 = vld [vmem:[#allocation2 + $0x44] sm:$0xf0]  ;;  %v2514_v27 = vld [vmem:[#allocation2 + $0x34] sm:$0xf]  ;;  %v2090_v31 = vld [vmem:[#allocation2 + $0x48] sm:$0xf0]  ;;  %v2401_v3 = vor.u32 %v2593_v59, %v2400_v58  ;;  %v2213_v48 = vor.u32 %v2544_v63, %v2210_v42 }
 0x18d   : > { %1387 = vmatpush.bf16.msrb.mxu1 %v2489_v41  ;;  %1338 = vmatmul.bf16.vlgmr.msra.gmra.mxu2 %v3414_v47  ;;  %v2526_v34 = vld [vmem:[%s2942_s18 + $0x34] sm:$0xf]  ;;  %v2138_v0 = vld [vmem:[%s2942_s18 + $0x38] sm:$0xf0]  ;;  %v2096_v37 = vld [vmem:[#allocation2 + $0x38] sm:$0xf]  ;;  %v3456_v16 = vor.u32 %v2514_v27, %v2090_v31 }
 0x18e   : > { %1406 = vmatpush.bf16.msrb.mxu2 %v2173_v35  ;;  %1357 = vmatmul.bf16.vlgmr.msra.gmra.mxu3 %v3418_v39  ;;  %v2456_v40 = vld [vmem:[%s2942_s18 + $0x2b0] sm:$0xf]  ;;  %v2607_v29 = vld [vmem:[%s2942_s18 + $0x2b4] sm:$0xf0]  ;;  %v2515_v18 = vld [vmem:[#allocation2 + $0x3c] sm:$0xf]  ;;  %v2141_v22 = vor.u32 %v2526_v34, %v2138_v0  ;;  %v3451_v35 = vor.u32 %v2517_v62, %v2088_v45 }
 0x18f   : > { %1425 = vmatpush.bf16.msrb.mxu3 %v2237_v43  ;;  %v2518_v8 = vld [vmem:[#allocation2 + $0x4c] sm:$0xf0]  ;;  %v2098_v32 = vld [vmem:[#allocation2 + $0x50] sm:$0xf0]  ;;  %v2591_v2 = vld [vmem:[%s2942_s18 + $0x234] sm:$0xf0]  ;;  %v2457_v11 = vor.u32 %v2607_v29, %v2456_v40 }
 0x190   : > { %1369 = vmatpush.bf16.msrb.mxu0 %v2417_v4  ;;  %v2392_v50 = vld [vmem:[%s2942_s18 + $0x230] sm:$0xf]  ;;  %v2542_v5 = vld [vmem:[%s2942_s18 + $0xb4] sm:$0xf]  ;;  %v2202_v15 = vld [vmem:[%s2942_s18 + $0xb8] sm:$0xf0]  ;;  %v3458_v14 = vor.u32 %v2518_v8, %v2096_v37  ;;  %v3462_v10 = vor.u32 %v2515_v18, %v2098_v32 }
 0x191   : > { %1388 = vmatpush.bf16.msrb.mxu1 %v2481_v21  ;;  %v2524_v7 = vld [vmem:[%s2942_s18 + $0x24] sm:$0xf]  ;;  %v2130_v41 = vld [vmem:[%s2942_s18 + $0x28] sm:$0xf0]  ;;  %v2448_v19 = vld [vmem:[%s2942_s18 + $0x2a0] sm:$0xf]  ;;  %v2393_v1 = vor.u32 %v2591_v2, %v2392_v50  ;;  %v2205_v43 = vor.u32 %v2542_v5, %v2202_v15 }
 0x192   : > { %1407 = vmatpush.bf16.msrb.mxu2 %v2165_v44  ;;  %v2605_v52 = vld [vmem:[%s2942_s18 + $0x2a4] sm:$0xf0]  ;;  %v2133_v44 = vor.u32 %v2524_v7, %v2130_v41  ;;  %v2384_v20 = vld [vmem:[%s2942_s18 + $0x220] sm:$0xf]  ;;  %v2540_v25 = vld [vmem:[%s2942_s18 + $0xa4] sm:$0xf] }
 0x193   : > { %1426 = vmatpush.bf16.msrb.mxu3 %v2229_v9  ;;  %v2589_v49 = vld [vmem:[%s2942_s18 + $0x224] sm:$0xf0]  ;;  %v2449_v21 = vor.u32 %v2605_v52, %v2448_v19  ;;  %v2194_v51 = vld [vmem:[%s2942_s18 + $0xa8] sm:$0xf0]  ;;  %v2522_v23 = vld [vmem:[%s2942_s18 + $0x14] sm:$0xf] }
 0x194   : > { %1370 = vmatpush.bf16.msrb.mxu0 %v2409_v57  ;;  %v2122_v60 = vld [vmem:[%s2942_s18 + $0x18] sm:$0xf0]  ;;  %v2440_v61 = vld [vmem:[%s2942_s18 + $0x290] sm:$0xf]  ;;  %v2603_v30 = vld [vmem:[%s2942_s18 + $0x294] sm:$0xf0]  ;;  %v2385_v4 = vor.u32 %v2589_v49, %v2384_v20 }
 0x195   : > { %1389 = vmatpush.bf16.msrb.mxu1 %v2473_v12  ;;  %v2376_v9 = vld [vmem:[%s2942_s18 + $0x210] sm:$0xf]  ;;  %v2125_v26 = vor.u32 %v2522_v23, %v2122_v60  ;;  %v2587_v36 = vld [vmem:[%s2942_s18 + $0x214] sm:$0xf0]  ;;  %v2538_v17 = vld [vmem:[%s2942_s18 + $0x94] sm:$0xf]  ;;  %v2441_v55 = vor.u32 %v2603_v30, %v2440_v61 }
 0x196   : > { %1408 = vmatpush.bf16.msrb.mxu2 %v2157_v6  ;;  %v2197_v6 = vor.u32 %v2540_v25, %v2194_v51  ;;  %v2186_v12 = vld [vmem:[%s2942_s18 + $0x98] sm:$0xf0]  ;;  %v2520_v13 = vld [vmem:[%s2942_s18 + $0x4] sm:$0xf]  ;;  %v2114_v38 = vld [vmem:[%s2942_s18 + $0x8] sm:$0xf0]  ;;  %v2377_v59 = vor.u32 %v2587_v36, %v2376_v9 }
 0x197   : > { %1427 = vmatpush.bf16.msrb.mxu3 %v2221_v33  ;;  %v2432_v56 = vld [vmem:[%s2942_s18 + $0x280] sm:$0xf]  ;;  %v2601_v24 = vld [vmem:[%s2942_s18 + $0x284] sm:$0xf0]  ;;  %v2598_v57 = vld [vmem:[%s2942_s18 + $0x274] sm:$0xf]  ;;  %v2189_v42 = vor.u32 %v2538_v17, %v2186_v12  ;;  %v2117_v45 = vor.u32 %v2520_v13, %v2114_v38 }
 0x198   : > { %1371 = vmatpush.bf16.msrb.mxu0 %v2401_v3  ;;  %v2426_v58 = vld [vmem:[%s2942_s18 + $0x278] sm:$0xf0]  ;;  %v2368_v63 = vld [vmem:[%s2942_s18 + $0x200] sm:$0xf]  ;;  %v2582_v33 = vld [vmem:[%s2942_s18 + $0x1f4] sm:$0xf]  ;;  %v2433_v31 = vor.u32 %v2601_v24, %v2432_v56 }
 0x199   : > { %1390 = vmatpush.bf16.msrb.mxu1 %v2465_v54  ;;  %v2585_v62 = vld [vmem:[%s2942_s18 + $0x204] sm:$0xf0]  ;;  %v2536_v54 = vld [vmem:[%s2942_s18 + $0x84] sm:$0xf]  ;;  %v2178_v27 = vld [vmem:[%s2942_s18 + $0x88] sm:$0xf0]  ;;  %v2429_v0 = vor.u32 %v2598_v57, %v2426_v58 }
 0x19a   : > { %1409 = vmatpush.bf16.msrb.mxu2 %v2149_v28  ;;  %v2362_v28 = vld [vmem:[%s2942_s18 + $0x1f8] sm:$0xf0]  ;;  %v2080_v34 = vld [vmem:[#allocation2 + $0x10] sm:$0xf]  ;;  %v2566_v37 = vld [vmem:[%s2942_s18 + $0x174] sm:$0xf]  ;;  %v2181_v5 = vor.u32 %v2536_v54, %v2178_v27 }
 0x19b   : > { %1428 = vmatpush.bf16.msrb.mxu3 %v2213_v48  ;;  %1305 = vmatmul.bf16.gmra.mxu0 %v3451_v35  ;;  %v2298_v40 = vld [vmem:[%s2942_s18 + $0x178] sm:$0xf0]  ;;  %v2614_v29 = vld [vmem:[%s2942_s18 + $0x2f4] sm:$0xf]  ;;  %v2365_v3 = vor.u32 %v2582_v33, %v2362_v28  ;;  %v2596_v18 = vld [vmem:[%s2942_s18 + $0x264] sm:$0xf]  ;;  %v2369_v48 = vor.u32 %v2585_v62, %v2368_v63 }
 0x19c   : > { %1324 = vmatmul.bf16.gmra.mxu1 %v3456_v16  ;;  %1372 = vmatpush.bf16.msrb.mxu0 %v2393_v1  ;;  %v2490_v8 = vld [vmem:[%s2942_s18 + $0x2f8] sm:$0xf0]  ;;  %v2418_v32 = vld [vmem:[%s2942_s18 + $0x268] sm:$0xf0]  ;;  %v2510_v50 = vld [vmem:[#allocation2 + $0x14] sm:$0xf] }
 0x19d   : > { %1391 = vmatpush.bf16.msrb.mxu1 %v2457_v11  ;;  %1343 = vmatmul.bf16.gmra.mxu2 %v3458_v14  ;;  %v2082_v2 = vld [vmem:[#allocation2 + $0x28] sm:$0xf0]  ;;  %v2301_v11 = vor.u32 %v2566_v37, %v2298_v40  ;;  %v2564_v15 = vld [vmem:[%s2942_s18 + $0x164] sm:$0xf]  ;;  %v2493_v41 = vor.u32 %v2614_v29, %v2490_v8  ;;  %v2421_v19 = vor.u32 %v2596_v18, %v2418_v32  ;;  %v2594_v25 = vld [vmem:[%s2942_s18 + $0x254] sm:$0xf] }
 0x19e   : > { %1410 = vmatpush.bf16.msrb.mxu2 %v2141_v22  ;;  %1362 = vmatmul.bf16.gmra.mxu3 %v3462_v10  ;;  %v2513_v22 = vld [vmem:[#allocation2 + $0x24] sm:$0xf0]  ;;  %v2290_v7 = vld [vmem:[%s2942_s18 + $0x168] sm:$0xf0]  ;;  %v2580_v52 = vld [vmem:[%s2942_s18 + $0x1e4] sm:$0xf]  ;;  %v3505_v20 = vor.u32 %v2510_v50, %v2082_v2 }
 0x19f   : > { %1429 = vmatpush.bf16.msrb.mxu3 %v2205_v43  ;;  %v2354_v1 = vld [vmem:[%s2942_s18 + $0x1e8] sm:$0xf0]  ;;  %v2612_v43 = vld [vmem:[%s2942_s18 + $0x2e4] sm:$0xf]  ;;  %v2293_v51 = vor.u32 %v2564_v15, %v2290_v7  ;;  %v2562_v60 = vld [vmem:[%s2942_s18 + $0x154] sm:$0xf] }
 0x1a0   : > { %1373 = vmatpush.bf16.msrb.mxu0 %v2385_v4  ;;  %v2482_v49 = vld [vmem:[%s2942_s18 + $0x2e8] sm:$0xf0]  ;;  %v2357_v23 = vor.u32 %v2580_v52, %v2354_v1  ;;  %v2282_v61 = vld [vmem:[%s2942_s18 + $0x158] sm:$0xf0]  ;;  %v2578_v9 = vld [vmem:[%s2942_s18 + $0x1d4] sm:$0xf] }
 0x1a1   : > { %1392 = vmatpush.bf16.msrb.mxu1 %v2449_v21  ;;  %v2410_v21 = vld [vmem:[%s2942_s18 + $0x258] sm:$0xf0]  ;;  %v2485_v30 = vor.u32 %v2612_v43, %v2482_v49  ;;  %v2592_v17 = vld [vmem:[%s2942_s18 + $0x244] sm:$0xf]  ;;  %v2402_v12 = vld [vmem:[%s2942_s18 + $0x248] sm:$0xf0] }
 0x1a2   : > { %1411 = vmatpush.bf16.msrb.mxu2 %v2133_v44  ;;  %v3503_v44 = vor.u32 %v2513_v22, %v2080_v34  ;;  %v2413_v4 = vor.u32 %v2594_v25, %v2410_v21  ;;  %v2474_v36 = vld [vmem:[%s2942_s18 + $0x2d8] sm:$0xf0]  ;;  %v2560_v38 = vld [vmem:[%s2942_s18 + $0x144] sm:$0xf]  ;;  %v2274_v56 = vld [vmem:[%s2942_s18 + $0x148] sm:$0xf0]  ;;  %v2405_v57 = vor.u32 %v2592_v17, %v2402_v12 }
 0x1a3   : > { %1430 = vmatpush.bf16.msrb.mxu3 %v2197_v6  ;;  %v2346_v6 = vld [vmem:[%s2942_s18 + $0x1d8] sm:$0xf0]  ;;  %v2576_v58 = vld [vmem:[%s2942_s18 + $0x1c4] sm:$0xf]  ;;  %v2466_v63 = vld [vmem:[%s2942_s18 + $0x2c8] sm:$0xf0]  ;;  %v2277_v28 = vor.u32 %v2560_v38, %v2274_v56 }
 0x1a4   : > { %1374 = vmatpush.bf16.msrb.mxu0 %v2377_v59  ;;  %v2349_v13 = vor.u32 %v2578_v9, %v2346_v6  ;;  %v2338_v59 = vld [vmem:[%s2942_s18 + $0x1c8] sm:$0xf0]  ;;  %v2394_v33 = vld [vmem:[%s2942_s18 + $0x238] sm:$0xf0]  ;;  %v2104_v27 = vld [vmem:[#allocation2 + $0x40] sm:$0xf] }
 0x1a5   : > { %1393 = vmatpush.bf16.msrb.mxu1 %v2441_v55  ;;  %v2285_v55 = vor.u32 %v2562_v60, %v2282_v61  ;;  %v2266_v62 = vld [vmem:[%s2942_s18 + $0x138] sm:$0xf0]  ;;  %v2574_v34 = vld [vmem:[%s2942_s18 + $0x1b4] sm:$0xf]  ;;  %v2588_v29 = vld [vmem:[%s2942_s18 + $0x224] sm:$0xf] }
 0x1a6   : > { %1412 = vmatpush.bf16.msrb.mxu2 %v2125_v26  ;;  %v2610_v26 = vld [vmem:[%s2942_s18 + $0x2d4] sm:$0xf]  ;;  %v2458_v40 = vld [vmem:[%s2942_s18 + $0x2b8] sm:$0xf0]  ;;  %v2519_v8 = vld [vmem:[#allocation2 + $0x54] sm:$0xf0] }
 0x1a7   : > { %1431 = vmatpush.bf16.msrb.mxu3 %v2189_v42  ;;  %v2477_v24 = vor.u32 %v2610_v26, %v2474_v36  ;;  %v2341_v42 = vor.u32 %v2576_v58, %v2338_v59  ;;  %v2606_v37 = vld [vmem:[%s2942_s18 + $0x2b4] sm:$0xf]  ;;  %v2516_v18 = vld [vmem:[#allocation2 + $0x44] sm:$0xf]  ;;  %v2106_v32 = vld [vmem:[#allocation2 + $0x58] sm:$0xf0] }
 0x1a8   : > { %1375 = vmatpush.bf16.msrb.mxu0 %v2369_v48  ;;  %v2556_v50 = vld [vmem:[%s2942_s18 + $0x124] sm:$0xf]  ;;  %v2258_v2 = vld [vmem:[%s2942_s18 + $0x128] sm:$0xf0]  ;;  %v2109_v52 = vor.u32 %v2516_v18, %v2106_v32  ;;  %v2586_v43 = vld [vmem:[%s2942_s18 + $0x214] sm:$0xf] }
 0x1a9   : > { %1394 = vmatpush.bf16.msrb.mxu1 %v2433_v31  ;;  %v2572_v15 = vld [vmem:[%s2942_s18 + $0x1a4] sm:$0xf]  ;;  %v2322_v7 = vld [vmem:[%s2942_s18 + $0x1a8] sm:$0xf0]  ;;  %v2378_v49 = vld [vmem:[%s2942_s18 + $0x218] sm:$0xf0]  ;;  %v2261_v25 = vor.u32 %v2556_v50, %v2258_v2 }
 0x1aa   : > { %1413 = vmatpush.bf16.msrb.mxu2 %v2117_v45  ;;  %v2558_v45 = vld [vmem:[%s2942_s18 + $0x134] sm:$0xf]  ;;  %v2450_v1 = vld [vmem:[%s2942_s18 + $0x2a8] sm:$0xf0]  ;;  %v2325_v21 = vor.u32 %v2572_v15, %v2322_v7  ;;  %v2381_v61 = vor.u32 %v2586_v43, %v2378_v49  ;;  %v2442_v6 = vld [vmem:[%s2942_s18 + $0x298] sm:$0xf0] }
 0x1ab   : > { %1432 = vmatpush.bf16.msrb.mxu3 %v2181_v5  ;;  %1376 = vmatmul.bf16.vlgmr.msrb.gmra.mxu0 %v3503_v44  ;;  %v2269_v48 = vor.u32 %v2558_v45, %v2266_v62  ;;  %v2461_v5 = vor.u32 %v2606_v37, %v2458_v40  ;;  %v2602_v9 = vld [vmem:[%s2942_s18 + $0x294] sm:$0xf]  ;;  %v2584_v26 = vld [vmem:[%s2942_s18 + $0x204] sm:$0xf]  ;;  %v2370_v36 = vld [vmem:[%s2942_s18 + $0x208] sm:$0xf0] }
 0x1ac   : > { %1444 = vmatpush.bf16.msra.mxu0 %v2301_v11  ;;  %1395 = vmatmul.bf16.vlgmr.msrb.gmra.mxu1 %v3505_v20  ;;  %v2373_v38 = vor.u32 %v2584_v26, %v2370_v36  ;;  %v2242_v56 = vld [vmem:[%s2942_s18 + $0x108] sm:$0xf0]  ;;  %v2600_v58 = vld [vmem:[%s2942_s18 + $0x284] sm:$0xf]  ;;  %v3569_v62 = vld [vmem:[%s2948_s27] sm:$0x3] }
 0x1ad   : > { %1463 = vmatpush.bf16.msra.mxu1 %v2365_v3  ;;  %1414 = vmatmul.bf16.vlgmr.msrb.gmra.mxu2 %v3407_v53  ;;  %v2608_v53 = vld [vmem:[%s2942_s18 + $0x2c4] sm:$0xf]  ;;  %v2386_v3 = vld [vmem:[%s2942_s18 + $0x228] sm:$0xf0] }
 0x1ae   : > { %1482 = vmatpush.bf16.msra.mxu2 %v2429_v0  ;;  %1433 = vmatmul.bf16.vlgmr.msrb.gmra.mxu3 %v3412_v46  ;;  %v2590_v46 = vld [vmem:[%s2942_s18 + $0x234] sm:$0xf]  ;;  %v2469_v54 = vor.u32 %v2608_v53, %v2466_v63  ;;  %v2330_v0 = vld [vmem:[%s2942_s18 + $0x1b8] sm:$0xf0]  ;;  %v2389_v11 = vor.u32 %v2588_v29, %v2386_v3  ;;  %v2434_v59 = vld [vmem:[%s2942_s18 + $0x288] sm:$0xf0] }
 0x1af   : > { %1501 = vmatpush.bf16.msra.mxu3 %v2493_v41  ;;  %v2397_v31 = vor.u32 %v2590_v46, %v2394_v33  ;;  %v2333_v22 = vor.u32 %v2574_v34, %v2330_v0  ;;  %v2604_v41 = vld [vmem:[%s2942_s18 + $0x2a4] sm:$0xf] }
 0x1b0   : > { %1445 = vmatpush.bf16.msra.mxu0 %v2293_v51  ;;  %v2554_v51 = vld [vmem:[%s2942_s18 + $0x114] sm:$0xf]  ;;  %v2453_v60 = vor.u32 %v2604_v41, %v2450_v1 }
 0x1b1   : > { %1464 = vmatpush.bf16.msra.mxu1 %v2357_v23  ;;  %v2250_v23 = vld [vmem:[%s2942_s18 + $0x118] sm:$0xf0] }
 0x1b2   : > { %1483 = vmatpush.bf16.msra.mxu2 %v2421_v19  ;;  %v2105_v19 = vor.u32 %v2519_v8, %v2104_v27  ;;  %v2253_v17 = vor.u32 %v2554_v51, %v2250_v23 }
 0x1b3   : > { %1502 = vmatpush.bf16.msra.mxu3 %v2485_v30  ;;  %v2570_v30 = vld [vmem:[%s2942_s18 + $0x194] sm:$0xf] }
 0x1b4   : > { %1446 = vmatpush.bf16.msra.mxu0 %v2285_v55  ;;  %v2552_v55 = vld [vmem:[%s2942_s18 + $0x104] sm:$0xf] }
 0x1b5   : > { %1465 = vmatpush.bf16.msra.mxu1 %v2349_v13  ;;  %v2445_v13 = vor.u32 %v2602_v9, %v2442_v6  ;;  %v2245_v53 = vor.u32 %v2552_v55, %v2242_v56 }
 0x1b6   : > { %1484 = vmatpush.bf16.msra.mxu2 %v2413_v4  ;;  %v2314_v4 = vld [vmem:[%s2942_s18 + $0x198] sm:$0xf0] }
 0x1b7   : > { %1503 = vmatpush.bf16.msra.mxu3 %v2477_v24  ;;  %v2317_v12 = vor.u32 %v2570_v30, %v2314_v4  ;;  %v2568_v24 = vld [vmem:[%s2942_s18 + $0x184] sm:$0xf] }
 0x1b8   : > { %1447 = vmatpush.bf16.msra.mxu0 %v2277_v28 }
 0x1b9   : > { %1466 = vmatpush.bf16.msra.mxu1 %v2341_v42 }
 0x1ba   : > { %1485 = vmatpush.bf16.msra.mxu2 %v2405_v57  ;;  %v2306_v57 = vld [vmem:[%s2942_s18 + $0x188] sm:$0xf0]  ;;  %s2616_s18 = sshll.u32 (%p2909_p9), %s2815_s21, 3 }
 0x1bb   : > { %1504 = vmatpush.bf16.msra.mxu3 %v2469_v54  ;;  %1381 = vmatmul.bf16.gmra.mxu0 %v2105_v19  ;;  %s1892_s15 = scalar_lea.vmem (%p2909_p9), %s3947_s5, %s2616_s18 }
 0x1bc   : > { %1448 = vmatpush.bf16.msra.mxu0 %v2269_v48  ;;  %1400 = vmatmul.bf16.gmra.mxu1 %v2109_v52 }
 0x1bd   : > { %1467 = vmatpush.bf16.msra.mxu1 %v2333_v22  ;;  %1419 = vmatmul.bf16.gmra.mxu2 %v3451_v35  ;;  %v2309_v35 = vor.u32 %v2568_v24, %v2306_v57 }
 0x1be   : > { %1486 = vmatpush.bf16.msra.mxu2 %v2397_v31  ;;  %1438 = vmatmul.bf16.gmra.mxu3 %v3456_v16  ;;  %v2437_v16 = vor.u32 %v2600_v58, %v2434_v59 }
 0x1bf   : > { %1505 = vmatpush.bf16.msra.mxu3 %v2461_v5 }
 0x1c0   : > { %1449 = vmatpush.bf16.msra.mxu0 %v2261_v25 }
 0x1c1   : > { %1468 = vmatpush.bf16.msra.mxu1 %v2325_v21 }
 0x1c2   : > { %1487 = vmatpush.bf16.msra.mxu2 %v2389_v11 }
 0x1c3   : > { %1506 = vmatpush.bf16.msra.mxu3 %v2453_v60 }
 0x1c4   : > { %1450 = vmatpush.bf16.msra.mxu0 %v2253_v17 }
 0x1c5   : > { %1469 = vmatpush.bf16.msra.mxu1 %v2317_v12 }
 0x1c6   : > { %1488 = vmatpush.bf16.msra.mxu2 %v2381_v61 }
 0x1c7   : > { %1507 = vmatpush.bf16.msra.mxu3 %v2445_v13 }
 0x1c8   : > { %1451 = vmatpush.bf16.msra.mxu0 %v2245_v53 }
 0x1c9   : > { %1470 = vmatpush.bf16.msra.mxu1 %v2309_v35 }
 0x1ca   : > { %1489 = vmatpush.bf16.msra.mxu2 %v2373_v38 }
 0x1cb   : > { %1508 = vmatpush.bf16.msra.mxu3 %v2437_v16  ;;  %1452 = vmatmul.bf16.vlgmr.msra.gmra.mxu0 %v3414_v47  ;;  %v748_v47 = vperm.slane %v3569_v62, 0 }
 0x1cc   : > { %1471 = vmatmul.bf16.vlgmr.msra.gmra.mxu1 %v3418_v39 }
 0x1cd   : > { %1490 = vmatmul.bf16.vlgmr.msra.gmra.mxu2 %v3503_v44 }
 0x1ce   : > { %1509 = vmatmul.bf16.vlgmr.msra.gmra.mxu3 %v3505_v20 }
 0x1db   : > { %1457 = vmatmul.bf16.gmra.mxu0 %v3458_v14 }
 0x1dc   : > { %1476 = vmatmul.bf16.gmra.mxu1 %v3462_v10 }
 0x1dd   : > { %1495 = vmatmul.bf16.gmra.mxu2 %v2105_v19 }
 0x1de   : > { %1514 = vmatmul.bf16.gmra.mxu3 %v2109_v52 }
 0x208   : > { %v1301_v63 = vpop.f32.mrf.mxu0 }
 0x209   : > { %v1320_v46 = vpop.f32.mrf.mxu1  ;;  %v1302_v31 = vadd.f32 %v1301_v63, %v748_v47 }
 0x20b   : > { %v1321_v34 = vadd.f32 %v1320_v46, %v1302_v31 }
 0x210   : > { %v1339_v33 = vpop.f32.mrf.mxu2  ;;  %v1303_v42 = vpop.f32.mrf.mxu0 }
 0x211   : > { %v1358_v28 = vpop.f32.mrf.mxu3  ;;  %v1322_v45 = vpop.f32.mrf.mxu1  ;;  %v1340_v32 = vadd.f32 %v1339_v33, %v1321_v34  ;;  %v1304_v48 = vadd.f32 %v1303_v42, %v748_v47 }
 0x213   : > { %v1359_v50 = vadd.f32 %v1358_v28, %v1340_v32  ;;  %v1323_v7 = vadd.f32 %v1322_v45, %v1304_v48 }
 0x218   : > { %v1341_v39 = vpop.f32.mrf.mxu2  ;;  %v1306_v54 = vpop.f32.mrf.mxu0 }
 0x219   : > { %v1360_v44 = vpop.f32.mrf.mxu3  ;;  %v1307_v20 = vadd.f32 %v1306_v54, %v748_v47  ;;  %v1325_v27 = vpop.f32.mrf.mxu1  ;;  %v1342_v52 = vadd.f32 %v1341_v39, %v1323_v7 }
 0x21b   : > { %v1326_v14 = vadd.f32 %v1325_v27, %v1307_v20  ;;  %v1361_v49 = vadd.f32 %v1360_v44, %v1342_v52 }
 0x220   : > { %v1344_v10 = vpop.f32.mrf.mxu2  ;;  %v1308_v40 = vpop.f32.mrf.mxu0 }
 0x221   : > { %v1345_v0 = vadd.f32 %v1344_v10, %v1326_v14  ;;  %v1363_v37 = vpop.f32.mrf.mxu3  ;;  %v1309_v29 = vadd.f32 %v1308_v40, %v748_v47  ;;  %v1327_v3 = vpop.f32.mrf.mxu1  ;;  %v3613_v14 = vperm.slane %v3569_v62, 1 }
 0x223   : > { %v1364_v8 = vadd.f32 %v1363_v37, %v1345_v0  ;;  %v1328_v18 = vadd.f32 %v1327_v3, %v1309_v29 }
 0x228   : > { %v1346_v22 = vpop.f32.mrf.mxu2  ;;  %v1377_v11 = vpop.f32.mrf.mxu0 }
 0x229   : > { %v1347_v2 = vadd.f32 %v1346_v22, %v1328_v18  ;;  %v1365_v5 = vpop.f32.mrf.mxu3  ;;  %v1396_v15 = vpop.f32.mrf.mxu1  ;;  %v1378_v19 = vadd.f32 %v1377_v11, %v1359_v50 }
 0x22b   : > { %v1366_v41 = vadd.f32 %v1365_v5, %v1347_v2  ;;  %v3572_v1 = vadd.f32 %v1396_v15, %v1378_v19 }
 0x22d   : > { %v3575_v43 = vmul.f32 0.70710677, %v3572_v1 }
 0x22f   : > { %v1536_v25 = vmul.f32 %v3575_v43, %v3575_v43 }
 0x230   : > { %v1415_v21 = vpop.f32.mrf.mxu2  ;;  %v1379_v23 = vpop.f32.mrf.mxu0 }
 0x231   : > { %v1434_v51 = vpop.f32.mrf.mxu3  ;;  %v1398_v60 = vpop.f32.mrf.mxu1  ;;  %v3579_v61 = vmin.f32 %v1536_v25, 16.0  ;;  %v1380_v30 = vadd.f32 %v1379_v23, %v1361_v49  ;;  %v1416_v3 = vadd.f32 %v1415_v21, %v3613_v14 }
 0x233   : > { %v1549_v4 = vmul.f32 3.8918573e-05, %v3579_v61  ;;  %v3582_v9 = vadd.f32 %v1398_v60, %v1380_v30  ;;  %v1538_v55 = vmul.f32 2.1237322e-06, %v3579_v61  ;;  %v1435_v11 = vadd.f32 %v1434_v51, %v1416_v3 }
 0x235   : > { %v1550_v6 = vadd.f32 0.001143296, %v1549_v4  ;;  %v3585_v26 = vmul.f32 0.70710677, %v3582_v9  ;;  %v1539_v35 = vadd.f32 0.00028619796, %v1538_v55 }
 0x237   : > { %v1551_v36 = vmul.f32 %v1550_v6, %v3579_v61  ;;  %v1616_v13 = vmul.f32 %v3585_v26, %v3585_v26  ;;  %v1540_v39 = vmul.f32 %v1539_v35, %v3579_v61 }
 0x238   : > { %v1417_v17 = vpop.f32.mrf.mxu2  ;;  %v1382_v38 = vpop.f32.mrf.mxu0 }
 0x239   : > { %v3588_v12 = vpop.f32.mrf.mxu3  ;;  %v1552_v56 = vadd.f32 0.014752088, %v1551_v36  ;;  %v1383_v24 = vadd.f32 %v1382_v38, %v1364_v8  ;;  %v3593_v57 = vmin.f32 %v1616_v13, 16.0  ;;  %v1401_v58 = vpop.f32.mrf.mxu1  ;;  %v1541_v0 = vadd.f32 0.0036580483, %v1540_v39 }
 0x23a   : > { %v1418_v30 = vadd.f32 %v1417_v17, %v3613_v14 }
 0x23b   : > { %v1553_v59 = vmul.f32 %v1552_v56, %v3579_v61  ;;  %v3596_v53 = vadd.f32 %v1401_v58, %v1383_v24  ;;  %v1629_v16 = vmul.f32 3.8918573e-05, %v3593_v57  ;;  %v1618_v42 = vmul.f32 2.1237322e-06, %v3593_v57 }
 0x23c   : > { %v1542_v62 = vmul.f32 %v1541_v0, %v3579_v61 }
 0x23d   : > { %v1554_v63 = vadd.f32 0.112945676, %v1553_v59  ;;  %v1630_v46 = vadd.f32 0.001143296, %v1629_v16  ;;  %v3600_v33 = vmul.f32 0.70710677, %v3596_v53  ;;  %v1437_v59 = vadd.f32 %v3588_v12, %v1418_v30 }
 0x23e   : > { %v1619_v10 = vadd.f32 0.00028619796, %v1618_v42  ;;  %v1543_v19 = vadd.f32 0.05243302, %v1542_v62 }
 0x23f   : > { %v1555_v28 = vmul.f32 %v1554_v63, %v3579_v61  ;;  %v1631_v44 = vmul.f32 %v1630_v46, %v3593_v57  ;;  %v1696_v20 = vmul.f32 %v3600_v33, %v3600_v33 }
 0x240   : > { %v3604_v45 = vpop.f32.mrf.mxu2  ;;  %v1384_v54 = vpop.f32.mrf.mxu0  ;;  %v1620_v18 = vmul.f32 %v1619_v10, %v3593_v57  ;;  %v1544_v4 = vmul.f32 %v1543_v19, %v3579_v61 }
 0x241   : > { %v3606_v47 = vpop.f32.mrf.mxu3  ;;  %v1385_v27 = vadd.f32 %v1384_v54, %v1366_v41  ;;  %v1556_v31 = vadd.f32 0.4994258, %v1555_v28  ;;  %v1632_v34 = vadd.f32 0.014752088, %v1631_v44  ;;  %v1403_v37 = vpop.f32.mrf.mxu1  ;;  %v3615_v40 = vmin.f32 %v1696_v20, 16.0 }
 0x242   : > { %v1621_v7 = vadd.f32 0.0036580483, %v1620_v18  ;;  %v1545_v16 = vadd.f32 0.18741608, %v1544_v4 }
 0x243   : > { %v3617_v29 = vadd.f32 %v1403_v37, %v1385_v27  ;;  %v1557_v8 = vmul.f32 %v1556_v31, %v3579_v61  ;;  %v1633_v32 = vmul.f32 %v1632_v34, %v3593_v57  ;;  %v1709_v50 = vmul.f32 3.8918573e-05, %v3615_v40 }
 0x244   : > { %v1622_v23 = vmul.f32 %v1621_v7, %v3593_v57  ;;  %v1698_v13 = vmul.f32 2.1237322e-06, %v3615_v40  ;;  %v1546_v20 = vmul.f32 %v1545_v16, %v3579_v61 }
 0x245   : > { %v3628_v2 = vmul.f32 0.70710677, %v3617_v29  ;;  %v3632_v15 = vadd.f32 1.0, %v1557_v8  ;;  %v1634_v41 = vadd.f32 0.112945676, %v1633_v32  ;;  %v1421_v8 = vadd.f32 %v3604_v45, %v3613_v14 }
 0x246   : > { %v1710_v49 = vadd.f32 0.001143296, %v1709_v50  ;;  %v1623_v24 = vadd.f32 0.05243302, %v1622_v23  ;;  %v1699_v39 = vadd.f32 0.00028619796, %v1698_v13 }
 0x247   : > { %v1776_v25 = vmul.f32 %v3628_v2, %v3628_v2  ;;  %2693 = vrcp.f32 %v3632_v15  ;;  %v1635_v60 = vmul.f32 %v1634_v41, %v3593_v57  ;;  %v3668_v50 = vmul.f32 0.5, %v3572_v1 }
 0x248   : > { %v3623_v48 = vpop.f32.mrf.mxu2  ;;  %v1453_v22 = vpop.f32.mrf.mxu0  ;;  %v1711_v36 = vmul.f32 %v1710_v49, %v3615_v40  ;;  %v1624_v44 = vmul.f32 %v1623_v24, %v3593_v57  ;;  %v1700_v3 = vmul.f32 %v1699_v39, %v3615_v40  ;;  %v1568_v49 = vand.u32 2147483647, %v3632_v15 }
 0x249   : > { %v3630_v5 = vpop.f32.mrf.mxu3  ;;  %v1454_v52 = vadd.f32 %v1453_v22, %v1435_v11  ;;  %v1472_v21 = vpop.f32.mrf.mxu1  ;;  %v3642_v55 = vmin.f32 %v1776_v25, 16.0  ;;  %v1636_v58 = vadd.f32 0.4994258, %v1635_v60  ;;  %v1547_v11 = vadd.f32 1.1283791, %v1546_v20 }
 0x24a   : > { %v1712_v17 = vadd.f32 0.014752088, %v1711_v36  ;;  %v1625_v18 = vadd.f32 0.18741608, %v1624_v44  ;;  %v1440_v45 = vadd.f32 %v3606_v47, %v1421_v8  ;;  %v1701_v1 = vadd.f32 0.0036580483, %v1700_v3 }
 0x24b   : > { %v1473_v6 = vadd.f32 %v1472_v21, %v1454_v52  ;;  %v1789_v46 = vmul.f32 3.8918573e-05, %v3642_v55  ;;  %v1637_v54 = vmul.f32 %v1636_v58, %v3593_v57  ;;  %v1778_v60 = vmul.f32 2.1237322e-06, %v3642_v55 }
 0x24c   : > { %v1713_v10 = vmul.f32 %v1712_v17, %v3615_v40  ;;  %v1626_v23 = vmul.f32 %v1625_v18, %v3593_v57  ;;  %v3684_v47 = vmul.f32 %v1547_v11, %v3575_v43  ;;  %v1570_v36 = vand.u32 2147483648, %v3632_v15 }
 0x24d   : > { %v3646_v63 = vpop.eup %2693  ;;  %v1790_v34 = vadd.f32 0.001143296, %v1789_v46  ;;  %v3663_v32 = vadd.f32 1.0, %v1637_v54  ;;  %vm1564_vm13 = vweird.f32 %v3632_v15  ;;  %vm3694_vm14 = vcmp.eq.f32.partialorder %v1568_v49, 8.507059e+37 }
 0x24e   : > { %v1560_v12 = vmul.f32 %v3646_v63, %v3632_v15  ;;  %v1714_v7 = vadd.f32 0.112945676, %v1713_v10  ;;  %v1702_v43 = vmul.f32 %v1701_v1, %v3615_v40  ;;  %vm1565_vm15 = vweird.f32 %v3646_v63 }
 0x24f   : > { %v1791_v41 = vmul.f32 %v1790_v34, %v3642_v55  ;;  %2695 = vrcp.f32 %v3663_v32  ;;  %vm3711_vm0 = vmor %vm1564_vm13, %vm1565_vm15  ;;  %v1648_v49 = vand.u32 2147483647, %v3663_v32  ;;  %vm1644_vm1 = vweird.f32 %v3663_v32 }
 0x250   : > { %v1491_v51 = vpop.f32.mrf.mxu2  ;;  %v1455_v56 = vpop.f32.mrf.mxu0  ;;  %v1561_v22 = vsub.f32 1.0, %v1560_v12  ;;  %v1715_v13 = vmul.f32 %v1714_v7, %v3615_v40  ;;  %v1571_v12 = vor.u32 1.1754944e-38, %v1570_v36 }
 0x251   : > { %v1492_v38 = vadd.f32 %v1491_v51, %v1473_v6  ;;  %v1510_v35 = vpop.f32.mrf.mxu3  ;;  %v1456_v42 = vadd.f32 %v1455_v56, %v1437_v59  ;;  %v1474_v27 = vpop.f32.mrf.mxu1  ;;  %v1792_v57 = vadd.f32 0.014752088, %v1791_v41  ;;  %vm3761_vm2 = vcmp.eq.f32.partialorder %v1648_v49, 8.507059e+37 }
 0x252   : > { %v1562_v30 = vmul.f32 %v3646_v63, %v1561_v22  ;;  %v1716_v39 = vadd.f32 0.4994258, %v1715_v13 }
 0x253   : > { %v3649_v28 = vadd.f32 %v1510_v35, %v1492_v38  ;;  %v1475_v37 = vadd.f32 %v1474_v27, %v1456_v42  ;;  %v1423_v38 = vadd.f32 %v3623_v48, %v3613_v14  ;;  %v1779_v35 = vadd.f32 0.00028619796, %v1778_v60 }
 0x254   : > { %v1563_v46 = vadd.f32 %v3646_v63, %v1562_v30  ;;  %v1627_v14 = vadd.f32 1.1283791, %v1626_v23  ;;  %v1793_v44 = vmul.f32 %v1792_v57, %v3642_v55  ;;  %v1717_v7 = vmul.f32 %v1716_v39, %v3615_v40 }
 0x255   : > { %v3658_v0 = vmul.f32 0.70710677, %v3649_v28  ;;  %v3701_v42 = vpop.eup %2695  ;;  %v1442_v27 = vadd.f32 %v3630_v5, %v1423_v38  ;;  %v1780_v3 = vmul.f32 %v1779_v35, %v3642_v55  ;;  %v1650_v23 = vand.u32 2147483648, %v3663_v32 }
 0x256   : > { %v1567_v5 = vsel %vm3711_vm0, %v3646_v63, %v1563_v46  ;;  %v1640_v15 = vmul.f32 %v3701_v42, %v3663_v32  ;;  %v1794_v41 = vadd.f32 0.112945676, %v1793_v44  ;;  %v3738_v57 = vadd.f32 1.0, %v1717_v7 }
 0x257   : > { %v1576_v61 = vmul.f32 %v3658_v0, %v3658_v0  ;;  %v1781_v60 = vadd.f32 0.0036580483, %v1780_v3  ;;  %vm1645_vm3 = vweird.f32 %v3701_v42 }
 0x258   : > { %v1493_v31 = vpop.f32.mrf.mxu2  ;;  %v1458_v52 = vpop.f32.mrf.mxu0  ;;  %v1641_v13 = vsub.f32 1.0, %v1640_v15  ;;  %v1795_v38 = vmul.f32 %v1794_v41, %v3642_v55  ;;  %2697 = vrcp.f32 %v3738_v57  ;;  %vm3790_vm4 = vmor %vm1644_vm1, %vm1645_vm3  ;;  %vm1724_vm6 = vweird.f32 %v3738_v57 }
 0x259   : > { %v1494_v62 = vadd.f32 %v1493_v31, %v1475_v37  ;;  %v1512_v19 = vpop.f32.mrf.mxu3  ;;  %v3673_v25 = vmin.f32 %v1576_v61, 16.0  ;;  %v1459_v6 = vadd.f32 %v1458_v52, %v1440_v45  ;;  %v1477_v16 = vpop.f32.mrf.mxu1  ;;  %v1703_v37 = vadd.f32 0.05243302, %v1702_v43 }
 0x25b   : > { %v3675_v21 = vadd.f32 %v1512_v19, %v1494_v62  ;;  %v1578_v51 = vmul.f32 2.1237322e-06, %v3673_v25  ;;  %v1589_v4 = vmul.f32 3.8918573e-05, %v3673_v25  ;;  %v1478_v48 = vadd.f32 %v1477_v16, %v1459_v6 }
 0x25c   : > { %v3720_v62 = vmul.f32 %v1627_v14, %v3585_v26  ;;  %v1704_v1 = vmul.f32 %v1703_v37, %v3615_v40  ;;  %v1782_v14 = vmul.f32 %v1781_v60, %v3642_v55 }
 0x25d   : > { %v1579_v56 = vadd.f32 0.00028619796, %v1578_v51  ;;  %v1590_v24 = vadd.f32 0.001143296, %v1589_v4  ;;  %v3691_v58 = vmul.f32 0.70710677, %v3675_v21  ;;  %v1572_v51 = vsel %vm3694_vm14, %v1571_v12, %v1567_v5 }
 0x25e   : > { %v1705_v46 = vadd.f32 0.18741608, %v1704_v1  ;;  %v1573_v44 = vmul.f32 %v1572_v51, %v3684_v47 }
 0x25f   : > { %v1580_v54 = vmul.f32 %v1579_v56, %v3673_v25  ;;  %v1591_v20 = vmul.f32 %v1590_v24, %v3673_v25  ;;  %v1656_v31 = vmul.f32 %v3691_v58, %v3691_v58 }
 0x260   : > { %v1496_v17 = vpop.f32.mrf.mxu2  ;;  %v1460_v61 = vpop.f32.mrf.mxu0  ;;  %v1706_v47 = vmul.f32 %v1705_v46, %v3615_v40  ;;  %v3771_v40 = vmul.f32 0.5, %v3649_v28 }
 0x261   : > { %v1497_v10 = vadd.f32 %v1496_v17, %v1478_v48  ;;  %v1581_v8 = vadd.f32 0.0036580483, %v1580_v54  ;;  %v1592_v18 = vadd.f32 0.014752088, %v1591_v20  ;;  %v3724_v22 = vmin.f32 %v1656_v31, 16.0  ;;  %v1515_v11 = vpop.f32.mrf.mxu3  ;;  %v1479_v24 = vpop.f32.mrf.mxu1 }
 0x262   : > { %v1461_v45 = vadd.f32 %v1460_v61, %v1442_v27  ;;  %v1642_v27 = vmul.f32 %v3701_v42, %v1641_v13  ;;  %v1651_v31 = vor.u32 1.1754944e-38, %v1650_v23  ;;  %v3778_v60 = vadd.f32 1.1283791, %v1706_v47  ;;  %v3782_v28 = vpop.eup %2697 }
 0x263   : > { %v1593_v19 = vmul.f32 %v1592_v18, %v3673_v25  ;;  %v3728_v52 = vadd.f32 %v1515_v11, %v1497_v10  ;;  %v1658_v63 = vmul.f32 2.1237322e-06, %v3724_v22  ;;  %v1669_v26 = vmul.f32 3.8918573e-05, %v3724_v22 }
 0x264   : > { %v1582_v30 = vmul.f32 %v1581_v8, %v3673_v25  ;;  %v1480_v17 = vadd.f32 %v1479_v24, %v1461_v45  ;;  %v1796_v10 = vadd.f32 0.4994258, %v1795_v38  ;;  %v1783_v18 = vadd.f32 0.05243302, %v1782_v14 }
 0x265   : > { %v1594_v4 = vadd.f32 0.112945676, %v1593_v19  ;;  %v1659_v6 = vadd.f32 0.00028619796, %v1658_v63  ;;  %v1670_v36 = vadd.f32 0.001143296, %v1669_v26  ;;  %v1643_v1 = vadd.f32 %v3701_v42, %v1642_v27 }
 0x266   : > { %v3742_v56 = vmul.f32 0.70710677, %v3728_v52  ;;  %v1583_v48 = vadd.f32 0.05243302, %v1582_v30  ;;  %v2494_v11 = vclamps-f32 %v1573_v44, 1.0  ;;  %v1797_v26 = vmul.f32 %v1796_v10, %v3642_v55 }
 0x267   : > { %v1595_v35 = vmul.f32 %v1594_v4, %v3673_v25  ;;  %v1660_v16 = vmul.f32 %v1659_v6, %v3724_v22  ;;  %v1671_v59 = vmul.f32 %v1670_v36, %v3724_v22  ;;  %v1784_v30 = vmul.f32 %v1783_v18, %v3642_v55 }
 0x268   : > { %v1498_v43 = vpop.f32.mrf.mxu2  ;;  %v1736_v39 = vmul.f32 %v3742_v56, %v3742_v56  ;;  %v1584_v61 = vmul.f32 %v1583_v48, %v3673_v25  ;;  %v1856_v6 = vadd.f32 1.0, %v2494_v11  ;;  %v1720_v48 = vmul.f32 %v3782_v28, %v3738_v57 }
 0x269   : > { %v1596_v54 = vadd.f32 0.4994258, %v1595_v35  ;;  %v1672_v20 = vadd.f32 0.014752088, %v1671_v59  ;;  %v1499_v12 = vadd.f32 %v1498_v43, %v1480_v17  ;;  %v1661_v3 = vadd.f32 0.0036580483, %v1660_v16  ;;  %v1517_v15 = vpop.f32.mrf.mxu3 }
 0x26a   : > { %v3753_v34 = vmin.f32 %v1736_v39, 16.0  ;;  %v1585_v51 = vadd.f32 0.18741608, %v1584_v61  ;;  %v1728_v43 = vand.u32 2147483647, %v3738_v57  ;;  %v1730_v35 = vand.u32 2147483648, %v3738_v57 }
 0x26b   : > { %v1597_v37 = vmul.f32 %v1596_v54, %v3673_v25  ;;  %v1673_v8 = vmul.f32 %v1672_v20, %v3724_v22  ;;  %v3767_v63 = vadd.f32 %v1517_v15, %v1499_v12  ;;  %v1662_v49 = vmul.f32 %v1661_v3, %v3724_v22 }
 0x26c   : > { %v1738_v5 = vmul.f32 2.1237322e-06, %v3753_v34  ;;  %v1749_v23 = vmul.f32 3.8918573e-05, %v3753_v34  ;;  %v3796_v16 = vadd.f32 1.0, %v1797_v26  ;;  %v1647_v17 = vsel %vm3790_vm4, %v3701_v42, %v1643_v1 }
 0x26d   : > { %v3765_v41 = vadd.f32 1.0, %v1597_v37  ;;  %v1674_v19 = vadd.f32 0.112945676, %v1673_v8  ;;  %v3786_v38 = vmul.f32 0.70710677, %v3767_v63  ;;  %v1586_v44 = vmul.f32 %v1585_v51, %v3673_v25 }
 0x26e   : > { %v1739_v45 = vadd.f32 0.00028619796, %v1738_v5  ;;  %v1750_v13 = vadd.f32 0.001143296, %v1749_v23  ;;  %v1663_v46 = vadd.f32 0.05243302, %v1662_v49  ;;  %v3811_v12 = vmul.f32 %v1856_v6, %v3668_v50 }
 0x26f   : > { %2699 = vrcp.f32 %v3765_v41  ;;  %v1675_v4 = vmul.f32 %v1674_v19, %v3724_v22  ;;  %v1816_v32 = vmul.f32 %v3786_v38, %v3786_v38  ;;  %v3806_v39 = vadd.f32 0.18741608, %v1784_v30 }
 0x270   : > { %v1740_v36 = vmul.f32 %v1739_v45, %v3753_v34  ;;  %v1751_v14 = vmul.f32 %v1750_v13, %v3753_v34  ;;  %v1652_v37 = vsel %vm3761_vm2, %v1651_v31, %v1647_v17  ;;  %2701 = vrcp.f32 %v3796_v16 }
 0x271   : > { %v1676_v59 = vadd.f32 0.4994258, %v1675_v4  ;;  %v3813_v10 = vmin.f32 %v1816_v32, 16.0  ;;  %v1664_v25 = vmul.f32 %v1663_v46, %v3724_v22  ;;  %v1721_v61 = vsub.f32 1.0, %v1720_v48 }
 0x272   : > { %v1741_v42 = vadd.f32 0.0036580483, %v1740_v36  ;;  %v1752_v27 = vadd.f32 0.014752088, %v1751_v14  ;;  %v1587_v5 = vadd.f32 1.1283791, %v1586_v44  ;;  %v1653_v1 = vmul.f32 %v1652_v37, %v3720_v62 }
 0x273   : > { %v1677_v54 = vmul.f32 %v1676_v59, %v3724_v22  ;;  %v1818_v50 = vmul.f32 2.1237322e-06, %v3813_v10  ;;  %v1829_v18 = vmul.f32 3.8918573e-05, %v3813_v10  ;;  %v1608_v31 = vand.u32 2147483647, %v3765_v41 }
 0x274   : > { %v1753_v47 = vmul.f32 %v1752_v27, %v3753_v34  ;;  %v1610_v11 = vand.u32 2147483648, %v3765_v41  ;;  %v1742_v7 = vmul.f32 %v1741_v42, %v3753_v34  ;;  %v3831_v49 = vor.u32 1.1754944e-38, %v1730_v35 }
 0x275   : > { %v2700_v20 = vpop.eup %2699  ;;  %v3819_v8 = vadd.f32 1.0, %v1677_v54  ;;  %v1819_v45 = vadd.f32 0.00028619796, %v1818_v50  ;;  %v1830_v23 = vadd.f32 0.001143296, %v1829_v18  ;;  %vm1604_vm7 = vweird.f32 %v3765_v41 }
 0x276   : > { %v1600_v3 = vmul.f32 %v2700_v20, %v3765_v41  ;;  %v1754_v19 = vadd.f32 0.112945676, %v1753_v47  ;;  %vm1605_vm5 = vweird.f32 %v2700_v20  ;;  %v1665_v30 = vadd.f32 0.18741608, %v1664_v25  ;;  %v3834_v4 = vpop.eup %2701 }
 0x277   : > { %2703 = vrcp.f32 %v3819_v8  ;;  %v1820_v36 = vmul.f32 %v1819_v45, %v3813_v10  ;;  %v1831_v13 = vmul.f32 %v1830_v23, %v3813_v10  ;;  %v1722_v24 = vmul.f32 %v3782_v28, %v1721_v61  ;;  %vm1606_vm8 = vmor %vm1604_vm7, %vm1605_vm5 }
 0x278   : > { %v1601_v15 = vsub.f32 1.0, %v1600_v3  ;;  %v1755_v51 = vmul.f32 %v1754_v19, %v3753_v34  ;;  %v1588_v62 = vmul.f32 %v1587_v5, %v3658_v0  ;;  %v1611_v35 = vor.u32 1.1754944e-38, %v1610_v11 }
 0x279   : > { %vm1609_vm9 = vcmp.eq.f32.partialorder %v1608_v31, 8.507059e+37  ;;  %v1743_v14 = vadd.f32 0.05243302, %v1742_v7  ;;  %v1832_v32 = vadd.f32 0.014752088, %v1831_v13  ;;  %vm1725_vm10 = vweird.f32 %v3782_v28 }
 0x27a   : > { %v1602_v26 = vmul.f32 %v2700_v20, %v1601_v15  ;;  %v1756_v59 = vadd.f32 0.4994258, %v1755_v51  ;;  %v1666_v48 = vmul.f32 %v1665_v30, %v3724_v22  ;;  %v1821_v0 = vadd.f32 0.0036580483, %v1820_v36  ;;  %vm3859_vm12 = vmor %vm1724_vm6, %vm1725_vm10 }
 0x27b   : > { %v1833_v27 = vmul.f32 %v1832_v32, %v3813_v10  ;;  %v1723_v37 = vadd.f32 %v3782_v28, %v1722_v24  ;;  %v1690_v25 = vand.u32 2147483648, %v3819_v8  ;;  %v1744_v50 = vmul.f32 %v1743_v14, %v3753_v34 }
 0x27c   : > { %v1603_v6 = vadd.f32 %v2700_v20, %v1602_v26  ;;  %v1757_v42 = vmul.f32 %v1756_v59, %v3753_v34  ;;  %v1667_v61 = vadd.f32 1.1283791, %v1666_v48  ;;  %v1688_v15 = vand.u32 2147483647, %v3819_v8 }
 0x27d   : > { %v2704_v17 = vpop.eup %2703  ;;  %v1834_v18 = vadd.f32 0.112945676, %v1833_v27  ;;  %v2496_v31 = vclamps-f32 %v1653_v1, 1.0  ;;  %v1822_v19 = vmul.f32 %v1821_v0, %v3813_v10  ;;  %v1727_v26 = vsel %vm3859_vm12, %v3782_v28, %v1723_v37 }
 0x27e   : > { %v1607_v46 = vsel %vm1606_vm8, %v2700_v20, %v1603_v6  ;;  %v1680_v44 = vmul.f32 %v2704_v17, %v3819_v8  ;;  %v1800_v20 = vmul.f32 %v3834_v4, %v3796_v16  ;;  %v3852_v22 = vadd.f32 1.0, %v1757_v42 }
 0x27f   : > { %v1612_v41 = vsel %vm1609_vm9, %v1611_v35, %v1607_v46  ;;  %vm1685_vm11 = vweird.f32 %v2704_v17  ;;  %vm1684_vm13 = vweird.f32 %v3819_v8  ;;  %v1835_v23 = vmul.f32 %v1834_v18, %v3813_v10 }
 0x280   : > { %v1613_v54 = vmul.f32 %v1612_v41, %v1588_v62  ;;  %v1681_v3 = vsub.f32 1.0, %v1680_v44  ;;  %2705 = vrcp.f32 %v3852_v22  ;;  %v1801_v1 = vsub.f32 1.0, %v1800_v20  ;;  %vm1686_vm14 = vmor %vm1684_vm13, %vm1685_vm11 }
 0x281   : > { %v1691_v51 = vor.u32 1.1754944e-38, %v1690_v25  ;;  %v1745_v6 = vadd.f32 0.18741608, %v1744_v50  ;;  %v1668_v36 = vmul.f32 %v1667_v61, %v3691_v58  ;;  %vm1689_vm15 = vcmp.eq.f32.partialorder %v1688_v15, 8.507059e+37 }
 0x282   : > { %v2495_v47 = vclamps-f32 %v1613_v54, 1.0  ;;  %v1682_v5 = vmul.f32 %v2704_v17, %v1681_v3  ;;  %v1836_v24 = vadd.f32 0.4994258, %v1835_v23  ;;  %v1858_v62 = vadd.f32 1.0, %v2496_v31 }
 0x283   : > { %v1823_v59 = vadd.f32 0.05243302, %v1822_v19  ;;  %v1522_v8 = vmul.f32 0.5, %v3582_v9  ;;  %vm1729_vm0 = vcmp.eq.f32.partialorder %v1728_v43, 8.507059e+37  ;;  %v1708_v58 = vmul.f32 %v3778_v60, %v3600_v33 }
 0x284   : > { %v1857_v7 = vadd.f32 1.0, %v2495_v47  ;;  %v1683_v45 = vadd.f32 %v2704_v17, %v1682_v5  ;;  %v1837_v46 = vmul.f32 %v1836_v24, %v3813_v10  ;;  %v1802_v32 = vmul.f32 %v3834_v4, %v1801_v1 }
 0x285   : > { %v1786_v9 = vmul.f32 %v3806_v39, %v3642_v55  ;;  %v1523_v57 = vmul.f32 0.5, %v3675_v21  ;;  %v1866_v48 = vmul.f32 %v1858_v62, %v1522_v8  ;;  %v1810_v44 = vand.u32 2147483648, %v3796_v16 }
 0x286   : > { %v1865_v30 = vmul.f32 %v1857_v7, %v3771_v40  ;;  %v1687_v13 = vsel %vm1686_vm14, %v2704_v17, %v1683_v45  ;;  %v2706_v14 = vpop.eup %2705  ;;  %v1732_v17 = vsel %vm1729_vm0, %v3831_v49, %v1727_v26  ;;  %v1824_v33 = vmul.f32 %v1823_v59, %v3813_v10 }
 0x287   : > { %v1692_v35 = vsel %vm1689_vm15, %v1691_v51, %v1687_v13  ;;  %v1760_v41 = vmul.f32 %v2706_v14, %v3852_v22  ;;  %v1838_v60 = vadd.f32 1.0, %v1837_v46  ;;  %v1733_v49 = vmul.f32 %v1732_v17, %v1708_v58 }
 0x288   : > { %v1872_v28 = vpack.c.bf16 %v1865_v30, %v3811_v12  ;;  %v1693_v40 = vmul.f32 %v1692_v35, %v1668_v36  ;;  %v1746_v12 = vmul.f32 %v1745_v6, %v3753_v34  ;;  %vm1805_vm1 = vweird.f32 %v3834_v4 }
 0x289   : > { %v1761_v42 = vsub.f32 1.0, %v1760_v41  ;;  %v1803_v34 = vadd.f32 %v3834_v4, %v1802_v32  ;;  %v1770_v55 = vand.u32 2147483648, %v3852_v22  ;;  %2707 = vrcp.f32 %v1838_v60 }
 0x28a   : > { %1876 = vst [vmem:[%s2954_s7] sm:$0xff] %v1872_v28  ;;  %v2497_v43 = vclamps-f32 %v1693_v40, 1.0  ;;  %v1747_v0 = vadd.f32 1.1283791, %v1746_v12  ;;  %vm1765_vm2 = vweird.f32 %v2706_v14  ;;  %v1768_v27 = vand.u32 2147483647, %v3852_v22 }
 0x28b   : > { %v1762_v39 = vmul.f32 %v2706_v14, %v1761_v42  ;;  %vm1804_vm3 = vweird.f32 %v3796_v16  ;;  %v1808_v37 = vand.u32 2147483647, %v3796_v16  ;;  %v1825_v20 = vadd.f32 0.18741608, %v1824_v33 }
 0x28c   : > { %v1859_v54 = vadd.f32 1.0, %v2497_v43  ;;  %vm3895_vm4 = vmor %vm1804_vm3, %vm1805_vm1  ;;  %vm1764_vm5 = vweird.f32 %v3852_v22  ;;  %v1787_v50 = vadd.f32 1.1283791, %v1786_v9  ;;  %v1811_v61 = vor.u32 1.1754944e-38, %v1810_v44 }
 0x28d   : > { %v1763_v47 = vadd.f32 %v2706_v14, %v1762_v39  ;;  %v1807_v18 = vsel %vm3895_vm4, %v3834_v4, %v1803_v34  ;;  %vm1766_vm6 = vmor %vm1764_vm5, %vm1765_vm2  ;;  %v1771_v5 = vor.u32 1.1754944e-38, %v1770_v55  ;;  %v2498_v15 = vclamps-f32 %v1733_v49, 1.0 }
 0x28e   : > { %v1867_v21 = vmul.f32 %v1859_v54, %v1523_v57  ;;  %v1748_v16 = vmul.f32 %v1747_v0, %v3742_v56  ;;  %vm1769_vm7 = vcmp.eq.f32.partialorder %v1768_v27, 8.507059e+37  ;;  %vm1809_vm8 = vcmp.eq.f32.partialorder %v1808_v37, 8.507059e+37 }
 0x28f   : > { %v1767_v31 = vsel %vm1766_vm6, %v2706_v14, %v1763_v47  ;;  %v2708_v11 = vpop.eup %2707  ;;  %v1826_v19 = vmul.f32 %v1825_v20, %v3813_v10  ;;  %v1812_v22 = vsel %vm1809_vm8, %v1811_v61, %v1807_v18  ;;  %v1788_v23 = vmul.f32 %v1787_v50, %v3628_v2 }
 0x290   : > { %v1873_v25 = vpack.c.bf16 %v1867_v21, %v1866_v48  ;;  %v1772_v7 = vsel %vm1769_vm7, %v1771_v5, %v1767_v31  ;;  %v1840_v45 = vmul.f32 %v2708_v11, %v1838_v60  ;;  %v1524_v4 = vmul.f32 0.5, %v3596_v53 }
 0x291   : > { %v1773_v26 = vmul.f32 %v1772_v7, %v1748_v16  ;;  %v1860_v1 = vadd.f32 1.0, %v2498_v15  ;;  %v1813_v6 = vmul.f32 %v1812_v22, %v1788_v23  ;;  %v1525_v56 = vmul.f32 0.5, %v3728_v52 }
 0x292   : > { %1877 = vst [vmem:[%s2954_s7 + $0x8] sm:$0xff] %v1873_v25  ;;  %v1841_v51 = vsub.f32 1.0, %v1840_v45  ;;  %v1827_v36 = vadd.f32 1.1283791, %v1826_v19  ;;  %v1850_v13 = vand.u32 2147483648, %v1838_v60  ;;  %vm1845_vm9 = vweird.f32 %v2708_v11 }
 0x293   : > { %v2499_v30 = vclamps-f32 %v1773_v26, 1.0  ;;  %v1848_v10 = vand.u32 2147483647, %v1838_v60  ;;  %v1868_v28 = vmul.f32 %v1860_v1, %v1524_v4  ;;  %vm1844_vm10 = vweird.f32 %v1838_v60 }
 0x294   : > { %v1842_v62 = vmul.f32 %v2708_v11, %v1841_v51  ;;  %v2500_v2 = vclamps-f32 %v1813_v6, 1.0  ;;  %vm1846_vm11 = vmor %vm1844_vm10, %vm1845_vm9  ;;  %v1851_v53 = vor.u32 1.1754944e-38, %v1850_v13  ;;  %v1828_v40 = vmul.f32 %v1827_v36, %v3786_v38  ;;  %v1927_v38 = vld [vmem:[%s2954_s7] sm:$0xff] (%p2909_p9) }
 0x295   : > { %v1861_v24 = vadd.f32 1.0, %v2499_v30  ;;  %vm1849_vm12 = vcmp.eq.f32.partialorder %v1848_v10, 8.507059e+37  ;;  %v1526_v32 = vmul.f32 0.5, %v3617_v29  ;;  %v1527_v12 = vmul.f32 0.5, %v3767_v63  ;;  %1928 = vst [vmem:[%s1892_s15] sm:$0xff] (%p2909_p9), %v1927_v38 }
 0x296   : > { %v1843_v59 = vadd.f32 %v2708_v11, %v1842_v62  ;;  %v1862_v58 = vadd.f32 1.0, %v2500_v2 }
 0x297   : > { %v1869_v35 = vmul.f32 %v1861_v24, %v1525_v56 }
 0x298   : > { %v1847_v46 = vsel %vm1846_vm11, %v2708_v11, %v1843_v59  ;;  %v1870_v57 = vmul.f32 %v1862_v58, %v1526_v32 }
 0x299   : > { %v1874_v8 = vpack.c.bf16 %v1869_v35, %v1868_v28  ;;  %v1852_v52 = vsel %vm1849_vm12, %v1851_v53, %v1847_v46  ;;  %v1929_v48 = vld [vmem:[%s2954_s7 + $0x8] sm:$0xff] (%p2909_p9) }
 0x29a   : > { %v1853_v14 = vmul.f32 %v1852_v52, %v1828_v40  ;;  %1930 = vst [vmem:[%s1892_s15 + $0x60] sm:$0xff] (%p2909_p9), %v1929_v48 }
 0x29b   : > { %1878 = vst [vmem:[%s2954_s7 + $0x10] sm:$0xff] %v1874_v8 }
 0x29c   : > { %v2501_v17 = vclamps-f32 %v1853_v14, 1.0 }
 0x29e   : > { %v1863_v9 = vadd.f32 1.0, %v2501_v17 }
 0x2a0   : > { %v1871_v43 = vmul.f32 %v1863_v9, %v1527_v12  ;;  %1886 = sbr.rel (!%p2909_p9) target bundleno = 685 (0x2ad), region = 56 }
 0x2a2   : > { %v1875_v41 = vpack.c.bf16 %v1871_v43, %v1870_v57  ;;  %v1931_v29 = vld [vmem:[%s2954_s7 + $0x10] sm:$0xff] (%p2909_p9) }
 0x2a3   : > { %1932 = vst [vmem:[%s1892_s15 + $0xc0] sm:$0xff] (%p2909_p9), %v1931_v29 }
 0x2a4   : > { %1879 = vst [vmem:[%s2954_s7 + $0x18] sm:$0xff] %v1875_v41 }
 0x2ab   : > { %v1933_v63 = vld [vmem:[%s2954_s7 + $0x18] sm:$0xff] }
 0x2ac   : > { %1934 = vst [vmem:[%s1892_s15 + $0x120] sm:$0xff] %v1933_v63 }
 0x2ad PF: > { %s21_s23 = sadd.s32 1, %s2823_s23   ;;  %s3966_s18 = smov %s2807_s19 }
 0x2ae   : > { %p18_p2 = scmp.ge.s32.totalorder %s21_s23, 14   ;;  %s3967_s19 = smov %s2811_s20 }
 0x2af   : > { %s3968_s20 = smov %s2907_s30  ;;  %s3969_s21 = smov %s2819_s22 }
 0x2b0   : > { %s3970_s22 = smov %s3972_s25  ;;  %20 = sbr.rel (!%p18_p2) target bundleno = 8 (0x8), region = 138 }
 0x2b5   :  { %1950 = vsyncpa [#allocation4], 1 }
 0x2b6   :  { %1952 = vsyncpa [#allocation4 + $0x1], 1 }
 0x2b7   :  { %1953 = vsyncpa [#allocation6], 1 }
 0x2b8   :  { %1955 = vsyncpa [#allocation6 + $0x1], 1 }

// kernel: dino_forward.13
= control target key start
LH: loop header
LB: loop body
LE: loop exit
PB: predicated region body
PF: predicated region fallthrough
CT: control target
= control target key end

     0   :  { %s2719_s18 = smov 0   ;;  %s2721_s19 = smov 0   ;;  %s3631_s0 = inlined_call_operand.vmem [shape: f32[32,768], index: 0, kind: input, shape index: {}]   ;;  %s3632_s1 = inlined_call_operand.vmem [shape: f32[1,768], index: 1, kind: input, shape index: {}]   ;;  %s3633_s2 = inlined_call_operand.vmem [shape: f32[1,768], index: 2, kind: input, shape index: {}]   ;;  %s3634_s3 = inlined_call_operand.vmem [shape: bf16[768,768], index: 3, kind: input, shape index: {}]   ;;  %s3635_s4 = inlined_call_operand.vmem [shape: f32[1,768], index: 4, kind: input, shape index: {}]   ;;  %s3636_s5 = inlined_call_operand.vmem [shape: f32[32,768], index: 5, kind: output, shape index: {}]  }
   0x1   :  { %s2723_s20 = smov 0   ;;  %s2725_s21 = smov 0  }
   0x2   :  { %s2727_s22 = smov 0  }
   0x3 LB: > { %s24_s23 = sadd.s32 1, %s2682_s21  ;;  %s2037_s24 = sadd.s32 4294967295, %s2686_s22   ;;  %s2686_s22 = sphi %s2727_s22, %s15_s22   ;;  %s2682_s21 = sphi %s2725_s21, %s3641_s21   ;;  %s2678_s20 = sphi %s2723_s20, %s3640_s20   ;;  %s2674_s19 = sphi %s2721_s19, %s3639_s19   ;;  %s2670_s18 = sphi %s2719_s18, %s3638_s18  }
   0x4   : > { %p25_p0 = scmp.ge.s32.totalorder %s24_s23, 3  ;;  %p109_p1 = scmp.ne.s32.totalorder %s2674_s19, %s2670_s18 }
   0x5   : > { %p110_p2 = scmp.eq.s32.totalorder %s2686_s22, 0  ;;  %p167_p4 = scmp.eq.s32.totalorder %s2037_s24, 2 }
   0x6   : > { %s3643_s23 = smov (%p25_p0, %s24_s23), 0  ;;  %s102_s26 = sadd.s32 1, %s2674_s19 }
   0x7   : > { %p111_p3 = por %p110_p2, %p109_p1  ;;  %s99_s25 = ssub.s32 %s2682_s21, %s3643_s23 }
   0x8   : > { %p100_p5 = scmp.eq.s32.totalorder %s99_s25, 0  ;;  %p2754_p6 = por %p167_p4, %p109_p1 }
   0x9   : > { %p2041_p7 = scmp.ge.s32.totalorder %s2686_s22, 3 }
   0xa   : > { %s2759_s28 = scalar_select %p100_p5, %s2674_s19, %s102_s26  }
   0xb   : > { %205 = sbr.rel (%p2041_p7) target bundleno = 116 (0x74), region = 28 }
  0x10   : > { %208 = sbr.rel (!%p111_p3) target bundleno = 116 (0x74), region = 32  ;;  %s210_s29 = sand.u32 (%p111_p3), 1, %s2674_s19  }
  0x11   : > { %s2485_s30 = sshll.u32 (%p111_p3), %s2682_s21, 3  ;;  %s2595_s6 = smul.u32 (%p111_p3), 768, %s210_s29 }
  0x12   : > { %s2767_s9 = scalar_lea.vmem (%p111_p3), %s3634_s3, %s2485_s30 }
  0x13   : > { %v434_v0 = vld [vmem:[%s2767_s9] sm:$0xff] (%p111_p3)  ;;  %v436_v1 = vld [vmem:[%s2767_s9 + $0x18] sm:$0xff] (%p111_p3)  ;;  %v438_v2 = vld [vmem:[%s2767_s9 + $0x30] sm:$0xff] (%p111_p3)  ;;  %s2772_s10 = scalar_lea.vmem (%p111_p3), [#allocation3], %s2595_s6 }
  0x14   : > { %435 = vst [vmem:[%s2772_s10] sm:$0xff] (%p111_p3), %v434_v0  ;;  %v440_v3 = vld [vmem:[%s2767_s9 + $0x48] sm:$0xff] (%p111_p3)  ;;  %v442_v4 = vld [vmem:[%s2767_s9 + $0x60] sm:$0xff] (%p111_p3)  ;;  %v444_v5 = vld [vmem:[%s2767_s9 + $0x78] sm:$0xff] (%p111_p3) }
  0x15   : > { %437 = vst [vmem:[%s2772_s10 + $0x8] sm:$0xff] %v436_v1  ;;  %v446_v6 = vld [vmem:[%s2767_s9 + $0x90] sm:$0xff]  ;;  %v448_v7 = vld [vmem:[%s2767_s9 + $0xa8] sm:$0xff]  ;;  %v450_v8 = vld [vmem:[%s2767_s9 + $0xc0] sm:$0xff] }
  0x16   : > { %439 = vst [vmem:[%s2772_s10 + $0x10] sm:$0xff] %v438_v2  ;;  %v452_v9 = vld [vmem:[%s2767_s9 + $0xd8] sm:$0xff]  ;;  %v454_v10 = vld [vmem:[%s2767_s9 + $0xf0] sm:$0xff]  ;;  %v456_v11 = vld [vmem:[%s2767_s9 + $0x108] sm:$0xff] }
  0x17   : > { %441 = vst [vmem:[%s2772_s10 + $0x18] sm:$0xff] %v440_v3  ;;  %v458_v12 = vld [vmem:[%s2767_s9 + $0x120] sm:$0xff]  ;;  %v460_v13 = vld [vmem:[%s2767_s9 + $0x138] sm:$0xff]  ;;  %v462_v14 = vld [vmem:[%s2767_s9 + $0x150] sm:$0xff] }
  0x18   : > { %443 = vst [vmem:[%s2772_s10 + $0x20] sm:$0xff] %v442_v4  ;;  %v464_v15 = vld [vmem:[%s2767_s9 + $0x168] sm:$0xff]  ;;  %v466_v16 = vld [vmem:[%s2767_s9 + $0x180] sm:$0xff]  ;;  %v468_v17 = vld [vmem:[%s2767_s9 + $0x198] sm:$0xff] }
  0x19   : > { %445 = vst [vmem:[%s2772_s10 + $0x28] sm:$0xff] %v444_v5  ;;  %v470_v18 = vld [vmem:[%s2767_s9 + $0x1b0] sm:$0xff]  ;;  %v472_v19 = vld [vmem:[%s2767_s9 + $0x1c8] sm:$0xff]  ;;  %v474_v20 = vld [vmem:[%s2767_s9 + $0x1e0] sm:$0xff] }
  0x1a   : > { %447 = vst [vmem:[%s2772_s10 + $0x30] sm:$0xff] %v446_v6  ;;  %v476_v21 = vld [vmem:[%s2767_s9 + $0x1f8] sm:$0xff]  ;;  %v478_v22 = vld [vmem:[%s2767_s9 + $0x210] sm:$0xff]  ;;  %v480_v23 = vld [vmem:[%s2767_s9 + $0x228] sm:$0xff] }
  0x1b   : > { %449 = vst [vmem:[%s2772_s10 + $0x38] sm:$0xff] %v448_v7  ;;  %v482_v24 = vld [vmem:[%s2767_s9 + $0x240] sm:$0xff]  ;;  %v484_v25 = vld [vmem:[%s2767_s9 + $0x258] sm:$0xff]  ;;  %v486_v26 = vld [vmem:[%s2767_s9 + $0x270] sm:$0xff] }
  0x1c   : > { %451 = vst [vmem:[%s2772_s10 + $0x40] sm:$0xff] %v450_v8  ;;  %v488_v27 = vld [vmem:[%s2767_s9 + $0x288] sm:$0xff]  ;;  %v490_v28 = vld [vmem:[%s2767_s9 + $0x2a0] sm:$0xff]  ;;  %v492_v29 = vld [vmem:[%s2767_s9 + $0x2b8] sm:$0xff] }
  0x1d   : > { %453 = vst [vmem:[%s2772_s10 + $0x48] sm:$0xff] %v452_v9  ;;  %v494_v30 = vld [vmem:[%s2767_s9 + $0x2d0] sm:$0xff]  ;;  %v496_v31 = vld [vmem:[%s2767_s9 + $0x2e8] sm:$0xff]  ;;  %v498_v32 = vld [vmem:[%s2767_s9 + $0x300] sm:$0xff] }
  0x1e   : > { %455 = vst [vmem:[%s2772_s10 + $0x50] sm:$0xff] %v454_v10  ;;  %v500_v33 = vld [vmem:[%s2767_s9 + $0x318] sm:$0xff]  ;;  %v502_v34 = vld [vmem:[%s2767_s9 + $0x330] sm:$0xff]  ;;  %v504_v35 = vld [vmem:[%s2767_s9 + $0x348] sm:$0xff] }
  0x1f   : > { %457 = vst [vmem:[%s2772_s10 + $0x58] sm:$0xff] %v456_v11  ;;  %v506_v36 = vld [vmem:[%s2767_s9 + $0x360] sm:$0xff]  ;;  %v508_v37 = vld [vmem:[%s2767_s9 + $0x378] sm:$0xff]  ;;  %v510_v38 = vld [vmem:[%s2767_s9 + $0x390] sm:$0xff] }
  0x20   : > { %459 = vst [vmem:[%s2772_s10 + $0x60] sm:$0xff] %v458_v12  ;;  %v512_v39 = vld [vmem:[%s2767_s9 + $0x3a8] sm:$0xff]  ;;  %v514_v40 = vld [vmem:[%s2767_s9 + $0x3c0] sm:$0xff]  ;;  %v516_v41 = vld [vmem:[%s2767_s9 + $0x3d8] sm:$0xff] }
  0x21   : > { %461 = vst [vmem:[%s2772_s10 + $0x68] sm:$0xff] %v460_v13  ;;  %v518_v42 = vld [vmem:[%s2767_s9 + $0x3f0] sm:$0xff]  ;;  %v520_v43 = vld [vmem:[%s2767_s9 + $0x408] sm:$0xff]  ;;  %v522_v44 = vld [vmem:[%s2767_s9 + $0x420] sm:$0xff] }
  0x22   : > { %463 = vst [vmem:[%s2772_s10 + $0x70] sm:$0xff] %v462_v14  ;;  %v524_v45 = vld [vmem:[%s2767_s9 + $0x438] sm:$0xff]  ;;  %v526_v46 = vld [vmem:[%s2767_s9 + $0x450] sm:$0xff]  ;;  %v528_v47 = vld [vmem:[%s2767_s9 + $0x468] sm:$0xff] }
  0x23   : > { %465 = vst [vmem:[%s2772_s10 + $0x78] sm:$0xff] %v464_v15  ;;  %v530_v48 = vld [vmem:[%s2767_s9 + $0x480] sm:$0xff]  ;;  %v532_v49 = vld [vmem:[%s2767_s9 + $0x498] sm:$0xff]  ;;  %v534_v50 = vld [vmem:[%s2767_s9 + $0x4b0] sm:$0xff] }
  0x24   : > { %467 = vst [vmem:[%s2772_s10 + $0x80] sm:$0xff] %v466_v16  ;;  %v536_v51 = vld [vmem:[%s2767_s9 + $0x4c8] sm:$0xff]  ;;  %v538_v52 = vld [vmem:[%s2767_s9 + $0x4e0] sm:$0xff]  ;;  %v540_v53 = vld [vmem:[%s2767_s9 + $0x4f8] sm:$0xff] }
  0x25   : > { %469 = vst [vmem:[%s2772_s10 + $0x88] sm:$0xff] %v468_v17  ;;  %v542_v54 = vld [vmem:[%s2767_s9 + $0x510] sm:$0xff]  ;;  %v544_v55 = vld [vmem:[%s2767_s9 + $0x528] sm:$0xff]  ;;  %v546_v56 = vld [vmem:[%s2767_s9 + $0x540] sm:$0xff] }
  0x26   : > { %471 = vst [vmem:[%s2772_s10 + $0x90] sm:$0xff] %v470_v18  ;;  %v548_v57 = vld [vmem:[%s2767_s9 + $0x558] sm:$0xff]  ;;  %v550_v58 = vld [vmem:[%s2767_s9 + $0x570] sm:$0xff]  ;;  %v552_v59 = vld [vmem:[%s2767_s9 + $0x588] sm:$0xff] }
  0x27   : > { %473 = vst [vmem:[%s2772_s10 + $0x98] sm:$0xff] %v472_v19  ;;  %v554_v60 = vld [vmem:[%s2767_s9 + $0x5a0] sm:$0xff]  ;;  %v556_v61 = vld [vmem:[%s2767_s9 + $0x5b8] sm:$0xff]  ;;  %v558_v62 = vld [vmem:[%s2767_s9 + $0x5d0] sm:$0xff] }
  0x28   : > { %475 = vst [vmem:[%s2772_s10 + $0xa0] sm:$0xff] %v474_v20  ;;  %v560_v63 = vld [vmem:[%s2767_s9 + $0x5e8] sm:$0xff]  ;;  %v562_v0 = vld [vmem:[%s2767_s9 + $0x600] sm:$0xff]  ;;  %v564_v1 = vld [vmem:[%s2767_s9 + $0x618] sm:$0xff] }
  0x29   : > { %477 = vst [vmem:[%s2772_s10 + $0xa8] sm:$0xff] %v476_v21  ;;  %v566_v2 = vld [vmem:[%s2767_s9 + $0x630] sm:$0xff]  ;;  %v568_v3 = vld [vmem:[%s2767_s9 + $0x648] sm:$0xff]  ;;  %v570_v4 = vld [vmem:[%s2767_s9 + $0x660] sm:$0xff] }
  0x2a   : > { %479 = vst [vmem:[%s2772_s10 + $0xb0] sm:$0xff] %v478_v22  ;;  %v572_v5 = vld [vmem:[%s2767_s9 + $0x678] sm:$0xff]  ;;  %v574_v6 = vld [vmem:[%s2767_s9 + $0x690] sm:$0xff]  ;;  %v576_v7 = vld [vmem:[%s2767_s9 + $0x6a8] sm:$0xff] }
  0x2b   : > { %481 = vst [vmem:[%s2772_s10 + $0xb8] sm:$0xff] %v480_v23  ;;  %v578_v8 = vld [vmem:[%s2767_s9 + $0x6c0] sm:$0xff]  ;;  %v580_v9 = vld [vmem:[%s2767_s9 + $0x6d8] sm:$0xff]  ;;  %v582_v10 = vld [vmem:[%s2767_s9 + $0x6f0] sm:$0xff] }
  0x2c   : > { %483 = vst [vmem:[%s2772_s10 + $0xc0] sm:$0xff] %v482_v24  ;;  %v584_v11 = vld [vmem:[%s2767_s9 + $0x708] sm:$0xff]  ;;  %v586_v12 = vld [vmem:[%s2767_s9 + $0x720] sm:$0xff]  ;;  %v588_v13 = vld [vmem:[%s2767_s9 + $0x738] sm:$0xff] }
  0x2d   : > { %485 = vst [vmem:[%s2772_s10 + $0xc8] sm:$0xff] %v484_v25  ;;  %v590_v14 = vld [vmem:[%s2767_s9 + $0x750] sm:$0xff]  ;;  %v592_v15 = vld [vmem:[%s2767_s9 + $0x768] sm:$0xff]  ;;  %v594_v16 = vld [vmem:[%s2767_s9 + $0x780] sm:$0xff] }
  0x2e   : > { %487 = vst [vmem:[%s2772_s10 + $0xd0] sm:$0xff] %v486_v26  ;;  %v596_v17 = vld [vmem:[%s2767_s9 + $0x798] sm:$0xff]  ;;  %v598_v18 = vld [vmem:[%s2767_s9 + $0x7b0] sm:$0xff]  ;;  %v600_v19 = vld [vmem:[%s2767_s9 + $0x7c8] sm:$0xff] }
  0x2f   : > { %489 = vst [vmem:[%s2772_s10 + $0xd8] sm:$0xff] %v488_v27  ;;  %v602_v20 = vld [vmem:[%s2767_s9 + $0x7e0] sm:$0xff]  ;;  %v604_v21 = vld [vmem:[%s2767_s9 + $0x7f8] sm:$0xff]  ;;  %v606_v22 = vld [vmem:[%s2767_s9 + $0x810] sm:$0xff] }
  0x30   : > { %491 = vst [vmem:[%s2772_s10 + $0xe0] sm:$0xff] %v490_v28  ;;  %v608_v23 = vld [vmem:[%s2767_s9 + $0x828] sm:$0xff]  ;;  %v610_v24 = vld [vmem:[%s2767_s9 + $0x840] sm:$0xff]  ;;  %v612_v25 = vld [vmem:[%s2767_s9 + $0x858] sm:$0xff] }
  0x31   : > { %493 = vst [vmem:[%s2772_s10 + $0xe8] sm:$0xff] %v492_v29  ;;  %v614_v26 = vld [vmem:[%s2767_s9 + $0x870] sm:$0xff]  ;;  %v616_v27 = vld [vmem:[%s2767_s9 + $0x888] sm:$0xff]  ;;  %v618_v28 = vld [vmem:[%s2767_s9 + $0x8a0] sm:$0xff] }
  0x32   : > { %495 = vst [vmem:[%s2772_s10 + $0xf0] sm:$0xff] %v494_v30  ;;  %v620_v29 = vld [vmem:[%s2767_s9 + $0x8b8] sm:$0xff]  ;;  %v622_v30 = vld [vmem:[%s2767_s9 + $0x8d0] sm:$0xff] }
  0x33   : > { %497 = vst [vmem:[%s2772_s10 + $0xf8] sm:$0xff] %v496_v31  ;;  %v624_v31 = vld [vmem:[%s2767_s9 + $0x8e8] sm:$0xff] }
  0x34   : > { %499 = vst [vmem:[%s2772_s10 + $0x100] sm:$0xff] %v498_v32 }
  0x35   : > { %501 = vst [vmem:[%s2772_s10 + $0x108] sm:$0xff] %v500_v33 }
  0x36   : > { %503 = vst [vmem:[%s2772_s10 + $0x110] sm:$0xff] %v502_v34 }
  0x37   : > { %505 = vst [vmem:[%s2772_s10 + $0x118] sm:$0xff] %v504_v35 }
  0x38   : > { %507 = vst [vmem:[%s2772_s10 + $0x120] sm:$0xff] %v506_v36 }
  0x39   : > { %509 = vst [vmem:[%s2772_s10 + $0x128] sm:$0xff] %v508_v37 }
  0x3a   : > { %511 = vst [vmem:[%s2772_s10 + $0x130] sm:$0xff] %v510_v38 }
  0x3b   : > { %513 = vst [vmem:[%s2772_s10 + $0x138] sm:$0xff] %v512_v39 }
  0x3c   : > { %515 = vst [vmem:[%s2772_s10 + $0x140] sm:$0xff] %v514_v40 }
  0x3d   : > { %517 = vst [vmem:[%s2772_s10 + $0x148] sm:$0xff] %v516_v41 }
  0x3e   : > { %519 = vst [vmem:[%s2772_s10 + $0x150] sm:$0xff] %v518_v42 }
  0x3f   : > { %521 = vst [vmem:[%s2772_s10 + $0x158] sm:$0xff] %v520_v43 }
  0x40   : > { %523 = vst [vmem:[%s2772_s10 + $0x160] sm:$0xff] %v522_v44 }
  0x41   : > { %525 = vst [vmem:[%s2772_s10 + $0x168] sm:$0xff] %v524_v45 }
  0x42   : > { %527 = vst [vmem:[%s2772_s10 + $0x170] sm:$0xff] %v526_v46 }
  0x43   : > { %529 = vst [vmem:[%s2772_s10 + $0x178] sm:$0xff] %v528_v47 }
  0x44   : > { %531 = vst [vmem:[%s2772_s10 + $0x180] sm:$0xff] %v530_v48 }
  0x45   : > { %533 = vst [vmem:[%s2772_s10 + $0x188] sm:$0xff] %v532_v49 }
  0x46   : > { %535 = vst [vmem:[%s2772_s10 + $0x190] sm:$0xff] %v534_v50 }
  0x47   : > { %537 = vst [vmem:[%s2772_s10 + $0x198] sm:$0xff] %v536_v51 }
  0x48   : > { %539 = vst [vmem:[%s2772_s10 + $0x1a0] sm:$0xff] %v538_v52 }
  0x49   : > { %541 = vst [vmem:[%s2772_s10 + $0x1a8] sm:$0xff] %v540_v53 }
  0x4a   : > { %543 = vst [vmem:[%s2772_s10 + $0x1b0] sm:$0xff] %v542_v54 }
  0x4b   : > { %545 = vst [vmem:[%s2772_s10 + $0x1b8] sm:$0xff] %v544_v55 }
  0x4c   : > { %547 = vst [vmem:[%s2772_s10 + $0x1c0] sm:$0xff] %v546_v56 }
  0x4d   : > { %549 = vst [vmem:[%s2772_s10 + $0x1c8] sm:$0xff] %v548_v57 }
  0x4e   : > { %551 = vst [vmem:[%s2772_s10 + $0x1d0] sm:$0xff] %v550_v58 }
  0x4f   : > { %553 = vst [vmem:[%s2772_s10 + $0x1d8] sm:$0xff] %v552_v59 }
  0x50   : > { %555 = vst [vmem:[%s2772_s10 + $0x1e0] sm:$0xff] %v554_v60 }
  0x51   : > { %557 = vst [vmem:[%s2772_s10 + $0x1e8] sm:$0xff] %v556_v61 }
  0x52   : > { %559 = vst [vmem:[%s2772_s10 + $0x1f0] sm:$0xff] %v558_v62 }
  0x53   : > { %561 = vst [vmem:[%s2772_s10 + $0x1f8] sm:$0xff] %v560_v63 }
  0x54   : > { %563 = vst [vmem:[%s2772_s10 + $0x200] sm:$0xff] %v562_v0 }
  0x55   : > { %565 = vst [vmem:[%s2772_s10 + $0x208] sm:$0xff] %v564_v1 }
  0x56   : > { %567 = vst [vmem:[%s2772_s10 + $0x210] sm:$0xff] %v566_v2 }
  0x57   : > { %569 = vst [vmem:[%s2772_s10 + $0x218] sm:$0xff] %v568_v3 }
  0x58   : > { %571 = vst [vmem:[%s2772_s10 + $0x220] sm:$0xff] %v570_v4 }
  0x59   : > { %573 = vst [vmem:[%s2772_s10 + $0x228] sm:$0xff] %v572_v5 }
  0x5a   : > { %575 = vst [vmem:[%s2772_s10 + $0x230] sm:$0xff] %v574_v6 }
  0x5b   : > { %577 = vst [vmem:[%s2772_s10 + $0x238] sm:$0xff] %v576_v7 }
  0x5c   : > { %579 = vst [vmem:[%s2772_s10 + $0x240] sm:$0xff] %v578_v8 }
  0x5d   : > { %581 = vst [vmem:[%s2772_s10 + $0x248] sm:$0xff] %v580_v9 }
  0x5e   : > { %583 = vst [vmem:[%s2772_s10 + $0x250] sm:$0xff] %v582_v10 }
  0x5f   : > { %585 = vst [vmem:[%s2772_s10 + $0x258] sm:$0xff] %v584_v11 }
  0x60   : > { %587 = vst [vmem:[%s2772_s10 + $0x260] sm:$0xff] %v586_v12 }
  0x61   : > { %589 = vst [vmem:[%s2772_s10 + $0x268] sm:$0xff] %v588_v13 }
  0x62   : > { %591 = vst [vmem:[%s2772_s10 + $0x270] sm:$0xff] %v590_v14 }
  0x63   : > { %593 = vst [vmem:[%s2772_s10 + $0x278] sm:$0xff] %v592_v15 }
  0x64   : > { %595 = vst [vmem:[%s2772_s10 + $0x280] sm:$0xff] %v594_v16 }
  0x65   : > { %597 = vst [vmem:[%s2772_s10 + $0x288] sm:$0xff] %v596_v17 }
  0x66   : > { %599 = vst [vmem:[%s2772_s10 + $0x290] sm:$0xff] %v598_v18 }
  0x67   : > { %601 = vst [vmem:[%s2772_s10 + $0x298] sm:$0xff] %v600_v19 }
  0x68   : > { %603 = vst [vmem:[%s2772_s10 + $0x2a0] sm:$0xff] %v602_v20 }
  0x69   : > { %605 = vst [vmem:[%s2772_s10 + $0x2a8] sm:$0xff] %v604_v21 }
  0x6a   : > { %607 = vst [vmem:[%s2772_s10 + $0x2b0] sm:$0xff] %v606_v22 }
  0x6b   : > { %609 = vst [vmem:[%s2772_s10 + $0x2b8] sm:$0xff] %v608_v23 }
  0x6c   : > { %611 = vst [vmem:[%s2772_s10 + $0x2c0] sm:$0xff] %v610_v24 }
  0x6d   : > { %613 = vst [vmem:[%s2772_s10 + $0x2c8] sm:$0xff] %v612_v25 }
  0x6e   : > { %615 = vst [vmem:[%s2772_s10 + $0x2d0] sm:$0xff] %v614_v26 }
  0x6f   : > { %617 = vst [vmem:[%s2772_s10 + $0x2d8] sm:$0xff] %v616_v27 }
  0x70   : > { %619 = vst [vmem:[%s2772_s10 + $0x2e0] sm:$0xff] %v618_v28 }
  0x71   : > { %621 = vst [vmem:[%s2772_s10 + $0x2e8] sm:$0xff] %v620_v29 }
  0x72   : > { %623 = vst [vmem:[%s2772_s10 + $0x2f0] sm:$0xff] %v622_v30 }
  0x73   : > { %625 = vst [vmem:[%s2772_s10 + $0x2f8] sm:$0xff] %v624_v31 }
  0x74 PF: > { %p2044_p8 = scmp.ge.s32.totalorder %s2686_s22, 1  ;;  %p638_p9 = scmp.lt.s32.totalorder %s2686_s22, 4 }
  0x76   : > { %p639_p10 = pnand %p2044_p8, %p638_p9 }
  0x77   : > { %s645_s11 = sand.u32 (!%p639_p10), 1, %s2670_s18   ;;  %s2046_s12 = sshll.u32 (!%p639_p10), %s2678_s20, 1 }
  0x78   : > { %642 = sbr.rel (%p639_p10) target bundleno = 714 (0x2ca), region = 74  ;;  %s2045_s14 = sshll.u32 (!%p639_p10), %s645_s11, 6 }
  0x79   : > { %s2596_s13 = smul.u32 (!%p639_p10), 768, %s645_s11  ;;  %p690_p11 = scmp.lt.s32.totalorder (!%p639_p10), %s2046_s12, 5 }
  0x7a   : > { %s2975_s25 = scalar_lea.vmem (!%p639_p10), [#allocation4], %s2045_s14  ;;  %p2047_p12 = scmp.ne.s32.totalorder (!%p639_p10), %s2678_s20, 0 }
  0x7b   : > { %s2973_s24 = scalar_lea.vmem (!%p639_p10), [#allocation3], %s2596_s13 }
  0x7d   : > { %s3645_s12 = smov (!%p690_p11, %s2046_s12), 5  ;;  %699 = sbr.rel (%p2047_p12) target bundleno = 445 (0x1bd), region = 82 }
  0x7e   : > { %s692_s17 = scalar_lea.vmem %s3635_s4, %s3645_s12 }
  0x82   : > { %v712_v32 = vld [vmem:[%s3631_s0 + $0x60] sm:$0xff]  ;;  %v713_v33 = vld [vmem:[%s3631_s0 + $0x68] sm:$0xff]  ;;  %v714_v34 = vld [vmem:[%s3631_s0 + $0x70] sm:$0xff]  ;;  %v2688_v12 = vmov 768.0  }
  0x83   : > { %v715_v35 = vld [vmem:[%s3631_s0 + $0x78] sm:$0xff]  ;;  %v738_v36 = vadd.f32 %v713_v33, %v712_v32  ;;  %v2993_v37 = vld [vmem:[%s3631_s0] sm:$0xff]  ;;  %v2998_v38 = vld [vmem:[%s3631_s0 + $0x8] sm:$0xff]  ;;  %2638 = vrcp.f32 %v2688_v12 }
  0x84   : > { %v3003_v39 = vld [vmem:[%s3631_s0 + $0x10] sm:$0xff]  ;;  %v716_v40 = vld [vmem:[%s3631_s0 + $0x80] sm:$0xff]  ;;  %v3011_v42 = vld [vmem:[%s3631_s0 + $0x18] sm:$0xff]  ;;  %v724_v43 = vadd.f32 %v2998_v38, %v2993_v37 }
  0x85   : > { %v739_v41 = vadd.f32 %v738_v36, %v714_v34  ;;  %v3018_v44 = vld [vmem:[%s3631_s0 + $0x90] sm:$0xff]  ;;  %v3023_v45 = vld [vmem:[%s3631_s0 + $0x98] sm:$0xff]  ;;  %v3028_v46 = vld [vmem:[%s3631_s0 + $0xa0] sm:$0xff] }
  0x86   : > { %v717_v47 = vld [vmem:[%s3631_s0 + $0x88] sm:$0xff]  ;;  %v3036_v49 = vld [vmem:[%s3631_s0 + $0x20] sm:$0xff]  ;;  %v725_v50 = vadd.f32 %v724_v43, %v3003_v39  ;;  %v745_v52 = vadd.f32 %v3023_v45, %v3018_v44  ;;  %v3049_v53 = vld [vmem:[%s3631_s0 + $0x30] sm:$0xff] }
  0x87   : > { %v740_v48 = vadd.f32 %v739_v41, %v715_v35  ;;  %v3042_v51 = vld [vmem:[%s3631_s0 + $0xa8] sm:$0xff]  ;;  %v3054_v54 = vld [vmem:[%s3631_s0 + $0x38] sm:$0xff]  ;;  %v3059_v55 = vld [vmem:[%s3631_s0 + $0x40] sm:$0xff] }
  0x88   : > { %v726_v57 = vadd.f32 %v725_v50, %v3011_v42  ;;  %v746_v58 = vadd.f32 %v745_v52, %v3028_v46  ;;  %v731_v59 = vadd.f32 %v3054_v54, %v3049_v53  ;;  %v3068_v60 = vld [vmem:[%s3631_s0 + $0x28] sm:$0xff]  ;;  %v3073_v61 = vld [vmem:[%s3631_s0 + $0xb0] sm:$0xff]  ;;  %v3094_v7 = vld [vmem:[%s3631_s0 + $0xb8] sm:$0xff] }
  0x89   : > { %v741_v56 = vadd.f32 %v740_v48, %v716_v40  ;;  %v3078_v62 = vld [vmem:[%s3631_s0 + $0x48] sm:$0xff]  ;;  %v3086_v3 = vld [vmem:[%s3631_s0 + $0x50] sm:$0xff]  ;;  %v3100_v9 = vld [vmem:[%s3631_s0 + $0x58] sm:$0xff]  ;;  %v2639_v13 = vpop.eup %2638 }
  0x8a   : > { %v727_v0 = vadd.f32 %v726_v57, %v3036_v49  ;;  %v747_v1 = vadd.f32 %v746_v58, %v3042_v51  ;;  %v732_v2 = vadd.f32 %v731_v59, %v3059_v55  ;;  %v753_v14 = vmul.f32 768.0, %v2639_v13 }
  0x8b   : > { %v742_v63 = vadd.f32 %v741_v56, %v717_v47  ;;  %vm757_vm0 = vweird.f32 %v2639_v13 }
  0x8c   : > { %v728_v4 = vadd.f32 %v727_v0, %v3068_v60  ;;  %v748_v5 = vadd.f32 %v747_v1, %v3073_v61  ;;  %v733_v6 = vadd.f32 %v732_v2, %v3078_v62  ;;  %v754_v15 = vsub.f32 1.0, %v753_v14 }
  0x8d   : > { %743 = vadd.xlane.f32.xlu1 %v742_v63 }
  0x8e   : > { %729 = vadd.xlane.f32.xlu0 %v728_v4  ;;  %v734_v8 = vadd.f32 %v733_v6, %v3086_v3  ;;  %v749_v10 = vadd.f32 %v748_v5, %v3094_v7  ;;  %v755_v16 = vmul.f32 %v2639_v13, %v754_v15 }
  0x90   : > { %v735_v11 = vadd.f32 %v734_v8, %v3100_v9  ;;  %v756_v17 = vadd.f32 %v2639_v13, %v755_v16 }
  0x92   : > { %v3104_v18 = vsel %vm757_vm0, %v2639_v13, %v756_v17 }
  0x95   : > { %750 = vadd.xlane.f32.xlu1 %v749_v10 }
  0x96   : > { %736 = vadd.xlane.f32.xlu0 %v735_v11 }
 0x100   : > { %v744_v19 = vpop.xlane.xlu1 %743 }
 0x101   : > { %v761_v20 = vmul.f32 %v3104_v18, %v744_v19  ;;  %v730_v21 = vpop.xlane.xlu0 %729 }
 0x102   : > { %v759_v22 = vmul.f32 %v3104_v18, %v730_v21 }
 0x103   : > { %v3108_v23 = vsub.f32 %v712_v32, %v761_v20  ;;  %v3110_v24 = vsub.f32 %v713_v33, %v761_v20  ;;  %v3112_v25 = vsub.f32 %v714_v34, %v761_v20  ;;  %v3114_v26 = vsub.f32 %v715_v35, %v761_v20 }
 0x104   : > { %v3116_v27 = vsub.f32 %v716_v40, %v761_v20  ;;  %v3123_v30 = vsub.f32 %v2993_v37, %v759_v22  ;;  %v3125_v31 = vsub.f32 %v717_v47, %v761_v20  ;;  %v3128_v32 = vsub.f32 %v2998_v38, %v759_v22 }
 0x105   : > { %v799_v28 = vmul.f32 %v3108_v23, %v3108_v23  ;;  %v800_v29 = vmul.f32 %v3110_v24, %v3110_v24  ;;  %v801_v33 = vmul.f32 %v3112_v25, %v3112_v25  ;;  %v3133_v35 = vsub.f32 %v3003_v39, %v759_v22 }
 0x106   : > { %v3136_v40 = vsub.f32 %v3011_v42, %v759_v22  ;;  %v787_v37 = vmul.f32 %v3123_v30, %v3123_v30  ;;  %v788_v41 = vmul.f32 %v3128_v32, %v3128_v32  ;;  %v802_v43 = vmul.f32 %v3114_v26, %v3114_v26 }
 0x107   : > { %v825_v34 = vadd.f32 %v800_v29, %v799_v28  ;;  %v803_v47 = vmul.f32 %v3116_v27, %v3116_v27  ;;  %v804_v42 = vmul.f32 %v3125_v31, %v3125_v31  ;;  %v3150_v50 = vsub.f32 %v3036_v49, %v759_v22 }
 0x108   : > { %v751_v36 = vpop.xlane.xlu1 %750  ;;  %v789_v52 = vmul.f32 %v3133_v35, %v3133_v35  ;;  %v811_v56 = vadd.f32 %v788_v41, %v787_v37  ;;  %v3162_v0 = vsub.f32 %v3068_v60, %v759_v22  ;;  %v790_v49 = vmul.f32 %v3136_v40, %v3136_v40 }
 0x109   : > { %v762_v38 = vmul.f32 %v3104_v18, %v751_v36  ;;  %v826_v39 = vadd.f32 %v825_v34, %v801_v33  ;;  %v737_v48 = vpop.xlane.xlu0 %736  ;;  %v791_v60 = vmul.f32 %v3150_v50, %v3150_v50 }
 0x10a   : > { %v760_v57 = vmul.f32 %v3104_v18, %v737_v48  ;;  %v812_v1 = vadd.f32 %v811_v56, %v789_v52  ;;  %v792_v12 = vmul.f32 %v3162_v0, %v3162_v0 }
 0x10b   : > { %v827_v58 = vadd.f32 %v826_v39, %v802_v43  ;;  %v3156_v59 = vsub.f32 %v3018_v44, %v762_v38  ;;  %v3159_v63 = vsub.f32 %v3023_v45, %v762_v38  ;;  %v3167_v2 = vsub.f32 %v3028_v46, %v762_v38 }
 0x10c   : > { %v3170_v5 = vsub.f32 %v3042_v51, %v762_v38  ;;  %v813_v6 = vadd.f32 %v812_v1, %v790_v49  ;;  %v3179_v8 = vsub.f32 %v3073_v61, %v762_v38  ;;  %v3184_v51 = vsub.f32 %v3049_v53, %v760_v57 }
 0x10d   : > { %v828_v4 = vadd.f32 %v827_v58, %v803_v47  ;;  %v805_v44 = vmul.f32 %v3156_v59, %v3156_v59  ;;  %v806_v45 = vmul.f32 %v3159_v63, %v3159_v63  ;;  %v807_v46 = vmul.f32 %v3167_v2, %v3167_v2 }
 0x10e   : > { %v814_v13 = vadd.f32 %v813_v6, %v791_v60  ;;  %v3189_v14 = vsub.f32 %v3054_v54, %v760_v57  ;;  %v3192_v15 = vsub.f32 %v3059_v55, %v760_v57  ;;  %v3195_v61 = vsub.f32 %v3094_v7, %v762_v38 }
 0x10f   : > { %v829_v10 = vadd.f32 %v828_v4, %v804_v42  ;;  %v832_v11 = vadd.f32 %v806_v45, %v805_v44  ;;  %v808_v16 = vmul.f32 %v3170_v5, %v3170_v5  ;;  %v793_v53 = vmul.f32 %v3184_v51, %v3184_v51  ;;  %v911_v44 = vld [vmem:[%s3632_s1] sm:$0x3f] }
 0x110   : > { %v815_v19 = vadd.f32 %v814_v13, %v792_v12  ;;  %v3202_v20 = vsub.f32 %v3078_v62, %v760_v57  ;;  %v794_v54 = vmul.f32 %v3189_v14, %v3189_v14  ;;  %v809_v55 = vmul.f32 %v3179_v8, %v3179_v8  ;;  %v949_v13 = vld [vmem:[%s3633_s2] sm:$0x3f] }
 0x111   : > { %830 = vadd.xlane.f32.xlu0 %v829_v10  ;;  %v833_v17 = vadd.f32 %v832_v11, %v807_v46  ;;  %v3209_v7 = vsub.f32 %v3086_v3, %v760_v57  ;;  %v795_v22 = vmul.f32 %v3192_v15, %v3192_v15  ;;  %v810_v29 = vmul.f32 %v3195_v61, %v3195_v61 }
 0x112   : > { %816 = vadd.xlane.f32.xlu2 %v815_v19  ;;  %v818_v28 = vadd.f32 %v794_v54, %v793_v53  ;;  %v3216_v33 = vsub.f32 %v3100_v9, %v760_v57  ;;  %v796_v34 = vmul.f32 %v3202_v20, %v3202_v20  ;;  %v3234_v11 = vperm.slane %v911_v44, 0 }
 0x113   : > { %v834_v21 = vadd.f32 %v833_v17, %v808_v16  ;;  %v797_v3 = vmul.f32 %v3209_v7, %v3209_v7  ;;  %v3236_v12 = vperm.slane %v911_v44, 1  ;;  %v3241_v17 = vperm.slane %v911_v44, 2 }
 0x114   : > { %v819_v36 = vadd.f32 %v818_v28, %v795_v22  ;;  %v798_v38 = vmul.f32 %v3216_v33, %v3216_v33  ;;  %v3243_v53 = vperm.slane %v911_v44, 3  ;;  %v3245_v19 = vperm.slane %v911_v44, 4 }
 0x115   : > { %v835_v62 = vadd.f32 %v834_v21, %v809_v55  ;;  %v3247_v55 = vperm.slane %v911_v44, 5  ;;  %v3253_v28 = vperm.slane %v949_v13, 0 }
 0x116   : > { %v820_v41 = vadd.f32 %v819_v36, %v796_v34  ;;  %v3259_v36 = vperm.slane %v949_v13, 3 }
 0x117   : > { %v836_v37 = vadd.f32 %v835_v62, %v810_v29  ;;  %v3255_v29 = vperm.slane %v949_v13, 1  ;;  %v3257_v62 = vperm.slane %v949_v13, 2 }
 0x118   : > { %v821_v43 = vadd.f32 %v820_v41, %v797_v3  ;;  %v3263_v41 = vperm.slane %v949_v13, 4 }
 0x119   : > { %837 = vadd.xlane.f32.xlu1 %v836_v37 }
 0x11a   : > { %v822_v47 = vadd.f32 %v821_v43, %v798_v38  ;;  %v3265_v38 = vperm.slane %v949_v13, 5 }
 0x11c   : > { %823 = vadd.xlane.f32.xlu2 %v822_v47 }
 0x184   : > { %v831_v39 = vpop.xlane.xlu0 %830 }
 0x185   : > { %v841_v9 = vmul.f32 %v831_v39, %v3104_v18  ;;  %v817_v48 = vpop.xlane.xlu2 %816 }
 0x186   : > { %v839_v52 = vmul.f32 %v817_v48, %v3104_v18 }
 0x187   : > { %v845_v42 = vadd.f32 1e-06, %v841_v9 }
 0x188   : > { %v843_v56 = vadd.f32 1e-06, %v839_v52 }
 0x189   : > { %2640 = vrsqrt.f32 %v845_v42  ;;  %vm873_vm2 = vweird.f32 %v845_v42 }
 0x18a   : > { %2642 = vrsqrt.f32 %v843_v56  ;;  %vm853_vm5 = vweird.f32 %v843_v56 }
 0x18c   : > { %v838_v57 = vpop.xlane.xlu1 %837 }
 0x18d   : > { %v842_v58 = vmul.f32 %v838_v57, %v3104_v18 }
 0x18f   : > { %v2641_v49 = vpop.eup %2640  ;;  %v3227_v1 = vadd.f32 1e-06, %v842_v58  ;;  %v824_v45 = vpop.xlane.xlu2 %823 }
 0x190   : > { %v868_v4 = vmul.f32 %v2641_v49, %v845_v42  ;;  %v2643_v60 = vpop.eup %2642  ;;  %v840_v10 = vmul.f32 %v824_v45, %v3104_v18  ;;  %vm874_vm1 = vweird.f32 %v2641_v49 }
 0x191   : > { %2644 = vrsqrt.f32 %v3227_v1  ;;  %v848_v46 = vmul.f32 %v2643_v60, %v843_v56  ;;  %vm854_vm3 = vweird.f32 %v2643_v60  ;;  %vm875_vm4 = vmor %vm873_vm2, %vm874_vm1  ;;  %vm883_vm8 = vweird.f32 %v3227_v1 }
 0x192   : > { %v869_v6 = vmul.f32 %v2641_v49, %v868_v4  ;;  %v3249_v21 = vadd.f32 1e-06, %v840_v10  ;;  %vm855_vm6 = vmor %vm853_vm5, %vm854_vm3 }
 0x193   : > { %v849_v54 = vmul.f32 %v2643_v60, %v848_v46 }
 0x194   : > { %v870_v16 = vmul.f32 0.5, %v869_v6  ;;  %2646 = vrsqrt.f32 %v3249_v21  ;;  %vm863_vm11 = vweird.f32 %v3249_v21 }
 0x195   : > { %v850_v34 = vmul.f32 0.5, %v849_v54 }
 0x196   : > { %v871_v18 = vsub.f32 1.5, %v870_v16 }
 0x197   : > { %v3251_v22 = vpop.eup %2644  ;;  %v851_v43 = vsub.f32 1.5, %v850_v34 }
 0x198   : > { %v872_v37 = vmul.f32 %v2641_v49, %v871_v18  ;;  %v878_v3 = vmul.f32 %v3251_v22, %v3227_v1  ;;  %vm884_vm7 = vweird.f32 %v3251_v22 }
 0x199   : > { %v852_v9 = vmul.f32 %v2643_v60, %v851_v43  ;;  %vm885_vm9 = vmor %vm883_vm8, %vm884_vm7 }
 0x19a   : > { %v876_v47 = vsel %vm875_vm4, %v2641_v49, %v872_v37  ;;  %v879_v39 = vmul.f32 %v3251_v22, %v878_v3  ;;  %v3288_v46 = vpop.eup %2646 }
 0x19b   : > { %v899_v48 = vmul.f32 %v876_v47, %v3108_v23  ;;  %v900_v42 = vmul.f32 %v876_v47, %v3110_v24  ;;  %v901_v52 = vmul.f32 %v876_v47, %v3112_v25  ;;  %v902_v57 = vmul.f32 %v876_v47, %v3114_v26 }
 0x19c   : > { %v903_v58 = vmul.f32 %v876_v47, %v3116_v27  ;;  %v904_v4 = vmul.f32 %v876_v47, %v3125_v31  ;;  %v880_v56 = vmul.f32 0.5, %v879_v39  ;;  %v856_v49 = vsel %vm855_vm6, %v2643_v60, %v852_v9 }
 0x19d   : > { %v937_v44 = vmul.f32 %v3234_v11, %v899_v48  ;;  %v938_v45 = vmul.f32 %v3236_v12, %v900_v42  ;;  %v939_v6 = vmul.f32 %v3241_v17, %v901_v52  ;;  %v887_v23 = vmul.f32 %v856_v49, %v3123_v30 }
 0x19e   : > { %v888_v24 = vmul.f32 %v856_v49, %v3128_v32  ;;  %v889_v25 = vmul.f32 %v856_v49, %v3133_v35  ;;  %v890_v26 = vmul.f32 %v856_v49, %v3136_v40  ;;  %v891_v27 = vmul.f32 %v856_v49, %v3150_v50 }
 0x19f   : > { %v892_v31 = vmul.f32 %v856_v49, %v3162_v0  ;;  %v940_v60 = vmul.f32 %v3243_v53, %v902_v57  ;;  %v941_v10 = vmul.f32 %v3245_v19, %v903_v58  ;;  %v925_v13 = vmul.f32 %v3234_v11, %v887_v23 }
 0x1a0   : > { %v926_v30 = vmul.f32 %v3236_v12, %v888_v24  ;;  %v927_v32 = vmul.f32 %v3241_v17, %v889_v25  ;;  %v928_v35 = vmul.f32 %v3243_v53, %v890_v26  ;;  %v929_v40 = vmul.f32 %v3245_v19, %v891_v27 }
 0x1a1   : > { %v930_v50 = vmul.f32 %v3247_v55, %v892_v31  ;;  %v942_v0 = vmul.f32 %v3247_v55, %v904_v4  ;;  %v975_v16 = vadd.f32 %v3253_v28, %v937_v44  ;;  %v963_v54 = vadd.f32 %v3253_v28, %v925_v13 }
 0x1a2   : > { %v964_v18 = vadd.f32 %v3255_v29, %v926_v30  ;;  %v965_v34 = vadd.f32 %v3257_v62, %v927_v32  ;;  %v966_v37 = vadd.f32 %v3259_v36, %v928_v35  ;;  %v967_v3 = vadd.f32 %v3263_v41, %v929_v40 }
 0x1a3   : > { %v968_v43 = vadd.f32 %v3265_v38, %v930_v50  ;;  %v976_v47 = vadd.f32 %v3255_v29, %v938_v45  ;;  %v977_v39 = vadd.f32 %v3257_v62, %v939_v6  ;;  %v978_v42 = vadd.f32 %v3259_v36, %v940_v60 }
 0x1a4   : > { %v987_v9 = vpack.c.bf16 %v964_v18, %v963_v54  ;;  %v988_v48 = vpack.c.bf16 %v966_v37, %v965_v34  ;;  %v979_v52 = vadd.f32 %v3263_v41, %v941_v10  ;;  %v980_v58 = vadd.f32 %v3265_v38, %v942_v0 }
 0x1a5   : > { %v989_v57 = vpack.c.bf16 %v968_v43, %v967_v3  ;;  %v993_v4 = vpack.c.bf16 %v976_v47, %v975_v16  ;;  %v881_v49 = vsub.f32 1.5, %v880_v56  ;;  %v994_v44 = vpack.c.bf16 %v978_v42, %v977_v39 }
 0x1a6   : > { %999 = vst [vmem:[#allocation2] sm:$0xff] %v987_v9  ;;  %v858_v23 = vmul.f32 %v3288_v46, %v3249_v21  ;;  %v995_v45 = vpack.c.bf16 %v980_v58, %v979_v52  ;;  %vm864_vm10 = vweird.f32 %v3288_v46 }
 0x1a7   : > { %1000 = vst [vmem:[#allocation2 + $0x8] sm:$0xff] %v988_v48  ;;  %v882_v6 = vmul.f32 %v3251_v22, %v881_v49  ;;  %vm865_vm12 = vmor %vm863_vm11, %vm864_vm10 }
 0x1a8   : > { %1001 = vst [vmem:[#allocation2 + $0x10] sm:$0xff] %v989_v57  ;;  %v859_v24 = vmul.f32 %v3288_v46, %v858_v23 }
 0x1a9   : > { %1005 = vst [vmem:[#allocation2 + $0x30] sm:$0xff] %v993_v4  ;;  %v886_v56 = vsel %vm885_vm9, %v3251_v22, %v882_v6 }
 0x1aa   : > { %1006 = vst [vmem:[#allocation2 + $0x38] sm:$0xff] %v994_v44  ;;  %v905_v25 = vmul.f32 %v886_v56, %v3156_v59  ;;  %v906_v26 = vmul.f32 %v886_v56, %v3159_v63  ;;  %v907_v27 = vmul.f32 %v886_v56, %v3167_v2  ;;  %v908_v31 = vmul.f32 %v886_v56, %v3170_v5 }
 0x1ab   : > { %1007 = vst [vmem:[#allocation2 + $0x40] sm:$0xff] %v995_v45  ;;  %v909_v1 = vmul.f32 %v886_v56, %v3179_v8  ;;  %v910_v60 = vmul.f32 %v886_v56, %v3195_v61  ;;  %v860_v10 = vmul.f32 0.5, %v859_v24 }
 0x1ac   : > { %v943_v13 = vmul.f32 %v3234_v11, %v905_v25  ;;  %v944_v30 = vmul.f32 %v3236_v12, %v906_v26  ;;  %v945_v22 = vmul.f32 %v3241_v17, %v907_v27  ;;  %v946_v59 = vmul.f32 %v3243_v53, %v908_v31 }
 0x1ad   : > { %v947_v63 = vmul.f32 %v3245_v19, %v909_v1  ;;  %v948_v2 = vmul.f32 %v3247_v55, %v910_v60  ;;  %v861_v32 = vsub.f32 1.5, %v860_v10 }
 0x1ae   : > { %v981_v5 = vadd.f32 %v3253_v28, %v943_v13  ;;  %v982_v8 = vadd.f32 %v3255_v29, %v944_v30  ;;  %v983_v61 = vadd.f32 %v3257_v62, %v945_v22  ;;  %v984_v35 = vadd.f32 %v3259_v36, %v946_v59 }
 0x1af   : > { %v985_v40 = vadd.f32 %v3263_v41, %v947_v63  ;;  %v986_v50 = vadd.f32 %v3265_v38, %v948_v2  ;;  %v862_v0 = vmul.f32 %v3288_v46, %v861_v32 }
 0x1b0   : > { %v996_v16 = vpack.c.bf16 %v982_v8, %v981_v5  ;;  %v997_v54 = vpack.c.bf16 %v984_v35, %v983_v61 }
 0x1b1   : > { %v998_v18 = vpack.c.bf16 %v986_v50, %v985_v40  ;;  %v866_v34 = vsel %vm865_vm12, %v3288_v46, %v862_v0 }
 0x1b2   : > { %1008 = vst [vmem:[#allocation2 + $0x48] sm:$0xff] %v996_v16  ;;  %v893_v37 = vmul.f32 %v866_v34, %v3184_v51  ;;  %v894_v3 = vmul.f32 %v866_v34, %v3189_v14  ;;  %v895_v43 = vmul.f32 %v866_v34, %v3192_v15  ;;  %v896_v47 = vmul.f32 %v866_v34, %v3202_v20 }
 0x1b3   : > { %1009 = vst [vmem:[#allocation2 + $0x50] sm:$0xff] %v997_v54  ;;  %v897_v39 = vmul.f32 %v866_v34, %v3209_v7  ;;  %v898_v21 = vmul.f32 %v866_v34, %v3216_v33 }
 0x1b4   : > { %1010 = vst [vmem:[#allocation2 + $0x58] sm:$0xff] %v998_v18  ;;  %v931_v9 = vmul.f32 %v3234_v11, %v893_v37  ;;  %v932_v48 = vmul.f32 %v3236_v12, %v894_v3  ;;  %v933_v46 = vmul.f32 %v3241_v17, %v895_v43  ;;  %v934_v51 = vmul.f32 %v3243_v53, %v896_v47 }
 0x1b5   : > { %v935_v14 = vmul.f32 %v3245_v19, %v897_v39  ;;  %v936_v15 = vmul.f32 %v3247_v55, %v898_v21 }
 0x1b6   : > { %v969_v20 = vadd.f32 %v3253_v28, %v931_v9  ;;  %v970_v42 = vadd.f32 %v3255_v29, %v932_v48  ;;  %v971_v7 = vadd.f32 %v3257_v62, %v933_v46  ;;  %v972_v33 = vadd.f32 %v3259_v36, %v934_v51 }
 0x1b7   : > { %v973_v11 = vadd.f32 %v3263_v41, %v935_v14  ;;  %v974_v12 = vadd.f32 %v3265_v38, %v936_v15 }
 0x1b8   : > { %v990_v52 = vpack.c.bf16 %v970_v42, %v969_v20  ;;  %v991_v17 = vpack.c.bf16 %v972_v33, %v971_v7 }
 0x1b9   : > { %v992_v57 = vpack.c.bf16 %v974_v12, %v973_v11 }
 0x1ba   : > { %1002 = vst [vmem:[#allocation2 + $0x18] sm:$0xff] %v990_v52 }
 0x1bb   : > { %1003 = vst [vmem:[#allocation2 + $0x20] sm:$0xff] %v991_v17 }
 0x1bc   : > { %1004 = vst [vmem:[#allocation2 + $0x28] sm:$0xff] %v992_v57 }
 0x1bd PF: > { %v2154_v53 = vld [vmem:[%s2973_s24 + $0x70] sm:$0xf]  ;;  %v2513_v19 = vld [vmem:[%s2973_s24 + $0x74] sm:$0xf0]  ;;  %v2146_v49 = vld [vmem:[%s2973_s24 + $0x60] sm:$0xf] }
 0x1be   : > { %v2218_v55 = vld [vmem:[%s2973_s24 + $0xf0] sm:$0xf]  ;;  %v2155_v28 = vor.u32 %v2513_v19, %v2154_v53  ;;  %v2529_v29 = vld [vmem:[%s2973_s24 + $0xf4] sm:$0xf0]  ;;  %v2511_v23 = vld [vmem:[%s2973_s24 + $0x64] sm:$0xf0] }
 0x1bf   : > { %v2282_v62 = vld [vmem:[%s2973_s24 + $0x170] sm:$0xf]  ;;  %v2545_v36 = vld [vmem:[%s2973_s24 + $0x174] sm:$0xf0]  ;;  %v2219_v41 = vor.u32 %v2529_v29, %v2218_v55  ;;  %v2210_v45 = vld [vmem:[%s2973_s24 + $0xe0] sm:$0xf]  ;;  %v2147_v24 = vor.u32 %v2511_v23, %v2146_v49 }
 0x1c0   : > { %v2283_v38 = vor.u32 %v2545_v36, %v2282_v62  ;;  %v2346_v58 = vld [vmem:[%s2973_s24 + $0x1f0] sm:$0xf]  ;;  %v2561_v4 = vld [vmem:[%s2973_s24 + $0x1f4] sm:$0xf0]  ;;  %1665 = vmatpush.bf16.msra.mxu0 %v2155_v28  ;;  %v2527_v6 = vld [vmem:[%s2973_s24 + $0xe4] sm:$0xf0] }
 0x1c1   : > { %v2347_v44 = vor.u32 %v2561_v4, %v2346_v58  ;;  %1684 = vmatpush.bf16.msra.mxu1 %v2219_v41  ;;  %v2211_v56 = vor.u32 %v2527_v6, %v2210_v45  ;;  %v2274_v25 = vld [vmem:[%s2973_s24 + $0x160] sm:$0xf]  ;;  %v2543_v26 = vld [vmem:[%s2973_s24 + $0x164] sm:$0xf0]  ;;  %v2138_v60 = vld [vmem:[%s2973_s24 + $0x50] sm:$0xf] }
 0x1c2   : > { %1703 = vmatpush.bf16.msra.mxu2 %v2283_v38  ;;  %v2338_v27 = vld [vmem:[%s2973_s24 + $0x1e0] sm:$0xf]  ;;  %v2275_v31 = vor.u32 %v2543_v26, %v2274_v25  ;;  %v2559_v1 = vld [vmem:[%s2973_s24 + $0x1e4] sm:$0xf0]  ;;  %v2509_v10 = vld [vmem:[%s2973_s24 + $0x54] sm:$0xf0] }
 0x1c3   : > { %1722 = vmatpush.bf16.msra.mxu3 %v2347_v44  ;;  %v2339_v13 = vor.u32 %v2559_v1, %v2338_v27  ;;  %v2202_v30 = vld [vmem:[%s2973_s24 + $0xd0] sm:$0xf]  ;;  %v2525_v22 = vld [vmem:[%s2973_s24 + $0xd4] sm:$0xf0]  ;;  %v2139_v63 = vor.u32 %v2509_v10, %v2138_v60  ;;  %v2130_v35 = vld [vmem:[%s2973_s24 + $0x40] sm:$0xf] }
 0x1c4   : > { %v2266_v59 = vld [vmem:[%s2973_s24 + $0x150] sm:$0xf]  ;;  %1666 = vmatpush.bf16.msra.mxu0 %v2147_v24  ;;  %v2541_v2 = vld [vmem:[%s2973_s24 + $0x154] sm:$0xf0]  ;;  %v2203_v8 = vor.u32 %v2525_v22, %v2202_v30  ;;  %v2507_v40 = vld [vmem:[%s2973_s24 + $0x44] sm:$0xf0] }
 0x1c5   : > { %v2330_v32 = vld [vmem:[%s2973_s24 + $0x1d0] sm:$0xf]  ;;  %v2557_v5 = vld [vmem:[%s2973_s24 + $0x1d4] sm:$0xf0]  ;;  %1685 = vmatpush.bf16.msra.mxu1 %v2211_v56  ;;  %v2267_v61 = vor.u32 %v2541_v2, %v2266_v59  ;;  %v2194_v50 = vld [vmem:[%s2973_s24 + $0xc0] sm:$0xf]  ;;  %v2131_v3 = vor.u32 %v2507_v40, %v2130_v35 }
 0x1c6   : > { %1704 = vmatpush.bf16.msra.mxu2 %v2275_v31  ;;  %v2331_v0 = vor.u32 %v2557_v5, %v2330_v32  ;;  %v2523_v16 = vld [vmem:[%s2973_s24 + $0xc4] sm:$0xf0]  ;;  %v2258_v54 = vld [vmem:[%s2973_s24 + $0x140] sm:$0xf]  ;;  %v2122_v39 = vld [vmem:[%s2973_s24 + $0x30] sm:$0xf] }
 0x1c7   : > { %1723 = vmatpush.bf16.msra.mxu3 %v2339_v13  ;;  %v2539_v18 = vld [vmem:[%s2973_s24 + $0x144] sm:$0xf0]  ;;  %v2322_v34 = vld [vmem:[%s2973_s24 + $0x1c0] sm:$0xf]  ;;  %v2195_v43 = vor.u32 %v2523_v16, %v2194_v50  ;;  %v2505_v21 = vld [vmem:[%s2973_s24 + $0x34] sm:$0xf0] }
 0x1c8   : > { %v2555_v37 = vld [vmem:[%s2973_s24 + $0x1c4] sm:$0xf0]  ;;  %1667 = vmatpush.bf16.msra.mxu0 %v2139_v63  ;;  %v2259_v47 = vor.u32 %v2539_v18, %v2258_v54  ;;  %v2186_v9 = vld [vmem:[%s2973_s24 + $0xb0] sm:$0xf]  ;;  %v2521_v46 = vld [vmem:[%s2973_s24 + $0xb4] sm:$0xf0]  ;;  %v2123_v42 = vor.u32 %v2505_v21, %v2122_v39 }
 0x1c9   : > { %1686 = vmatpush.bf16.msra.mxu1 %v2203_v8  ;;  %v2323_v48 = vor.u32 %v2555_v37, %v2322_v34  ;;  %v2250_v51 = vld [vmem:[%s2973_s24 + $0x130] sm:$0xf]  ;;  %v2537_v14 = vld [vmem:[%s2973_s24 + $0x134] sm:$0xf0]  ;;  %v2187_v7 = vor.u32 %v2521_v46, %v2186_v9  ;;  %v2114_v11 = vld [vmem:[%s2973_s24 + $0x20] sm:$0xf] }
 0x1ca   : > { %1705 = vmatpush.bf16.msra.mxu2 %v2267_v61  ;;  %v2314_v15 = vld [vmem:[%s2973_s24 + $0x1b0] sm:$0xf]  ;;  %v2553_v20 = vld [vmem:[%s2973_s24 + $0x1b4] sm:$0xf0]  ;;  %v2251_v33 = vor.u32 %v2537_v14, %v2250_v51  ;;  %v2503_v12 = vld [vmem:[%s2973_s24 + $0x24] sm:$0xf0] }
 0x1cb   : > { %1724 = vmatpush.bf16.msra.mxu3 %v2331_v0  ;;  %v2178_v52 = vld [vmem:[%s2973_s24 + $0xa0] sm:$0xf]  ;;  %v2315_v17 = vor.u32 %v2553_v20, %v2314_v15  ;;  %v2519_v57 = vld [vmem:[%s2973_s24 + $0xa4] sm:$0xf0]  ;;  %v2115_v29 = vor.u32 %v2503_v12, %v2114_v11  ;;  %v2106_v41 = vld [vmem:[%s2973_s24 + $0x10] sm:$0xf] }
 0x1cc   : > { %1668 = vmatpush.bf16.msra.mxu0 %v2131_v3  ;;  %v2242_v53 = vld [vmem:[%s2973_s24 + $0x120] sm:$0xf]  ;;  %v2535_v19 = vld [vmem:[%s2973_s24 + $0x124] sm:$0xf0]  ;;  %v2179_v62 = vor.u32 %v2519_v57, %v2178_v52  ;;  %v2501_v38 = vld [vmem:[%s2973_s24 + $0x14] sm:$0xf0] }
 0x1cd   : > { %1687 = vmatpush.bf16.msra.mxu1 %v2195_v43  ;;  %v2306_v55 = vld [vmem:[%s2973_s24 + $0x1a0] sm:$0xf]  ;;  %v2551_v28 = vld [vmem:[%s2973_s24 + $0x1a4] sm:$0xf0]  ;;  %v2243_v36 = vor.u32 %v2535_v19, %v2242_v53  ;;  %v2170_v58 = vld [vmem:[%s2973_s24 + $0x90] sm:$0xf]  ;;  %v2107_v56 = vor.u32 %v2501_v38, %v2106_v41 }
 0x1ce   : > { %1706 = vmatpush.bf16.msra.mxu2 %v2259_v47  ;;  %v2307_v4 = vor.u32 %v2551_v28, %v2306_v55  ;;  %v2517_v49 = vld [vmem:[%s2973_s24 + $0x94] sm:$0xf0]  ;;  %v2234_v44 = vld [vmem:[%s2973_s24 + $0x110] sm:$0xf]  ;;  %v2098_v24 = vld [vmem:[%s2973_s24] sm:$0xf] }
 0x1cf   : > { %1725 = vmatpush.bf16.msra.mxu3 %v2323_v48  ;;  %v2533_v23 = vld [vmem:[%s2973_s24 + $0x114] sm:$0xf0]  ;;  %v2298_v45 = vld [vmem:[%s2973_s24 + $0x190] sm:$0xf]  ;;  %v2499_v25 = vld [vmem:[%s2973_s24 + $0x4] sm:$0xf0]  ;;  %v2171_v31 = vor.u32 %v2517_v49, %v2170_v58 }
 0x1d0   : > { %1669 = vmatpush.bf16.msra.mxu0 %v2123_v42  ;;  %v2549_v6 = vld [vmem:[%s2973_s24 + $0x194] sm:$0xf0]  ;;  %v2162_v26 = vld [vmem:[%s2973_s24 + $0x80] sm:$0xf]  ;;  %v2515_v27 = vld [vmem:[%s2973_s24 + $0x84] sm:$0xf0]  ;;  %v2235_v1 = vor.u32 %v2533_v23, %v2234_v44  ;;  %v2099_v61 = vor.u32 %v2499_v25, %v2098_v24 }
 0x1d1   : > { %1688 = vmatpush.bf16.msra.mxu1 %v2187_v7  ;;  %v2226_v60 = vld [vmem:[%s2973_s24 + $0x100] sm:$0xf]  ;;  %v2531_v10 = vld [vmem:[%s2973_s24 + $0x104] sm:$0xf0]  ;;  %v2299_v30 = vor.u32 %v2549_v6, %v2298_v45  ;;  %v2489_v63 = vld [vmem:[#allocation2 + $0x14] sm:$0xf0]  ;;  %v2163_v0 = vor.u32 %v2515_v27, %v2162_v26 }
 0x1d2   : > { %1707 = vmatpush.bf16.msra.mxu2 %v2251_v33  ;;  %v2290_v13 = vld [vmem:[%s2973_s24 + $0x180] sm:$0xf]  ;;  %v2547_v22 = vld [vmem:[%s2973_s24 + $0x184] sm:$0xf0]  ;;  %v2486_v2 = vld [vmem:[#allocation2 + $0x4] sm:$0xf]  ;;  %v2227_v16 = vor.u32 %v2531_v10, %v2226_v60 }
 0x1d3   : > { %1726 = vmatpush.bf16.msra.mxu3 %v2315_v17  ;;  %v2050_v59 = vld [vmem:[#allocation2] sm:$0xf]  ;;  %v2052_v32 = vld [vmem:[#allocation2 + $0x18] sm:$0xf0]  ;;  %v2512_v5 = vld [vmem:[%s2973_s24 + $0x74] sm:$0xf]  ;;  %v2291_v37 = vor.u32 %v2547_v22, %v2290_v13 }
 0x1d4   : > { %1670 = vmatpush.bf16.msra.mxu0 %v2115_v29  ;;  %v2156_v8 = vld [vmem:[%s2973_s24 + $0x78] sm:$0xf0]  ;;  %v2058_v35 = vld [vmem:[#allocation2 + $0x8] sm:$0xf]  ;;  %v2474_v40 = vld [vmem:[%s2973_s24 + $0x2f0] sm:$0xf]  ;;  %v3428_v21 = vor.u32 %v2489_v63, %v2050_v59  ;;  %v3433_v14 = vor.u32 %v2486_v2, %v2052_v32 }
 0x1d5   : > { %1689 = vmatpush.bf16.msra.mxu1 %v2179_v62  ;;  %v2593_v50 = vld [vmem:[%s2973_s24 + $0x2f4] sm:$0xf0]  ;;  %v2490_v54 = vld [vmem:[#allocation2 + $0x1c] sm:$0xf0]  ;;  %v2487_v18 = vld [vmem:[#allocation2 + $0xc] sm:$0xf]  ;;  %v2159_v3 = vor.u32 %v2512_v5, %v2156_v8 }
 0x1d6   : > { %1708 = vmatpush.bf16.msra.mxu2 %v2243_v36  ;;  %v2060_v34 = vld [vmem:[#allocation2 + $0x20] sm:$0xf0]  ;;  %v2410_v43 = vld [vmem:[%s2973_s24 + $0x270] sm:$0xf]  ;;  %v2577_v47 = vld [vmem:[%s2973_s24 + $0x274] sm:$0xf0]  ;;  %v2475_v9 = vor.u32 %v2593_v50, %v2474_v40  ;;  %v3435_v15 = vor.u32 %v2490_v54, %v2058_v35 }
 0x1d7   : > { %1727 = vmatpush.bf16.msra.mxu3 %v2307_v4  ;;  %v2528_v39 = vld [vmem:[%s2973_s24 + $0xf4] sm:$0xf]  ;;  %v2220_v48 = vld [vmem:[%s2973_s24 + $0xf8] sm:$0xf0]  ;;  %v2510_v46 = vld [vmem:[%s2973_s24 + $0x64] sm:$0xf]  ;;  %v3439_v7 = vor.u32 %v2487_v18, %v2060_v34  ;;  %v2411_v33 = vor.u32 %v2577_v47, %v2410_v43 }
 0x1d8   : > { %1671 = vmatpush.bf16.msra.mxu0 %v2107_v56  ;;  %v2148_v51 = vld [vmem:[%s2973_s24 + $0x68] sm:$0xf0]  ;;  %v2466_v20 = vld [vmem:[%s2973_s24 + $0x2e0] sm:$0xf]  ;;  %v2591_v42 = vld [vmem:[%s2973_s24 + $0x2e4] sm:$0xf0]  ;;  %v2223_v11 = vor.u32 %v2528_v39, %v2220_v48 }
 0x1d9   : > { %1690 = vmatpush.bf16.msra.mxu1 %v2171_v31  ;;  %v2151_v12 = vor.u32 %v2510_v46, %v2148_v51  ;;  %v2402_v52 = vld [vmem:[%s2973_s24 + $0x260] sm:$0xf]  ;;  %v2575_v17 = vld [vmem:[%s2973_s24 + $0x264] sm:$0xf0]  ;;  %v2526_v57 = vld [vmem:[%s2973_s24 + $0xe4] sm:$0xf]  ;;  %v2467_v53 = vor.u32 %v2591_v42, %v2466_v20 }
 0x1da   : > { %1709 = vmatpush.bf16.msra.mxu2 %v2235_v1  ;;  %v2212_v19 = vld [vmem:[%s2973_s24 + $0xe8] sm:$0xf0]  ;;  %v2508_v55 = vld [vmem:[%s2973_s24 + $0x54] sm:$0xf]  ;;  %v2140_v28 = vld [vmem:[%s2973_s24 + $0x58] sm:$0xf0]  ;;  %v2403_v36 = vor.u32 %v2575_v17, %v2402_v52 }
 0x1db   : > { %1728 = vmatpush.bf16.msra.mxu3 %v2299_v30  ;;  %v2458_v29 = vld [vmem:[%s2973_s24 + $0x2d0] sm:$0xf]  ;;  %v2589_v62 = vld [vmem:[%s2973_s24 + $0x2d4] sm:$0xf0]  ;;  %v2215_v41 = vor.u32 %v2526_v57, %v2212_v19  ;;  %v2143_v38 = vor.u32 %v2508_v55, %v2140_v28  ;;  %v2524_v49 = vld [vmem:[%s2973_s24 + $0xd4] sm:$0xf] }
 0x1dc   : > { %1672 = vmatpush.bf16.msra.mxu0 %v2099_v61  ;;  %v2394_v58 = vld [vmem:[%s2973_s24 + $0x250] sm:$0xf]  ;;  %v2573_v4 = vld [vmem:[%s2973_s24 + $0x254] sm:$0xf0]  ;;  %v2459_v44 = vor.u32 %v2589_v62, %v2458_v29  ;;  %v2204_v23 = vld [vmem:[%s2973_s24 + $0xd8] sm:$0xf0] }
 0x1dd   : > { %1691 = vmatpush.bf16.msra.mxu1 %v2163_v0  ;;  %v2506_v45 = vld [vmem:[%s2973_s24 + $0x44] sm:$0xf]  ;;  %v2132_v6 = vld [vmem:[%s2973_s24 + $0x48] sm:$0xf0]  ;;  %v2450_v24 = vld [vmem:[%s2973_s24 + $0x2c0] sm:$0xf]  ;;  %v2395_v25 = vor.u32 %v2573_v4, %v2394_v58  ;;  %v2207_v1 = vor.u32 %v2524_v49, %v2204_v23 }
 0x1de   : > { %1710 = vmatpush.bf16.msra.mxu2 %v2227_v16  ;;  %v2587_v56 = vld [vmem:[%s2973_s24 + $0x2c4] sm:$0xf0]  ;;  %v2386_v26 = vld [vmem:[%s2973_s24 + $0x240] sm:$0xf]  ;;  %v2522_v31 = vld [vmem:[%s2973_s24 + $0xc4] sm:$0xf]  ;;  %v2135_v60 = vor.u32 %v2506_v45, %v2132_v6 }
 0x1df   : > { %1729 = vmatpush.bf16.msra.mxu3 %v2291_v37  ;;  %1673 = vmatmul.bf16.vlgmr.msra.gmra.mxu0 %v3428_v21  ;;  %v2571_v27 = vld [vmem:[%s2973_s24 + $0x244] sm:$0xf0]  ;;  %v2196_v10 = vld [vmem:[%s2973_s24 + $0xc8] sm:$0xf0]  ;;  %v2074_v13 = vld [vmem:[#allocation2 + $0x30] sm:$0xf]  ;;  %v2451_v22 = vor.u32 %v2587_v56, %v2450_v24 }
 0x1e0   : > { %1692 = vmatmul.bf16.vlgmr.msra.gmra.mxu1 %v3433_v14  ;;  %1741 = vmatpush.bf16.msrb.mxu0 %v2411_v33  ;;  %v2495_v30 = vld [vmem:[#allocation2 + $0x44] sm:$0xf0]  ;;  %v2492_v59 = vld [vmem:[#allocation2 + $0x34] sm:$0xf]  ;;  %v2076_v63 = vld [vmem:[#allocation2 + $0x48] sm:$0xf0]  ;;  %v2387_v35 = vor.u32 %v2571_v27, %v2386_v26  ;;  %v2199_v16 = vor.u32 %v2522_v31, %v2196_v10 }
 0x1e1   : > { %1760 = vmatpush.bf16.msrb.mxu1 %v2475_v9  ;;  %1711 = vmatmul.bf16.vlgmr.msra.gmra.mxu2 %v3435_v15  ;;  %v2504_v2 = vld [vmem:[%s2973_s24 + $0x34] sm:$0xf]  ;;  %v2124_v32 = vld [vmem:[%s2973_s24 + $0x38] sm:$0xf0]  ;;  %v2082_v5 = vld [vmem:[#allocation2 + $0x38] sm:$0xf]  ;;  %v3477_v48 = vor.u32 %v2492_v59, %v2076_v63 }
 0x1e2   : > { %1779 = vmatpush.bf16.msrb.mxu2 %v2159_v3  ;;  %1730 = vmatmul.bf16.vlgmr.msra.gmra.mxu3 %v3439_v7  ;;  %v2442_v8 = vld [vmem:[%s2973_s24 + $0x2b0] sm:$0xf]  ;;  %v2585_v61 = vld [vmem:[%s2973_s24 + $0x2b4] sm:$0xf0]  ;;  %v2493_v50 = vld [vmem:[#allocation2 + $0x3c] sm:$0xf]  ;;  %v2127_v54 = vor.u32 %v2504_v2, %v2124_v32  ;;  %v3472_v3 = vor.u32 %v2495_v30, %v2074_v13 }
 0x1e3   : > { %1798 = vmatpush.bf16.msrb.mxu3 %v2223_v11  ;;  %v2496_v40 = vld [vmem:[#allocation2 + $0x4c] sm:$0xf0]  ;;  %v2084_v0 = vld [vmem:[#allocation2 + $0x50] sm:$0xf0]  ;;  %v2569_v34 = vld [vmem:[%s2973_s24 + $0x234] sm:$0xf0]  ;;  %v2443_v43 = vor.u32 %v2585_v61, %v2442_v8 }
 0x1e4   : > { %1742 = vmatpush.bf16.msrb.mxu0 %v2403_v36  ;;  %v2378_v18 = vld [vmem:[%s2973_s24 + $0x230] sm:$0xf]  ;;  %v2520_v37 = vld [vmem:[%s2973_s24 + $0xb4] sm:$0xf]  ;;  %v2188_v47 = vld [vmem:[%s2973_s24 + $0xb8] sm:$0xf0]  ;;  %v3479_v46 = vor.u32 %v2496_v40, %v2082_v5  ;;  %v3483_v42 = vor.u32 %v2493_v50, %v2084_v0 }
 0x1e5   : > { %1761 = vmatpush.bf16.msrb.mxu1 %v2467_v53  ;;  %v2502_v39 = vld [vmem:[%s2973_s24 + $0x24] sm:$0xf]  ;;  %v2116_v9 = vld [vmem:[%s2973_s24 + $0x28] sm:$0xf0]  ;;  %v2434_v51 = vld [vmem:[%s2973_s24 + $0x2a0] sm:$0xf]  ;;  %v2379_v33 = vor.u32 %v2569_v34, %v2378_v18  ;;  %v2191_v11 = vor.u32 %v2520_v37, %v2188_v47 }
 0x1e6   : > { %1780 = vmatpush.bf16.msrb.mxu2 %v2151_v12  ;;  %v2583_v20 = vld [vmem:[%s2973_s24 + $0x2a4] sm:$0xf0]  ;;  %v2119_v12 = vor.u32 %v2502_v39, %v2116_v9  ;;  %v2370_v52 = vld [vmem:[%s2973_s24 + $0x220] sm:$0xf]  ;;  %v2518_v57 = vld [vmem:[%s2973_s24 + $0xa4] sm:$0xf] }
 0x1e7   : > { %1799 = vmatpush.bf16.msrb.mxu3 %v2215_v41  ;;  %v2567_v17 = vld [vmem:[%s2973_s24 + $0x224] sm:$0xf0]  ;;  %v2435_v53 = vor.u32 %v2583_v20, %v2434_v51  ;;  %v2180_v19 = vld [vmem:[%s2973_s24 + $0xa8] sm:$0xf0]  ;;  %v2500_v55 = vld [vmem:[%s2973_s24 + $0x14] sm:$0xf] }
 0x1e8   : > { %1743 = vmatpush.bf16.msrb.mxu0 %v2395_v25  ;;  %v2108_v28 = vld [vmem:[%s2973_s24 + $0x18] sm:$0xf0]  ;;  %v2426_v29 = vld [vmem:[%s2973_s24 + $0x290] sm:$0xf]  ;;  %v2581_v62 = vld [vmem:[%s2973_s24 + $0x294] sm:$0xf0]  ;;  %v2371_v36 = vor.u32 %v2567_v17, %v2370_v52 }
 0x1e9   : > { %1762 = vmatpush.bf16.msrb.mxu1 %v2459_v44  ;;  %v2362_v41 = vld [vmem:[%s2973_s24 + $0x210] sm:$0xf]  ;;  %v2111_v58 = vor.u32 %v2500_v55, %v2108_v28  ;;  %v2565_v4 = vld [vmem:[%s2973_s24 + $0x214] sm:$0xf0]  ;;  %v2516_v49 = vld [vmem:[%s2973_s24 + $0x94] sm:$0xf]  ;;  %v2427_v23 = vor.u32 %v2581_v62, %v2426_v29 }
 0x1ea   : > { %1781 = vmatpush.bf16.msrb.mxu2 %v2143_v38  ;;  %v2183_v38 = vor.u32 %v2518_v57, %v2180_v19  ;;  %v2172_v44 = vld [vmem:[%s2973_s24 + $0x98] sm:$0xf0]  ;;  %v2498_v45 = vld [vmem:[%s2973_s24 + $0x4] sm:$0xf]  ;;  %v2100_v6 = vld [vmem:[%s2973_s24 + $0x8] sm:$0xf0]  ;;  %v2363_v27 = vor.u32 %v2565_v4, %v2362_v41 }
 0x1eb   : > { %1800 = vmatpush.bf16.msrb.mxu3 %v2207_v1  ;;  %v2418_v24 = vld [vmem:[%s2973_s24 + $0x280] sm:$0xf]  ;;  %v2579_v56 = vld [vmem:[%s2973_s24 + $0x284] sm:$0xf0]  ;;  %v2576_v25 = vld [vmem:[%s2973_s24 + $0x274] sm:$0xf]  ;;  %v2175_v10 = vor.u32 %v2516_v49, %v2172_v44  ;;  %v2103_v13 = vor.u32 %v2498_v45, %v2100_v6 }
 0x1ec   : > { %1744 = vmatpush.bf16.msrb.mxu0 %v2387_v35  ;;  %v2412_v26 = vld [vmem:[%s2973_s24 + $0x278] sm:$0xf0]  ;;  %v2354_v31 = vld [vmem:[%s2973_s24 + $0x200] sm:$0xf]  ;;  %v2560_v1 = vld [vmem:[%s2973_s24 + $0x1f4] sm:$0xf]  ;;  %v2419_v63 = vor.u32 %v2579_v56, %v2418_v24 }
 0x1ed   : > { %1763 = vmatpush.bf16.msrb.mxu1 %v2451_v22  ;;  %v2563_v30 = vld [vmem:[%s2973_s24 + $0x204] sm:$0xf0]  ;;  %v2514_v22 = vld [vmem:[%s2973_s24 + $0x84] sm:$0xf]  ;;  %v2164_v59 = vld [vmem:[%s2973_s24 + $0x88] sm:$0xf0]  ;;  %v2415_v32 = vor.u32 %v2576_v25, %v2412_v26 }
 0x1ee   : > { %1782 = vmatpush.bf16.msrb.mxu2 %v2135_v60  ;;  %v2348_v60 = vld [vmem:[%s2973_s24 + $0x1f8] sm:$0xf0]  ;;  %v2066_v2 = vld [vmem:[#allocation2 + $0x10] sm:$0xf]  ;;  %v2544_v5 = vld [vmem:[%s2973_s24 + $0x174] sm:$0xf]  ;;  %v2167_v37 = vor.u32 %v2514_v22, %v2164_v59 }
 0x1ef   : > { %1801 = vmatpush.bf16.msrb.mxu3 %v2199_v16  ;;  %1678 = vmatmul.bf16.gmra.mxu0 %v3472_v3  ;;  %v2284_v8 = vld [vmem:[%s2973_s24 + $0x178] sm:$0xf0]  ;;  %v2592_v61 = vld [vmem:[%s2973_s24 + $0x2f4] sm:$0xf]  ;;  %v2351_v35 = vor.u32 %v2560_v1, %v2348_v60  ;;  %v2574_v50 = vld [vmem:[%s2973_s24 + $0x264] sm:$0xf]  ;;  %v2355_v16 = vor.u32 %v2563_v30, %v2354_v31 }
 0x1f0   : > { %1697 = vmatmul.bf16.gmra.mxu1 %v3477_v48  ;;  %1745 = vmatpush.bf16.msrb.mxu0 %v2379_v33  ;;  %v2476_v40 = vld [vmem:[%s2973_s24 + $0x2f8] sm:$0xf0]  ;;  %v2404_v0 = vld [vmem:[%s2973_s24 + $0x268] sm:$0xf0]  ;;  %v2488_v18 = vld [vmem:[#allocation2 + $0x14] sm:$0xf] }
 0x1f1   : > { %1764 = vmatpush.bf16.msrb.mxu1 %v2443_v43  ;;  %1716 = vmatmul.bf16.gmra.mxu2 %v3479_v46  ;;  %v2068_v34 = vld [vmem:[#allocation2 + $0x28] sm:$0xf0]  ;;  %v2287_v43 = vor.u32 %v2544_v5, %v2284_v8  ;;  %v2542_v47 = vld [vmem:[%s2973_s24 + $0x164] sm:$0xf]  ;;  %v2479_v9 = vor.u32 %v2592_v61, %v2476_v40  ;;  %v2407_v51 = vor.u32 %v2574_v50, %v2404_v0  ;;  %v2572_v57 = vld [vmem:[%s2973_s24 + $0x254] sm:$0xf] }
 0x1f2   : > { %1783 = vmatpush.bf16.msrb.mxu2 %v2127_v54  ;;  %1735 = vmatmul.bf16.gmra.mxu3 %v3483_v42  ;;  %v2491_v54 = vld [vmem:[#allocation2 + $0x24] sm:$0xf0]  ;;  %v2276_v39 = vld [vmem:[%s2973_s24 + $0x168] sm:$0xf0]  ;;  %v2558_v20 = vld [vmem:[%s2973_s24 + $0x1e4] sm:$0xf]  ;;  %v3526_v52 = vor.u32 %v2488_v18, %v2068_v34 }
 0x1f3   : > { %1802 = vmatpush.bf16.msrb.mxu3 %v2191_v11  ;;  %v2340_v33 = vld [vmem:[%s2973_s24 + $0x1e8] sm:$0xf0]  ;;  %v2590_v11 = vld [vmem:[%s2973_s24 + $0x2e4] sm:$0xf]  ;;  %v2279_v19 = vor.u32 %v2542_v47, %v2276_v39  ;;  %v2540_v28 = vld [vmem:[%s2973_s24 + $0x154] sm:$0xf] }
 0x1f4   : > { %1746 = vmatpush.bf16.msrb.mxu0 %v2371_v36  ;;  %v2468_v17 = vld [vmem:[%s2973_s24 + $0x2e8] sm:$0xf0]  ;;  %v2343_v55 = vor.u32 %v2558_v20, %v2340_v33  ;;  %v2268_v29 = vld [vmem:[%s2973_s24 + $0x158] sm:$0xf0]  ;;  %v2556_v41 = vld [vmem:[%s2973_s24 + $0x1d4] sm:$0xf] }
 0x1f5   : > { %1765 = vmatpush.bf16.msrb.mxu1 %v2435_v53  ;;  %v2396_v53 = vld [vmem:[%s2973_s24 + $0x258] sm:$0xf0]  ;;  %v2471_v62 = vor.u32 %v2590_v11, %v2468_v17  ;;  %v2570_v49 = vld [vmem:[%s2973_s24 + $0x244] sm:$0xf]  ;;  %v2388_v44 = vld [vmem:[%s2973_s24 + $0x248] sm:$0xf0] }
 0x1f6   : > { %1784 = vmatpush.bf16.msrb.mxu2 %v2119_v12  ;;  %v3524_v12 = vor.u32 %v2491_v54, %v2066_v2  ;;  %v2399_v36 = vor.u32 %v2572_v57, %v2396_v53  ;;  %v2460_v4 = vld [vmem:[%s2973_s24 + $0x2d8] sm:$0xf0]  ;;  %v2538_v6 = vld [vmem:[%s2973_s24 + $0x144] sm:$0xf]  ;;  %v2260_v24 = vld [vmem:[%s2973_s24 + $0x148] sm:$0xf0]  ;;  %v2391_v25 = vor.u32 %v2570_v49, %v2388_v44 }
 0x1f7   : > { %1803 = vmatpush.bf16.msrb.mxu3 %v2183_v38  ;;  %v2332_v38 = vld [vmem:[%s2973_s24 + $0x1d8] sm:$0xf0]  ;;  %v2554_v26 = vld [vmem:[%s2973_s24 + $0x1c4] sm:$0xf]  ;;  %v2452_v31 = vld [vmem:[%s2973_s24 + $0x2c8] sm:$0xf0]  ;;  %v2263_v60 = vor.u32 %v2538_v6, %v2260_v24 }
 0x1f8   : > { %1747 = vmatpush.bf16.msrb.mxu0 %v2363_v27  ;;  %v2335_v45 = vor.u32 %v2556_v41, %v2332_v38  ;;  %v2324_v27 = vld [vmem:[%s2973_s24 + $0x1c8] sm:$0xf0]  ;;  %v2380_v1 = vld [vmem:[%s2973_s24 + $0x238] sm:$0xf0]  ;;  %v2090_v59 = vld [vmem:[#allocation2 + $0x40] sm:$0xf] }
 0x1f9   : > { %1766 = vmatpush.bf16.msrb.mxu1 %v2427_v23  ;;  %v2271_v23 = vor.u32 %v2540_v28, %v2268_v29  ;;  %v2252_v30 = vld [vmem:[%s2973_s24 + $0x138] sm:$0xf0]  ;;  %v2552_v2 = vld [vmem:[%s2973_s24 + $0x1b4] sm:$0xf]  ;;  %v2566_v61 = vld [vmem:[%s2973_s24 + $0x224] sm:$0xf] }
 0x1fa   : > { %1785 = vmatpush.bf16.msrb.mxu2 %v2111_v58  ;;  %v2588_v58 = vld [vmem:[%s2973_s24 + $0x2d4] sm:$0xf]  ;;  %v2444_v8 = vld [vmem:[%s2973_s24 + $0x2b8] sm:$0xf0]  ;;  %v2497_v40 = vld [vmem:[#allocation2 + $0x54] sm:$0xf0] }
 0x1fb   : > { %1804 = vmatpush.bf16.msrb.mxu3 %v2175_v10  ;;  %v2463_v56 = vor.u32 %v2588_v58, %v2460_v4  ;;  %v2327_v10 = vor.u32 %v2554_v26, %v2324_v27  ;;  %v2584_v5 = vld [vmem:[%s2973_s24 + $0x2b4] sm:$0xf]  ;;  %v2494_v50 = vld [vmem:[#allocation2 + $0x44] sm:$0xf]  ;;  %v2092_v0 = vld [vmem:[#allocation2 + $0x58] sm:$0xf0] }
 0x1fc   : > { %1748 = vmatpush.bf16.msrb.mxu0 %v2355_v16  ;;  %v2534_v18 = vld [vmem:[%s2973_s24 + $0x124] sm:$0xf]  ;;  %v2244_v34 = vld [vmem:[%s2973_s24 + $0x128] sm:$0xf0]  ;;  %v2095_v20 = vor.u32 %v2494_v50, %v2092_v0  ;;  %v2564_v11 = vld [vmem:[%s2973_s24 + $0x214] sm:$0xf] }
 0x1fd   : > { %1767 = vmatpush.bf16.msrb.mxu1 %v2419_v63  ;;  %v2550_v47 = vld [vmem:[%s2973_s24 + $0x1a4] sm:$0xf]  ;;  %v2308_v39 = vld [vmem:[%s2973_s24 + $0x1a8] sm:$0xf0]  ;;  %v2364_v17 = vld [vmem:[%s2973_s24 + $0x218] sm:$0xf0]  ;;  %v2247_v57 = vor.u32 %v2534_v18, %v2244_v34 }
 0x1fe   : > { %1786 = vmatpush.bf16.msrb.mxu2 %v2103_v13  ;;  %v2536_v13 = vld [vmem:[%s2973_s24 + $0x134] sm:$0xf]  ;;  %v2436_v33 = vld [vmem:[%s2973_s24 + $0x2a8] sm:$0xf0]  ;;  %v2311_v53 = vor.u32 %v2550_v47, %v2308_v39  ;;  %v2367_v29 = vor.u32 %v2564_v11, %v2364_v17  ;;  %v2428_v38 = vld [vmem:[%s2973_s24 + $0x298] sm:$0xf0] }
 0x1ff   : > { %1805 = vmatpush.bf16.msrb.mxu3 %v2167_v37  ;;  %1749 = vmatmul.bf16.vlgmr.msrb.gmra.mxu0 %v3524_v12  ;;  %v2255_v16 = vor.u32 %v2536_v13, %v2252_v30  ;;  %v2447_v37 = vor.u32 %v2584_v5, %v2444_v8  ;;  %v2580_v41 = vld [vmem:[%s2973_s24 + $0x294] sm:$0xf]  ;;  %v2562_v58 = vld [vmem:[%s2973_s24 + $0x204] sm:$0xf]  ;;  %v2356_v4 = vld [vmem:[%s2973_s24 + $0x208] sm:$0xf0] }
 0x200   : > { %1817 = vmatpush.bf16.msra.mxu0 %v2287_v43  ;;  %1768 = vmatmul.bf16.vlgmr.msrb.gmra.mxu1 %v3526_v52  ;;  %v2359_v6 = vor.u32 %v2562_v58, %v2356_v4  ;;  %v2228_v24 = vld [vmem:[%s2973_s24 + $0x108] sm:$0xf0]  ;;  %v2578_v26 = vld [vmem:[%s2973_s24 + $0x284] sm:$0xf]  ;;  %s2594_s12 = sshll.u32 (%p2754_p6), %s2678_s20, 4 }
 0x201   : > { %1836 = vmatpush.bf16.msra.mxu1 %v2351_v35  ;;  %1787 = vmatmul.bf16.vlgmr.msrb.gmra.mxu2 %v3428_v21  ;;  %v2586_v21 = vld [vmem:[%s2973_s24 + $0x2c4] sm:$0xf]  ;;  %v2372_v35 = vld [vmem:[%s2973_s24 + $0x228] sm:$0xf0]  ;;  %s1913_s15 = scalar_lea.vmem (%p2754_p6), %s3636_s5, %s2594_s12 }
 0x202   : > { %1855 = vmatpush.bf16.msra.mxu2 %v2415_v32  ;;  %1806 = vmatmul.bf16.vlgmr.msrb.gmra.mxu3 %v3433_v14  ;;  %v2568_v14 = vld [vmem:[%s2973_s24 + $0x234] sm:$0xf]  ;;  %v2455_v22 = vor.u32 %v2586_v21, %v2452_v31  ;;  %v2316_v32 = vld [vmem:[%s2973_s24 + $0x1b8] sm:$0xf0]  ;;  %v2375_v43 = vor.u32 %v2566_v61, %v2372_v35  ;;  %v2420_v27 = vld [vmem:[%s2973_s24 + $0x288] sm:$0xf0] }
 0x203   : > { %1874 = vmatpush.bf16.msra.mxu3 %v2479_v9  ;;  %v2383_v63 = vor.u32 %v2568_v14, %v2380_v1  ;;  %v2319_v54 = vor.u32 %v2552_v2, %v2316_v32  ;;  %v2582_v9 = vld [vmem:[%s2973_s24 + $0x2a4] sm:$0xf] }
 0x204   : > { %1818 = vmatpush.bf16.msra.mxu0 %v2279_v19  ;;  %v2532_v19 = vld [vmem:[%s2973_s24 + $0x114] sm:$0xf]  ;;  %v2439_v28 = vor.u32 %v2582_v9, %v2436_v33 }
 0x205   : > { %1837 = vmatpush.bf16.msra.mxu1 %v2343_v55  ;;  %v2236_v55 = vld [vmem:[%s2973_s24 + $0x118] sm:$0xf0] }
 0x206   : > { %1856 = vmatpush.bf16.msra.mxu2 %v2407_v51  ;;  %v2091_v51 = vor.u32 %v2497_v40, %v2090_v59  ;;  %v2239_v49 = vor.u32 %v2532_v19, %v2236_v55 }
 0x207   : > { %1875 = vmatpush.bf16.msra.mxu3 %v2471_v62  ;;  %v2548_v62 = vld [vmem:[%s2973_s24 + $0x194] sm:$0xf] }
 0x208   : > { %1819 = vmatpush.bf16.msra.mxu0 %v2271_v23  ;;  %v2530_v23 = vld [vmem:[%s2973_s24 + $0x104] sm:$0xf] }
 0x209   : > { %1838 = vmatpush.bf16.msra.mxu1 %v2335_v45  ;;  %v2431_v45 = vor.u32 %v2580_v41, %v2428_v38  ;;  %v2231_v21 = vor.u32 %v2530_v23, %v2228_v24 }
 0x20a   : > { %1857 = vmatpush.bf16.msra.mxu2 %v2399_v36  ;;  %v2300_v36 = vld [vmem:[%s2973_s24 + $0x198] sm:$0xf0] }
 0x20b   : > { %1876 = vmatpush.bf16.msra.mxu3 %v2463_v56  ;;  %v2303_v44 = vor.u32 %v2548_v62, %v2300_v36  ;;  %v2546_v56 = vld [vmem:[%s2973_s24 + $0x184] sm:$0xf] }
 0x20c   : > { %1820 = vmatpush.bf16.msra.mxu0 %v2263_v60 }
 0x20d   : > { %1839 = vmatpush.bf16.msra.mxu1 %v2327_v10 }
 0x20e   : > { %1858 = vmatpush.bf16.msra.mxu2 %v2391_v25  ;;  %v2292_v25 = vld [vmem:[%s2973_s24 + $0x188] sm:$0xf0] }
 0x20f   : > { %1877 = vmatpush.bf16.msra.mxu3 %v2455_v22  ;;  %1754 = vmatmul.bf16.gmra.mxu0 %v2091_v51 }
 0x210   : > { %1821 = vmatpush.bf16.msra.mxu0 %v2255_v16  ;;  %1773 = vmatmul.bf16.gmra.mxu1 %v2095_v20 }
 0x211   : > { %1840 = vmatpush.bf16.msra.mxu1 %v2319_v54  ;;  %1792 = vmatmul.bf16.gmra.mxu2 %v3472_v3  ;;  %v2295_v3 = vor.u32 %v2546_v56, %v2292_v25 }
 0x212   : > { %1859 = vmatpush.bf16.msra.mxu2 %v2383_v63  ;;  %1811 = vmatmul.bf16.gmra.mxu3 %v3477_v48  ;;  %v2423_v48 = vor.u32 %v2578_v26, %v2420_v27 }
 0x213   : > { %1878 = vmatpush.bf16.msra.mxu3 %v2447_v37 }
 0x214   : > { %1822 = vmatpush.bf16.msra.mxu0 %v2247_v57 }
 0x215   : > { %1841 = vmatpush.bf16.msra.mxu1 %v2311_v53 }
 0x216   : > { %1860 = vmatpush.bf16.msra.mxu2 %v2375_v43 }
 0x217   : > { %1879 = vmatpush.bf16.msra.mxu3 %v2439_v28 }
 0x218   : > { %1823 = vmatpush.bf16.msra.mxu0 %v2239_v49 }
 0x219   : > { %1842 = vmatpush.bf16.msra.mxu1 %v2303_v44 }
 0x21a   : > { %1861 = vmatpush.bf16.msra.mxu2 %v2367_v29 }
 0x21b   : > { %1880 = vmatpush.bf16.msra.mxu3 %v2431_v45 }
 0x21c   : > { %1824 = vmatpush.bf16.msra.mxu0 %v2231_v21 }
 0x21d   : > { %1843 = vmatpush.bf16.msra.mxu1 %v2295_v3 }
 0x21e   : > { %1862 = vmatpush.bf16.msra.mxu2 %v2359_v6 }
 0x21f   : > { %1881 = vmatpush.bf16.msra.mxu3 %v2423_v48  ;;  %1825 = vmatmul.bf16.vlgmr.msra.gmra.mxu0 %v3435_v15  ;;  %v1119_v15 = vld [vmem:[%s692_s17] sm:$0x3] }
 0x220   : > { %1844 = vmatmul.bf16.vlgmr.msra.gmra.mxu1 %v3439_v7  ;;  %v1122_v44 = vperm.slane %v1119_v15, 1 }
 0x221   : > { %1863 = vmatmul.bf16.vlgmr.msra.gmra.mxu2 %v3524_v12  ;;  %v1121_v12 = vperm.slane %v1119_v15, 0 }
 0x222   : > { %1882 = vmatmul.bf16.vlgmr.msra.gmra.mxu3 %v3526_v52 }
 0x22f   : > { %1830 = vmatmul.bf16.gmra.mxu0 %v3479_v46 }
 0x230   : > { %1849 = vmatmul.bf16.gmra.mxu1 %v3483_v42 }
 0x231   : > { %1868 = vmatmul.bf16.gmra.mxu2 %v2091_v51 }
 0x232   : > { %1887 = vmatmul.bf16.gmra.mxu3 %v2095_v20 }
 0x25c   : > { %v1674_v31 = vpop.f32.mrf.mxu0 }
 0x25d   : > { %v1693_v14 = vpop.f32.mrf.mxu1  ;;  %v1675_v22 = vadd.f32 %v1674_v31, %v1121_v12 }
 0x25f   : > { %v1694_v59 = vadd.f32 %v1693_v14, %v1675_v22 }
 0x264   : > { %v1712_v1 = vpop.f32.mrf.mxu2  ;;  %v1676_v10 = vpop.f32.mrf.mxu0 }
 0x265   : > { %v1731_v60 = vpop.f32.mrf.mxu3  ;;  %v1695_v13 = vpop.f32.mrf.mxu1  ;;  %v1713_v5 = vadd.f32 %v1712_v1, %v1694_v59  ;;  %v1677_v8 = vadd.f32 %v1676_v10, %v1121_v12 }
 0x267   : > { %v1732_v35 = vadd.f32 %v1731_v60, %v1713_v5  ;;  %v1696_v16 = vadd.f32 %v1695_v13, %v1677_v8 }
 0x26c   : > { %v1714_v7 = vpop.f32.mrf.mxu2  ;;  %v1679_v30 = vpop.f32.mrf.mxu0 }
 0x26d   : > { %v1733_v52 = vpop.f32.mrf.mxu3  ;;  %v1698_v46 = vpop.f32.mrf.mxu1  ;;  %v1715_v18 = vadd.f32 %v1714_v7, %v1696_v16  ;;  %v1680_v34 = vadd.f32 %v1679_v30, %v1121_v12 }
 0x26f   : > { %v1734_v43 = vadd.f32 %v1733_v52, %v1715_v18  ;;  %v1699_v47 = vadd.f32 %v1698_v46, %v1680_v34 }
 0x274   : > { %v1717_v42 = vpop.f32.mrf.mxu2  ;;  %v1681_v2 = vpop.f32.mrf.mxu0 }
 0x275   : > { %v1736_v63 = vpop.f32.mrf.mxu3  ;;  %v1700_v32 = vpop.f32.mrf.mxu1  ;;  %v1718_v11 = vadd.f32 %v1717_v42, %v1699_v47  ;;  %v1682_v57 = vadd.f32 %v1681_v2, %v1121_v12 }
 0x277   : > { %v1737_v53 = vadd.f32 %v1736_v63, %v1718_v11  ;;  %v1701_v62 = vadd.f32 %v1700_v32, %v1682_v57 }
 0x27c   : > { %v1719_v61 = vpop.f32.mrf.mxu2  ;;  %v1750_v50 = vpop.f32.mrf.mxu0 }
 0x27d   : > { %v1738_v40 = vpop.f32.mrf.mxu3  ;;  %v1769_v0 = vpop.f32.mrf.mxu1  ;;  %v1751_v54 = vadd.f32 %v1750_v50, %v1732_v35  ;;  %v1720_v41 = vadd.f32 %v1719_v61, %v1701_v62 }
 0x27f   : > { %v1770_v37 = vadd.f32 %v1769_v0, %v1751_v54  ;;  %v1739_v58 = vadd.f32 %v1738_v40, %v1720_v41 }
 0x281   : > { %1893 = vst [vmem:[%s2975_s25] sm:$0xff] %v1770_v37 }
 0x284   : > { %v1788_v39 = vpop.f32.mrf.mxu2  ;;  %v1752_v51 = vpop.f32.mrf.mxu0 }
 0x285   : > { %v1807_v9 = vpop.f32.mrf.mxu3  ;;  %v1771_v20 = vpop.f32.mrf.mxu1  ;;  %v1753_v33 = vadd.f32 %v1752_v51, %v1734_v43  ;;  %v1789_v56 = vadd.f32 %v1788_v39, %v1122_v44 }
 0x287   : > { %v1772_v17 = vadd.f32 %v1771_v20, %v1753_v33  ;;  %v1808_v27 = vadd.f32 %v1807_v9, %v1789_v56 }
 0x288   : > { %v1926_v20 = vld [vmem:[%s2975_s25] sm:$0xff] (%p2754_p6) }
 0x289   : > { %1895 = vst [vmem:[%s2975_s25 + $0x10] sm:$0xff] %v1772_v17 }
 0x28a   : > { %1927 = vst [vmem:[%s1913_s15] sm:$0xff] (%p2754_p6), %v1926_v20 }
 0x28c   : > { %v1790_v19 = vpop.f32.mrf.mxu2  ;;  %v1755_v28 = vpop.f32.mrf.mxu0 }
 0x28d   : > { %v1809_v55 = vpop.f32.mrf.mxu3  ;;  %v1774_v29 = vpop.f32.mrf.mxu1  ;;  %v1756_v36 = vadd.f32 %v1755_v28, %v1737_v53  ;;  %v1791_v31 = vadd.f32 %v1790_v19, %v1122_v44 }
 0x28f   : > { %v1775_v38 = vadd.f32 %v1774_v29, %v1756_v36  ;;  %v1810_v10 = vadd.f32 %v1809_v55, %v1791_v31 }
 0x290   : > { %v1930_v11 = vld [vmem:[%s2975_s25 + $0x10] sm:$0xff] (%p2754_p6) }
 0x291   : > { %1897 = vst [vmem:[%s2975_s25 + $0x20] sm:$0xff] %v1775_v38 }
 0x292   : > { %1931 = vst [vmem:[%s1913_s15 + $0x30] sm:$0xff] (%p2754_p6), %v1930_v11 }
 0x294   : > { %v1793_v4 = vpop.f32.mrf.mxu2  ;;  %v1757_v23 = vpop.f32.mrf.mxu0 }
 0x295   : > { %v1812_v49 = vpop.f32.mrf.mxu3  ;;  %v1776_v45 = vpop.f32.mrf.mxu1  ;;  %v1758_v6 = vadd.f32 %v1757_v23, %v1739_v58  ;;  %v1794_v30 = vadd.f32 %v1793_v4, %v1122_v44 }
 0x297   : > { %v1777_v24 = vadd.f32 %v1776_v45, %v1758_v6  ;;  %v1813_v59 = vadd.f32 %v1812_v49, %v1794_v30 }
 0x298   : > { %v1934_v57 = vld [vmem:[%s2975_s25 + $0x20] sm:$0xff] (%p2754_p6) }
 0x299   : > { %1899 = vst [vmem:[%s2975_s25 + $0x30] sm:$0xff] %v1777_v24 }
 0x29a   : > { %1935 = vst [vmem:[%s1913_s15 + $0x60] sm:$0xff] (%p2754_p6), %v1934_v57 }
 0x29c   : > { %v1795_v25 = vpop.f32.mrf.mxu2  ;;  %v1826_v21 = vpop.f32.mrf.mxu0 }
 0x29d   : > { %v1814_v26 = vpop.f32.mrf.mxu3  ;;  %v1845_v3 = vpop.f32.mrf.mxu1  ;;  %v1827_v48 = vadd.f32 %v1826_v21, %v1808_v27  ;;  %v1796_v61 = vadd.f32 %v1795_v25, %v1122_v44 }
 0x29f   : > { %v1846_v14 = vadd.f32 %v1845_v3, %v1827_v48  ;;  %v1815_v0 = vadd.f32 %v1814_v26, %v1796_v61 }
 0x2a0   : > { %v1938_v19 = vld [vmem:[%s2975_s25 + $0x30] sm:$0xff] (%p2754_p6) }
 0x2a1   : > { %1939 = vst [vmem:[%s1913_s15 + $0x90] sm:$0xff] (%p2754_p6), %v1938_v19 }
 0x2a4   : > { %v1864_v1 = vpop.f32.mrf.mxu2  ;;  %v1828_v15 = vpop.f32.mrf.mxu0 }
 0x2a5   : > { %v1883_v60 = vpop.f32.mrf.mxu3  ;;  %v1865_v13 = vadd.f32 %v1864_v1, %v1846_v14  ;;  %v1847_v7 = vpop.f32.mrf.mxu1  ;;  %v1829_v52 = vadd.f32 %v1828_v15, %v1810_v10 }
 0x2a7   : > { %v1884_v12 = vadd.f32 %v1883_v60, %v1865_v13  ;;  %v1848_v46 = vadd.f32 %v1847_v7, %v1829_v52 }
 0x2a9   : > { %1894 = vst [vmem:[%s2975_s25 + $0x8] sm:$0xff] %v1884_v12 }
 0x2ac   : > { %v1866_v22 = vpop.f32.mrf.mxu2  ;;  %v1831_v2 = vpop.f32.mrf.mxu0 }
 0x2ad   : > { %v1885_v42 = vpop.f32.mrf.mxu3  ;;  %v1867_v63 = vadd.f32 %v1866_v22, %v1848_v46  ;;  %v1832_v5 = vadd.f32 %v1831_v2, %v1813_v59  ;;  %v1850_v8 = vpop.f32.mrf.mxu1 }
 0x2af   : > { %v1886_v32 = vadd.f32 %v1885_v42, %v1867_v63  ;;  %v1851_v35 = vadd.f32 %v1850_v8, %v1832_v5 }
 0x2b0   : > { %v1928_v33 = vld [vmem:[%s2975_s25 + $0x8] sm:$0xff] (%p2754_p6) }
 0x2b1   : > { %1896 = vst [vmem:[%s2975_s25 + $0x18] sm:$0xff] %v1886_v32 }
 0x2b2   : > { %1929 = vst [vmem:[%s1913_s15 + $0x8] sm:$0xff] (%p2754_p6), %v1928_v33 }
 0x2b4   : > { %v1869_v40 = vpop.f32.mrf.mxu2  ;;  %v1833_v54 = vpop.f32.mrf.mxu0 }
 0x2b5   : > { %v1888_v50 = vpop.f32.mrf.mxu3  ;;  %v1870_v16 = vadd.f32 %v1869_v40, %v1851_v35  ;;  %v1834_v34 = vadd.f32 %v1833_v54, %v1815_v0  ;;  %v1852_v37 = vpop.f32.mrf.mxu1 }
 0x2b7   : > { %v1889_v18 = vadd.f32 %v1888_v50, %v1870_v16  ;;  %v1853_v43 = vadd.f32 %v1852_v37, %v1834_v34 }
 0x2b8   : > { %v1932_v17 = vld [vmem:[%s2975_s25 + $0x18] sm:$0xff] (%p2754_p6) }
 0x2b9   : > { %1898 = vst [vmem:[%s2975_s25 + $0x28] sm:$0xff] %v1889_v18 }
 0x2ba   : > { %1933 = vst [vmem:[%s1913_s15 + $0x38] sm:$0xff] (%p2754_p6), %v1932_v17 }
 0x2bc   : > { %v1871_v47 = vpop.f32.mrf.mxu2 }
 0x2bd   : > { %v1872_v39 = vadd.f32 %v1871_v47, %v1853_v43  ;;  %v1890_v9 = vpop.f32.mrf.mxu3  ;;  %1907 = sbr.rel (!%p2754_p6) target bundleno = 714 (0x2ca), region = 86 }
 0x2bf   : > { %v1891_v51 = vadd.f32 %v1890_v9, %v1872_v39 }
 0x2c0   : > { %v1936_v53 = vld [vmem:[%s2975_s25 + $0x28] sm:$0xff] (%p2754_p6) }
 0x2c1   : > { %1900 = vst [vmem:[%s2975_s25 + $0x38] sm:$0xff] %v1891_v51 }
 0x2c2   : > { %1937 = vst [vmem:[%s1913_s15 + $0x68] sm:$0xff] %v1936_v53 }
 0x2c8   : > { %v1940_v55 = vld [vmem:[%s2975_s25 + $0x38] sm:$0xff] }
 0x2c9   : > { %1941 = vst [vmem:[%s1913_s15 + $0x98] sm:$0xff] %v1940_v55 }
 0x2ca PF: > { %s15_s22 = sadd.s32 1, %s2686_s22   ;;  %s3638_s18 = smov %s2674_s19 }
 0x2cb   : > { %p12_p13 = scmp.ge.s32.totalorder %s15_s22, 5   ;;  %s3639_s19 = smov %s2759_s28 }
 0x2cc   : > { %s3640_s20 = smov %s2682_s21  ;;  %s3641_s21 = smov %s3643_s23 }
 0x2cd   :  { %14 = sbr.rel (!%p12_p13) target bundleno = 3 (0x3), region = 146 }

// kernel: dino_forward.12
= control target key start
LH: loop header
LB: loop body
LE: loop exit
PB: predicated region body
PF: predicated region fallthrough
CT: control target
= control target key end

     0   :  { %10 = vsyncpa [#allocation3], 0  ;;  %s8021_s0 = inlined_call_operand.vmem [shape: bf16[32,3072], index: 0, kind: input, shape index: {}]   ;;  %s8022_s1 = inlined_call_operand.hbm [shape: bf16[3072,768], index: 1, kind: input, shape index: {}]   ;;  %s8023_s2 = inlined_call_operand.vmem [shape: f32[1,768], index: 2, kind: input, shape index: {}]   ;;  %s8024_s3 = inlined_call_operand.vmem [shape: f32[32,768], index: 3, kind: input, shape index: {}]   ;;  %s8025_s4 = inlined_call_operand.vmem [shape: f32[1,768], index: 4, kind: input, shape index: {}]   ;;  %s8026_s5 = inlined_call_operand.vmem [shape: f32[32,768], index: 5, kind: output, shape index: {}]  }
   0x1   :  { %12 = vsyncpa [#allocation3 + $0x1], 0  ;;  %s6453_s18 = smov 0   ;;  %s6455_s19 = smov 0  }
   0x2   :  { %s6457_s20 = smov 0   ;;  %s6459_s21 = smov 0  }
   0x3   :  { %s6461_s22 = smov 0   ;;  %s6463_s23 = smov 0  }
   0x4 LB: > { %s4101_s24 = sadd.s32 4294967295, %s6418_s23   ;;  %s27_s25 = sadd.s32 1, %s6414_s22  ;;  %s6418_s23 = sphi %s6463_s23, %s18_s23   ;;  %s6414_s22 = sphi %s6461_s22, %s8092_s22   ;;  %s6410_s21 = sphi %s6459_s21, %s8091_s21   ;;  %s6406_s20 = sphi %s6457_s20, %s8090_s20   ;;  %s6402_s19 = sphi %s6455_s19, %s8089_s19   ;;  %s6398_s18 = sphi %s6453_s18, %s8088_s18  }
   0x5   : > { %p28_p0 = scmp.ge.s32.totalorder %s27_s25, 3  ;;  %s63_s26 = sadd.s32 1, %s6406_s20 }
   0x6   : > { %p70_p1 = scmp.ne.s32.totalorder %s6406_s20, %s6402_s19  ;;  %p71_p2 = scmp.eq.s32.totalorder %s6418_s23, 0 }
   0x7   : > { %s8094_s25 = smov (%p28_p0, %s27_s25), 0  ;;  %p76_p4 = scmp.ne.s32.totalorder %s6402_s19, %s6398_s18 }
   0x8   : > { %8046 = sst [smem:[#allocation7_spill]] %s8094_s25  ;;  %p6489_p3 = por %p71_p2, %p70_p1 }
   0x9   : > { %s60_s28 = ssub.s32 %s6414_s22, %s8094_s25  ;;  %p77_p5 = scmp.eq.s32.totalorder %s4101_s24, 0 }
   0xa   : > { %p61_p6 = scmp.eq.s32.totalorder %s60_s28, 0  ;;  %p182_p7 = scmp.eq.s32.totalorder %s4101_s24, 2 }
   0xb   : > { %p6496_p8 = por %p77_p5, %p76_p4  ;;  %p4105_p10 = scmp.ge.s32.totalorder %s6418_s23, 3 }
   0xc   : > { %s6501_s30 = scalar_select %p61_p6, %s6406_s20, %s63_s26  }
   0xd   : > { %p6503_p9 = por %p182_p7, %p70_p1  ;;  %214 = sbr.rel (%p4105_p10) target bundleno = 32 (0x20), region = 20 }
   0xe   : > { %s218_s7 = sand.u32 (!%p4105_p10), 1, %s6406_s20   ;;  %s5849_s8 = sshll.u32 (!%p4105_p10), %s6414_s22, 3 }
   0xf   : > { %s6284_s9 = smul.u32 (!%p4105_p10), 3072, %s218_s7  ;;  %s227_s12 = scalar_lea.hbm (!%p4105_p10), %s8022_s1, %s5849_s8 }
  0x10   : > { %s228_s13 = sshll.u32 (!%p4105_p10), %s227_s12, 4  ;;  %s219_s16 = scalar_lea.sflag (!%p4105_p10), [#allocation3], %s218_s7  ;;  %s229_s13 = int_to_ptr.hbm [resolvable:$true] %s228_s13 }
  0x11   : > { %s222_s14 = scalar_lea.vmem (!%p4105_p10), [#allocation2], %s6284_s9  ;;  %s6420_s17 = smov (!%p4105_p10), 384  }
  0x12   : > { %s230_s15 = sshll.u32 %s222_s14, 4  ;;  %s6421_s18 = smov 128   ;;  %s231_s15 = int_to_ptr.vmem [resolvable:$true] %s230_s15 }
  0x13   : > { %s6422_s24 = smov 8   ;;  %247 = sbr.rel (!%p6489_p3) target bundleno = 32 (0x20), region = 32 }
  0x14   : > { %6286 = dma.hbm_to_vmem [thread:$0]  (%p6489_p3), %s229_s13, 49152, %s231_s15, %s219_s16, %s6420_s17, %s6421_s18, %s6422_s24  }
  0x15   : > { %s4108_s26 = sshll.u32 (%p6489_p3), %s218_s7, 6  ;;  %s5850_s28 = sshll.u32 (%p6489_p3), %s6414_s22, 4 }
  0x16   : > { %s257_s8 = scalar_lea.vmem (%p6489_p3), %s8024_s3, %s5850_s28  ;;  %s251_s9 = scalar_lea.vmem (%p6489_p3), [#allocation4], %s4108_s26 }
  0x17   : > { %v270_v0 = vld [vmem:[%s257_s8] sm:$0xff] (%p6489_p3)  ;;  %v272_v1 = vld [vmem:[%s257_s8 + $0x8] sm:$0xff] (%p6489_p3)  ;;  %v274_v2 = vld [vmem:[%s257_s8 + $0x30] sm:$0xff] (%p6489_p3) }
  0x18   : > { %271 = vst [vmem:[%s251_s9] sm:$0xff] %v270_v0  ;;  %v276_v3 = vld [vmem:[%s257_s8 + $0x38] sm:$0xff]  ;;  %v278_v4 = vld [vmem:[%s257_s8 + $0x60] sm:$0xff]  ;;  %v280_v5 = vld [vmem:[%s257_s8 + $0x68] sm:$0xff] }
  0x19   : > { %273 = vst [vmem:[%s251_s9 + $0x8] sm:$0xff] %v272_v1  ;;  %v282_v6 = vld [vmem:[%s257_s8 + $0x90] sm:$0xff]  ;;  %v284_v7 = vld [vmem:[%s257_s8 + $0x98] sm:$0xff] }
  0x1a   : > { %275 = vst [vmem:[%s251_s9 + $0x10] sm:$0xff] %v274_v2 }
  0x1b   : > { %277 = vst [vmem:[%s251_s9 + $0x18] sm:$0xff] %v276_v3 }
  0x1c   : > { %279 = vst [vmem:[%s251_s9 + $0x20] sm:$0xff] %v278_v4 }
  0x1d   : > { %281 = vst [vmem:[%s251_s9 + $0x28] sm:$0xff] %v280_v5 }
  0x1e   : > { %283 = vst [vmem:[%s251_s9 + $0x30] sm:$0xff] %v282_v6 }
  0x1f   : > { %285 = vst [vmem:[%s251_s9 + $0x38] sm:$0xff] %v284_v7 }
  0x20 PF: > { %p4111_p11 = scmp.ge.s32.totalorder %s6418_s23, 1  ;;  %p298_p12 = scmp.lt.s32.totalorder %s6418_s23, 4 }
  0x22   : > { %p299_p13 = pnand %p4111_p11, %p298_p12 }
  0x24   : > { %302 = sbr.rel (%p299_p13) target bundleno = 611 (0x263), region = 59 }
  0x29   : > { %s6524_s25 = sand.u32 1, %s6402_s19  }
  0x2a   : > { %s6285_s27 = smul.u32 3072, %s6524_s25  ;;  %s305_s7 = scalar_lea.sflag [#allocation3], %s6524_s25 }
  0x2c   : > { %s6528_s11 = scalar_lea.vmem [#allocation2], %s6285_s27 }
  0x2d   : > { %6393 = dma.done.wait (%p6496_p8), %s305_s7, 49152  }
  0x2e   : > { %6395 = vsyncadd (%p6496_p8), %s305_s7, 4294918144  ;;  %v4366_v8 = vld [vmem:[%s6528_s11 + $0x70] sm:$0xf]  ;;  %v5914_v9 = vld [vmem:[%s6528_s11 + $0x74] sm:$0xf0]  ;;  %s4114_s29 = sshll.u32 %s6410_s21, 1 }
  0x2f   : > { %v4430_v10 = vld [vmem:[%s6528_s11 + $0xf0] sm:$0xf]  ;;  %v4367_v11 = vor.u32 %v5914_v9, %v4366_v8  ;;  %v5930_v12 = vld [vmem:[%s6528_s11 + $0xf4] sm:$0xf0]  ;;  %v4358_v19 = vld [vmem:[%s6528_s11 + $0x60] sm:$0xf] }
  0x30   : > { %v4494_v13 = vld [vmem:[%s6528_s11 + $0x170] sm:$0xf]  ;;  %v5946_v14 = vld [vmem:[%s6528_s11 + $0x174] sm:$0xf0]  ;;  %v4431_v15 = vor.u32 %v5930_v12, %v4430_v10  ;;  %v5912_v21 = vld [vmem:[%s6528_s11 + $0x64] sm:$0xf0] }
  0x31   : > { %v4495_v16 = vor.u32 %v5946_v14, %v4494_v13  ;;  %v4558_v17 = vld [vmem:[%s6528_s11 + $0x1f0] sm:$0xf]  ;;  %v5962_v18 = vld [vmem:[%s6528_s11 + $0x1f4] sm:$0xf0]  ;;  %2980 = vmatpush.bf16.msra.mxu0 %v4367_v11  ;;  %v4422_v22 = vld [vmem:[%s6528_s11 + $0xe0] sm:$0xf]  ;;  %v4359_v24 = vor.u32 %v5912_v21, %v4358_v19 }
  0x32   : > { %v4559_v20 = vor.u32 %v5962_v18, %v4558_v17  ;;  %v5928_v23 = vld [vmem:[%s6528_s11 + $0xe4] sm:$0xf0]  ;;  %2999 = vmatpush.bf16.msra.mxu1 %v4431_v15  ;;  %v4486_v26 = vld [vmem:[%s6528_s11 + $0x160] sm:$0xf]  ;;  %v4350_v31 = vld [vmem:[%s6528_s11 + $0x50] sm:$0xf] }
  0x33   : > { %3018 = vmatpush.bf16.msra.mxu2 %v4495_v16  ;;  %v4423_v25 = vor.u32 %v5928_v23, %v4422_v22  ;;  %v5944_v27 = vld [vmem:[%s6528_s11 + $0x164] sm:$0xf0]  ;;  %v4550_v28 = vld [vmem:[%s6528_s11 + $0x1e0] sm:$0xf]  ;;  %v5910_v32 = vld [vmem:[%s6528_s11 + $0x54] sm:$0xf0] }
  0x34   : > { %3037 = vmatpush.bf16.msra.mxu3 %v4559_v20  ;;  %v4487_v29 = vor.u32 %v5944_v27, %v4486_v26  ;;  %v5960_v30 = vld [vmem:[%s6528_s11 + $0x1e4] sm:$0xf0]  ;;  %v4414_v34 = vld [vmem:[%s6528_s11 + $0xd0] sm:$0xf]  ;;  %v5926_v35 = vld [vmem:[%s6528_s11 + $0xd4] sm:$0xf0]  ;;  %v4351_v37 = vor.u32 %v5910_v32, %v4350_v31 }
  0x35   : > { %v4551_v33 = vor.u32 %v5960_v30, %v4550_v28  ;;  %v4478_v36 = vld [vmem:[%s6528_s11 + $0x150] sm:$0xf]  ;;  %2981 = vmatpush.bf16.msra.mxu0 %v4359_v24  ;;  %v5942_v38 = vld [vmem:[%s6528_s11 + $0x154] sm:$0xf0]  ;;  %v4415_v41 = vor.u32 %v5926_v35, %v4414_v34  ;;  %v4342_v43 = vld [vmem:[%s6528_s11 + $0x40] sm:$0xf] }
  0x36   : > { %v4542_v39 = vld [vmem:[%s6528_s11 + $0x1d0] sm:$0xf]  ;;  %v5958_v40 = vld [vmem:[%s6528_s11 + $0x1d4] sm:$0xf0]  ;;  %3000 = vmatpush.bf16.msra.mxu1 %v4423_v25  ;;  %v4479_v42 = vor.u32 %v5942_v38, %v4478_v36  ;;  %v5908_v44 = vld [vmem:[%s6528_s11 + $0x44] sm:$0xf0] }
  0x37   : > { %3019 = vmatpush.bf16.msra.mxu2 %v4487_v29  ;;  %v4406_v45 = vld [vmem:[%s6528_s11 + $0xc0] sm:$0xf]  ;;  %v4543_v46 = vor.u32 %v5958_v40, %v4542_v39  ;;  %v5924_v47 = vld [vmem:[%s6528_s11 + $0xc4] sm:$0xf0]  ;;  %v4343_v52 = vor.u32 %v5908_v44, %v4342_v43  ;;  %v4334_v55 = vld [vmem:[%s6528_s11 + $0x30] sm:$0xf] }
  0x38   : > { %3038 = vmatpush.bf16.msra.mxu3 %v4551_v33  ;;  %v4470_v48 = vld [vmem:[%s6528_s11 + $0x140] sm:$0xf]  ;;  %v5940_v49 = vld [vmem:[%s6528_s11 + $0x144] sm:$0xf0]  ;;  %v4407_v53 = vor.u32 %v5924_v47, %v4406_v45  ;;  %v5906_v56 = vld [vmem:[%s6528_s11 + $0x34] sm:$0xf0] }
  0x39   : > { %v4534_v50 = vld [vmem:[%s6528_s11 + $0x1c0] sm:$0xf]  ;;  %v5956_v51 = vld [vmem:[%s6528_s11 + $0x1c4] sm:$0xf0]  ;;  %2982 = vmatpush.bf16.msra.mxu0 %v4351_v37  ;;  %v4471_v54 = vor.u32 %v5940_v49, %v4470_v48  ;;  %v4398_v57 = vld [vmem:[%s6528_s11 + $0xb0] sm:$0xf]  ;;  %v4335_v0 = vor.u32 %v5906_v56, %v4334_v55 }
  0x3a   : > { %3001 = vmatpush.bf16.msra.mxu1 %v4415_v41  ;;  %v4535_v58 = vor.u32 %v5956_v51, %v4534_v50  ;;  %v5922_v59 = vld [vmem:[%s6528_s11 + $0xb4] sm:$0xf0]  ;;  %v4462_v60 = vld [vmem:[%s6528_s11 + $0x130] sm:$0xf]  ;;  %v4326_v3 = vld [vmem:[%s6528_s11 + $0x20] sm:$0xf] }
  0x3b   : > { %3020 = vmatpush.bf16.msra.mxu2 %v4479_v42  ;;  %v5938_v61 = vld [vmem:[%s6528_s11 + $0x134] sm:$0xf0]  ;;  %v4526_v62 = vld [vmem:[%s6528_s11 + $0x1b0] sm:$0xf]  ;;  %v4399_v1 = vor.u32 %v5922_v59, %v4398_v57  ;;  %v5904_v4 = vld [vmem:[%s6528_s11 + $0x24] sm:$0xf0] }
  0x3c   : > { %3039 = vmatpush.bf16.msra.mxu3 %v4543_v46  ;;  %v5954_v63 = vld [vmem:[%s6528_s11 + $0x1b4] sm:$0xf0]  ;;  %v4463_v2 = vor.u32 %v5938_v61, %v4462_v60  ;;  %v4390_v5 = vld [vmem:[%s6528_s11 + $0xa0] sm:$0xf]  ;;  %v5920_v7 = vld [vmem:[%s6528_s11 + $0xa4] sm:$0xf0]  ;;  %v4327_v12 = vor.u32 %v5904_v4, %v4326_v3 }
  0x3d   : > { %2983 = vmatpush.bf16.msra.mxu0 %v4343_v52  ;;  %v4527_v6 = vor.u32 %v5954_v63, %v4526_v62  ;;  %v4454_v8 = vld [vmem:[%s6528_s11 + $0x120] sm:$0xf]  ;;  %v5936_v9 = vld [vmem:[%s6528_s11 + $0x124] sm:$0xf0]  ;;  %v4391_v13 = vor.u32 %v5920_v7, %v4390_v5  ;;  %v4318_v15 = vld [vmem:[%s6528_s11 + $0x10] sm:$0xf] }
  0x3e   : > { %3002 = vmatpush.bf16.msra.mxu1 %v4407_v53  ;;  %v4518_v10 = vld [vmem:[%s6528_s11 + $0x1a0] sm:$0xf]  ;;  %v5952_v11 = vld [vmem:[%s6528_s11 + $0x1a4] sm:$0xf0]  ;;  %v4455_v14 = vor.u32 %v5936_v9, %v4454_v8  ;;  %v5902_v16 = vld [vmem:[%s6528_s11 + $0x14] sm:$0xf0] }
  0x3f   : > { %3021 = vmatpush.bf16.msra.mxu2 %v4471_v54  ;;  %v4382_v17 = vld [vmem:[%s6528_s11 + $0x90] sm:$0xf]  ;;  %v4519_v18 = vor.u32 %v5952_v11, %v4518_v10  ;;  %v5918_v19 = vld [vmem:[%s6528_s11 + $0x94] sm:$0xf0]  ;;  %v4310_v24 = vld [vmem:[%s6528_s11] sm:$0xf]  ;;  %v4319_v25 = vor.u32 %v5902_v16, %v4318_v15 }
  0x40   : > { %3040 = vmatpush.bf16.msra.mxu3 %v4535_v58  ;;  %v4446_v20 = vld [vmem:[%s6528_s11 + $0x110] sm:$0xf]  ;;  %v5934_v21 = vld [vmem:[%s6528_s11 + $0x114] sm:$0xf0]  ;;  %v5900_v26 = vld [vmem:[%s6528_s11 + $0x4] sm:$0xf0]  ;;  %v4383_v29 = vor.u32 %v5918_v19, %v4382_v17 }
  0x41   : > { %2984 = vmatpush.bf16.msra.mxu0 %v4335_v0  ;;  %v4510_v22 = vld [vmem:[%s6528_s11 + $0x190] sm:$0xf]  ;;  %v5950_v23 = vld [vmem:[%s6528_s11 + $0x194] sm:$0xf0]  ;;  %v4374_v27 = vld [vmem:[%s6528_s11 + $0x80] sm:$0xf]  ;;  %v4447_v30 = vor.u32 %v5934_v21, %v4446_v20  ;;  %v4311_v42 = vor.u32 %v5900_v26, %v4310_v24 }
  0x42   : > { %3003 = vmatpush.bf16.msra.mxu1 %v4399_v1  ;;  %v5916_v28 = vld [vmem:[%s6528_s11 + $0x84] sm:$0xf0]  ;;  %v4438_v31 = vld [vmem:[%s6528_s11 + $0x100] sm:$0xf]  ;;  %v4511_v34 = vor.u32 %v5950_v23, %v4510_v22  ;;  %v5851_v38 = vld [vmem:[%s8021_s0 + $0x4] sm:$0xf] }
  0x43   : > { %3022 = vmatpush.bf16.msra.mxu2 %v4463_v2  ;;  %v5932_v32 = vld [vmem:[%s6528_s11 + $0x104] sm:$0xf0]  ;;  %v4502_v33 = vld [vmem:[%s6528_s11 + $0x180] sm:$0xf]  ;;  %v4120_v39 = vld [vmem:[%s8021_s0 + $0x60] sm:$0xf0]  ;;  %v4375_v46 = vor.u32 %v5916_v28, %v4374_v27 }
  0x44   : > { %3041 = vmatpush.bf16.msra.mxu3 %v4527_v6  ;;  %v5948_v35 = vld [vmem:[%s6528_s11 + $0x184] sm:$0xf0]  ;;  %v4118_v36 = vld [vmem:[%s8021_s0] sm:$0xf]  ;;  %v4750_v40 = vld [vmem:[%s6528_s11 + $0x370] sm:$0xf]  ;;  %v4439_v47 = vor.u32 %v5932_v32, %v4438_v31  ;;  %v6634_v61 = vor.u32 %v5851_v38, %v4120_v39 }
  0x45   : > { %2985 = vmatpush.bf16.msra.mxu0 %v4327_v12  ;;  %v5863_v37 = vld [vmem:[%s8021_s0 + $0x5c] sm:$0xf0]  ;;  %v6010_v41 = vld [vmem:[%s6528_s11 + $0x374] sm:$0xf0]  ;;  %v4126_v43 = vld [vmem:[%s8021_s0 + $0x8] sm:$0xf]  ;;  %v4503_v51 = vor.u32 %v5948_v35, %v4502_v33 }
  0x46   : > { %3004 = vmatpush.bf16.msra.mxu1 %v4391_v13  ;;  %v4686_v44 = vld [vmem:[%s6528_s11 + $0x2f0] sm:$0xf]  ;;  %v5994_v45 = vld [vmem:[%s6528_s11 + $0x2f4] sm:$0xf0]  ;;  %v5864_v48 = vld [vmem:[%s8021_s0 + $0x64] sm:$0xf0]  ;;  %v4751_v52 = vor.u32 %v6010_v41, %v4750_v40  ;;  %v6629_v56 = vor.u32 %v5863_v37, %v4118_v36 }
  0x47   : > { %3023 = vmatpush.bf16.msra.mxu2 %v4455_v14  ;;  %v5852_v49 = vld [vmem:[%s8021_s0 + $0xc] sm:$0xf]  ;;  %v4622_v53 = vld [vmem:[%s6528_s11 + $0x270] sm:$0xf]  ;;  %v5978_v54 = vld [vmem:[%s6528_s11 + $0x274] sm:$0xf0]  ;;  %v4687_v57 = vor.u32 %v5994_v45, %v4686_v44  ;;  %v6636_v62 = vor.u32 %v5864_v48, %v4126_v43 }
  0x48   : > { %3042 = vmatpush.bf16.msra.mxu3 %v4519_v18  ;;  %v4128_v50 = vld [vmem:[%s8021_s0 + $0x68] sm:$0xf0]  ;;  %v4814_v55 = vld [vmem:[%s6528_s11 + $0x3f0] sm:$0xf]  ;;  %v6026_v58 = vld [vmem:[%s6528_s11 + $0x3f4] sm:$0xf0]  ;;  %v4623_v2 = vor.u32 %v5978_v54, %v4622_v53 }
  0x49   : > { %2986 = vmatpush.bf16.msra.mxu0 %v4319_v25  ;;  %v4742_v59 = vld [vmem:[%s6528_s11 + $0x360] sm:$0xf]  ;;  %v6008_v60 = vld [vmem:[%s6528_s11 + $0x364] sm:$0xf0]  ;;  %v6640_v1 = vor.u32 %v5852_v49, %v4128_v50  ;;  %v4815_v3 = vor.u32 %v6026_v58, %v4814_v55  ;;  %v4734_v10 = vld [vmem:[%s6528_s11 + $0x350] sm:$0xf] }
  0x4a   : > { %3005 = vmatpush.bf16.msra.mxu1 %v4383_v29  ;;  %v4678_v63 = vld [vmem:[%s6528_s11 + $0x2e0] sm:$0xf]  ;;  %v5992_v0 = vld [vmem:[%s6528_s11 + $0x2e4] sm:$0xf0]  ;;  %v4743_v4 = vor.u32 %v6008_v60, %v4742_v59  ;;  %v6006_v11 = vld [vmem:[%s6528_s11 + $0x354] sm:$0xf0] }
  0x4b   : > { %3024 = vmatpush.bf16.msra.mxu2 %v4447_v30  ;;  %v4614_v5 = vld [vmem:[%s6528_s11 + $0x260] sm:$0xf]  ;;  %v5976_v6 = vld [vmem:[%s6528_s11 + $0x264] sm:$0xf0]  ;;  %v4679_v8 = vor.u32 %v5992_v0, %v4678_v63  ;;  %v4670_v12 = vld [vmem:[%s6528_s11 + $0x2d0] sm:$0xf]  ;;  %v4735_v16 = vor.u32 %v6006_v11, %v4734_v10 }
  0x4c   : > { %3043 = vmatpush.bf16.msra.mxu3 %v4511_v34  ;;  %v4806_v7 = vld [vmem:[%s6528_s11 + $0x3e0] sm:$0xf]  ;;  %v6024_v9 = vld [vmem:[%s6528_s11 + $0x3e4] sm:$0xf0]  ;;  %v5990_v13 = vld [vmem:[%s6528_s11 + $0x2d4] sm:$0xf0]  ;;  %v4615_v14 = vor.u32 %v5976_v6, %v4614_v5 }
  0x4d   : > { %2987 = vmatpush.bf16.msra.mxu0 %v4311_v42  ;;  %v4807_v15 = vor.u32 %v6024_v9, %v4806_v7  ;;  %v4606_v17 = vld [vmem:[%s6528_s11 + $0x250] sm:$0xf]  ;;  %v5974_v18 = vld [vmem:[%s6528_s11 + $0x254] sm:$0xf0]  ;;  %v4671_v20 = vor.u32 %v5990_v13, %v4670_v12  ;;  %v4726_v22 = vld [vmem:[%s6528_s11 + $0x340] sm:$0xf] }
  0x4e   : > { %3006 = vmatpush.bf16.msra.mxu1 %v4375_v46  ;;  %v4798_v19 = vld [vmem:[%s6528_s11 + $0x3d0] sm:$0xf]  ;;  %v6022_v21 = vld [vmem:[%s6528_s11 + $0x3d4] sm:$0xf0]  ;;  %v6004_v23 = vld [vmem:[%s6528_s11 + $0x344] sm:$0xf0]  ;;  %v4607_v26 = vor.u32 %v5974_v18, %v4606_v17 }
  0x4f   : > { %3025 = vmatpush.bf16.msra.mxu2 %v4439_v47  ;;  %v4662_v24 = vld [vmem:[%s6528_s11 + $0x2c0] sm:$0xf]  ;;  %v5988_v25 = vld [vmem:[%s6528_s11 + $0x2c4] sm:$0xf0]  ;;  %v4799_v30 = vor.u32 %v6022_v21, %v4798_v19  ;;  %v4727_v31 = vor.u32 %v6004_v23, %v4726_v22  ;;  %v5875_v36 = vld [vmem:[%s8021_s0 + $0xc4] sm:$0xf] }
  0x50   : > { %3044 = vmatpush.bf16.msra.mxu3 %v4503_v51  ;;  %2988 = vmatmul.bf16.vlgmr.msra.gmra.mxu0 %v6629_v56  ;;  %v4598_v27 = vld [vmem:[%s6528_s11 + $0x240] sm:$0xf]  ;;  %v5972_v28 = vld [vmem:[%s6528_s11 + $0x244] sm:$0xf0]  ;;  %v4663_v35 = vor.u32 %v5988_v25, %v4662_v24  ;;  %v4216_v37 = vld [vmem:[%s8021_s0 + $0x120] sm:$0xf0] }
  0x51   : > { %3007 = vmatmul.bf16.vlgmr.msra.gmra.mxu1 %v6634_v61  ;;  %3056 = vmatpush.bf16.msrb.mxu0 %v4623_v2  ;;  %v4790_v29 = vld [vmem:[%s6528_s11 + $0x3c0] sm:$0xf]  ;;  %v6020_v32 = vld [vmem:[%s6528_s11 + $0x3c4] sm:$0xf0]  ;;  %v4718_v38 = vld [vmem:[%s6528_s11 + $0x330] sm:$0xf]  ;;  %v4599_v43 = vor.u32 %v5972_v28, %v4598_v27  ;;  %v6702_v58 = vor.u32 %v5875_v36, %v4216_v37 }
  0x52   : > { %3075 = vmatpush.bf16.msrb.mxu1 %v4687_v57  ;;  %3026 = vmatmul.bf16.vlgmr.msra.gmra.mxu2 %v6636_v62  ;;  %v4214_v33 = vld [vmem:[%s8021_s0 + $0xc0] sm:$0xf]  ;;  %v6002_v39 = vld [vmem:[%s6528_s11 + $0x334] sm:$0xf0]  ;;  %v4222_v40 = vld [vmem:[%s8021_s0 + $0xc8] sm:$0xf]  ;;  %v4791_v47 = vor.u32 %v6020_v32, %v4790_v29 }
  0x53   : > { %3094 = vmatpush.bf16.msrb.mxu2 %v4751_v52  ;;  %3045 = vmatmul.bf16.vlgmr.msra.gmra.mxu3 %v6640_v1  ;;  %v5887_v34 = vld [vmem:[%s8021_s0 + $0x11c] sm:$0xf0]  ;;  %v4654_v41 = vld [vmem:[%s6528_s11 + $0x2b0] sm:$0xf]  ;;  %v5986_v42 = vld [vmem:[%s6528_s11 + $0x2b4] sm:$0xf0]  ;;  %v4719_v48 = vor.u32 %v6002_v39, %v4718_v38 }
  0x54   : > { %3113 = vmatpush.bf16.msrb.mxu3 %v4815_v3  ;;  %v5888_v44 = vld [vmem:[%s8021_s0 + $0x124] sm:$0xf0]  ;;  %v5876_v45 = vld [vmem:[%s8021_s0 + $0xcc] sm:$0xf]  ;;  %v4590_v49 = vld [vmem:[%s6528_s11 + $0x230] sm:$0xf]  ;;  %v6697_v52 = vor.u32 %v5887_v34, %v4214_v33  ;;  %v4655_v53 = vor.u32 %v5986_v42, %v4654_v41 }
  0x55   : > { %3057 = vmatpush.bf16.msrb.mxu0 %v4615_v14  ;;  %v4224_v46 = vld [vmem:[%s8021_s0 + $0x128] sm:$0xf0]  ;;  %v5970_v50 = vld [vmem:[%s6528_s11 + $0x234] sm:$0xf0]  ;;  %v4782_v51 = vld [vmem:[%s6528_s11 + $0x3b0] sm:$0xf]  ;;  %v6704_v59 = vor.u32 %v5888_v44, %v4222_v40 }
  0x56   : > { %3076 = vmatpush.bf16.msrb.mxu1 %v4679_v8  ;;  %v6018_v54 = vld [vmem:[%s6528_s11 + $0x3b4] sm:$0xf0]  ;;  %v4710_v55 = vld [vmem:[%s6528_s11 + $0x320] sm:$0xf]  ;;  %v6000_v57 = vld [vmem:[%s6528_s11 + $0x324] sm:$0xf0]  ;;  %v6708_v0 = vor.u32 %v5876_v45, %v4224_v46  ;;  %v4591_v2 = vor.u32 %v5970_v50, %v4590_v49 }
  0x57   : > { %3095 = vmatpush.bf16.msrb.mxu2 %v4743_v4  ;;  %v4646_v60 = vld [vmem:[%s6528_s11 + $0x2a0] sm:$0xf]  ;;  %v5984_v63 = vld [vmem:[%s6528_s11 + $0x2a4] sm:$0xf0]  ;;  %v4783_v3 = vor.u32 %v6018_v54, %v4782_v51  ;;  %v4711_v4 = vor.u32 %v6000_v57, %v4710_v55  ;;  %v4702_v10 = vld [vmem:[%s6528_s11 + $0x310] sm:$0xf] }
  0x58   : > { %3114 = vmatpush.bf16.msrb.mxu3 %v4807_v15  ;;  %v4582_v5 = vld [vmem:[%s6528_s11 + $0x220] sm:$0xf]  ;;  %v5968_v6 = vld [vmem:[%s6528_s11 + $0x224] sm:$0xf0]  ;;  %v4647_v8 = vor.u32 %v5984_v63, %v4646_v60  ;;  %v5998_v11 = vld [vmem:[%s6528_s11 + $0x314] sm:$0xf0] }
  0x59   : > { %3058 = vmatpush.bf16.msrb.mxu0 %v4607_v26  ;;  %v4774_v7 = vld [vmem:[%s6528_s11 + $0x3a0] sm:$0xf]  ;;  %v6016_v9 = vld [vmem:[%s6528_s11 + $0x3a4] sm:$0xf0]  ;;  %v4638_v12 = vld [vmem:[%s6528_s11 + $0x290] sm:$0xf]  ;;  %v4583_v14 = vor.u32 %v5968_v6, %v4582_v5  ;;  %v4703_v17 = vor.u32 %v5998_v11, %v4702_v10 }
  0x5a   : > { %3077 = vmatpush.bf16.msrb.mxu1 %v4671_v20  ;;  %v5982_v13 = vld [vmem:[%s6528_s11 + $0x294] sm:$0xf0]  ;;  %v4574_v15 = vld [vmem:[%s6528_s11 + $0x210] sm:$0xf]  ;;  %v4694_v22 = vld [vmem:[%s6528_s11 + $0x300] sm:$0xf] }
  0x5b   : > { %3096 = vmatpush.bf16.msrb.mxu2 %v4735_v16  ;;  %v4775_v16 = vor.u32 %v6016_v9, %v4774_v7  ;;  %v5966_v18 = vld [vmem:[%s6528_s11 + $0x214] sm:$0xf0]  ;;  %v4766_v19 = vld [vmem:[%s6528_s11 + $0x390] sm:$0xf]  ;;  %v4639_v21 = vor.u32 %v5982_v13, %v4638_v12  ;;  %v5996_v23 = vld [vmem:[%s6528_s11 + $0x304] sm:$0xf0] }
  0x5c   : > { %3115 = vmatpush.bf16.msrb.mxu3 %v4799_v30  ;;  %v6014_v20 = vld [vmem:[%s6528_s11 + $0x394] sm:$0xf0]  ;;  %v4630_v24 = vld [vmem:[%s6528_s11 + $0x280] sm:$0xf]  ;;  %v5980_v25 = vld [vmem:[%s6528_s11 + $0x284] sm:$0xf0]  ;;  %v4575_v28 = vor.u32 %v5966_v18, %v4574_v15  ;;  %v4695_v33 = vor.u32 %v5996_v23, %v4694_v22 }
  0x5d   : > { %3059 = vmatpush.bf16.msrb.mxu0 %v4599_v43  ;;  %v5006_v26 = vld [vmem:[%s6528_s11 + $0x570] sm:$0xf]  ;;  %v6074_v27 = vld [vmem:[%s6528_s11 + $0x574] sm:$0xf0]  ;;  %v4566_v29 = vld [vmem:[%s6528_s11 + $0x200] sm:$0xf]  ;;  %v4767_v32 = vor.u32 %v6014_v20, %v4766_v19  ;;  %v4631_v37 = vor.u32 %v5980_v25, %v4630_v24 }
  0x5e   : > { %3078 = vmatpush.bf16.msrb.mxu1 %v4663_v35  ;;  %v4942_v30 = vld [vmem:[%s6528_s11 + $0x4f0] sm:$0xf]  ;;  %v5964_v34 = vld [vmem:[%s6528_s11 + $0x204] sm:$0xf0]  ;;  %v4758_v35 = vld [vmem:[%s6528_s11 + $0x380] sm:$0xf]  ;;  %v5007_v42 = vor.u32 %v6074_v27, %v5006_v26 }
  0x5f   : > { %3097 = vmatpush.bf16.msrb.mxu2 %v4727_v31  ;;  %v6058_v31 = vld [vmem:[%s6528_s11 + $0x4f4] sm:$0xf0]  ;;  %v6012_v36 = vld [vmem:[%s6528_s11 + $0x384] sm:$0xf0]  ;;  %v4134_v38 = vld [vmem:[%s8021_s0 + $0x10] sm:$0xf]  ;;  %v4567_v50 = vor.u32 %v5964_v34, %v4566_v29 }
  0x60   : > { %3116 = vmatpush.bf16.msrb.mxu3 %v4791_v47  ;;  %2993 = vmatmul.bf16.gmra.mxu0 %v6697_v52  ;;  %v5865_v39 = vld [vmem:[%s8021_s0 + $0x6c] sm:$0xf0]  ;;  %v5853_v40 = vld [vmem:[%s8021_s0 + $0x14] sm:$0xf]  ;;  %v6042_v44 = vld [vmem:[%s6528_s11 + $0x474] sm:$0xf0]  ;;  %v4943_v46 = vor.u32 %v6058_v31, %v4942_v30  ;;  %v4759_v55 = vor.u32 %v6012_v36, %v4758_v35 }
  0x61   : > { %3012 = vmatmul.bf16.gmra.mxu1 %v6702_v58  ;;  %3060 = vmatpush.bf16.msrb.mxu0 %v4591_v2  ;;  %v4136_v41 = vld [vmem:[%s8021_s0 + $0x70] sm:$0xf0]  ;;  %v4878_v43 = vld [vmem:[%s6528_s11 + $0x470] sm:$0xf]  ;;  %v6090_v47 = vld [vmem:[%s6528_s11 + $0x5f4] sm:$0xf0] }
  0x62   : > { %3079 = vmatpush.bf16.msrb.mxu1 %v4655_v53  ;;  %3031 = vmatmul.bf16.gmra.mxu2 %v6704_v59  ;;  %v5070_v45 = vld [vmem:[%s6528_s11 + $0x5f0] sm:$0xf]  ;;  %v6072_v49 = vld [vmem:[%s6528_s11 + $0x564] sm:$0xf0]  ;;  %v4142_v51 = vld [vmem:[%s8021_s0 + $0x18] sm:$0xf]  ;;  %v4879_v60 = vor.u32 %v6042_v44, %v4878_v43  ;;  %v6775_v9 = vor.u32 %v5853_v40, %v4136_v41 }
  0x63   : > { %3098 = vmatpush.bf16.msrb.mxu2 %v4719_v48  ;;  %3050 = vmatmul.bf16.gmra.mxu3 %v6708_v0  ;;  %v4998_v48 = vld [vmem:[%s6528_s11 + $0x560] sm:$0xf]  ;;  %v5866_v53 = vld [vmem:[%s8021_s0 + $0x74] sm:$0xf0]  ;;  %v5854_v54 = vld [vmem:[%s8021_s0 + $0x1c] sm:$0xf] }
  0x64   : > { %3117 = vmatpush.bf16.msrb.mxu3 %v4783_v3  ;;  %v4144_v57 = vld [vmem:[%s8021_s0 + $0x78] sm:$0xf0]  ;;  %v4870_v63 = vld [vmem:[%s6528_s11 + $0x460] sm:$0xf]  ;;  %v6040_v2 = vld [vmem:[%s6528_s11 + $0x464] sm:$0xf0]  ;;  %v5071_v3 = vor.u32 %v6090_v47, %v5070_v45  ;;  %v6780_v13 = vor.u32 %v5866_v53, %v4142_v51 }
  0x65   : > { %3061 = vmatpush.bf16.msrb.mxu0 %v4583_v14  ;;  %v4934_v5 = vld [vmem:[%s6528_s11 + $0x4e0] sm:$0xf]  ;;  %v6056_v6 = vld [vmem:[%s6528_s11 + $0x4e4] sm:$0xf0]  ;;  %v4990_v11 = vld [vmem:[%s6528_s11 + $0x550] sm:$0xf]  ;;  %v6782_v14 = vor.u32 %v5854_v54, %v4144_v57  ;;  %v4871_v15 = vor.u32 %v6040_v2, %v4870_v63 }
  0x66   : > { %3080 = vmatpush.bf16.msrb.mxu1 %v4647_v8  ;;  %v5062_v7 = vld [vmem:[%s6528_s11 + $0x5e0] sm:$0xf]  ;;  %v6773_v8 = vor.u32 %v5865_v39, %v4134_v38  ;;  %v6088_v10 = vld [vmem:[%s6528_s11 + $0x5e4] sm:$0xf0]  ;;  %v6070_v12 = vld [vmem:[%s6528_s11 + $0x554] sm:$0xf0] }
  0x67   : > { %3099 = vmatpush.bf16.msrb.mxu2 %v4711_v4  ;;  %v4999_v4 = vor.u32 %v6072_v49, %v4998_v48  ;;  %v6038_v18 = vld [vmem:[%s6528_s11 + $0x454] sm:$0xf0]  ;;  %v5063_v19 = vor.u32 %v6088_v10, %v5062_v7  ;;  %v4991_v20 = vor.u32 %v6070_v12, %v4990_v11  ;;  %v5054_v23 = vld [vmem:[%s6528_s11 + $0x5d0] sm:$0xf]  ;;  %v4982_v25 = vld [vmem:[%s6528_s11 + $0x540] sm:$0xf] }
  0x68   : > { %3118 = vmatpush.bf16.msrb.mxu3 %v4775_v16  ;;  %v4935_v16 = vor.u32 %v6056_v6, %v4934_v5  ;;  %v6054_v22 = vld [vmem:[%s6528_s11 + $0x4d4] sm:$0xf0]  ;;  %v6068_v26 = vld [vmem:[%s6528_s11 + $0x544] sm:$0xf0]  ;;  %v4854_v29 = vld [vmem:[%s6528_s11 + $0x440] sm:$0xf] }
  0x69   : > { %3062 = vmatpush.bf16.msrb.mxu0 %v4575_v28  ;;  %v6086_v24 = vld [vmem:[%s6528_s11 + $0x5d4] sm:$0xf0]  ;;  %v6036_v30 = vld [vmem:[%s6528_s11 + $0x444] sm:$0xf0]  ;;  %v5046_v35 = vld [vmem:[%s6528_s11 + $0x5c0] sm:$0xf] }
  0x6a   : > { %3081 = vmatpush.bf16.msrb.mxu1 %v4639_v21  ;;  %v4926_v21 = vld [vmem:[%s6528_s11 + $0x4d0] sm:$0xf]  ;;  %v5055_v31 = vor.u32 %v6086_v24, %v5054_v23  ;;  %v6052_v34 = vld [vmem:[%s6528_s11 + $0x4c4] sm:$0xf0]  ;;  %v6066_v38 = vld [vmem:[%s6528_s11 + $0x534] sm:$0xf0]  ;;  %v4855_v39 = vor.u32 %v6036_v30, %v4854_v29 }
  0x6b   : > { %3100 = vmatpush.bf16.msrb.mxu2 %v4703_v17  ;;  %v4862_v17 = vld [vmem:[%s6528_s11 + $0x450] sm:$0xf]  ;;  %v4927_v28 = vor.u32 %v6054_v22, %v4926_v21  ;;  %v6084_v36 = vld [vmem:[%s6528_s11 + $0x5c4] sm:$0xf0]  ;;  %v4232_v47 = vld [vmem:[%s8021_s0 + $0x130] sm:$0xf0] }
  0x6c   : > { %3119 = vmatpush.bf16.msrb.mxu3 %v4767_v32  ;;  %v4863_v27 = vor.u32 %v6038_v18, %v4862_v17  ;;  %v4983_v32 = vor.u32 %v6068_v26, %v4982_v25  ;;  %v4846_v41 = vld [vmem:[%s6528_s11 + $0x430] sm:$0xf]  ;;  %v5047_v43 = vor.u32 %v6084_v36, %v5046_v35  ;;  %v6082_v53 = vld [vmem:[%s6528_s11 + $0x5b4] sm:$0xf0]  ;;  %v4966_v54 = vld [vmem:[%s6528_s11 + $0x520] sm:$0xf] }
  0x6d   : > { %3063 = vmatpush.bf16.msrb.mxu0 %v4567_v50  ;;  %v4230_v44 = vld [vmem:[%s8021_s0 + $0xd0] sm:$0xf]  ;;  %v6050_v50 = vld [vmem:[%s6528_s11 + $0x4b4] sm:$0xf0]  ;;  %v5878_v63 = vld [vmem:[%s8021_s0 + $0xdc] sm:$0xf] }
  0x6e   : > { %3082 = vmatpush.bf16.msrb.mxu1 %v4631_v37  ;;  %v4974_v37 = vld [vmem:[%s6528_s11 + $0x530] sm:$0xf]  ;;  %v4238_v57 = vld [vmem:[%s8021_s0 + $0xd8] sm:$0xf]  ;;  %v4240_v2 = vld [vmem:[%s8021_s0 + $0x138] sm:$0xf0] }
  0x6f   : > { %3101 = vmatpush.bf16.msrb.mxu2 %v4695_v33  ;;  %v4918_v33 = vld [vmem:[%s6528_s11 + $0x4c0] sm:$0xf]  ;;  %v5889_v45 = vld [vmem:[%s8021_s0 + $0x12c] sm:$0xf0]  ;;  %v4975_v48 = vor.u32 %v6066_v38, %v4974_v37  ;;  %v6032_v6 = vld [vmem:[%s6528_s11 + $0x424] sm:$0xf0]  ;;  %v6850_v22 = vor.u32 %v5878_v63, %v4240_v2 }
  0x70   : > { %3120 = vmatpush.bf16.msrb.mxu3 %v4759_v55  ;;  %3064 = vmatmul.bf16.vlgmr.msrb.gmra.mxu0 %v6773_v8  ;;  %v4919_v40 = vor.u32 %v6052_v34, %v4918_v33  ;;  %v4910_v49 = vld [vmem:[%s6528_s11 + $0x4b0] sm:$0xf]  ;;  %v6064_v55 = vld [vmem:[%s6528_s11 + $0x524] sm:$0xf0]  ;;  %v4838_v5 = vld [vmem:[%s6528_s11 + $0x420] sm:$0xf] }
  0x71   : > { %3132 = vmatpush.bf16.msra.mxu0 %v4879_v60  ;;  %3083 = vmatmul.bf16.vlgmr.msrb.gmra.mxu1 %v6775_v9  ;;  %v5038_v51 = vld [vmem:[%s6528_s11 + $0x5b0] sm:$0xf]  ;;  %v5890_v60 = vld [vmem:[%s8021_s0 + $0x134] sm:$0xf0]  ;;  %v4967_v10 = vor.u32 %v6064_v55, %v4966_v54  ;;  %v4902_v11 = vld [vmem:[%s6528_s11 + $0x4a0] sm:$0xf]  ;;  %v4839_v23 = vor.u32 %v6032_v6, %v4838_v5 }
  0x72   : > { %3151 = vmatpush.bf16.msra.mxu1 %v4943_v46  ;;  %3102 = vmatmul.bf16.vlgmr.msrb.gmra.mxu2 %v6780_v13  ;;  %v5877_v46 = vld [vmem:[%s8021_s0 + $0xd4] sm:$0xf]  ;;  %v5039_v7 = vor.u32 %v6082_v53, %v5038_v51  ;;  %v6048_v12 = vld [vmem:[%s6528_s11 + $0x4a4] sm:$0xf0]  ;;  %v6848_v21 = vor.u32 %v5890_v60, %v4238_v57  ;;  %v4830_v25 = vld [vmem:[%s6528_s11 + $0x410] sm:$0xf] }
  0x73   : > { %3170 = vmatpush.bf16.msra.mxu2 %v5007_v42  ;;  %3121 = vmatmul.bf16.vlgmr.msrb.gmra.mxu3 %v6782_v14  ;;  %v6034_v42 = vld [vmem:[%s6528_s11 + $0x434] sm:$0xf0]  ;;  %v6843_v17 = vor.u32 %v5877_v46, %v4232_v47  ;;  %v6080_v18 = vld [vmem:[%s6528_s11 + $0x5a4] sm:$0xf0]  ;;  %v4903_v24 = vor.u32 %v6048_v12, %v4902_v11  ;;  %v4894_v29 = vld [vmem:[%s6528_s11 + $0x490] sm:$0xf] }
  0x74   : > { %3189 = vmatpush.bf16.msra.mxu3 %v5071_v3  ;;  %v4847_v3 = vor.u32 %v6034_v42, %v4846_v41  ;;  %v6030_v26 = vld [vmem:[%s6528_s11 + $0x414] sm:$0xf0]  ;;  %v4950_v33 = vld [vmem:[%s6528_s11 + $0x500] sm:$0xf]  ;;  %v6060_v34 = vld [vmem:[%s6528_s11 + $0x504] sm:$0xf0] }
  0x75   : > { %3133 = vmatpush.bf16.msra.mxu0 %v4871_v15  ;;  %v5030_v15 = vld [vmem:[%s6528_s11 + $0x5a0] sm:$0xf]  ;;  %v6046_v30 = vld [vmem:[%s6528_s11 + $0x494] sm:$0xf0]  ;;  %v5262_v35 = vld [vmem:[%s6528_s11 + $0x770] sm:$0xf]  ;;  %v4831_v37 = vor.u32 %v6030_v26, %v4830_v25 }
  0x76   : > { %3152 = vmatpush.bf16.msra.mxu1 %v4935_v16  ;;  %v6841_v16 = vor.u32 %v5889_v45, %v4230_v44  ;;  %v6138_v36 = vld [vmem:[%s6528_s11 + $0x774] sm:$0xf0]  ;;  %v4895_v38 = vor.u32 %v6046_v30, %v4894_v29  ;;  %v4886_v41 = vld [vmem:[%s6528_s11 + $0x480] sm:$0xf]  ;;  %v6044_v44 = vld [vmem:[%s6528_s11 + $0x484] sm:$0xf0] }
  0x77   : > { %3171 = vmatpush.bf16.msra.mxu2 %v4999_v4  ;;  %v4911_v4 = vor.u32 %v6050_v50, %v4910_v49  ;;  %v5014_v45 = vld [vmem:[%s6528_s11 + $0x580] sm:$0xf]  ;;  %v6076_v46 = vld [vmem:[%s6528_s11 + $0x584] sm:$0xf0]  ;;  %v5263_v47 = vor.u32 %v6138_v36, %v5262_v35  ;;  %v6106_v49 = vld [vmem:[%s6528_s11 + $0x674] sm:$0xf0]  ;;  %v4887_v57 = vor.u32 %v6044_v44, %v4886_v41 }
  0x78   : > { %3190 = vmatpush.bf16.msra.mxu3 %v5063_v19  ;;  %v4958_v19 = vld [vmem:[%s6528_s11 + $0x510] sm:$0xf]  ;;  %v6122_v51 = vld [vmem:[%s6528_s11 + $0x6f4] sm:$0xf0]  ;;  %v5254_v60 = vld [vmem:[%s6528_s11 + $0x760] sm:$0xf]  ;;  %v5015_v2 = vor.u32 %v6076_v46, %v5014_v45 }
  0x79   : > { %3134 = vmatpush.bf16.msra.mxu0 %v4863_v27  ;;  %v5031_v27 = vor.u32 %v6080_v18, %v5030_v15  ;;  %v5198_v50 = vld [vmem:[%s6528_s11 + $0x6f0] sm:$0xf]  ;;  %v6154_v54 = vld [vmem:[%s6528_s11 + $0x7f4] sm:$0xf0]  ;;  %v6136_v63 = vld [vmem:[%s6528_s11 + $0x764] sm:$0xf0] }
  0x7a   : > { %3153 = vmatpush.bf16.msra.mxu1 %v4927_v28  ;;  %v5326_v53 = vld [vmem:[%s6528_s11 + $0x7f0] sm:$0xf]  ;;  %v5855_v5 = vld [vmem:[%s8021_s0 + $0x24] sm:$0xf]  ;;  %v5126_v12 = vld [vmem:[%s6528_s11 + $0x660] sm:$0xf] }
  0x7b   : > { %3172 = vmatpush.bf16.msra.mxu2 %v4991_v20  ;;  %v6062_v20 = vld [vmem:[%s6528_s11 + $0x514] sm:$0xf0]  ;;  %v5327_v11 = vor.u32 %v6154_v54, %v5326_v53  ;;  %v6104_v15 = vld [vmem:[%s6528_s11 + $0x664] sm:$0xf0]  ;;  %v5190_v25 = vld [vmem:[%s6528_s11 + $0x6e0] sm:$0xf] }
  0x7c   : > { %3191 = vmatpush.bf16.msra.mxu3 %v5055_v31  ;;  %v4959_v28 = vor.u32 %v6062_v20, %v4958_v19  ;;  %v5022_v31 = vld [vmem:[%s6528_s11 + $0x590] sm:$0xf]  ;;  %v4158_v18 = vld [vmem:[%s8021_s0 + $0x28] sm:$0xf]  ;;  %v5856_v20 = vld [vmem:[%s8021_s0 + $0x2c] sm:$0xf] }
  0x7d   : > { %3135 = vmatpush.bf16.msra.mxu0 %v4855_v39  ;;  %v4822_v39 = vld [vmem:[%s6528_s11 + $0x400] sm:$0xf]  ;;  %v5868_v19 = vld [vmem:[%s8021_s0 + $0x84] sm:$0xf0]  ;;  %v5246_v30 = vld [vmem:[%s6528_s11 + $0x750] sm:$0xf] }
  0x7e   : > { %3154 = vmatpush.bf16.msra.mxu1 %v4919_v40  ;;  %v6028_v40 = vld [vmem:[%s6528_s11 + $0x404] sm:$0xf0]  ;;  %v6102_v35 = vld [vmem:[%s6528_s11 + $0x654] sm:$0xf0]  ;;  %v6918_v36 = vor.u32 %v5868_v19, %v4158_v18  ;;  %v5310_v44 = vld [vmem:[%s6528_s11 + $0x7d0] sm:$0xf] }
  0x7f   : > { %3173 = vmatpush.bf16.msra.mxu2 %v4983_v32  ;;  %v6078_v32 = vld [vmem:[%s6528_s11 + $0x594] sm:$0xf0]  ;;  %v4823_v55 = vor.u32 %v6028_v40, %v4822_v39  ;;  %v6120_v26 = vld [vmem:[%s6528_s11 + $0x6e4] sm:$0xf0]  ;;  %v5182_v40 = vld [vmem:[%s6528_s11 + $0x6d0] sm:$0xf] }
  0x80   : > { %3192 = vmatpush.bf16.msra.mxu3 %v5047_v43  ;;  %3069 = vmatmul.bf16.gmra.mxu0 %v6841_v16  ;;  %v5023_v42 = vor.u32 %v6078_v32, %v5022_v31  ;;  %v4951_v43 = vor.u32 %v6060_v34, %v4950_v33  ;;  %v6152_v29 = vld [vmem:[%s6528_s11 + $0x7e4] sm:$0xf0]  ;;  %v6134_v33 = vld [vmem:[%s6528_s11 + $0x754] sm:$0xf0]  ;;  %v5118_v34 = vld [vmem:[%s6528_s11 + $0x650] sm:$0xf] }
  0x81   : > { %3136 = vmatpush.bf16.msra.mxu0 %v4847_v3  ;;  %3088 = vmatmul.bf16.gmra.mxu1 %v6843_v17  ;;  %v4150_v3 = vld [vmem:[%s8021_s0 + $0x20] sm:$0xf]  ;;  %v6118_v41 = vld [vmem:[%s6528_s11 + $0x6d4] sm:$0xf0]  ;;  %v6116_v54 = vld [vmem:[%s6528_s11 + $0x6c4] sm:$0xf0] }
  0x82   : > { %3155 = vmatpush.bf16.msra.mxu1 %v4911_v4  ;;  %3107 = vmatmul.bf16.gmra.mxu2 %v6848_v21  ;;  %v5867_v4 = vld [vmem:[%s8021_s0 + $0x7c] sm:$0xf0]  ;;  %v6150_v45 = vld [vmem:[%s6528_s11 + $0x7d4] sm:$0xf0]  ;;  %v5879_v18 = vld [vmem:[%s8021_s0 + $0xe4] sm:$0xf] }
  0x83   : > { %3174 = vmatpush.bf16.msra.mxu2 %v4975_v48  ;;  %3126 = vmatmul.bf16.gmra.mxu3 %v6850_v22  ;;  %v5134_v48 = vld [vmem:[%s6528_s11 + $0x670] sm:$0xf]  ;;  %v6911_v31 = vor.u32 %v5867_v4, %v4150_v3  ;;  %v5238_v46 = vld [vmem:[%s6528_s11 + $0x740] sm:$0xf]  ;;  %v6130_v3 = vld [vmem:[%s6528_s11 + $0x734] sm:$0xf0] }
  0x84   : > { %3193 = vmatpush.bf16.msra.mxu3 %v5039_v7  ;;  %v5135_v6 = vor.u32 %v6106_v49, %v5134_v48  ;;  %v4152_v7 = vld [vmem:[%s8021_s0 + $0x80] sm:$0xf0]  ;;  %v5110_v48 = vld [vmem:[%s6528_s11 + $0x640] sm:$0xf]  ;;  %v6100_v49 = vld [vmem:[%s6528_s11 + $0x644] sm:$0xf0] }
  0x85   : > { %3137 = vmatpush.bf16.msra.mxu0 %v4839_v23  ;;  %v5255_v23 = vor.u32 %v6136_v63, %v5254_v60  ;;  %v6913_v32 = vor.u32 %v5855_v5, %v4152_v7  ;;  %v5174_v53 = vld [vmem:[%s6528_s11 + $0x6c0] sm:$0xf]  ;;  %v6148_v63 = vld [vmem:[%s6528_s11 + $0x7c4] sm:$0xf0]  ;;  %v5102_v4 = vld [vmem:[%s6528_s11 + $0x630] sm:$0xf] }
  0x86   : > { %3156 = vmatpush.bf16.msra.mxu1 %v4903_v24  ;;  %v4160_v24 = vld [vmem:[%s8021_s0 + $0x88] sm:$0xf0]  ;;  %v5302_v60 = vld [vmem:[%s6528_s11 + $0x7c0] sm:$0xf]  ;;  %v6098_v5 = vld [vmem:[%s6528_s11 + $0x634] sm:$0xf0] }
  0x87   : > { %3175 = vmatpush.bf16.msra.mxu2 %v4967_v10  ;;  %v5199_v10 = vor.u32 %v6122_v51, %v5198_v50  ;;  %v5183_v50 = vor.u32 %v6118_v41, %v5182_v40  ;;  %v5311_v51 = vor.u32 %v6150_v45, %v5310_v44  ;;  %v5303_v7 = vor.u32 %v6148_v63, %v5302_v60  ;;  %v4248_v19 = vld [vmem:[%s8021_s0 + $0x140] sm:$0xf0]  ;;  %v5158_v40 = vld [vmem:[%s6528_s11 + $0x6a0] sm:$0xf]  ;;  %v6112_v41 = vld [vmem:[%s6528_s11 + $0x6a4] sm:$0xf0] }
  0x88   : > { %3194 = vmatpush.bf16.msra.mxu3 %v5031_v27  ;;  %v5127_v27 = vor.u32 %v6104_v15, %v5126_v12  ;;  %v4246_v12 = vld [vmem:[%s8021_s0 + $0xe0] sm:$0xf]  ;;  %v6144_v45 = vld [vmem:[%s6528_s11 + $0x7a4] sm:$0xf0]  ;;  %v5150_v60 = vld [vmem:[%s6528_s11 + $0x690] sm:$0xf] }
  0x89   : > { %3138 = vmatpush.bf16.msra.mxu0 %v4831_v37  ;;  %v6920_v37 = vor.u32 %v5856_v20, %v4160_v24  ;;  %v5891_v15 = vld [vmem:[%s8021_s0 + $0x13c] sm:$0xf0]  ;;  %v5294_v24 = vld [vmem:[%s6528_s11 + $0x7b0] sm:$0xf]  ;;  %v6110_v63 = vld [vmem:[%s6528_s11 + $0x694] sm:$0xf0] }
  0x8a   : > { %3157 = vmatpush.bf16.msra.mxu1 %v4895_v38  ;;  %v5191_v38 = vor.u32 %v6120_v26, %v5190_v25  ;;  %v6146_v25 = vld [vmem:[%s6528_s11 + $0x7b4] sm:$0xf0]  ;;  %v5222_v26 = vld [vmem:[%s6528_s11 + $0x720] sm:$0xf]  ;;  %p7114_p0 = scmp.lt.s32.totalorder %s4114_s29, 5 }
  0x8b   : > { %3176 = vmatpush.bf16.msra.mxu2 %v4959_v28  ;;  %v5318_v28 = vld [vmem:[%s6528_s11 + $0x7e0] sm:$0xf] }
  0x8c   : > { %3195 = vmatpush.bf16.msra.mxu3 %v5023_v42  ;;  %v5319_v39 = vor.u32 %v6152_v29, %v5318_v28  ;;  %v5247_v42 = vor.u32 %v6134_v33, %v5246_v30  ;;  %v5094_v28 = vld [vmem:[%s6528_s11 + $0x620] sm:$0xf]  ;;  %v6096_v29 = vld [vmem:[%s6528_s11 + $0x624] sm:$0xf0]  ;;  %s8096_s29 = smov (!%p7114_p0, %s4114_s29), 5 }
  0x8d   : > { %3139 = vmatpush.bf16.msra.mxu0 %v4823_v55  ;;  %v4254_v30 = vld [vmem:[%s8021_s0 + $0xe8] sm:$0xf]  ;;  %v5286_v44 = vld [vmem:[%s6528_s11 + $0x7a0] sm:$0xf]  ;;  %s7161_s16 = scalar_lea.vmem %s8023_s2, %s8096_s29  ;;  %s378_s12 = scalar_lea.vmem %s8025_s4, %s8096_s29 }
  0x8e   : > { %3158 = vmatpush.bf16.msra.mxu1 %v4887_v57  ;;  %v5111_v57 = vor.u32 %v6100_v49, %v5110_v48  ;;  %v5892_v33 = vld [vmem:[%s8021_s0 + $0x144] sm:$0xf0]  ;;  %v6981_v48 = vor.u32 %v5879_v18, %v4248_v19  ;;  %v6126_v49 = vld [vmem:[%s6528_s11 + $0x714] sm:$0xf0]  ;;  %v5390_v18 = vld [vmem:[%s6528_s11 + $0x870] sm:$0xf] }
  0x8f   : > { %3177 = vmatpush.bf16.msra.mxu2 %v4951_v43  ;;  %v5119_v43 = vor.u32 %v6102_v35, %v5118_v34  ;;  %v5880_v34 = vld [vmem:[%s8021_s0 + $0xec] sm:$0xf]  ;;  %v6170_v19 = vld [vmem:[%s6528_s11 + $0x874] sm:$0xf0]  ;;  %s4112_s29 = sshll.u32 %s6524_s25, 6  ;;  %s6283_s25 = sshll.u32 (%p6503_p9), %s6410_s21, 4 }
  0x90   : > { %3196 = vmatpush.bf16.msra.mxu3 %v5015_v2  ;;  %3140 = vmatmul.bf16.vlgmr.msra.gmra.mxu0 %v6911_v31  ;;  %v5230_v2 = vld [vmem:[%s6528_s11 + $0x730] sm:$0xf]  ;;  %v4256_v35 = vld [vmem:[%s8021_s0 + $0x148] sm:$0xf0]  ;;  %s7844_s13 = scalar_lea.vmem [#allocation4], %s4112_s29  ;;  %s7864_s14 = scalar_lea.vmem [#allocation5], %s4112_s29 }
  0x91   : > { %3208 = vmatpush.bf16.msrb.mxu0 %v5135_v6  ;;  %3159 = vmatmul.bf16.vlgmr.msra.gmra.mxu1 %v6913_v32  ;;  %v5175_v6 = vor.u32 %v6116_v54, %v5174_v53  ;;  %v5231_v20 = vor.u32 %v6130_v3, %v5230_v2  ;;  %v6986_v53 = vor.u32 %v5892_v33, %v4254_v30  ;;  %v5278_v2 = vld [vmem:[%s6528_s11 + $0x790] sm:$0xf]  ;;  %v6186_v33 = vld [vmem:[%s6528_s11 + $0x8f4] sm:$0xf0]  ;;  %s3942_s15 = scalar_lea.vmem (%p6503_p9), %s8026_s5, %s6283_s25 }
  0x92   : > { %3227 = vmatpush.bf16.msrb.mxu1 %v5199_v10  ;;  %3178 = vmatmul.bf16.vlgmr.msra.gmra.mxu2 %v6918_v36  ;;  %v5166_v10 = vld [vmem:[%s6528_s11 + $0x6b0] sm:$0xf]  ;;  %v6988_v54 = vor.u32 %v5880_v34, %v4256_v35  ;;  %v5391_v35 = vor.u32 %v6170_v19, %v5390_v18 }
  0x93   : > { %3246 = vmatpush.bf16.msrb.mxu2 %v5263_v47  ;;  %v6132_v47 = vld [vmem:[%s6528_s11 + $0x744] sm:$0xf0]  ;;  %3197 = vmatmul.bf16.vlgmr.msra.gmra.mxu3 %v6920_v37  ;;  %v5454_v30 = vld [vmem:[%s6528_s11 + $0x8f0] sm:$0xf] }
  0x94   : > { %3265 = vmatpush.bf16.msrb.mxu3 %v5327_v11  ;;  %v5239_v55 = vor.u32 %v6132_v47, %v5238_v46  ;;  %v6114_v11 = vld [vmem:[%s6528_s11 + $0x6b4] sm:$0xf0]  ;;  %v5214_v46 = vld [vmem:[%s6528_s11 + $0x710] sm:$0xf]  ;;  %v6979_v47 = vor.u32 %v5891_v15, %v4246_v12 }
  0x95   : > { %3209 = vmatpush.bf16.msrb.mxu0 %v5127_v27  ;;  %v6128_v27 = vld [vmem:[%s6528_s11 + $0x724] sm:$0xf0]  ;;  %v5215_v3 = vor.u32 %v6126_v49, %v5214_v46  ;;  %v5518_v12 = vld [vmem:[%s6528_s11 + $0x970] sm:$0xf]  ;;  %v6202_v15 = vld [vmem:[%s6528_s11 + $0x974] sm:$0xf0] }
  0x96   : > { %3228 = vmatpush.bf16.msrb.mxu1 %v5191_v38  ;;  %v5167_v38 = vor.u32 %v6114_v11, %v5166_v10  ;;  %v5078_v10 = vld [vmem:[%s6528_s11 + $0x600] sm:$0xf]  ;;  %v6092_v11 = vld [vmem:[%s6528_s11 + $0x604] sm:$0xf0]  ;;  %v5519_v34 = vor.u32 %v6202_v15, %v5518_v12  ;;  %v4166_v46 = vld [vmem:[%s8021_s0 + $0x30] sm:$0xf] }
  0x97   : > { %3247 = vmatpush.bf16.msrb.mxu2 %v5255_v23  ;;  %v5103_v23 = vor.u32 %v6098_v5, %v5102_v4  ;;  %v6142_v5 = vld [vmem:[%s6528_s11 + $0x794] sm:$0xf0]  ;;  %v5869_v49 = vld [vmem:[%s8021_s0 + $0x8c] sm:$0xf0] }
  0x98   : > { %3266 = vmatpush.bf16.msrb.mxu3 %v5319_v39  ;;  %v5295_v39 = vor.u32 %v6146_v25, %v5294_v24  ;;  %v5142_v24 = vld [vmem:[%s6528_s11 + $0x680] sm:$0xf]  ;;  %v6108_v25 = vld [vmem:[%s6528_s11 + $0x684] sm:$0xf0]  ;;  %v5502_v12 = vld [vmem:[%s6528_s11 + $0x950] sm:$0xf] }
  0x99   : > { %3210 = vmatpush.bf16.msrb.mxu0 %v5119_v43  ;;  %v5095_v43 = vor.u32 %v6096_v29, %v5094_v28  ;;  %v5079_v28 = vor.u32 %v6092_v11, %v5078_v10  ;;  %v6140_v29 = vld [vmem:[%s6528_s11 + $0x784] sm:$0xf0]  ;;  %v5858_v10 = vld [vmem:[%s8021_s0 + $0x3c] sm:$0xf]  ;;  %v6198_v15 = vld [vmem:[%s6528_s11 + $0x954] sm:$0xf0] }
  0x9a   : > { %3229 = vmatpush.bf16.msrb.mxu1 %v5183_v50  ;;  %v5086_v50 = vld [vmem:[%s6528_s11 + $0x610] sm:$0xf]  ;;  %v4176_v11 = vld [vmem:[%s8021_s0 + $0x98] sm:$0xf0] }
  0x9b   : > { %3248 = vmatpush.bf16.msrb.mxu2 %v5247_v42  ;;  %v5223_v42 = vor.u32 %v6128_v27, %v5222_v26  ;;  %v5270_v26 = vld [vmem:[%s6528_s11 + $0x780] sm:$0xf] }
  0x9c   : > { %3267 = vmatpush.bf16.msrb.mxu3 %v5311_v51  ;;  %v6094_v51 = vld [vmem:[%s6528_s11 + $0x614] sm:$0xf0] }
  0x9d   : > { %3211 = vmatpush.bf16.msrb.mxu0 %v5111_v57  ;;  %v5287_v57 = vor.u32 %v6144_v45, %v5286_v44  ;;  %v5087_v4 = vor.u32 %v6094_v51, %v5086_v50  ;;  %v5143_v44 = vor.u32 %v6108_v25, %v5142_v24  ;;  %v5271_v45 = vor.u32 %v6140_v29, %v5270_v26  ;;  %v5857_v50 = vld [vmem:[%s8021_s0 + $0x34] sm:$0xf]  ;;  %v5438_v24 = vld [vmem:[%s6528_s11 + $0x8d0] sm:$0xf]  ;;  %v6214_v29 = vld [vmem:[%s6528_s11 + $0x9d4] sm:$0xf0] }
  0x9e   : > { %3230 = vmatpush.bf16.msrb.mxu1 %v5175_v6  ;;  %v5206_v6 = vld [vmem:[%s6528_s11 + $0x700] sm:$0xf]  ;;  %v4168_v51 = vld [vmem:[%s8021_s0 + $0x90] sm:$0xf0]  ;;  %v7051_v25 = vor.u32 %v5869_v49, %v4166_v46  ;;  %v6212_v49 = vld [vmem:[%s6528_s11 + $0x9c4] sm:$0xf0] }
  0x9f   : > { %3249 = vmatpush.bf16.msrb.mxu2 %v5239_v55  ;;  %v5159_v55 = vor.u32 %v6112_v41, %v5158_v40  ;;  %v5510_v40 = vld [vmem:[%s6528_s11 + $0x960] sm:$0xf]  ;;  %v6200_v41 = vld [vmem:[%s6528_s11 + $0x964] sm:$0xf0]  ;;  %v7053_v26 = vor.u32 %v5857_v50, %v4168_v51 }
  0xa0   : > { %3268 = vmatpush.bf16.msrb.mxu3 %v5303_v7  ;;  %v6124_v7 = vld [vmem:[%s6528_s11 + $0x704] sm:$0xf0]  ;;  %3145 = vmatmul.bf16.gmra.mxu0 %v6979_v47  ;;  %v5558_v46 = vld [vmem:[%s6528_s11 + $0x9c0] sm:$0xf] }
  0xa1   : > { %3212 = vmatpush.bf16.msrb.mxu0 %v5103_v23  ;;  %3164 = vmatmul.bf16.gmra.mxu1 %v6981_v48  ;;  %v5279_v23 = vor.u32 %v6142_v5, %v5278_v2  ;;  %v5207_v27 = vor.u32 %v6124_v7, %v5206_v6  ;;  %v6216_v5 = vld [vmem:[%s6528_s11 + $0x9e4] sm:$0xf0]  ;;  %v4174_v6 = vld [vmem:[%s8021_s0 + $0x38] sm:$0xf] }
  0xa2   : > { %3231 = vmatpush.bf16.msrb.mxu1 %v5167_v38  ;;  %3183 = vmatmul.bf16.gmra.mxu2 %v6986_v53  ;;  %v5582_v38 = vld [vmem:[%s6528_s11 + $0x9f0] sm:$0xf]  ;;  %v5870_v7 = vld [vmem:[%s8021_s0 + $0x94] sm:$0xf0] }
  0xa3   : > { %3250 = vmatpush.bf16.msrb.mxu2 %v5231_v20  ;;  %3202 = vmatmul.bf16.gmra.mxu3 %v6988_v54  ;;  %v5151_v20 = vor.u32 %v6110_v63, %v5150_v60  ;;  %v5446_v60 = vld [vmem:[%s6528_s11 + $0x8e0] sm:$0xf]  ;;  %v5511_v63 = vor.u32 %v6200_v41, %v5510_v40 }
  0xa4   : > { %3269 = vmatpush.bf16.msrb.mxu3 %v5295_v39  ;;  %v6218_v39 = vld [vmem:[%s6528_s11 + $0x9f4] sm:$0xf0] }
  0xa5   : > { %3213 = vmatpush.bf16.msrb.mxu0 %v5095_v43  ;;  %v6168_v43 = vld [vmem:[%s6528_s11 + $0x864] sm:$0xf0] }
  0xa6   : > { %3232 = vmatpush.bf16.msrb.mxu1 %v5159_v55  ;;  %v5455_v55 = vor.u32 %v6186_v33, %v5454_v30  ;;  %v7058_v30 = vor.u32 %v5870_v7, %v4174_v6  ;;  %v7060_v33 = vor.u32 %v5858_v10, %v4176_v11  ;;  %v5550_v6 = vld [vmem:[%s6528_s11 + $0x9b0] sm:$0xf]  ;;  %v6210_v7 = vld [vmem:[%s6528_s11 + $0x9b4] sm:$0xf0] }
  0xa7   : > { %3251 = vmatpush.bf16.msrb.mxu2 %v5223_v42  ;;  %v5382_v42 = vld [vmem:[%s6528_s11 + $0x860] sm:$0xf] }
  0xa8   : > { %3270 = vmatpush.bf16.msrb.mxu3 %v5287_v57  ;;  %v5583_v57 = vor.u32 %v6218_v39, %v5582_v38  ;;  %v5383_v2 = vor.u32 %v6168_v43, %v5382_v42  ;;  %v5494_v38 = vld [vmem:[%s6528_s11 + $0x940] sm:$0xf]  ;;  %v6196_v39 = vld [vmem:[%s6528_s11 + $0x944] sm:$0xf0] }
  0xa9   : > { %3214 = vmatpush.bf16.msrb.mxu0 %v5087_v4  ;;  %v5574_v4 = vld [vmem:[%s6528_s11 + $0x9e0] sm:$0xf]  ;;  %v6164_v43 = vld [vmem:[%s6528_s11 + $0x844] sm:$0xf0]  ;;  %v5495_v50 = vor.u32 %v6196_v39, %v5494_v38 }
  0xaa   : > { %3233 = vmatpush.bf16.msrb.mxu1 %v5151_v20  ;;  %v5575_v19 = vor.u32 %v6216_v5, %v5574_v4  ;;  %v5374_v20 = vld [vmem:[%s6528_s11 + $0x850] sm:$0xf]  ;;  %v5366_v42 = vld [vmem:[%s6528_s11 + $0x840] sm:$0xf]  ;;  %v6178_v5 = vld [vmem:[%s6528_s11 + $0x8b4] sm:$0xf0] }
  0xab   : > { %3252 = vmatpush.bf16.msrb.mxu2 %v5215_v3  ;;  %v6184_v3 = vld [vmem:[%s6528_s11 + $0x8e4] sm:$0xf0]  ;;  %v5367_v51 = vor.u32 %v6164_v43, %v5366_v42  ;;  %v5422_v4 = vld [vmem:[%s6528_s11 + $0x8b0] sm:$0xf]  ;;  %v5542_v39 = vld [vmem:[%s6528_s11 + $0x9a0] sm:$0xf] }
  0xac   : > { %3271 = vmatpush.bf16.msrb.mxu3 %v5279_v23  ;;  %v5447_v18 = vor.u32 %v6184_v3, %v5446_v60  ;;  %v6166_v23 = vld [vmem:[%s6528_s11 + $0x854] sm:$0xf0]  ;;  %v6176_v38 = vld [vmem:[%s6528_s11 + $0x8a4] sm:$0xf0]  ;;  %v5882_v42 = vld [vmem:[%s8021_s0 + $0xfc] sm:$0xf] }
  0xad   : > { %3215 = vmatpush.bf16.msrb.mxu0 %v5079_v28  ;;  %v5566_v28 = vld [vmem:[%s6528_s11 + $0x9d0] sm:$0xf]  ;;  %v6162_v3 = vld [vmem:[%s6528_s11 + $0x834] sm:$0xf0]  ;;  %v4272_v43 = vld [vmem:[%s8021_s0 + $0x158] sm:$0xf0] }
  0xae   : > { %3234 = vmatpush.bf16.msrb.mxu1 %v5143_v44  ;;  %v5567_v41 = vor.u32 %v6214_v29, %v5566_v28  ;;  %v5430_v44 = vld [vmem:[%s6528_s11 + $0x8c0] sm:$0xf]  ;;  %v6160_v29 = vld [vmem:[%s6528_s11 + $0x824] sm:$0xf0] }
  0xaf   : > { %3253 = vmatpush.bf16.msrb.mxu2 %v5207_v27  ;;  %v6182_v27 = vld [vmem:[%s6528_s11 + $0x8d4] sm:$0xf0]  ;;  %v5350_v28 = vld [vmem:[%s6528_s11 + $0x820] sm:$0xf] }
  0xb0   : > { %3272 = vmatpush.bf16.msrb.mxu3 %v5271_v45  ;;  %v5439_v40 = vor.u32 %v6182_v27, %v5438_v24  ;;  %3216 = vmatmul.bf16.vlgmr.msrb.gmra.mxu0 %v7051_v25  ;;  %v6180_v45 = vld [vmem:[%s6528_s11 + $0x8c4] sm:$0xf0]  ;;  %v5423_v24 = vor.u32 %v6178_v5, %v5422_v4  ;;  %v5551_v27 = vor.u32 %v6210_v7, %v5550_v6  ;;  %v5534_v4 = vld [vmem:[%s6528_s11 + $0x990] sm:$0xf]  ;;  %v6206_v5 = vld [vmem:[%s6528_s11 + $0x994] sm:$0xf0] }
  0xb1   : > { %3284 = vmatpush.bf16.msra.mxu0 %v5391_v35  ;;  %v5375_v35 = vor.u32 %v6166_v23, %v5374_v20  ;;  %3235 = vmatmul.bf16.vlgmr.msrb.gmra.mxu1 %v7053_v26  ;;  %v5431_v60 = vor.u32 %v6180_v45, %v5430_v44  ;;  %v5881_v20 = vld [vmem:[%s8021_s0 + $0xf4] sm:$0xf]  ;;  %v5351_v45 = vor.u32 %v6160_v29, %v5350_v28  ;;  %v5526_v28 = vld [vmem:[%s6528_s11 + $0x980] sm:$0xf]  ;;  %v6204_v29 = vld [vmem:[%s6528_s11 + $0x984] sm:$0xf0] }
  0xb2   : > { %3303 = vmatpush.bf16.msra.mxu1 %v5455_v55  ;;  %3254 = vmatmul.bf16.vlgmr.msrb.gmra.mxu2 %v7058_v30  ;;  %v5486_v55 = vld [vmem:[%s6528_s11 + $0x930] sm:$0xf]  ;;  %v4264_v23 = vld [vmem:[%s8021_s0 + $0x150] sm:$0xf0]  ;;  %v7135_v7 = vor.u32 %v5882_v42, %v4272_v43  ;;  %v6250_v43 = vld [vmem:[%s6528_s11 + $0xaf4] sm:$0xf0] }
  0xb3   : > { %3322 = vmatpush.bf16.msra.mxu2 %v5519_v34  ;;  %v5503_v34 = vor.u32 %v6198_v15, %v5502_v12  ;;  %3273 = vmatmul.bf16.vlgmr.msrb.gmra.mxu3 %v7060_v33  ;;  %v5478_v12 = vld [vmem:[%s6528_s11 + $0x920] sm:$0xf]  ;;  %v6192_v15 = vld [vmem:[%s6528_s11 + $0x924] sm:$0xf0] }
  0xb4   : > { %3341 = vmatpush.bf16.msra.mxu3 %v5583_v57  ;;  %v6194_v57 = vld [vmem:[%s6528_s11 + $0x934] sm:$0xf0]  ;;  %v5479_v44 = vor.u32 %v6192_v15, %v5478_v12  ;;  %8054 = vst [vmem:[#allocation11_spill] sm:$0xff] %v7135_v7  ;;  %v6188_v15 = vld [vmem:[%s6528_s11 + $0x904] sm:$0xf0] }
  0xb5   : > { %3285 = vmatpush.bf16.msra.mxu0 %v5383_v2  ;;  %v5358_v2 = vld [vmem:[%s6528_s11 + $0x830] sm:$0xf]  ;;  %v5487_v10 = vor.u32 %v6194_v57, %v5486_v55  ;;  %v6158_v57 = vld [vmem:[%s6528_s11 + $0x814] sm:$0xf0] }
  0xb6   : > { %3304 = vmatpush.bf16.msra.mxu1 %v5447_v18  ;;  %v5359_v11 = vor.u32 %v6162_v3, %v5358_v2  ;;  %v4262_v18 = vld [vmem:[%s8021_s0 + $0xf0] sm:$0xf]  ;;  %v7128_v2 = vor.u32 %v5881_v20, %v4264_v23  ;;  %v6174_v3 = vld [vmem:[%s6528_s11 + $0x894] sm:$0xf0]  ;;  %v5535_v23 = vor.u32 %v6206_v5, %v5534_v4  ;;  %v5638_v5 = vld [vmem:[%s6528_s11 + $0xa60] sm:$0xf] }
  0xb7   : > { %3323 = vmatpush.bf16.msra.mxu2 %v5511_v63  ;;  %v5559_v63 = vor.u32 %v6212_v49, %v5558_v46  ;;  %v5470_v46 = vld [vmem:[%s6528_s11 + $0x910] sm:$0xf]  ;;  %v6190_v49 = vld [vmem:[%s6528_s11 + $0x914] sm:$0xf0] }
  0xb8   : > { %3342 = vmatpush.bf16.msra.mxu3 %v5575_v19  ;;  %v5893_v19 = vld [vmem:[%s8021_s0 + $0x14c] sm:$0xf0]  ;;  %8052 = vst [vmem:[#allocation9_spill] sm:$0xff] %v7128_v2 }
  0xb9   : > { %3286 = vmatpush.bf16.msra.mxu0 %v5375_v35  ;;  %v4270_v35 = vld [vmem:[%s8021_s0 + $0xf8] sm:$0xf]  ;;  %v5342_v55 = vld [vmem:[%s6528_s11 + $0x810] sm:$0xf] }
  0xba   : > { %3305 = vmatpush.bf16.msra.mxu1 %v5439_v40  ;;  %v6208_v40 = vld [vmem:[%s6528_s11 + $0x9a4] sm:$0xf0]  ;;  %v5343_v12 = vor.u32 %v6158_v57, %v5342_v55  ;;  %v5766_v57 = vld [vmem:[%s6528_s11 + $0xb60] sm:$0xf] }
  0xbb   : > { %3324 = vmatpush.bf16.msra.mxu2 %v5503_v34  ;;  %v5414_v34 = vld [vmem:[%s6528_s11 + $0x8a0] sm:$0xf] }
  0xbc   : > { %3343 = vmatpush.bf16.msra.mxu3 %v5567_v41  ;;  %v5894_v41 = vld [vmem:[%s8021_s0 + $0x154] sm:$0xf0] }
  0xbd   : > { %3287 = vmatpush.bf16.msra.mxu0 %v5367_v51  ;;  %v5543_v51 = vor.u32 %v6208_v40, %v5542_v39  ;;  %v7133_v6 = vor.u32 %v5894_v41, %v4270_v35  ;;  %v6266_v35 = vld [vmem:[%s6528_s11 + $0xb74] sm:$0xf0]  ;;  %v5710_v40 = vld [vmem:[%s6528_s11 + $0xaf0] sm:$0xf] }
  0xbe   : > { %3306 = vmatpush.bf16.msra.mxu1 %v5431_v60  ;;  %v5406_v60 = vld [vmem:[%s6528_s11 + $0x890] sm:$0xf]  ;;  %v6234_v39 = vld [vmem:[%s6528_s11 + $0xa74] sm:$0xf0] }
  0xbf   : > { %3325 = vmatpush.bf16.msra.mxu2 %v5495_v50  ;;  %v5415_v50 = vor.u32 %v6176_v38, %v5414_v34  ;;  %8053 = vst [vmem:[#allocation10_spill] sm:$0xff] %v7133_v6  ;;  %v5407_v20 = vor.u32 %v6174_v3, %v5406_v60  ;;  %v5774_v34 = vld [vmem:[%s6528_s11 + $0xb70] sm:$0xf]  ;;  %v6264_v60 = vld [vmem:[%s6528_s11 + $0xb64] sm:$0xf0]  ;;  %v5711_v3 = vor.u32 %v6250_v43, %v5710_v40 }
  0xc0   : > { %3344 = vmatpush.bf16.msra.mxu3 %v5559_v63  ;;  %v7126_v63 = vor.u32 %v5893_v19, %v4262_v18  ;;  %v5334_v18 = vld [vmem:[%s6528_s11 + $0x800] sm:$0xf]  ;;  %v6156_v19 = vld [vmem:[%s6528_s11 + $0x804] sm:$0xf0]  ;;  %v5646_v38 = vld [vmem:[%s6528_s11 + $0xa70] sm:$0xf] }
  0xc1   : > { %3288 = vmatpush.bf16.msra.mxu0 %v5359_v11  ;;  %v5471_v11 = vor.u32 %v6190_v49, %v5470_v46  ;;  %3240 = vmatmul.bf16.gmra.mxu1 %v7128_v2  ;;  %v5335_v42 = vor.u32 %v6156_v19, %v5334_v18  ;;  %v5527_v49 = vor.u32 %v6204_v29, %v5526_v28  ;;  %v6280_v18 = vld [vmem:[%s6528_s11 + $0xbe4] sm:$0xf0]  ;;  %v4182_v19 = vld [vmem:[%s8021_s0 + $0x40] sm:$0xf]  ;;  %v6262_v43 = vld [vmem:[%s6528_s11 + $0xb54] sm:$0xf0] }
  0xc2   : > { %3307 = vmatpush.bf16.msra.mxu1 %v5423_v24  ;;  %8051 = vst [vmem:[#allocation8_spill] sm:$0xff] %v7126_v63  ;;  %v5398_v24 = vld [vmem:[%s6528_s11 + $0x880] sm:$0xf]  ;;  %3221 = vmatmul.bf16.gmra.mxu0 %v7126_v63  ;;  %v5647_v55 = vor.u32 %v6234_v39, %v5646_v38  ;;  %v5767_v28 = vor.u32 %v6264_v60, %v5766_v57  ;;  %v5860_v38 = vld [vmem:[%s8021_s0 + $0x4c] sm:$0xf] }
  0xc3   : > { %3326 = vmatpush.bf16.msra.mxu2 %v5487_v10  ;;  %v5462_v10 = vld [vmem:[%s6528_s11 + $0x900] sm:$0xf]  ;;  %3278 = vmatmul.bf16.gmra.mxu3 %v7135_v7  ;;  %v5822_v57 = vld [vmem:[%s6528_s11 + $0xbd0] sm:$0xf]  ;;  %v6278_v60 = vld [vmem:[%s6528_s11 + $0xbd4] sm:$0xf0] }
  0xc4   : > { %3345 = vmatpush.bf16.msra.mxu3 %v5551_v27  ;;  %v6172_v27 = vld [vmem:[%s6528_s11 + $0x884] sm:$0xf0]  ;;  %3259 = vmatmul.bf16.gmra.mxu2 %v7133_v6  ;;  %v5463_v41 = vor.u32 %v6188_v15, %v5462_v10  ;;  %v5830_v15 = vld [vmem:[%s6528_s11 + $0xbe0] sm:$0xf]  ;;  %v5662_v7 = vld [vmem:[%s6528_s11 + $0xa90] sm:$0xf] }
  0xc5   : > { %3289 = vmatpush.bf16.msra.mxu0 %v5351_v45  ;;  %v6282_v45 = vld [vmem:[%s6528_s11 + $0xbf4] sm:$0xf0]  ;;  %v5399_v46 = vor.u32 %v6172_v27, %v5398_v24  ;;  %v6232_v10 = vld [vmem:[%s6528_s11 + $0xa64] sm:$0xf0]  ;;  %v4184_v24 = vld [vmem:[%s8021_s0 + $0xa0] sm:$0xf0]  ;;  %v5831_v40 = vor.u32 %v6280_v18, %v5830_v15 }
  0xc6   : > { %3308 = vmatpush.bf16.msra.mxu1 %v5415_v50  ;;  %v814_v50 = vld [vmem:[%s7161_s16] sm:$0x3]  ;;  %v4190_v27 = vld [vmem:[%s8021_s0 + $0x48] sm:$0xf]  ;;  %v5639_v29 = vor.u32 %v6232_v10, %v5638_v5 }
  0xc7   : > { %3327 = vmatpush.bf16.msra.mxu2 %v5479_v44  ;;  %v5838_v44 = vld [vmem:[%s6528_s11 + $0xbf0] sm:$0xf]  ;;  %v5750_v15 = vld [vmem:[%s6528_s11 + $0xb40] sm:$0xf]  ;;  %v6260_v18 = vld [vmem:[%s6528_s11 + $0xb44] sm:$0xf0] }
  0xc8   : > { %3346 = vmatpush.bf16.msra.mxu3 %v5543_v51  ;;  %v5775_v51 = vor.u32 %v6266_v35, %v5774_v34  ;;  %v5839_v4 = vor.u32 %v6282_v45, %v5838_v44  ;;  %v7193_v34 = vperm.slane %v814_v50, 0  ;;  %v5872_v35 = vld [vmem:[%s8021_s0 + $0xa4] sm:$0xf0]  ;;  %v5630_v44 = vld [vmem:[%s6528_s11 + $0xa50] sm:$0xf] }
  0xc9   : > { %3290 = vmatpush.bf16.msra.mxu0 %v5343_v12  ;;  %v6248_v12 = vld [vmem:[%s6528_s11 + $0xae4] sm:$0xf0]  ;;  %v6230_v45 = vld [vmem:[%s6528_s11 + $0xa54] sm:$0xf0]  ;;  %v7217_v5 = vor.u32 %v5872_v35, %v4190_v27  ;;  %v5686_v27 = vld [vmem:[%s6528_s11 + $0xac0] sm:$0xf] }
  0xca   : > { %3309 = vmatpush.bf16.msra.mxu1 %v5407_v20  ;;  %v5871_v20 = vld [vmem:[%s8021_s0 + $0x9c] sm:$0xf0] }
  0xcb   : > { %3328 = vmatpush.bf16.msra.mxu2 %v5471_v11  ;;  %v5702_v11 = vld [vmem:[%s6528_s11 + $0xae0] sm:$0xf]  ;;  %v7209_v50 = vor.u32 %v5871_v20, %v4182_v19  ;;  %8057 = vst [vmem:[#allocation14_spill] sm:$0xff] %v7217_v5 }
  0xcc   : > { %3347 = vmatpush.bf16.msra.mxu3 %v5535_v23  ;;  %v5859_v23 = vld [vmem:[%s8021_s0 + $0x44] sm:$0xf]  ;;  %v5703_v39 = vor.u32 %v6248_v12, %v5702_v11  ;;  %v5631_v12 = vor.u32 %v6230_v45, %v5630_v44  ;;  %v5814_v35 = vld [vmem:[%s6528_s11 + $0xbc0] sm:$0xf] }
  0xcd   : > { %3291 = vmatpush.bf16.msra.mxu0 %v5335_v42  ;;  %v5758_v42 = vld [vmem:[%s6528_s11 + $0xb50] sm:$0xf]  ;;  %8055 = vst [vmem:[#allocation12_spill] sm:$0xff] %v7209_v50 }
  0xce   : > { %3310 = vmatpush.bf16.msra.mxu1 %v5399_v46  ;;  %v5694_v46 = vld [vmem:[%s6528_s11 + $0xad0] sm:$0xf]  ;;  %v5759_v11 = vor.u32 %v6262_v43, %v5758_v42  ;;  %v6258_v42 = vld [vmem:[%s6528_s11 + $0xb34] sm:$0xf0] }
  0xcf   : > { %3329 = vmatpush.bf16.msra.mxu2 %v5463_v41  ;;  %v4192_v41 = vld [vmem:[%s8021_s0 + $0xa8] sm:$0xf0] }
  0xd0   : > { %3348 = vmatpush.bf16.msra.mxu3 %v5527_v49  ;;  %v2989_v49 = vpop.f32.mrf.mxu0  ;;  %v7219_v10 = vor.u32 %v5860_v38, %v4192_v41  ;;  %v6276_v38 = vld [vmem:[%s6528_s11 + $0xbc4] sm:$0xf0]  ;;  %v5742_v41 = vld [vmem:[%s6528_s11 + $0xb30] sm:$0xf] }
  0xd1   : > { %3360 = vmatpush.bf16.msrb.mxu0 %v5647_v55  ;;  %v6246_v55 = vld [vmem:[%s6528_s11 + $0xad4] sm:$0xf0]  ;;  %v5815_v45 = vor.u32 %v6276_v38, %v5814_v35  ;;  %v5895_v35 = vld [vmem:[%s8021_s0 + $0x15c] sm:$0xf0]  ;;  %v5883_v38 = vld [vmem:[%s8021_s0 + $0x104] sm:$0xf] }
  0xd2   : > { %3379 = vmatpush.bf16.msrb.mxu1 %v5711_v3  ;;  %v2990_v3 = vadd.f32 %v2989_v49, %v7193_v34  ;;  %8058 = vst [vmem:[#allocation15_spill] sm:$0xff] %v7219_v10  ;;  %v5695_v20 = vor.u32 %v6246_v55, %v5694_v46  ;;  %3292 = vmatmul.bf16.vlgmr.msra.gmra.mxu0 %v7209_v50  ;;  %v5614_v46 = vld [vmem:[%s6528_s11 + $0xa30] sm:$0xf]  ;;  %v6226_v49 = vld [vmem:[%s6528_s11 + $0xa34] sm:$0xf0] }
  0xd3   : > { %3398 = vmatpush.bf16.msrb.mxu2 %v5775_v51  ;;  %v7211_v51 = vor.u32 %v5859_v23, %v4184_v24  ;;  %v5823_v23 = vor.u32 %v6278_v60, %v5822_v57  ;;  %v5622_v24 = vld [vmem:[%s6528_s11 + $0xa40] sm:$0xf]  ;;  %3349 = vmatmul.bf16.vlgmr.msra.gmra.mxu3 %v7219_v10  ;;  %v5678_v55 = vld [vmem:[%s6528_s11 + $0xab0] sm:$0xf]  ;;  %v6222_v50 = vld [vmem:[%s6528_s11 + $0xa14] sm:$0xf0] }
  0xd4   : > { %3417 = vmatpush.bf16.msrb.mxu3 %v5839_v4  ;;  %v3008_v4 = vpop.f32.mrf.mxu1  ;;  %3330 = vmatmul.bf16.vlgmr.msra.gmra.mxu2 %v7217_v5 }
  0xd5   : > { %8056 = vst [vmem:[#allocation13_spill] sm:$0xff] %v7211_v51  ;;  %3361 = vmatpush.bf16.msrb.mxu0 %v5639_v29  ;;  %v3009_v19 = vadd.f32 %v3008_v4, %v2990_v3  ;;  %3311 = vmatmul.bf16.vlgmr.msra.gmra.mxu1 %v7211_v51  ;;  %v6244_v29 = vld [vmem:[%s6528_s11 + $0xac4] sm:$0xf0]  ;;  %v3027_v43 = vpop.f32.mrf.mxu2  ;;  %v6242_v4 = vld [vmem:[%s6528_s11 + $0xab4] sm:$0xf0] }
  0xd6   : > { %3380 = vmatpush.bf16.msrb.mxu1 %v5703_v39  ;;  %v5751_v39 = vor.u32 %v6260_v18, %v5750_v15  ;;  %v5687_v44 = vor.u32 %v6244_v29, %v5686_v27  ;;  %v3046_v60 = vpop.f32.mrf.mxu3  ;;  %v4278_v29 = vld [vmem:[%s8021_s0 + $0x100] sm:$0xf]  ;;  %v5598_v51 = vld [vmem:[%s6528_s11 + $0xa10] sm:$0xf] }
  0xd7   : > { %3399 = vmatpush.bf16.msrb.mxu2 %v5767_v28  ;;  %v6228_v28 = vld [vmem:[%s6528_s11 + $0xa44] sm:$0xf0]  ;;  %v3028_v57 = vadd.f32 %v3027_v43, %v3009_v19  ;;  %v5734_v19 = vld [vmem:[%s6528_s11 + $0xb20] sm:$0xf] }
  0xd8   : > { %3418 = vmatpush.bf16.msrb.mxu3 %v5831_v40  ;;  %v5623_v40 = vor.u32 %v6228_v28, %v5622_v24  ;;  %v2991_v3 = vpop.f32.mrf.mxu0  ;;  %v6256_v28 = vld [vmem:[%s6528_s11 + $0xb24] sm:$0xf0] }
  0xd9   : > { %3362 = vmatpush.bf16.msrb.mxu0 %v5631_v12  ;;  %v6274_v12 = vld [vmem:[%s6528_s11 + $0xbb4] sm:$0xf0]  ;;  %v2992_v15 = vadd.f32 %v2991_v3, %v7193_v34  ;;  %v7242_v24 = vadd.f32 %v3046_v60, %v3028_v57  ;;  %v6224_v43 = vld [vmem:[%s6528_s11 + $0xa24] sm:$0xf0]  ;;  %v4288_v3 = vld [vmem:[%s8021_s0 + $0x168] sm:$0xf0] }
  0xda   : > { %3381 = vmatpush.bf16.msrb.mxu1 %v5695_v20  ;;  %v5743_v20 = vor.u32 %v6258_v42, %v5742_v41  ;;  %v5606_v42 = vld [vmem:[%s6528_s11 + $0xa20] sm:$0xf]  ;;  %v4286_v57 = vld [vmem:[%s8021_s0 + $0x108] sm:$0xf] }
  0xdb   : > { %3400 = vmatpush.bf16.msrb.mxu2 %v5759_v11  ;;  %v5806_v11 = vld [vmem:[%s6528_s11 + $0xbb0] sm:$0xf]  ;;  %v5896_v60 = vld [vmem:[%s8021_s0 + $0x164] sm:$0xf0] }
  0xdc   : > { %3419 = vmatpush.bf16.msrb.mxu3 %v5823_v23  ;;  %v3010_v18 = vpop.f32.mrf.mxu1  ;;  %v5615_v23 = vor.u32 %v6226_v49, %v5614_v46  ;;  %v5807_v41 = vor.u32 %v6274_v12, %v5806_v11  ;;  %v5798_v46 = vld [vmem:[%s6528_s11 + $0xba0] sm:$0xf]  ;;  %v6272_v49 = vld [vmem:[%s6528_s11 + $0xba4] sm:$0xf0]  ;;  %v5607_v11 = vor.u32 %v6224_v43, %v5606_v42  ;;  %v5726_v12 = vld [vmem:[%s6528_s11 + $0xb10] sm:$0xf] }
  0xdd   : > { %3363 = vmatpush.bf16.msrb.mxu0 %v5623_v40  ;;  %v3011_v27 = vadd.f32 %v3010_v18, %v2992_v15  ;;  %v5679_v40 = vor.u32 %v6242_v4, %v5678_v55  ;;  %v5884_v55 = vld [vmem:[%s8021_s0 + $0x10c] sm:$0xf]  ;;  %v5735_v4 = vor.u32 %v6256_v28, %v5734_v19  ;;  %v6254_v15 = vld [vmem:[%s6528_s11 + $0xb14] sm:$0xf0]  ;;  %v3029_v18 = vpop.f32.mrf.mxu2  ;;  %v5799_v5 = vor.u32 %v6272_v49, %v5798_v46  ;;  %v5790_v42 = vld [vmem:[%s6528_s11 + $0xb90] sm:$0xf] }
  0xde   : > { %3382 = vmatpush.bf16.msrb.mxu1 %v5687_v44  ;;  %v5670_v44 = vld [vmem:[%s6528_s11 + $0xaa0] sm:$0xf]  ;;  %v3048_v2 = vpop.f32.mrf.mxu3  ;;  %v6238_v28 = vld [vmem:[%s6528_s11 + $0xa94] sm:$0xf0]  ;;  %v6220_v49 = vld [vmem:[%s6528_s11 + $0xa04] sm:$0xf0] }
  0xdf   : > { %3401 = vmatpush.bf16.msrb.mxu2 %v5751_v39  ;;  %v4280_v39 = vld [vmem:[%s8021_s0 + $0x160] sm:$0xf0]  ;;  %v3030_v6 = vadd.f32 %v3029_v18, %v3011_v27  ;;  %v5718_v27 = vld [vmem:[%s6528_s11 + $0xb00] sm:$0xf]  ;;  %v5961_v18 = vld [vmem:[%s6528_s11 + $0x1f4] sm:$0xf] }
  0xe0   : > { %3420 = vmatpush.bf16.msrb.mxu3 %v5815_v45  ;;  %v6240_v45 = vld [vmem:[%s6528_s11 + $0xaa4] sm:$0xf0]  ;;  %v7283_v19 = vor.u32 %v5883_v38, %v4280_v39  ;;  %v5599_v38 = vor.u32 %v6222_v50, %v5598_v51  ;;  %v5590_v46 = vld [vmem:[%s6528_s11 + $0xa00] sm:$0xf]  ;;  %v5945_v51 = vld [vmem:[%s6528_s11 + $0x174] sm:$0xf] }
  0xe1   : > { %3364 = vmatpush.bf16.msrb.mxu0 %v5615_v23  ;;  %v5671_v10 = vor.u32 %v6240_v45, %v5670_v44  ;;  %v7281_v23 = vor.u32 %v5895_v35, %v4278_v29  ;;  %v7289_v44 = vor.u32 %v5896_v60, %v4286_v57  ;;  %v7291_v45 = vor.u32 %v5884_v55, %v4288_v3  ;;  %v6252_v39 = vld [vmem:[%s6528_s11 + $0xb04] sm:$0xf0]  ;;  %v5782_v3 = vld [vmem:[%s6528_s11 + $0xb80] sm:$0xf] }
  0xe2   : > { %3383 = vmatpush.bf16.msrb.mxu1 %v5679_v40  ;;  %8060 = vst [vmem:[#allocation17_spill] sm:$0xff] %v7283_v19  ;;  %v6270_v40 = vld [vmem:[%s6528_s11 + $0xb94] sm:$0xf0]  ;;  %v7294_v29 = vadd.f32 %v3048_v2, %v3030_v6  ;;  %v5727_v35 = vor.u32 %v6254_v15, %v5726_v12  ;;  %v5663_v60 = vor.u32 %v6238_v28, %v5662_v7  ;;  %v5654_v2 = vld [vmem:[%s6528_s11 + $0xa80] sm:$0xf] }
  0xe3   : > { %3402 = vmatpush.bf16.msrb.mxu2 %v5743_v20  ;;  %v2994_v20 = vpop.f32.mrf.mxu0  ;;  %8059 = vst [vmem:[#allocation16_spill] sm:$0xff] %v7281_v23  ;;  %v5791_v55 = vor.u32 %v6270_v40, %v5790_v42  ;;  %v6236_v6 = vld [vmem:[%s6528_s11 + $0xa84] sm:$0xf0]  ;;  %3297 = vmatmul.bf16.gmra.mxu0 %v7281_v23  ;;  %v4368_v7 = vld [vmem:[%s6528_s11 + $0x78] sm:$0xf0]  ;;  %v5591_v12 = vor.u32 %v6220_v49, %v5590_v46 }
  0xe4   : > { %3421 = vmatpush.bf16.msrb.mxu3 %v5807_v41  ;;  %v2995_v41 = vadd.f32 %v2994_v20, %v7193_v34  ;;  %v3013_v43 = vpop.f32.mrf.mxu1  ;;  %8061 = vst [vmem:[#allocation18_spill] sm:$0xff] %v7289_v44  ;;  %v6268_v50 = vld [vmem:[%s6528_s11 + $0xb84] sm:$0xf0]  ;;  %3335 = vmatmul.bf16.gmra.mxu2 %v7289_v44  ;;  %v4432_v15 = vld [vmem:[%s6528_s11 + $0xf8] sm:$0xf0]  ;;  %v5655_v42 = vor.u32 %v6236_v6, %v5654_v2 }
  0xe5   : > { %8062 = vst [vmem:[#allocation19_spill] sm:$0xff] %v7291_v45  ;;  %3365 = vmatpush.bf16.msrb.mxu0 %v5607_v11  ;;  %3316 = vmatmul.bf16.gmra.mxu1 %v7283_v19  ;;  %v5719_v11 = vor.u32 %v6252_v39, %v5718_v27  ;;  %v4560_v20 = vld [vmem:[%s6528_s11 + $0x1f8] sm:$0xf0]  ;;  %v3032_v28 = vpop.f32.mrf.mxu2  ;;  %v5783_v40 = vor.u32 %v6268_v50, %v5782_v3  ;;  %v5943_v39 = vld [vmem:[%s6528_s11 + $0x164] sm:$0xf] }
  0xe6   : > { %v3014_v57 = vadd.f32 %v3013_v43, %v2995_v41  ;;  %3384 = vmatpush.bf16.msrb.mxu1 %v5671_v10  ;;  %3354 = vmatmul.bf16.gmra.mxu3 %v7291_v45  ;;  %v5929_v10 = vld [vmem:[%s6528_s11 + $0xf4] sm:$0xf]  ;;  %v3051_v43 = vpop.f32.mrf.mxu3  ;;  %v4488_v46 = vld [vmem:[%s6528_s11 + $0x168] sm:$0xf0]  ;;  %v5911_v19 = vld [vmem:[%s6528_s11 + $0x64] sm:$0xf] }
  0xe7   : > { %3403 = vmatpush.bf16.msrb.mxu2 %v5735_v4  ;;  %v4496_v4 = vld [vmem:[%s6528_s11 + $0x178] sm:$0xf0]  ;;  %v4435_v44 = vor.u32 %v5929_v10, %v4432_v15  ;;  %v5927_v23 = vld [vmem:[%s6528_s11 + $0xe4] sm:$0xf]  ;;  %v4552_v3 = vld [vmem:[%s6528_s11 + $0x1e8] sm:$0xf0] }
  0xe8   : > { %3422 = vmatpush.bf16.msrb.mxu3 %v5799_v5  ;;  %v5913_v5 = vld [vmem:[%s6528_s11 + $0x74] sm:$0xf]  ;;  %v3033_v41 = vadd.f32 %v3032_v28, %v3014_v57  ;;  %v4424_v57 = vld [vmem:[%s6528_s11 + $0xe8] sm:$0xf0]  ;;  %v5959_v6 = vld [vmem:[%s6528_s11 + $0x1e4] sm:$0xf] }
  0xe9   : > { %3366 = vmatpush.bf16.msrb.mxu0 %v5599_v38  ;;  %v4499_v38 = vor.u32 %v5945_v51, %v4496_v4  ;;  %v4371_v27 = vor.u32 %v5913_v5, %v4368_v7  ;;  %v5873_v51 = vld [vmem:[%s8021_s0 + $0xac] sm:$0xf0]  ;;  %v5861_v4 = vld [vmem:[%s8021_s0 + $0x54] sm:$0xf]  ;;  %v4491_v5 = vor.u32 %v5943_v39, %v4488_v46  ;;  %v4206_v10 = vld [vmem:[%s8021_s0 + $0x58] sm:$0xf]  ;;  %v4427_v15 = vor.u32 %v5927_v23, %v4424_v57 }
  0xea   : > { %3385 = vmatpush.bf16.msrb.mxu1 %v5663_v60  ;;  %v4563_v60 = vor.u32 %v5961_v18, %v4560_v20  ;;  %v7321_v2 = vadd.f32 %v3051_v43, %v3033_v41  ;;  %v4555_v18 = vor.u32 %v5959_v6, %v4552_v3  ;;  %v5941_v20 = vld [vmem:[%s6528_s11 + $0x154] sm:$0xf]  ;;  %v4480_v28 = vld [vmem:[%s6528_s11 + $0x158] sm:$0xf0] }
  0xeb   : > { %3404 = vmatpush.bf16.msrb.mxu2 %v5727_v35  ;;  %v2996_v35 = vpop.f32.mrf.mxu0  ;;  %v4352_v41 = vld [vmem:[%s6528_s11 + $0x58] sm:$0xf0]  ;;  %v5925_v43 = vld [vmem:[%s6528_s11 + $0xd4] sm:$0xf] }
  0xec   : > { %3423 = vmatpush.bf16.msrb.mxu3 %v5791_v55  ;;  %v2997_v49 = vadd.f32 %v2996_v35, %v7193_v34  ;;  %v3015_v45 = vpop.f32.mrf.mxu1  ;;  %v4360_v55 = vld [vmem:[%s6528_s11 + $0x68] sm:$0xf0]  ;;  %v4198_v34 = vld [vmem:[%s8021_s0 + $0x50] sm:$0xf]  ;;  %v4416_v23 = vld [vmem:[%s6528_s11 + $0xd8] sm:$0xf0] }
  0xed   : > { %3367 = vmatpush.bf16.msrb.mxu0 %v5591_v12  ;;  %v4363_v7 = vor.u32 %v5911_v19, %v4360_v55  ;;  %v5862_v12 = vld [vmem:[%s8021_s0 + $0x5c] sm:$0xf]  ;;  %v5957_v39 = vld [vmem:[%s6528_s11 + $0x1d4] sm:$0xf] }
  0xee   : > { %v3016_v50 = vadd.f32 %v3015_v45, %v2997_v49  ;;  %3386 = vmatpush.bf16.msrb.mxu1 %v5655_v42  ;;  %v4200_v45 = vld [vmem:[%s8021_s0 + $0xb0] sm:$0xf0]  ;;  %v4208_v19 = vld [vmem:[%s8021_s0 + $0xb8] sm:$0xf0]  ;;  %v3034_v42 = vpop.f32.mrf.mxu2 }
  0xef   : > { %3405 = vmatpush.bf16.msrb.mxu2 %v5719_v11  ;;  %v5874_v11 = vld [vmem:[%s8021_s0 + $0xb4] sm:$0xf0]  ;;  %v4544_v46 = vld [vmem:[%s6528_s11 + $0x1d8] sm:$0xf0]  ;;  %v7364_v57 = vor.u32 %v5862_v12, %v4208_v19 }
  0xf0   : > { %3424 = vmatpush.bf16.msrb.mxu3 %v5783_v40  ;;  %v5909_v40 = vld [vmem:[%s6528_s11 + $0x54] sm:$0xf]  ;;  %v3035_v35 = vadd.f32 %v3034_v42, %v3016_v50  ;;  %v7362_v55 = vor.u32 %v5874_v11, %v4206_v10  ;;  %v4483_v50 = vor.u32 %v5941_v20, %v4480_v28  ;;  %v4344_v10 = vld [vmem:[%s6528_s11 + $0x48] sm:$0xf0]  ;;  %v5923_v11 = vld [vmem:[%s6528_s11 + $0xc4] sm:$0xf] }
  0xf1   : > { %3436 = vmatpush.bf16.msra.mxu0 %v4371_v27  ;;  %v7355_v27 = vor.u32 %v5873_v51, %v4198_v34  ;;  %8066 = vst [vmem:[#allocation23_spill] sm:$0xff] %v7364_v57  ;;  %v4355_v34 = vor.u32 %v5909_v40, %v4352_v41  ;;  %v5939_v51 = vld [vmem:[%s6528_s11 + $0x144] sm:$0xf]  ;;  %v5937_v28 = vld [vmem:[%s6528_s11 + $0x134] sm:$0xf] }
  0xf2   : > { %3455 = vmatpush.bf16.msra.mxu1 %v4435_v44  ;;  %v7357_v44 = vor.u32 %v5861_v4, %v4200_v45  ;;  %8065 = vst [vmem:[#allocation22_spill] sm:$0xff] %v7362_v55  ;;  %v4472_v4 = vld [vmem:[%s6528_s11 + $0x148] sm:$0xf0]  ;;  %v4419_v45 = vor.u32 %v5925_v43, %v4416_v23  ;;  %v4464_v42 = vld [vmem:[%s6528_s11 + $0x138] sm:$0xf0] }
  0xf3   : > { %3474 = vmatpush.bf16.msra.mxu2 %v4499_v38  ;;  %v3053_v38 = vpop.f32.mrf.mxu3  ;;  %8063 = vst [vmem:[#allocation20_spill] sm:$0xff] %v7355_v27  ;;  %v3065_v49 = vpop.f32.mrf.mxu0  ;;  %3368 = vmatmul.bf16.vlgmr.msrb.gmra.mxu0 %v7355_v27  ;;  %v4475_v19 = vor.u32 %v5939_v51, %v4472_v4  ;;  %v5905_v43 = vld [vmem:[%s6528_s11 + $0x34] sm:$0xf]  ;;  %v4467_v4 = vor.u32 %v5937_v28, %v4464_v42  ;;  %v5919_v28 = vld [vmem:[%s6528_s11 + $0xa4] sm:$0xf] }
  0xf4   : > { %3493 = vmatpush.bf16.msra.mxu3 %v4563_v60  ;;  %8064 = vst [vmem:[#allocation21_spill] sm:$0xff] %v7357_v44  ;;  %v3084_v60 = vpop.f32.mrf.mxu1  ;;  %v7366_v6 = vadd.f32 %v3053_v38, %v3035_v35  ;;  %v3066_v3 = vadd.f32 %v3065_v49, %v7242_v24  ;;  %v5955_v24 = vld [vmem:[%s6528_s11 + $0x1c4] sm:$0xf]  ;;  %3406 = vmatmul.bf16.vlgmr.msrb.gmra.mxu2 %v7362_v55  ;;  %v4336_v35 = vld [vmem:[%s6528_s11 + $0x38] sm:$0xf0] }
  0xf5   : > { %3437 = vmatpush.bf16.msra.mxu0 %v4363_v7  ;;  %v5907_v7 = vld [vmem:[%s6528_s11 + $0x44] sm:$0xf]  ;;  %3387 = vmatmul.bf16.vlgmr.msrb.gmra.mxu1 %v7357_v44  ;;  %v5921_v38 = vld [vmem:[%s6528_s11 + $0xb4] sm:$0xf] }
  0xf6   : > { %3456 = vmatpush.bf16.msra.mxu1 %v4427_v15  ;;  %v3085_v12 = vadd.f32 %v3084_v60, %v3066_v3  ;;  %v4408_v15 = vld [vmem:[%s6528_s11 + $0xc8] sm:$0xf0]  ;;  %3425 = vmatmul.bf16.vlgmr.msrb.gmra.mxu3 %v7364_v57  ;;  %v4347_v20 = vor.u32 %v5907_v7, %v4344_v10  ;;  %v3103_v23 = vpop.f32.mrf.mxu2  ;;  %v5953_v49 = vld [vmem:[%s6528_s11 + $0x1b4] sm:$0xf]  ;;  %v4528_v60 = vld [vmem:[%s6528_s11 + $0x1b8] sm:$0xf0] }
  0xf7   : > { %3475 = vmatpush.bf16.msra.mxu2 %v4491_v5  ;;  %v4547_v5 = vor.u32 %v5957_v39, %v4544_v46  ;;  %v4411_v40 = vor.u32 %v5923_v11, %v4408_v15  ;;  %v4400_v46 = vld [vmem:[%s6528_s11 + $0xb8] sm:$0xf0]  ;;  %v4456_v7 = vld [vmem:[%s6528_s11 + $0x128] sm:$0xf0]  ;;  %v5897_v11 = vld [vmem:[%s8021_s0 + $0x16c] sm:$0xf0] }
  0xf8   : > { %3494 = vmatpush.bf16.msra.mxu3 %v4555_v18  ;;  %v4536_v18 = vld [vmem:[%s6528_s11 + $0x1c8] sm:$0xf0]  ;;  %v3104_v3 = vadd.f32 %v3103_v23, %v3085_v12  ;;  %v5885_v12 = vld [vmem:[%s8021_s0 + $0x114] sm:$0xf]  ;;  %v5886_v23 = vld [vmem:[%s8021_s0 + $0x11c] sm:$0xf] }
  0xf9   : > { %3438 = vmatpush.bf16.msra.mxu0 %v4355_v34  ;;  %v4539_v41 = vor.u32 %v5955_v24, %v4536_v18  ;;  %v4296_v15 = vld [vmem:[%s8021_s0 + $0x170] sm:$0xf0]  ;;  %v4403_v24 = vor.u32 %v5921_v38, %v4400_v46  ;;  %v4531_v18 = vor.u32 %v5953_v49, %v4528_v60  ;;  %v5898_v38 = vld [vmem:[%s8021_s0 + $0x174] sm:$0xf0]  ;;  %v4320_v57 = vld [vmem:[%s6528_s11 + $0x18] sm:$0xf0] }
  0xfa   : > { %3457 = vmatpush.bf16.msra.mxu1 %v4419_v45  ;;  %v4339_v45 = vor.u32 %v5905_v43, %v4336_v35  ;;  %v4520_v43 = vld [vmem:[%s6528_s11 + $0x1a8] sm:$0xf0]  ;;  %v4302_v35 = vld [vmem:[%s8021_s0 + $0x118] sm:$0xf]  ;;  %v5933_v60 = vld [vmem:[%s6528_s11 + $0x114] sm:$0xf] }
  0xfb   : > { %3476 = vmatpush.bf16.msra.mxu2 %v4483_v50  ;;  %v3122_v39 = vpop.f32.mrf.mxu3  ;;  %v3067_v50 = vpop.f32.mrf.mxu0  ;;  %v5917_v55 = vld [vmem:[%s6528_s11 + $0x94] sm:$0xf] }
  0xfc   : > { %3495 = vmatpush.bf16.msra.mxu3 %v4547_v5  ;;  %v3086_v34 = vpop.f32.mrf.mxu1  ;;  %v3068_v51 = vadd.f32 %v3067_v50, %v7294_v29  ;;  %v5935_v5 = vld [vmem:[%s6528_s11 + $0x124] sm:$0xf]  ;;  %v7392_v10 = vadd.f32 %v3122_v39, %v3104_v3  ;;  %v4294_v29 = vld [vmem:[%s8021_s0 + $0x110] sm:$0xf]  ;;  %v4304_v39 = vld [vmem:[%s8021_s0 + $0x178] sm:$0xf0] }
  0xfd   : > { %3439 = vmatpush.bf16.msra.mxu0 %v4347_v20  ;;  %v4328_v20 = vld [vmem:[%s6528_s11 + $0x28] sm:$0xf0]  ;;  %v4459_v46 = vor.u32 %v5935_v5, %v4456_v7  ;;  %v4448_v3 = vld [vmem:[%s6528_s11 + $0x118] sm:$0xf0]  ;;  %v7429_v63 = vor.u32 %v5897_v11, %v4294_v29  ;;  %v5949_v5 = vld [vmem:[%s6528_s11 + $0x194] sm:$0xf] }
  0xfe   : > { %3458 = vmatpush.bf16.msra.mxu1 %v4411_v40  ;;  %v3087_v42 = vadd.f32 %v3086_v34, %v3068_v51  ;;  %v4392_v40 = vld [vmem:[%s6528_s11 + $0xa8] sm:$0xf0]  ;;  %v5901_v51 = vld [vmem:[%s6528_s11 + $0x14] sm:$0xf]  ;;  %v3105_v44 = vpop.f32.mrf.mxu2  ;;  %v4512_v7 = vld [vmem:[%s6528_s11 + $0x198] sm:$0xf0]  ;;  %v4451_v11 = vor.u32 %v5933_v60, %v4448_v3 }
  0xff   : > { %3477 = vmatpush.bf16.msra.mxu2 %v4475_v19  ;;  %v5903_v19 = vld [vmem:[%s6528_s11 + $0x24] sm:$0xf]  ;;  %v4395_v50 = vor.u32 %v5919_v28, %v4392_v40  ;;  %v7438_v28 = vor.u32 %v5886_v23, %v4304_v39  ;;  %v5993_v60 = vld [vmem:[%s6528_s11 + $0x2f4] sm:$0xf] }
 0x100   : > { %3496 = vmatpush.bf16.msra.mxu3 %v4539_v41  ;;  %v5951_v41 = vld [vmem:[%s6528_s11 + $0x1a4] sm:$0xf]  ;;  %v4331_v49 = vor.u32 %v5903_v19, %v4328_v20  ;;  %v7436_v20 = vor.u32 %v5898_v38, %v4302_v35  ;;  %v4515_v35 = vor.u32 %v5949_v5, %v4512_v7  ;;  %v4376_v38 = vld [vmem:[%s6528_s11 + $0x88] sm:$0xf0] }
 0x101   : > { %3440 = vmatpush.bf16.msra.mxu0 %v4339_v45  ;;  %v4523_v34 = vor.u32 %v5951_v41, %v4520_v43  ;;  %v4384_v45 = vld [vmem:[%s6528_s11 + $0x98] sm:$0xf0]  ;;  %8068 = vst [vmem:[#allocation25_spill] sm:$0xff] %v7438_v28  ;;  %v5931_v40 = vld [vmem:[%s6528_s11 + $0x104] sm:$0xf] }
 0x102   : > { %3459 = vmatpush.bf16.msra.mxu1 %v4403_v24  ;;  %v3106_v24 = vadd.f32 %v3105_v44, %v3087_v42  ;;  %8067 = vst [vmem:[#allocation24_spill] sm:$0xff] %v7436_v20  ;;  %v5899_v44 = vld [vmem:[%s6528_s11 + $0x4] sm:$0xf]  ;;  %v4312_v42 = vld [vmem:[%s6528_s11 + $0x8] sm:$0xf0]  ;;  %v4387_v43 = vor.u32 %v5917_v55, %v4384_v45 }
 0x103   : > { %3478 = vmatpush.bf16.msra.mxu2 %v4467_v4  ;;  %v3124_v27 = vpop.f32.mrf.mxu3  ;;  %v7431_v4 = vor.u32 %v5885_v12, %v4296_v15  ;;  %v4323_v12 = vor.u32 %v5901_v51, %v4320_v57  ;;  %v4440_v15 = vld [vmem:[%s6528_s11 + $0x108] sm:$0xf0]  ;;  %v5947_v23 = vld [vmem:[%s6528_s11 + $0x184] sm:$0xf]  ;;  %3373 = vmatmul.bf16.gmra.mxu0 %v7429_v63  ;;  %v6009_v57 = vld [vmem:[%s6528_s11 + $0x374] sm:$0xf] }
 0x104   : > { %3497 = vmatpush.bf16.msra.mxu3 %v4531_v18  ;;  %v3070_v18 = vpop.f32.mrf.mxu0  ;;  %v3089_v19 = vpop.f32.mrf.mxu1  ;;  %v7445_v41 = vadd.f32 %v3124_v27, %v3106_v24  ;;  %v4504_v27 = vld [vmem:[%s6528_s11 + $0x188] sm:$0xf0]  ;;  %3411 = vmatmul.bf16.gmra.mxu2 %v7436_v20  ;;  %v5977_v55 = vld [vmem:[%s6528_s11 + $0x274] sm:$0xf]  ;;  %v4443_v3 = vor.u32 %v5931_v40, %v4440_v15  ;;  %v4816_v45 = vld [vmem:[%s6528_s11 + $0x3f8] sm:$0xf0] }
 0x105   : > { %v3071_v29 = vadd.f32 %v3070_v18, %v7321_v2  ;;  %3441 = vmatpush.bf16.msra.mxu0 %v4331_v49  ;;  %v5915_v2 = vld [vmem:[%s6528_s11 + $0x84] sm:$0xf]  ;;  %3392 = vmatmul.bf16.gmra.mxu1 %v7431_v4  ;;  %v4624_v49 = vld [vmem:[%s6528_s11 + $0x278] sm:$0xf0]  ;;  %v6025_v51 = vld [vmem:[%s6528_s11 + $0x3f4] sm:$0xf]  ;;  %v4507_v7 = vor.u32 %v5947_v23, %v4504_v27 }
 0x106   : > { %3460 = vmatpush.bf16.msra.mxu1 %v4395_v50  ;;  %3430 = vmatmul.bf16.gmra.mxu3 %v7438_v28  ;;  %v4315_v50 = vor.u32 %v5899_v44, %v4312_v42  ;;  %v4379_v5 = vor.u32 %v5915_v2, %v4376_v38  ;;  %v3108_v24 = vpop.f32.mrf.mxu2  ;;  %v4744_v40 = vld [vmem:[%s6528_s11 + $0x368] sm:$0xf0]  ;;  %v4819_v28 = vor.u32 %v6025_v51, %v4816_v45  ;;  %v6023_v23 = vld [vmem:[%s6528_s11 + $0x3e4] sm:$0xf]  ;;  %v5989_v51 = vld [vmem:[%s6528_s11 + $0x2d4] sm:$0xf] }
 0x107   : > { %3479 = vmatpush.bf16.msra.mxu2 %v4459_v46  ;;  %v3090_v39 = vadd.f32 %v3089_v19, %v3071_v29  ;;  %v4752_v46 = vld [vmem:[%s6528_s11 + $0x378] sm:$0xf0]  ;;  %v4627_v29 = vor.u32 %v5977_v55, %v4624_v49  ;;  %v4616_v20 = vld [vmem:[%s6528_s11 + $0x268] sm:$0xf0] }
 0x108   : > { %3498 = vmatpush.bf16.msra.mxu3 %v4523_v34  ;;  %v4688_v34 = vld [vmem:[%s6528_s11 + $0x2f8] sm:$0xf0]  ;;  %v4755_v19 = vor.u32 %v6009_v57, %v4752_v46  ;;  %v4680_v38 = vld [vmem:[%s6528_s11 + $0x2e8] sm:$0xf0] }
 0x109   : > { %3442 = vmatpush.bf16.msra.mxu0 %v4323_v12  ;;  %v3109_v12 = vadd.f32 %v3108_v24, %v3090_v39  ;;  %v4691_v42 = vor.u32 %v5993_v60, %v4688_v34  ;;  %v4808_v27 = vld [vmem:[%s6528_s11 + $0x3e8] sm:$0xf0]  ;;  %v6005_v60 = vld [vmem:[%s6528_s11 + $0x354] sm:$0xf]  ;;  %v4608_v34 = vld [vmem:[%s6528_s11 + $0x258] sm:$0xf0] }
 0x10a   : > { %3461 = vmatpush.bf16.msra.mxu1 %v4387_v43  ;;  %v5975_v43 = vld [vmem:[%s6528_s11 + $0x264] sm:$0xf]  ;;  %v4811_v49 = vor.u32 %v6023_v23, %v4808_v27  ;;  %v6021_v24 = vld [vmem:[%s6528_s11 + $0x3d4] sm:$0xf] }
 0x10b   : > { %3480 = vmatpush.bf16.msra.mxu2 %v4451_v11  ;;  %v3127_v18 = vpop.f32.mrf.mxu3  ;;  %v6007_v11 = vld [vmem:[%s6528_s11 + $0x364] sm:$0xf] }
 0x10c   : > { %3499 = vmatpush.bf16.msra.mxu3 %v4515_v35  ;;  %v3072_v15 = vpop.f32.mrf.mxu0  ;;  %v3091_v44 = vpop.f32.mrf.mxu1  ;;  %v5991_v35 = vld [vmem:[%s6528_s11 + $0x2e4] sm:$0xf]  ;;  %v7472_v57 = vadd.f32 %v3127_v18, %v3109_v12  ;;  %v4747_v46 = vor.u32 %v6007_v11, %v4744_v40 }
 0x10d   : > { %v3073_v2 = vadd.f32 %v3072_v15, %v7366_v6  ;;  %3443 = vmatpush.bf16.msra.mxu0 %v4315_v50  ;;  %v4619_v6 = vor.u32 %v5975_v43, %v4616_v20  ;;  %v4683_v55 = vor.u32 %v5991_v35, %v4680_v38  ;;  %v5973_v50 = vld [vmem:[%s6528_s11 + $0x254] sm:$0xf]  ;;  %v4800_v20 = vld [vmem:[%s6528_s11 + $0x3d8] sm:$0xf0]  ;;  %v6003_v12 = vld [vmem:[%s6528_s11 + $0x344] sm:$0xf] }
 0x10e   : > { %3462 = vmatpush.bf16.msra.mxu1 %v4379_v5  ;;  %v3110_v45 = vpop.f32.mrf.mxu2  ;;  %v4611_v40 = vor.u32 %v5973_v50, %v4608_v34  ;;  %v4728_v15 = vld [vmem:[%s6528_s11 + $0x348] sm:$0xf0]  ;;  %v4803_v43 = vor.u32 %v6021_v24, %v4800_v20  ;;  %v5971_v35 = vld [vmem:[%s6528_s11 + $0x244] sm:$0xf]  ;;  %v4656_v34 = vld [vmem:[%s6528_s11 + $0x2b8] sm:$0xf0] }
 0x10f   : > { %3481 = vmatpush.bf16.msra.mxu2 %v4443_v3  ;;  %v3092_v39 = vadd.f32 %v3091_v44, %v3073_v2  ;;  %v4736_v3 = vld [vmem:[%s6528_s11 + $0x358] sm:$0xf0]  ;;  %v4600_v2 = vld [vmem:[%s6528_s11 + $0x248] sm:$0xf0]  ;;  %v5987_v38 = vld [vmem:[%s6528_s11 + $0x2c4] sm:$0xf] }
 0x110   : > { %3500 = vmatpush.bf16.msra.mxu3 %v4507_v7  ;;  %v4672_v7 = vld [vmem:[%s6528_s11 + $0x2d8] sm:$0xf0]  ;;  %v4739_v11 = vor.u32 %v6005_v60, %v4736_v3  ;;  %v6019_v27 = vld [vmem:[%s6528_s11 + $0x3c4] sm:$0xf]  ;;  %v5969_v60 = vld [vmem:[%s6528_s11 + $0x234] sm:$0xf] }
 0x111   : > { %3512 = vmatpush.bf16.msrb.mxu0 %v4627_v29  ;;  %v4592_v3 = vld [vmem:[%s6528_s11 + $0x238] sm:$0xf0] }
 0x112   : > { %3531 = vmatpush.bf16.msrb.mxu1 %v4691_v42  ;;  %v4675_v42 = vor.u32 %v5989_v51, %v4672_v7  ;;  %v6017_v51 = vld [vmem:[%s6528_s11 + $0x3b4] sm:$0xf] }
 0x113   : > { %3550 = vmatpush.bf16.msrb.mxu2 %v4755_v19  ;;  %v3129_v5 = vpop.f32.mrf.mxu3  ;;  %3444 = vmatmul.bf16.vlgmr.msra.gmra.mxu0 %v6629_v56  ;;  %v6001_v56 = vld [vmem:[%s6528_s11 + $0x334] sm:$0xf] }
 0x114   : > { %3569 = vmatpush.bf16.msrb.mxu3 %v4819_v28  ;;  %v3111_v28 = vadd.f32 %v3110_v45, %v3092_v39  ;;  %v3141_v18 = vpop.f32.mrf.mxu0  ;;  %v3160_v19 = vpop.f32.mrf.mxu1  ;;  %v4792_v39 = vld [vmem:[%s6528_s11 + $0x3c8] sm:$0xf0]  ;;  %3482 = vmatmul.bf16.vlgmr.msra.gmra.mxu2 %v6636_v62  ;;  %v5985_v62 = vld [vmem:[%s6528_s11 + $0x2b4] sm:$0xf]  ;;  %v4784_v45 = vld [vmem:[%s6528_s11 + $0x3b8] sm:$0xf0] }
 0x115   : > { %3513 = vmatpush.bf16.msrb.mxu0 %v4619_v6  ;;  %v3142_v29 = vadd.f32 %v3141_v18, %v7392_v10  ;;  %3463 = vmatmul.bf16.vlgmr.msra.gmra.mxu1 %v6634_v61  ;;  %v4664_v10 = vld [vmem:[%s6528_s11 + $0x2c8] sm:$0xf0]  ;;  %v4603_v6 = vor.u32 %v5971_v35, %v4600_v2  ;;  %v4595_v18 = vor.u32 %v5969_v60, %v4592_v3  ;;  %v6015_v2 = vld [vmem:[%s6528_s11 + $0x3a4] sm:$0xf]  ;;  %v4640_v3 = vld [vmem:[%s6528_s11 + $0x298] sm:$0xf0] }
 0x116   : > { %3532 = vmatpush.bf16.msrb.mxu1 %v4683_v55  ;;  %v7485_v44 = vadd.f32 %v3129_v5, %v3111_v28  ;;  %3501 = vmatmul.bf16.vlgmr.msra.gmra.mxu3 %v6640_v1  ;;  %v4720_v55 = vld [vmem:[%s6528_s11 + $0x338] sm:$0xf0]  ;;  %v4667_v61 = vor.u32 %v5987_v38, %v4664_v10  ;;  %v3179_v50 = vpop.f32.mrf.mxu2  ;;  %v4648_v35 = vld [vmem:[%s6528_s11 + $0x2a8] sm:$0xf0] }
 0x117   : > { %3551 = vmatpush.bf16.msrb.mxu2 %v4747_v46  ;;  %v3161_v23 = vadd.f32 %v3160_v19, %v3142_v29  ;;  %v4731_v46 = vor.u32 %v6003_v12, %v4728_v15  ;;  %v4723_v28 = vor.u32 %v6001_v56, %v4720_v55  ;;  %v5999_v19 = vld [vmem:[%s6528_s11 + $0x324] sm:$0xf]  ;;  %v4712_v29 = vld [vmem:[%s6528_s11 + $0x328] sm:$0xf0]  ;;  %v4787_v12 = vor.u32 %v6017_v51, %v4784_v45  ;;  %v5965_v56 = vld [vmem:[%s6528_s11 + $0x214] sm:$0xf] }
 0x118   : > { %3570 = vmatpush.bf16.msrb.mxu3 %v4811_v49  ;;  %v4795_v49 = vor.u32 %v6019_v27, %v4792_v39  ;;  %v5967_v15 = vld [vmem:[%s6528_s11 + $0x224] sm:$0xf]  ;;  %v4776_v38 = vld [vmem:[%s6528_s11 + $0x3a8] sm:$0xf0]  ;;  %v5997_v27 = vld [vmem:[%s6528_s11 + $0x314] sm:$0xf] }
 0x119   : > { %3514 = vmatpush.bf16.msrb.mxu0 %v4611_v40  ;;  %v3180_v5 = vadd.f32 %v3179_v50, %v3161_v23  ;;  %v4659_v40 = vor.u32 %v5985_v62, %v4656_v34  ;;  %v4715_v23 = vor.u32 %v5999_v19, %v4712_v29  ;;  %v4704_v39 = vld [vmem:[%s6528_s11 + $0x318] sm:$0xf0]  ;;  %v6013_v62 = vld [vmem:[%s6528_s11 + $0x394] sm:$0xf]  ;;  %v5995_v45 = vld [vmem:[%s6528_s11 + $0x304] sm:$0xf] }
 0x11a   : > { %3533 = vmatpush.bf16.msrb.mxu1 %v4675_v42  ;;  %v4584_v42 = vld [vmem:[%s6528_s11 + $0x228] sm:$0xf0]  ;;  %v4576_v55 = vld [vmem:[%s6528_s11 + $0x218] sm:$0xf0] }
 0x11b   : > { %3552 = vmatpush.bf16.msrb.mxu2 %v4739_v11  ;;  %v3198_v1 = vpop.f32.mrf.mxu3  ;;  %v4587_v10 = vor.u32 %v5967_v15, %v4584_v42  ;;  %v4768_v50 = vld [vmem:[%s6528_s11 + $0x398] sm:$0xf0]  ;;  %v6011_v15 = vld [vmem:[%s6528_s11 + $0x384] sm:$0xf] }
 0x11c   : > { %3571 = vmatpush.bf16.msrb.mxu3 %v4803_v43  ;;  %v3143_v7 = vpop.f32.mrf.mxu0  ;;  %v3162_v24 = vpop.f32.mrf.mxu1  ;;  %v7508_v11 = vadd.f32 %v3198_v1, %v3180_v5 }
 0x11d   : > { %v3144_v20 = vadd.f32 %v3143_v7, %v7445_v41  ;;  %3515 = vmatpush.bf16.msrb.mxu0 %v4603_v6  ;;  %v5983_v41 = vld [vmem:[%s6528_s11 + $0x2a4] sm:$0xf]  ;;  %v4779_v6 = vor.u32 %v6015_v2, %v4776_v38  ;;  %v4707_v7 = vor.u32 %v5997_v27, %v4704_v39  ;;  %v6041_v2 = vld [vmem:[%s6528_s11 + $0x474] sm:$0xf]  ;;  %v4880_v38 = vld [vmem:[%s6528_s11 + $0x478] sm:$0xf0] }
 0x11e   : > { %3534 = vmatpush.bf16.msrb.mxu1 %v4667_v61  ;;  %v5981_v61 = vld [vmem:[%s6528_s11 + $0x294] sm:$0xf] }
 0x11f   : > { %3553 = vmatpush.bf16.msrb.mxu2 %v4731_v46  ;;  %v3163_v43 = vadd.f32 %v3162_v24, %v3144_v20  ;;  %v4651_v46 = vor.u32 %v5983_v41, %v4648_v35  ;;  %v4579_v24 = vor.u32 %v5965_v56, %v4576_v55  ;;  %v4696_v20 = vld [vmem:[%s6528_s11 + $0x308] sm:$0xf0]  ;;  %v4643_v29 = vor.u32 %v5981_v61, %v4640_v3  ;;  %v5008_v35 = vld [vmem:[%s6528_s11 + $0x578] sm:$0xf0]  ;;  %v6089_v39 = vld [vmem:[%s6528_s11 + $0x5f4] sm:$0xf] }
 0x120   : > { %3572 = vmatpush.bf16.msrb.mxu3 %v4795_v49  ;;  %v3181_v49 = vpop.f32.mrf.mxu2  ;;  %v4760_v41 = vld [vmem:[%s6528_s11 + $0x388] sm:$0xf0]  ;;  %v4883_v55 = vor.u32 %v6041_v2, %v4880_v38  ;;  %v6071_v61 = vld [vmem:[%s6528_s11 + $0x564] sm:$0xf]  ;;  %v4928_v38 = vld [vmem:[%s6528_s11 + $0x4d8] sm:$0xf0] }
 0x121   : > { %3516 = vmatpush.bf16.msrb.mxu0 %v4595_v18  ;;  %v3182_v1 = vadd.f32 %v3181_v49, %v3163_v43  ;;  %v4568_v18 = vld [vmem:[%s6528_s11 + $0x208] sm:$0xf0]  ;;  %v6073_v43 = vld [vmem:[%s6528_s11 + $0x574] sm:$0xf] }
 0x122   : > { %3535 = vmatpush.bf16.msrb.mxu1 %v4659_v40  ;;  %v4771_v40 = vor.u32 %v6013_v62, %v4768_v50  ;;  %v5011_v56 = vor.u32 %v6073_v43, %v5008_v35  ;;  %v5000_v49 = vld [vmem:[%s6528_s11 + $0x568] sm:$0xf0]  ;;  %v6053_v43 = vld [vmem:[%s6528_s11 + $0x4d4] sm:$0xf] }
 0x123   : > { %3554 = vmatpush.bf16.msrb.mxu2 %v4723_v28  ;;  %v3200_v60 = vpop.f32.mrf.mxu3  ;;  %v5963_v28 = vld [vmem:[%s6528_s11 + $0x204] sm:$0xf]  ;;  %3449 = vmatmul.bf16.gmra.mxu0 %v6697_v52  ;;  %v4944_v52 = vld [vmem:[%s6528_s11 + $0x4f8] sm:$0xf0] }
 0x124   : > { %3573 = vmatpush.bf16.msrb.mxu3 %v4787_v12  ;;  %v3146_v34 = vpop.f32.mrf.mxu0  ;;  %v3165_v51 = vpop.f32.mrf.mxu1  ;;  %v7529_v19 = vadd.f32 %v3200_v60, %v3182_v1  ;;  %v4632_v12 = vld [vmem:[%s6528_s11 + $0x288] sm:$0xf0]  ;;  %3487 = vmatmul.bf16.gmra.mxu2 %v6704_v59  ;;  %v4571_v27 = vor.u32 %v5963_v28, %v4568_v18  ;;  %v4763_v59 = vor.u32 %v6011_v15, %v4760_v41  ;;  %v4992_v15 = vld [vmem:[%s6528_s11 + $0x558] sm:$0xf0] }
 0x125   : > { %v3147_v5 = vadd.f32 %v3146_v34, %v7472_v57  ;;  %3517 = vmatpush.bf16.msrb.mxu0 %v4587_v10  ;;  %v5979_v57 = vld [vmem:[%s6528_s11 + $0x284] sm:$0xf]  ;;  %3468 = vmatmul.bf16.gmra.mxu1 %v6702_v58  ;;  %v4699_v10 = vor.u32 %v5995_v45, %v4696_v20  ;;  %v5064_v20 = vld [vmem:[%s6528_s11 + $0x5e8] sm:$0xf0]  ;;  %v4864_v41 = vld [vmem:[%s6528_s11 + $0x458] sm:$0xf0] }
 0x126   : > { %3536 = vmatpush.bf16.msrb.mxu1 %v4651_v46  ;;  %3506 = vmatmul.bf16.gmra.mxu3 %v6708_v0  ;;  %v5072_v46 = vld [vmem:[%s6528_s11 + $0x5f8] sm:$0xf0]  ;;  %v4635_v58 = vor.u32 %v5979_v57, %v4632_v12  ;;  %v6039_v34 = vld [vmem:[%s6528_s11 + $0x464] sm:$0xf]  ;;  %v6069_v12 = vld [vmem:[%s6528_s11 + $0x554] sm:$0xf] }
 0x127   : > { %3555 = vmatpush.bf16.msrb.mxu2 %v4715_v23  ;;  %v3166_v42 = vadd.f32 %v3165_v51, %v3147_v5  ;;  %v6057_v23 = vld [vmem:[%s6528_s11 + $0x4f4] sm:$0xf]  ;;  %v5075_v1 = vor.u32 %v6089_v39, %v5072_v46  ;;  %v4872_v51 = vld [vmem:[%s6528_s11 + $0x468] sm:$0xf0]  ;;  %v6055_v45 = vld [vmem:[%s6528_s11 + $0x4e4] sm:$0xf]  ;;  %v4995_v46 = vor.u32 %v6069_v12, %v4992_v15 }
 0x128   : > { %3574 = vmatpush.bf16.msrb.mxu3 %v4779_v6  ;;  %v3184_v0 = vpop.f32.mrf.mxu2  ;;  %v4947_v50 = vor.u32 %v6057_v23, %v4944_v52  ;;  %v6085_v23 = vld [vmem:[%s6528_s11 + $0x5d4] sm:$0xf]  ;;  %v6063_v15 = vld [vmem:[%s6528_s11 + $0x524] sm:$0xf] }
 0x129   : > { %3518 = vmatpush.bf16.msrb.mxu0 %v4579_v24  ;;  %v3185_v60 = vadd.f32 %v3184_v0, %v3166_v42  ;;  %v6087_v24 = vld [vmem:[%s6528_s11 + $0x5e4] sm:$0xf]  ;;  %v6037_v42 = vld [vmem:[%s6528_s11 + $0x454] sm:$0xf]  ;;  %v4984_v0 = vld [vmem:[%s6528_s11 + $0x548] sm:$0xf0] }
 0x12a   : > { %3537 = vmatpush.bf16.msrb.mxu1 %v4643_v29  ;;  %v5003_v29 = vor.u32 %v6071_v61, %v5000_v49  ;;  %v5067_v57 = vor.u32 %v6087_v24, %v5064_v20  ;;  %v6035_v61 = vld [vmem:[%s6528_s11 + $0x444] sm:$0xf]  ;;  %v4856_v49 = vld [vmem:[%s6528_s11 + $0x448] sm:$0xf0]  ;;  %v4912_v20 = vld [vmem:[%s6528_s11 + $0x4b8] sm:$0xf0] }
 0x12b   : > { %3556 = vmatpush.bf16.msrb.mxu2 %v4707_v7  ;;  %v3203_v6 = vpop.f32.mrf.mxu3  ;;  %v4936_v7 = vld [vmem:[%s6528_s11 + $0x4e8] sm:$0xf0] }
 0x12c   : > { %3575 = vmatpush.bf16.msrb.mxu3 %v4771_v40  ;;  %v3148_v3 = vpop.f32.mrf.mxu0  ;;  %v3167_v62 = vpop.f32.mrf.mxu1  ;;  %v7556_v28 = vadd.f32 %v3203_v6, %v3185_v60  ;;  %v4939_v40 = vor.u32 %v6055_v45, %v4936_v7  ;;  %v6051_v60 = vld [vmem:[%s6528_s11 + $0x4c4] sm:$0xf]  ;;  %v4848_v7 = vld [vmem:[%s6528_s11 + $0x438] sm:$0xf0] }
 0x12d   : > { %v3149_v5 = vadd.f32 %v3148_v3, %v7485_v44  ;;  %3519 = vmatpush.bf16.msrb.mxu0 %v4571_v27  ;;  %v4875_v44 = vor.u32 %v6039_v34, %v4872_v51  ;;  %v4920_v3 = vld [vmem:[%s6528_s11 + $0x4c8] sm:$0xf0]  ;;  %v4859_v34 = vor.u32 %v6035_v61, %v4856_v49  ;;  %v4976_v51 = vld [vmem:[%s6528_s11 + $0x538] sm:$0xf0]  ;;  %v6029_v61 = vld [vmem:[%s6528_s11 + $0x414] sm:$0xf] }
 0x12e   : > { %3538 = vmatpush.bf16.msrb.mxu1 %v4635_v58  ;;  %v4867_v58 = vor.u32 %v6037_v42, %v4864_v41  ;;  %v4968_v42 = vld [vmem:[%s6528_s11 + $0x528] sm:$0xf0]  ;;  %v4832_v49 = vld [vmem:[%s6528_s11 + $0x418] sm:$0xf0] }
 0x12f   : > { %3557 = vmatpush.bf16.msrb.mxu2 %v4699_v10  ;;  %v3168_v18 = vadd.f32 %v3167_v62, %v3149_v5  ;;  %v5056_v10 = vld [vmem:[%s6528_s11 + $0x5d8] sm:$0xf0]  ;;  %v6083_v62 = vld [vmem:[%s6528_s11 + $0x5c4] sm:$0xf]  ;;  %v6033_v5 = vld [vmem:[%s6528_s11 + $0x434] sm:$0xf] }
 0x130   : > { %3576 = vmatpush.bf16.msrb.mxu3 %v4763_v59  ;;  %v3186_v35 = vpop.f32.mrf.mxu2  ;;  %v6067_v59 = vld [vmem:[%s6528_s11 + $0x544] sm:$0xf]  ;;  %v4851_v12 = vor.u32 %v6033_v5, %v4848_v7  ;;  %v4835_v5 = vor.u32 %v6029_v61, %v4832_v49  ;;  %v4952_v7 = vld [vmem:[%s6528_s11 + $0x508] sm:$0xf0] }
 0x131   : > { %3588 = vmatpush.bf16.msra.mxu0 %v4883_v55  ;;  %v3187_v27 = vadd.f32 %v3186_v35, %v3168_v18  ;;  %v5059_v55 = vor.u32 %v6085_v23, %v5056_v10  ;;  %v6081_v18 = vld [vmem:[%s6528_s11 + $0x5b4] sm:$0xf]  ;;  %v6031_v35 = vld [vmem:[%s6528_s11 + $0x424] sm:$0xf]  ;;  %v4904_v23 = vld [vmem:[%s6528_s11 + $0x4a8] sm:$0xf0] }
 0x132   : > { %3607 = vmatpush.bf16.msra.mxu1 %v4947_v50  ;;  %v5048_v50 = vld [vmem:[%s6528_s11 + $0x5c8] sm:$0xf0]  ;;  %v6079_v10 = vld [vmem:[%s6528_s11 + $0x5a4] sm:$0xf] }
 0x133   : > { %3626 = vmatpush.bf16.msra.mxu2 %v5011_v56  ;;  %v3205_v2 = vpop.f32.mrf.mxu3  ;;  %v4931_v56 = vor.u32 %v6053_v43, %v4928_v38  ;;  %3520 = vmatmul.bf16.vlgmr.msrb.gmra.mxu0 %v6773_v8  ;;  %v6065_v8 = vld [vmem:[%s6528_s11 + $0x534] sm:$0xf]  ;;  %v5051_v45 = vor.u32 %v6083_v62, %v5048_v50  ;;  %v6047_v38 = vld [vmem:[%s6528_s11 + $0x4a4] sm:$0xf]  ;;  %v4896_v50 = vld [vmem:[%s6528_s11 + $0x498] sm:$0xf0] }
 0x134   : > { %3645 = vmatpush.bf16.msra.mxu3 %v5075_v1  ;;  %v7566_v52 = vpop.f32.mrf.mxu0  ;;  %v7568_v39 = vpop.f32.mrf.mxu1  ;;  %v7572_v6 = vadd.f32 %v3205_v2, %v3187_v27  ;;  %3558 = vmatmul.bf16.vlgmr.msrb.gmra.mxu2 %v6780_v13  ;;  %v4987_v1 = vor.u32 %v6067_v59, %v4984_v0  ;;  %v6049_v13 = vld [vmem:[%s6528_s11 + $0x4b4] sm:$0xf]  ;;  %v4840_v2 = vld [vmem:[%s6528_s11 + $0x428] sm:$0xf0]  ;;  %v4960_v0 = vld [vmem:[%s6528_s11 + $0x518] sm:$0xf0] }
 0x135   : > { %3589 = vmatpush.bf16.msra.mxu0 %v4875_v44  ;;  %3539 = vmatmul.bf16.vlgmr.msrb.gmra.mxu1 %v6775_v9  ;;  %v4923_v9 = vor.u32 %v6051_v60, %v4920_v3  ;;  %v4915_v41 = vor.u32 %v6049_v13, %v4912_v20  ;;  %v5032_v27 = vld [vmem:[%s6528_s11 + $0x5a8] sm:$0xf0]  ;;  %v6061_v59 = vld [vmem:[%s6528_s11 + $0x514] sm:$0xf]  ;;  %v6027_v13 = vld [vmem:[%s6528_s11 + $0x404] sm:$0xf] }
 0x136   : > { %3608 = vmatpush.bf16.msra.mxu1 %v4939_v40  ;;  %3577 = vmatmul.bf16.vlgmr.msrb.gmra.mxu3 %v6782_v14  ;;  %v6045_v60 = vld [vmem:[%s6528_s11 + $0x494] sm:$0xf]  ;;  %v4824_v20 = vld [vmem:[%s6528_s11 + $0x408] sm:$0xf0] }
 0x137   : > { %3627 = vmatpush.bf16.msra.mxu2 %v5003_v29  ;;  %v5040_v29 = vld [vmem:[%s6528_s11 + $0x5b8] sm:$0xf0] }
 0x138   : > { %3646 = vmatpush.bf16.msra.mxu3 %v5067_v57  ;;  %v7589_v24 = vpop.f32.mrf.mxu2  ;;  %v4979_v57 = vor.u32 %v6065_v8, %v4976_v51  ;;  %v5043_v43 = vor.u32 %v6081_v18, %v5040_v29  ;;  %v4899_v18 = vor.u32 %v6045_v60, %v4896_v50 }
 0x139   : > { %3590 = vmatpush.bf16.msra.mxu0 %v4867_v58  ;;  %v4843_v58 = vor.u32 %v6031_v35, %v4840_v2  ;;  %v6105_v35 = vld [vmem:[%s6528_s11 + $0x674] sm:$0xf]  ;;  %v5136_v2 = vld [vmem:[%s6528_s11 + $0x678] sm:$0xf0] }
 0x13a   : > { %3609 = vmatpush.bf16.msra.mxu1 %v4931_v56  ;;  %v4907_v56 = vor.u32 %v6047_v38, %v4904_v23  ;;  %v6121_v38 = vld [vmem:[%s6528_s11 + $0x6f4] sm:$0xf] }
 0x13b   : > { %3628 = vmatpush.bf16.msra.mxu2 %v4995_v46  ;;  %v7591_v14 = vpop.f32.mrf.mxu3  ;;  %v4971_v46 = vor.u32 %v6063_v15, %v4968_v42  ;;  %v6075_v15 = vld [vmem:[%s6528_s11 + $0x584] sm:$0xf]  ;;  %v5016_v42 = vld [vmem:[%s6528_s11 + $0x588] sm:$0xf0] }
 0x13c   : > { %3647 = vmatpush.bf16.msra.mxu3 %v5059_v55  ;;  %v7596_v44 = vpop.f32.mrf.mxu0  ;;  %v7598_v40 = vpop.f32.mrf.mxu1  ;;  %v5035_v55 = vor.u32 %v6079_v10, %v5032_v27  ;;  %v4827_v10 = vor.u32 %v6027_v13, %v4824_v20  ;;  %v6153_v27 = vld [vmem:[%s6528_s11 + $0x7f4] sm:$0xf] }
 0x13d   : > { %3591 = vmatpush.bf16.msra.mxu0 %v4859_v34  ;;  %v5024_v34 = vld [vmem:[%s6528_s11 + $0x598] sm:$0xf0] }
 0x13e   : > { %3610 = vmatpush.bf16.msra.mxu1 %v4923_v9  ;;  %v6059_v9 = vld [vmem:[%s6528_s11 + $0x504] sm:$0xf] }
 0x13f   : > { %3629 = vmatpush.bf16.msra.mxu2 %v4987_v1  ;;  %v6077_v1 = vld [vmem:[%s6528_s11 + $0x594] sm:$0xf]  ;;  %v4955_v23 = vor.u32 %v6059_v9, %v4952_v7  ;;  %v6119_v9 = vld [vmem:[%s6528_s11 + $0x6e4] sm:$0xf]  ;;  %v5320_v7 = vld [vmem:[%s6528_s11 + $0x7e8] sm:$0xf0] }
 0x140   : > { %3648 = vmatpush.bf16.msra.mxu3 %v5051_v45  ;;  %v7613_v3 = vpop.f32.mrf.mxu2  ;;  %v4963_v45 = vor.u32 %v6061_v59, %v4960_v0  ;;  %v5027_v29 = vor.u32 %v6077_v1, %v5024_v34  ;;  %v5139_v0 = vor.u32 %v6105_v35, %v5136_v2  ;;  %v6103_v1 = vld [vmem:[%s6528_s11 + $0x664] sm:$0xf]  ;;  %v5128_v34 = vld [vmem:[%s6528_s11 + $0x668] sm:$0xf0]  ;;  %v5184_v2 = vld [vmem:[%s6528_s11 + $0x6d8] sm:$0xf0] }
 0x141   : > { %3592 = vmatpush.bf16.msra.mxu0 %v4851_v12  ;;  %v4888_v12 = vld [vmem:[%s6528_s11 + $0x488] sm:$0xf0]  ;;  %v5131_v20 = vor.u32 %v6103_v1, %v5128_v34  ;;  %v6147_v1 = vld [vmem:[%s6528_s11 + $0x7c4] sm:$0xf] }
 0x142   : > { %3611 = vmatpush.bf16.msra.mxu1 %v4915_v41  ;;  %v6137_v41 = vld [vmem:[%s6528_s11 + $0x774] sm:$0xf]  ;;  %v5304_v34 = vld [vmem:[%s6528_s11 + $0x7c8] sm:$0xf0] }
 0x143   : > { %3630 = vmatpush.bf16.msra.mxu2 %v4979_v57  ;;  %v7615_v62 = vpop.f32.mrf.mxu3  ;;  %v6043_v57 = vld [vmem:[%s6528_s11 + $0x484] sm:$0xf]  ;;  %3525 = vmatmul.bf16.gmra.mxu0 %v6841_v16  ;;  %v5200_v16 = vld [vmem:[%s6528_s11 + $0x6f8] sm:$0xf0] }
 0x144   : > { %3649 = vmatpush.bf16.msra.mxu3 %v5043_v43  ;;  %v7620_v8 = vpop.f32.mrf.mxu0  ;;  %v7622_v51 = vpop.f32.mrf.mxu1  ;;  %v5264_v43 = vld [vmem:[%s6528_s11 + $0x778] sm:$0xf0]  ;;  %3563 = vmatmul.bf16.gmra.mxu2 %v6848_v21  ;;  %v4891_v21 = vor.u32 %v6043_v57, %v4888_v12  ;;  %v5203_v60 = vor.u32 %v6121_v38, %v5200_v16  ;;  %v6133_v57 = vld [vmem:[%s6528_s11 + $0x754] sm:$0xf] }
 0x145   : > { %3593 = vmatpush.bf16.msra.mxu0 %v4843_v58  ;;  %3544 = vmatmul.bf16.gmra.mxu1 %v6843_v17  ;;  %v5328_v17 = vld [vmem:[%s6528_s11 + $0x7f8] sm:$0xf0]  ;;  %v5267_v59 = vor.u32 %v6137_v41, %v5264_v43  ;;  %v6117_v41 = vld [vmem:[%s6528_s11 + $0x6d4] sm:$0xf] }
 0x146   : > { %3612 = vmatpush.bf16.msra.mxu1 %v4907_v56  ;;  %3582 = vmatmul.bf16.gmra.mxu3 %v6850_v22  ;;  %v6135_v56 = vld [vmem:[%s6528_s11 + $0x764] sm:$0xf]  ;;  %v5331_v50 = vor.u32 %v6153_v27, %v5328_v17  ;;  %v5248_v12 = vld [vmem:[%s6528_s11 + $0x758] sm:$0xf0]  ;;  %v6149_v38 = vld [vmem:[%s6528_s11 + $0x7d4] sm:$0xf] }
 0x147   : > { %3631 = vmatpush.bf16.msra.mxu2 %v4971_v46  ;;  %v5019_v46 = vor.u32 %v6075_v15, %v5016_v42  ;;  %v6101_v15 = vld [vmem:[%s6528_s11 + $0x654] sm:$0xf]  ;;  %v5120_v42 = vld [vmem:[%s6528_s11 + $0x658] sm:$0xf0]  ;;  %v5251_v27 = vor.u32 %v6133_v57, %v5248_v12 }
 0x148   : > { %3650 = vmatpush.bf16.msra.mxu3 %v5035_v55  ;;  %v7644_v22 = vpop.f32.mrf.mxu2  ;;  %v5256_v55 = vld [vmem:[%s6528_s11 + $0x768] sm:$0xf0]  ;;  %v5123_v17 = vor.u32 %v6101_v15, %v5120_v42  ;;  %v6145_v57 = vld [vmem:[%s6528_s11 + $0x7b4] sm:$0xf]  ;;  %v5296_v12 = vld [vmem:[%s6528_s11 + $0x7b8] sm:$0xf0] }
 0x149   : > { %3594 = vmatpush.bf16.msra.mxu0 %v4835_v5  ;;  %v6151_v5 = vld [vmem:[%s6528_s11 + $0x7e4] sm:$0xf]  ;;  %v5259_v13 = vor.u32 %v6135_v56, %v5256_v55  ;;  %v5112_v55 = vld [vmem:[%s6528_s11 + $0x648] sm:$0xf0] }
 0x14a   : > { %3613 = vmatpush.bf16.msra.mxu1 %v4899_v18  ;;  %v6099_v56 = vld [vmem:[%s6528_s11 + $0x644] sm:$0xf] }
 0x14b   : > { %3632 = vmatpush.bf16.msra.mxu2 %v4963_v45  ;;  %v7646_v58 = vpop.f32.mrf.mxu3  ;;  %v5192_v45 = vld [vmem:[%s6528_s11 + $0x6e8] sm:$0xf0] }
 0x14c   : > { %3651 = vmatpush.bf16.msra.mxu3 %v5027_v29  ;;  %v7650_v61 = vpop.f32.mrf.mxu0  ;;  %v7652_v49 = vpop.f32.mrf.mxu1  ;;  %v5195_v18 = vor.u32 %v6119_v9, %v5192_v45  ;;  %v5323_v29 = vor.u32 %v6151_v5, %v5320_v7  ;;  %v5115_v45 = vor.u32 %v6099_v56, %v5112_v55  ;;  %v5232_v5 = vld [vmem:[%s6528_s11 + $0x738] sm:$0xf0]  ;;  %v5307_v7 = vor.u32 %v6147_v1, %v5304_v34  ;;  %v5160_v56 = vld [vmem:[%s6528_s11 + $0x6a8] sm:$0xf0]  ;;  %v6143_v55 = vld [vmem:[%s6528_s11 + $0x7a4] sm:$0xf] }
 0x14d   : > { %3595 = vmatpush.bf16.msra.mxu0 %v4827_v10  ;;  %v5216_v1 = vld [vmem:[%s6528_s11 + $0x718] sm:$0xf0] }
 0x14e   : > { %3614 = vmatpush.bf16.msra.mxu1 %v4891_v21  ;;  %v6131_v21 = vld [vmem:[%s6528_s11 + $0x744] sm:$0xf] }
 0x14f   : > { %3633 = vmatpush.bf16.msra.mxu2 %v4955_v23  ;;  %v5312_v23 = vld [vmem:[%s6528_s11 + $0x7d8] sm:$0xf0] }
 0x150   : > { %3652 = vmatpush.bf16.msra.mxu3 %v5019_v46  ;;  %v7665_v43 = vpop.f32.mrf.mxu2  ;;  %v5240_v46 = vld [vmem:[%s6528_s11 + $0x748] sm:$0xf0] }
 0x151   : > { %3664 = vmatpush.bf16.msrb.mxu0 %v5139_v0  ;;  %v5315_v0 = vor.u32 %v6149_v38, %v5312_v23  ;;  %v5243_v9 = vor.u32 %v6131_v21, %v5240_v46  ;;  %v6127_v38 = vld [vmem:[%s6528_s11 + $0x724] sm:$0xf]  ;;  %v5224_v23 = vld [vmem:[%s6528_s11 + $0x728] sm:$0xf0]  ;;  %v5299_v21 = vor.u32 %v6145_v57, %v5296_v12 }
 0x152   : > { %3683 = vmatpush.bf16.msrb.mxu1 %v5203_v60  ;;  %v6115_v60 = vld [vmem:[%s6528_s11 + $0x6c4] sm:$0xf] }
 0x153   : > { %3702 = vmatpush.bf16.msrb.mxu2 %v5267_v59  ;;  %v7667_v35 = vpop.f32.mrf.mxu3  ;;  %v5187_v59 = vor.u32 %v6117_v41, %v5184_v2  ;;  %3596 = vmatmul.bf16.vlgmr.msra.gmra.mxu0 %v6911_v31  ;;  %v6129_v31 = vld [vmem:[%s6528_s11 + $0x734] sm:$0xf]  ;;  %v6095_v46 = vld [vmem:[%s6528_s11 + $0x624] sm:$0xf] }
 0x154   : > { %3721 = vmatpush.bf16.msrb.mxu3 %v5331_v50  ;;  %v7672_v10 = vpop.f32.mrf.mxu0  ;;  %v7674_v16 = vpop.f32.mrf.mxu1  ;;  %v5176_v50 = vld [vmem:[%s6528_s11 + $0x6c8] sm:$0xf0]  ;;  %3634 = vmatmul.bf16.vlgmr.msra.gmra.mxu2 %v6918_v36  ;;  %v6113_v36 = vld [vmem:[%s6528_s11 + $0x6b4] sm:$0xf]  ;;  %v5235_v41 = vor.u32 %v6129_v31, %v5232_v5  ;;  %v5088_v5 = vld [vmem:[%s6528_s11 + $0x618] sm:$0xf0] }
 0x155   : > { %3665 = vmatpush.bf16.msrb.mxu0 %v5131_v20  ;;  %3615 = vmatmul.bf16.vlgmr.msra.gmra.mxu1 %v6913_v32  ;;  %v5179_v32 = vor.u32 %v6115_v60, %v5176_v50  ;;  %v5104_v20 = vld [vmem:[%s6528_s11 + $0x638] sm:$0xf0]  ;;  %v5288_v60 = vld [vmem:[%s6528_s11 + $0x7a8] sm:$0xf0]  ;;  %v5227_v50 = vor.u32 %v6127_v38, %v5224_v23  ;;  %v6093_v31 = vld [vmem:[%s6528_s11 + $0x614] sm:$0xf] }
 0x156   : > { %3684 = vmatpush.bf16.msrb.mxu1 %v5195_v18  ;;  %3653 = vmatmul.bf16.vlgmr.msra.gmra.mxu3 %v6920_v37  ;;  %v5208_v38 = vld [vmem:[%s6528_s11 + $0x708] sm:$0xf0]  ;;  %v6091_v23 = vld [vmem:[%s6528_s11 + $0x604] sm:$0xf] }
 0x157   : > { %3703 = vmatpush.bf16.msrb.mxu2 %v5259_v13  ;;  %v6097_v13 = vld [vmem:[%s6528_s11 + $0x634] sm:$0xf] }
 0x158   : > { %3722 = vmatpush.bf16.msrb.mxu3 %v5323_v29  ;;  %v7693_v18 = vpop.f32.mrf.mxu2  ;;  %v5168_v29 = vld [vmem:[%s6528_s11 + $0x6b8] sm:$0xf0]  ;;  %v5107_v2 = vor.u32 %v6097_v13, %v5104_v20 }
 0x159   : > { %3666 = vmatpush.bf16.msrb.mxu0 %v5123_v17  ;;  %v5171_v17 = vor.u32 %v6113_v36, %v5168_v29  ;;  %v5152_v36 = vld [vmem:[%s6528_s11 + $0x698] sm:$0xf0] }
 0x15a   : > { %3685 = vmatpush.bf16.msrb.mxu1 %v5187_v59  ;;  %v5096_v59 = vld [vmem:[%s6528_s11 + $0x628] sm:$0xf0]  ;;  %v5280_v29 = vld [vmem:[%s6528_s11 + $0x798] sm:$0xf0] }
 0x15b   : > { %3704 = vmatpush.bf16.msrb.mxu2 %v5251_v27  ;;  %v7695_v37 = vpop.f32.mrf.mxu3  ;;  %v3218_v27 = vadd.f32 %v7566_v52, %v7508_v11  ;;  %v5099_v11 = vor.u32 %v6095_v46, %v5096_v59  ;;  %v6125_v52 = vld [vmem:[%s6528_s11 + $0x714] sm:$0xf]  ;;  %v5144_v46 = vld [vmem:[%s6528_s11 + $0x688] sm:$0xf0]  ;;  %v6139_v59 = vld [vmem:[%s6528_s11 + $0x784] sm:$0xf] }
 0x15c   : > { %3723 = vmatpush.bf16.msrb.mxu3 %v5315_v0  ;;  %v7700_v15 = vpop.f32.mrf.mxu0  ;;  %v7702_v42 = vpop.f32.mrf.mxu1  ;;  %v6111_v0 = vld [vmem:[%s6528_s11 + $0x6a4] sm:$0xf] }
 0x15d   : > { %3667 = vmatpush.bf16.msrb.mxu0 %v5115_v45  ;;  %v3237_v34 = vadd.f32 %v7568_v39, %v3218_v27  ;;  %v5291_v45 = vor.u32 %v6143_v55, %v5288_v60  ;;  %v6141_v39 = vld [vmem:[%s6528_s11 + $0x794] sm:$0xf]  ;;  %v5080_v27 = vld [vmem:[%s6528_s11 + $0x608] sm:$0xf0]  ;;  %v5520_v60 = vld [vmem:[%s6528_s11 + $0x978] sm:$0xf0] }
 0x15e   : > { %3686 = vmatpush.bf16.msrb.mxu1 %v5179_v32  ;;  %v6109_v32 = vld [vmem:[%s6528_s11 + $0x694] sm:$0xf] }
 0x15f   : > { %3705 = vmatpush.bf16.msrb.mxu2 %v5243_v9  ;;  %v5163_v9 = vor.u32 %v6111_v0, %v5160_v56  ;;  %v3256_v57 = vadd.f32 %v7589_v24, %v3237_v34  ;;  %v5155_v24 = vor.u32 %v6109_v32, %v5152_v36  ;;  %v5272_v56 = vld [vmem:[%s6528_s11 + $0x788] sm:$0xf0]  ;;  %v6201_v55 = vld [vmem:[%s6528_s11 + $0x974] sm:$0xf]  ;;  %v5456_v34 = vld [vmem:[%s6528_s11 + $0x8f8] sm:$0xf0] }
 0x160   : > { %3724 = vmatpush.bf16.msrb.mxu3 %v5307_v7  ;;  %v3220_v7 = vadd.f32 %v7596_v44, %v7529_v19  ;;  %v7722_v13 = vpop.f32.mrf.mxu2  ;;  %v5219_v19 = vor.u32 %v6125_v52, %v5216_v1  ;;  %v5091_v44 = vor.u32 %v6093_v31, %v5088_v5  ;;  %v5392_v52 = vld [vmem:[%s6528_s11 + $0x878] sm:$0xf0]  ;;  %v6185_v1 = vld [vmem:[%s6528_s11 + $0x8f4] sm:$0xf]  ;;  %v5523_v32 = vor.u32 %v6201_v55, %v5520_v60  ;;  %v5512_v36 = vld [vmem:[%s6528_s11 + $0x968] sm:$0xf0] }
 0x161   : > { %3668 = vmatpush.bf16.msrb.mxu0 %v5107_v2  ;;  %v6123_v2 = vld [vmem:[%s6528_s11 + $0x704] sm:$0xf]  ;;  %v5504_v55 = vld [vmem:[%s6528_s11 + $0x958] sm:$0xf0] }
 0x162   : > { %3687 = vmatpush.bf16.msrb.mxu1 %v5171_v17  ;;  %v5283_v17 = vor.u32 %v6141_v39, %v5280_v29  ;;  %v3239_v0 = vadd.f32 %v7598_v40, %v3220_v7 }
 0x163   : > { %3706 = vmatpush.bf16.msrb.mxu2 %v5235_v41  ;;  %v7724_v20 = vpop.f32.mrf.mxu3  ;;  %3601 = vmatmul.bf16.gmra.mxu0 %v6979_v47  ;;  %v5211_v47 = vor.u32 %v6123_v2, %v5208_v38  ;;  %v6215_v38 = vld [vmem:[%s6528_s11 + $0x9e4] sm:$0xf] }
 0x164   : > { %3725 = vmatpush.bf16.msrb.mxu3 %v5299_v21  ;;  %v7730_v12 = vpop.f32.mrf.mxu0  ;;  %v7732_v41 = vpop.f32.mrf.mxu1  ;;  %v6107_v21 = vld [vmem:[%s6528_s11 + $0x684] sm:$0xf]  ;;  %3639 = vmatmul.bf16.gmra.mxu2 %v6986_v53  ;;  %v3258_v40 = vadd.f32 %v7613_v3, %v3239_v0  ;;  %v3223_v3 = vadd.f32 %v7620_v8, %v7556_v28  ;;  %v5448_v8 = vld [vmem:[%s6528_s11 + $0x8e8] sm:$0xf0] }
 0x165   : > { %3669 = vmatpush.bf16.msrb.mxu0 %v5099_v11  ;;  %3620 = vmatmul.bf16.gmra.mxu1 %v6981_v48  ;;  %v6169_v11 = vld [vmem:[%s6528_s11 + $0x874] sm:$0xf]  ;;  %v5083_v48 = vor.u32 %v6091_v23, %v5080_v27  ;;  %v5147_v53 = vor.u32 %v6107_v21, %v5144_v46  ;;  %v6183_v28 = vld [vmem:[%s6528_s11 + $0x8e4] sm:$0xf]  ;;  %v5576_v23 = vld [vmem:[%s6528_s11 + $0x9e8] sm:$0xf0] }
 0x166   : > { %3688 = vmatpush.bf16.msrb.mxu1 %v5163_v9  ;;  %3658 = vmatmul.bf16.gmra.mxu3 %v6988_v54  ;;  %v6217_v9 = vld [vmem:[%s6528_s11 + $0x9f4] sm:$0xf]  ;;  %v5275_v54 = vor.u32 %v6139_v59, %v5272_v56  ;;  %v5395_v7 = vor.u32 %v6169_v11, %v5392_v52  ;;  %v3277_v27 = vadd.f32 %v7615_v62, %v3258_v40  ;;  %v5376_v11 = vld [vmem:[%s6528_s11 + $0x858] sm:$0xf0] }
 0x167   : > { %3707 = vmatpush.bf16.msrb.mxu2 %v5227_v50  ;;  %v3275_v50 = vadd.f32 %v7591_v14, %v3256_v57  ;;  %v5459_v57 = vor.u32 %v6185_v1, %v5456_v34  ;;  %v5451_v62 = vor.u32 %v6183_v28, %v5448_v8  ;;  %v6197_v56 = vld [vmem:[%s6528_s11 + $0x954] sm:$0xf] }
 0x168   : > { %3726 = vmatpush.bf16.msrb.mxu3 %v5291_v45  ;;  %v5584_v45 = vld [vmem:[%s6528_s11 + $0x9f8] sm:$0xf0]  ;;  %v7760_v31 = vpop.f32.mrf.mxu2  ;;  %v3296_v60 = vadd.f32 %v7700_v15, %v3277_v27  ;;  %v6213_v40 = vld [vmem:[%s6528_s11 + $0x9d4] sm:$0xf] }
 0x169   : > { %3670 = vmatpush.bf16.msrb.mxu0 %v5091_v44  ;;  %v3294_v14 = vadd.f32 %v7672_v10, %v3275_v50  ;;  %v6199_v10 = vld [vmem:[%s6528_s11 + $0x964] sm:$0xf]  ;;  %v5587_v2 = vor.u32 %v6217_v9, %v5584_v45  ;;  %v5384_v44 = vld [vmem:[%s6528_s11 + $0x868] sm:$0xf0]  ;;  %v6165_v50 = vld [vmem:[%s6528_s11 + $0x854] sm:$0xf]  ;;  %v5507_v9 = vor.u32 %v6197_v56, %v5504_v55 }
 0x16a   : > { %3689 = vmatpush.bf16.msrb.mxu1 %v5155_v24  ;;  %v5515_v21 = vor.u32 %v6199_v10, %v5512_v36  ;;  %v6195_v45 = vld [vmem:[%s6528_s11 + $0x944] sm:$0xf]  ;;  %v5432_v36 = vld [vmem:[%s6528_s11 + $0x8c8] sm:$0xf0]  ;;  %v6161_v28 = vld [vmem:[%s6528_s11 + $0x834] sm:$0xf] }
 0x16b   : > { %3708 = vmatpush.bf16.msrb.mxu2 %v5219_v19  ;;  %v7762_v5 = vpop.f32.mrf.mxu3  ;;  %v6167_v19 = vld [vmem:[%s6528_s11 + $0x864] sm:$0xf]  ;;  %v3313_v24 = vadd.f32 %v7674_v16, %v3294_v14  ;;  %v5579_v16 = vor.u32 %v6215_v38, %v5576_v23  ;;  %v5496_v14 = vld [vmem:[%s6528_s11 + $0x948] sm:$0xf0]  ;;  %v6177_v38 = vld [vmem:[%s6528_s11 + $0x8b4] sm:$0xf] }
 0x16c   : > { %3727 = vmatpush.bf16.msrb.mxu3 %v5283_v17  ;;  %v7766_v39 = vpop.f32.mrf.mxu0  ;;  %v7768_v29 = vpop.f32.mrf.mxu1  ;;  %v3242_v17 = vadd.f32 %v7622_v51, %v3223_v3  ;;  %v5387_v46 = vor.u32 %v6167_v19, %v5384_v44  ;;  %v3225_v51 = vadd.f32 %v7650_v61, %v7572_v6  ;;  %v6193_v44 = vld [vmem:[%s6528_s11 + $0x934] sm:$0xf]  ;;  %v5424_v23 = vld [vmem:[%s6528_s11 + $0x8b8] sm:$0xf0] }
 0x16d   : > { %3671 = vmatpush.bf16.msrb.mxu0 %v5083_v48  ;;  %v3332_v59 = vadd.f32 %v7693_v18, %v3313_v24  ;;  %v6181_v18 = vld [vmem:[%s6528_s11 + $0x8d4] sm:$0xf] }
 0x16e   : > { %3690 = vmatpush.bf16.msrb.mxu1 %v5147_v53  ;;  %v3261_v0 = vadd.f32 %v7644_v22, %v3242_v17  ;;  %v5440_v22 = vld [vmem:[%s6528_s11 + $0x8d8] sm:$0xf0]  ;;  %v3244_v34 = vadd.f32 %v7652_v49, %v3225_v51  ;;  %v3315_v53 = vadd.f32 %v7702_v42, %v3296_v60  ;;  %v6179_v49 = vld [vmem:[%s6528_s11 + $0x8c4] sm:$0xf]  ;;  %v5427_v60 = vor.u32 %v6177_v38, %v5424_v23  ;;  %v5336_v38 = vld [vmem:[%s6528_s11 + $0x808] sm:$0xf0] }
 0x16f   : > { %3709 = vmatpush.bf16.msrb.mxu2 %v5211_v47  ;;  %v5568_v47 = vld [vmem:[%s6528_s11 + $0x9d8] sm:$0xf0]  ;;  %v3351_v6 = vadd.f32 %v7695_v37, %v3332_v59  ;;  %v5379_v37 = vor.u32 %v6165_v50, %v5376_v11  ;;  %v5443_v3 = vor.u32 %v6181_v18, %v5440_v22  ;;  %v5480_v50 = vld [vmem:[%s6528_s11 + $0x928] sm:$0xf0] }
 0x170   : > { %3728 = vmatpush.bf16.msrb.mxu3 %v5275_v54  ;;  %v7789_v52 = vpop.f32.mrf.mxu2  ;;  %v3280_v48 = vadd.f32 %v7646_v58, %v3261_v0  ;;  %v6163_v58 = vld [vmem:[%s6528_s11 + $0x844] sm:$0xf]  ;;  %v3263_v10 = vadd.f32 %v7665_v43, %v3244_v34  ;;  %v3334_v42 = vadd.f32 %v7722_v13, %v3315_v53  ;;  %v5488_v13 = vld [vmem:[%s6528_s11 + $0x938] sm:$0xf0] }
 0x171   : > { %3740 = vmatpush.bf16.msra.mxu0 %v5395_v7  ;;  %v5368_v7 = vld [vmem:[%s6528_s11 + $0x848] sm:$0xf0] }
 0x172   : > { %3759 = vmatpush.bf16.msra.mxu1 %v5459_v57  ;;  %v6211_v57 = vld [vmem:[%s6528_s11 + $0x9c4] sm:$0xf]  ;;  %v3299_v19 = vadd.f32 %v7730_v12, %v3280_v48  ;;  %v5371_v43 = vor.u32 %v6163_v58, %v5368_v7  ;;  %v3282_v27 = vadd.f32 %v7667_v35, %v3263_v10  ;;  %v3353_v59 = vadd.f32 %v7724_v20, %v3334_v42  ;;  %v5544_v48 = vld [vmem:[%s6528_s11 + $0x9a8] sm:$0xf0]  ;;  %v5344_v7 = vld [vmem:[%s6528_s11 + $0x818] sm:$0xf0] }
 0x173   : > { %3778 = vmatpush.bf16.msra.mxu2 %v5523_v32  ;;  %v7791_v1 = vpop.f32.mrf.mxu3  ;;  %v5571_v32 = vor.u32 %v6213_v40, %v5568_v47  ;;  %3672 = vmatmul.bf16.vlgmr.msrb.gmra.mxu0 %v7051_v25  ;;  %v7820_v25 = vld [vmem:[%s378_s12] sm:$0x3]  ;;  %v5491_v35 = vor.u32 %v6193_v44, %v5488_v13  ;;  %v6191_v20 = vld [vmem:[%s6528_s11 + $0x924] sm:$0xf]  ;;  %v5352_v40 = vld [vmem:[%s6528_s11 + $0x828] sm:$0xf0] }
 0x174   : > { %3797 = vmatpush.bf16.msra.mxu3 %v5587_v2  ;;  %v3369_v61 = vpop.f32.mrf.mxu0  ;;  %v3388_v15 = vpop.f32.mrf.mxu1  ;;  %v5560_v2 = vld [vmem:[%s6528_s11 + $0x9c8] sm:$0xf0]  ;;  %3710 = vmatmul.bf16.vlgmr.msrb.gmra.mxu2 %v7058_v30  ;;  %v5435_v30 = vor.u32 %v6179_v49, %v5432_v36  ;;  %v7834_v0 = vperm.slane %v7820_v25, 0  ;;  %v6175_v47 = vld [vmem:[%s6528_s11 + $0x8a4] sm:$0xf] }
 0x175   : > { %3741 = vmatpush.bf16.msra.mxu0 %v5387_v46  ;;  %v3370_v54 = vadd.f32 %v3369_v61, %v3351_v6  ;;  %3691 = vmatmul.bf16.vlgmr.msrb.gmra.mxu1 %v7053_v26  ;;  %v5499_v26 = vor.u32 %v6195_v45, %v5496_v14  ;;  %v5563_v8 = vor.u32 %v6211_v57, %v5560_v2  ;;  %v5552_v46 = vld [vmem:[%s6528_s11 + $0x9b8] sm:$0xf0]  ;;  %v5416_v6 = vld [vmem:[%s6528_s11 + $0x8a8] sm:$0xf0]  ;;  %v3892_v61 = vld [vmem:[%s7844_s13] sm:$0xff] }
 0x176   : > { %3760 = vmatpush.bf16.msra.mxu1 %v5451_v62  ;;  %3729 = vmatmul.bf16.vlgmr.msrb.gmra.mxu3 %v7060_v33  ;;  %v5360_v33 = vld [vmem:[%s6528_s11 + $0x838] sm:$0xf0]  ;;  %v3318_v62 = vadd.f32 %v7732_v41, %v3299_v19  ;;  %v6159_v41 = vld [vmem:[%s6528_s11 + $0x824] sm:$0xf]  ;;  %v5483_v45 = vor.u32 %v6191_v20, %v5480_v50  ;;  %v5419_v53 = vor.u32 %v6175_v47, %v5416_v6  ;;  %v6173_v49 = vld [vmem:[%s6528_s11 + $0x894] sm:$0xf] }
 0x177   : > { %3779 = vmatpush.bf16.msra.mxu2 %v5515_v21  ;;  %v3389_v12 = vadd.f32 %v3388_v15, %v3370_v54  ;;  %v6209_v21 = vld [vmem:[%s6528_s11 + $0x9b4] sm:$0xf]  ;;  %v5363_v55 = vor.u32 %v6161_v28, %v5360_v33  ;;  %v6207_v15 = vld [vmem:[%s6528_s11 + $0x9a4] sm:$0xf]  ;;  %v5355_v14 = vor.u32 %v6159_v41, %v5352_v40  ;;  %v5408_v10 = vld [vmem:[%s6528_s11 + $0x898] sm:$0xf0] }
 0x178   : > { %3798 = vmatpush.bf16.msra.mxu3 %v5579_v16  ;;  %v3407_v24 = vpop.f32.mrf.mxu2  ;;  %v5555_v22 = vor.u32 %v6209_v21, %v5552_v46  ;;  %v3337_v34 = vadd.f32 %v7760_v31, %v3318_v62  ;;  %v6189_v54 = vld [vmem:[%s6528_s11 + $0x914] sm:$0xf]  ;;  %v5536_v42 = vld [vmem:[%s6528_s11 + $0x998] sm:$0xf0]  ;;  %v6187_v28 = vld [vmem:[%s6528_s11 + $0x904] sm:$0xf] }
 0x179   : > { %3742 = vmatpush.bf16.msra.mxu0 %v5379_v37  ;;  %v3408_v16 = vadd.f32 %v3407_v24, %v3389_v12  ;;  %v6205_v2 = vld [vmem:[%s6528_s11 + $0x994] sm:$0xf]  ;;  %v6155_v33 = vld [vmem:[%s6528_s11 + $0x804] sm:$0xf]  ;;  %v5400_v21 = vld [vmem:[%s6528_s11 + $0x888] sm:$0xf0] }
 0x17a   : > { %3761 = vmatpush.bf16.msra.mxu1 %v5443_v3  ;;  %v5472_v3 = vld [vmem:[%s6528_s11 + $0x918] sm:$0xf0]  ;;  %v3356_v19 = vadd.f32 %v7762_v5, %v3337_v34  ;;  %v3894_v12 = vld [vmem:[%s7844_s13 + $0x10] sm:$0xff]  ;;  %v5539_v24 = vor.u32 %v6205_v2, %v5536_v42  ;;  %v6203_v46 = vld [vmem:[%s6528_s11 + $0x984] sm:$0xf] }
 0x17b   : > { %3780 = vmatpush.bf16.msra.mxu2 %v5507_v9  ;;  %v3426_v17 = vpop.f32.mrf.mxu3  ;;  %v3301_v9 = vadd.f32 %v7766_v39, %v3282_v27  ;;  %v5547_v39 = vor.u32 %v6207_v15, %v5544_v48  ;;  %v8070_v62 = vld [vmem:[#allocation9_spill] sm:$0xff]  ;;  %v8072_v20 = vld [vmem:[#allocation11_spill] sm:$0xff]  ;;  %v6233_v50 = vld [vmem:[%s6528_s11 + $0xa74] sm:$0xf] }
 0x17c   : > { %3799 = vmatpush.bf16.msra.mxu3 %v5571_v32  ;;  %v3371_v51 = vpop.f32.mrf.mxu0  ;;  %v3390_v56 = vpop.f32.mrf.mxu1  ;;  %v3427_v11 = vadd.f32 %v3426_v17, %v3408_v16  ;;  %v6157_v32 = vld [vmem:[%s6528_s11 + $0x814] sm:$0xf]  ;;  %v6171_v17 = vld [vmem:[%s6528_s11 + $0x884] sm:$0xf]  ;;  %v5528_v16 = vld [vmem:[%s6528_s11 + $0x988] sm:$0xf0] }
 0x17d   : > { %3743 = vmatpush.bf16.msra.mxu0 %v5371_v43  ;;  %v3372_v18 = vadd.f32 %v3371_v51, %v3353_v59  ;;  %v5347_v5 = vor.u32 %v6157_v32, %v5344_v7  ;;  %v8069_v59 = vld [vmem:[#allocation8_spill] sm:$0xff]  ;;  %v6265_v51 = vld [vmem:[%s6528_s11 + $0xb74] sm:$0xf]  ;;  %v5648_v41 = vld [vmem:[%s6528_s11 + $0xa78] sm:$0xf0]  ;;  %v5403_v40 = vor.u32 %v6171_v17, %v5400_v21  ;;  %v5531_v48 = vor.u32 %v6203_v46, %v5528_v16 }
 0x17e   : > { %3762 = vmatpush.bf16.msra.mxu1 %v5435_v30  ;;  %v3906_v37 = vmul.f32 %v7834_v0, %v3427_v11  ;;  %v5475_v30 = vor.u32 %v6189_v54, %v5472_v3  ;;  %v6249_v11 = vld [vmem:[%s6528_s11 + $0xaf4] sm:$0xf]  ;;  %v5712_v47 = vld [vmem:[%s6528_s11 + $0xaf8] sm:$0xf0]  ;;  %v6231_v54 = vld [vmem:[%s6528_s11 + $0xa64] sm:$0xf] }
 0x17f   : > { %3781 = vmatpush.bf16.msra.mxu2 %v5499_v26  ;;  %v3391_v31 = vadd.f32 %v3390_v56, %v3372_v18  ;;  %v3320_v26 = vadd.f32 %v7768_v29, %v3301_v9  ;;  %v5411_v29 = vor.u32 %v6173_v49, %v5408_v10  ;;  %v5776_v56 = vld [vmem:[%s6528_s11 + $0xb78] sm:$0xf0]  ;;  %v5640_v49 = vld [vmem:[%s6528_s11 + $0xa68] sm:$0xf0]  ;;  %v6247_v10 = vld [vmem:[%s6528_s11 + $0xae4] sm:$0xf] }
 0x180   : > { %3800 = vmatpush.bf16.msra.mxu3 %v5563_v8  ;;  %v3914_v58 = vadd.f32 %v3906_v37, %v3892_v61  ;;  %v3409_v36 = vpop.f32.mrf.mxu2  ;;  %v5464_v8 = vld [vmem:[%s6528_s11 + $0x908] sm:$0xf0]  ;;  %v5840_v6 = vld [vmem:[%s6528_s11 + $0xbf8] sm:$0xf0]  ;;  %v5779_v37 = vor.u32 %v6265_v51, %v5776_v56  ;;  %v6277_v46 = vld [vmem:[%s6528_s11 + $0xbd4] sm:$0xf] }
 0x181   : > { %3744 = vmatpush.bf16.msra.mxu0 %v5363_v55  ;;  %v3410_v43 = vadd.f32 %v3409_v36, %v3391_v31  ;;  %v5467_v18 = vor.u32 %v6187_v28, %v5464_v8  ;;  %v5704_v36 = vld [vmem:[%s6528_s11 + $0xae8] sm:$0xf0]  ;;  %v5696_v21 = vld [vmem:[%s6528_s11 + $0xad8] sm:$0xf0]  ;;  %v3898_v56 = vld [vmem:[%s7844_s13 + $0x30] sm:$0xff] }
 0x182   : > { %3763 = vmatpush.bf16.msra.mxu1 %v5427_v60  ;;  %3922 = vst [vmem:[%s7864_s14] sm:$0xff] %v3914_v58  ;;  %v8071_v60 = vld [vmem:[#allocation10_spill] sm:$0xff]  ;;  %v5832_v2 = vld [vmem:[%s6528_s11 + $0xbe8] sm:$0xf0] }
 0x183   : > { %3782 = vmatpush.bf16.msra.mxu2 %v5491_v35  ;;  %v3428_v57 = vpop.f32.mrf.mxu3  ;;  %3677 = vmatmul.bf16.gmra.mxu0 %v8069_v59  ;;  %v3339_v35 = vadd.f32 %v7789_v52, %v3320_v26  ;;  %v6281_v52 = vld [vmem:[%s6528_s11 + $0xbf4] sm:$0xf]  ;;  %v5824_v59 = vld [vmem:[%s6528_s11 + $0xbd8] sm:$0xf0] }
 0x184   : > { %3801 = vmatpush.bf16.msra.mxu3 %v5555_v22  ;;  %v3374_v44 = vpop.f32.mrf.mxu0  ;;  %v3393_v13 = vpop.f32.mrf.mxu1  ;;  %v3429_v23 = vadd.f32 %v3428_v57, %v3410_v43  ;;  %3715 = vmatmul.bf16.gmra.mxu2 %v8071_v60  ;;  %v5339_v22 = vor.u32 %v6155_v33, %v5336_v38  ;;  %v5843_v7 = vor.u32 %v6281_v52, %v5840_v6  ;;  %v6279_v57 = vld [vmem:[%s6528_s11 + $0xbe4] sm:$0xf]  ;;  %v6229_v38 = vld [vmem:[%s6528_s11 + $0xa54] sm:$0xf] }
 0x185   : > { %3745 = vmatpush.bf16.msra.mxu0 %v5355_v14  ;;  %v3375_v27 = vadd.f32 %v3374_v44, %v3356_v19  ;;  %3696 = vmatmul.bf16.gmra.mxu1 %v8070_v62  ;;  %v6263_v14 = vld [vmem:[%s6528_s11 + $0xb64] sm:$0xf]  ;;  %v3358_v3 = vadd.f32 %v7791_v1, %v3339_v35  ;;  %v5643_v43 = vor.u32 %v6231_v54, %v5640_v49  ;;  %v6257_v54 = vld [vmem:[%s6528_s11 + $0xb34] sm:$0xf] }
 0x186   : > { %3764 = vmatpush.bf16.msra.mxu1 %v5419_v53  ;;  %v3908_v55 = vmul.f32 %v7834_v0, %v3429_v23  ;;  %3734 = vmatmul.bf16.gmra.mxu3 %v8072_v20  ;;  %v5768_v53 = vld [vmem:[%s6528_s11 + $0xb68] sm:$0xf0]  ;;  %v3896_v1 = vld [vmem:[%s7844_s13 + $0x20] sm:$0xff]  ;;  %v5835_v28 = vor.u32 %v6279_v57, %v5832_v2  ;;  %v5632_v23 = vld [vmem:[%s6528_s11 + $0xa58] sm:$0xf0] }
 0x187   : > { %3783 = vmatpush.bf16.msra.mxu2 %v5483_v45  ;;  %v3394_v15 = vadd.f32 %v3393_v13, %v3375_v27  ;;  %v5651_v45 = vor.u32 %v6233_v50, %v5648_v41  ;;  %v5771_v26 = vor.u32 %v6263_v14, %v5768_v53  ;;  %v5707_v13 = vor.u32 %v6247_v10, %v5704_v36  ;;  %v6245_v27 = vld [vmem:[%s6528_s11 + $0xad4] sm:$0xf]  ;;  %v6259_v20 = vld [vmem:[%s6528_s11 + $0xb44] sm:$0xf]  ;;  %v5752_v50 = vld [vmem:[%s6528_s11 + $0xb48] sm:$0xf0] }
 0x188   : > { %3802 = vmatpush.bf16.msra.mxu3 %v5547_v39  ;;  %v3916_v61 = vadd.f32 %v3908_v55, %v3894_v12  ;;  %v3412_v34 = vpop.f32.mrf.mxu2  ;;  %v5715_v39 = vor.u32 %v6249_v11, %v5712_v47  ;;  %v6339_v12 = vld [vmem:[%s7161_s16] sm:$0x3]  ;;  %v5635_v60 = vor.u32 %v6229_v38, %v5632_v23  ;;  %v5699_v11 = vor.u32 %v6245_v27, %v5696_v21  ;;  %v6243_v47 = vld [vmem:[%s6528_s11 + $0xac4] sm:$0xf]  ;;  %v5680_v36 = vld [vmem:[%s6528_s11 + $0xab8] sm:$0xf0] }
 0x189   : > { %3746 = vmatpush.bf16.msra.mxu0 %v5347_v5  ;;  %v3413_v32 = vadd.f32 %v3412_v34, %v3394_v15  ;;  %v6261_v5 = vld [vmem:[%s6528_s11 + $0xb54] sm:$0xf]  ;;  %v8073_v6 = vld [vmem:[#allocation12_spill] sm:$0xff]  ;;  %v5688_v15 = vld [vmem:[%s6528_s11 + $0xac8] sm:$0xf0]  ;;  %v5755_v14 = vor.u32 %v6259_v20, %v5752_v50 }
 0x18a   : > { %3765 = vmatpush.bf16.msra.mxu1 %v5411_v29  ;;  %3924 = vst [vmem:[%s7864_s14 + $0x10] sm:$0xff] %v3916_v61  ;;  %v5760_v29 = vld [vmem:[%s6528_s11 + $0xb58] sm:$0xf0]  ;;  %v8074_v61 = vld [vmem:[#allocation13_spill] sm:$0xff]  ;;  %v6273_v57 = vld [vmem:[%s6528_s11 + $0xbb4] sm:$0xf] }
 0x18b   : > { %3784 = vmatpush.bf16.msra.mxu2 %v5475_v30  ;;  %v3431_v9 = vpop.f32.mrf.mxu3  ;;  %v7903_v30 = vperm.slane %v6339_v12, 1  ;;  %v5763_v55 = vor.u32 %v6261_v5, %v5760_v29  ;;  %v5816_v34 = vld [vmem:[%s6528_s11 + $0xbc8] sm:$0xf0]  ;;  %v5808_v2 = vld [vmem:[%s6528_s11 + $0xbb8] sm:$0xf0] }
 0x18c   : > { %3803 = vmatpush.bf16.msra.mxu3 %v5539_v24  ;;  %v3376_v58 = vpop.f32.mrf.mxu0  ;;  %v3395_v31 = vpop.f32.mrf.mxu1  ;;  %v3432_v42 = vadd.f32 %v3431_v9, %v3413_v32  ;;  %v5811_v29 = vor.u32 %v6273_v57, %v5808_v2  ;;  %v6239_v38 = vld [vmem:[%s6528_s11 + $0xaa4] sm:$0xf]  ;;  %v5672_v27 = vld [vmem:[%s6528_s11 + $0xaa8] sm:$0xf0]  ;;  %v5664_v50 = vld [vmem:[%s6528_s11 + $0xa98] sm:$0xf0] }
 0x18d   : > { %3747 = vmatpush.bf16.msra.mxu0 %v5339_v22  ;;  %v3377_v19 = vadd.f32 %v3376_v58, %v3358_v3  ;;  %v6227_v22 = vld [vmem:[%s6528_s11 + $0xa44] sm:$0xf]  ;;  %v5744_v3 = vld [vmem:[%s6528_s11 + $0xb38] sm:$0xf0]  ;;  %v5691_v58 = vor.u32 %v6243_v47, %v5688_v15  ;;  %v5720_v15 = vld [vmem:[%s6528_s11 + $0xb08] sm:$0xf0] }
 0x18e   : > { %3766 = vmatpush.bf16.msra.mxu1 %v5403_v40  ;;  %v3910_v44 = vmul.f32 %v7834_v0, %v3432_v42  ;;  %v5624_v40 = vld [vmem:[%s6528_s11 + $0xa48] sm:$0xf0] }
 0x18f   : > { %3785 = vmatpush.bf16.msra.mxu2 %v5467_v18  ;;  %v3396_v33 = vadd.f32 %v3395_v31, %v3377_v19  ;;  %v5827_v18 = vor.u32 %v6277_v46, %v5824_v59  ;;  %v5627_v53 = vor.u32 %v6227_v22, %v5624_v40  ;;  %v6225_v31 = vld [vmem:[%s6528_s11 + $0xa34] sm:$0xf] }
 0x190   : > { %3804 = vmatpush.bf16.msra.mxu3 %v5531_v48  ;;  %v3918_v8 = vadd.f32 %v3910_v44, %v3896_v1  ;;  %v3414_v24 = vpop.f32.mrf.mxu2  ;;  %v6275_v48 = vld [vmem:[%s6528_s11 + $0xbc4] sm:$0xf]  ;;  %v6253_v59 = vld [vmem:[%s6528_s11 + $0xb14] sm:$0xf] }
 0x191   : > { %3816 = vmatpush.bf16.msrb.mxu0 %v5651_v45  ;;  %v3415_v62 = vadd.f32 %v3414_v24, %v3396_v33  ;;  %v8076_v45 = vld [vmem:[#allocation15_spill] sm:$0xff]  ;;  %v5608_v33 = vld [vmem:[%s6528_s11 + $0xa28] sm:$0xf0]  ;;  %v6271_v24 = vld [vmem:[%s6528_s11 + $0xba4] sm:$0xf] }
 0x192   : > { %3835 = vmatpush.bf16.msrb.mxu1 %v5715_v39  ;;  %3926 = vst [vmem:[%s7864_s14 + $0x20] sm:$0xff] %v3918_v8  ;;  %v5616_v39 = vld [vmem:[%s6528_s11 + $0xa38] sm:$0xf0]  ;;  %v6223_v8 = vld [vmem:[%s6528_s11 + $0xa24] sm:$0xf] }
 0x193   : > { %3854 = vmatpush.bf16.msrb.mxu2 %v5779_v37  ;;  %v3433_v17 = vpop.f32.mrf.mxu3  ;;  %3748 = vmatmul.bf16.vlgmr.msra.gmra.mxu0 %v8073_v6  ;;  %v8075_v37 = vld [vmem:[#allocation14_spill] sm:$0xff]  ;;  %v5619_v44 = vor.u32 %v6225_v31, %v5616_v39  ;;  %v5611_v46 = vor.u32 %v6223_v8, %v5608_v33  ;;  %v8080_v39 = vld [vmem:[#allocation19_spill] sm:$0xff] }
 0x194   : > { %3873 = vmatpush.bf16.msrb.mxu3 %v5843_v7  ;;  %v3445_v16 = vpop.f32.mrf.mxu0  ;;  %v3464_v51 = vpop.f32.mrf.mxu1  ;;  %v3434_v41 = vadd.f32 %v3433_v17, %v3415_v62  ;;  %3786 = vmatmul.bf16.vlgmr.msra.gmra.mxu2 %v8075_v37  ;;  %v6241_v7 = vld [vmem:[%s6528_s11 + $0xab4] sm:$0xf]  ;;  %v5800_v17 = vld [vmem:[%s6528_s11 + $0xba8] sm:$0xf0]  ;;  %v5728_v62 = vld [vmem:[%s6528_s11 + $0xb18] sm:$0xf0] }
 0x195   : > { %3817 = vmatpush.bf16.msrb.mxu0 %v5643_v43  ;;  %v3446_v35 = vadd.f32 %v3445_v16, %v7903_v30  ;;  %3767 = vmatmul.bf16.vlgmr.msra.gmra.mxu1 %v8074_v61  ;;  %v5747_v43 = vor.u32 %v6257_v54, %v5744_v3  ;;  %v5683_v5 = vor.u32 %v6241_v7, %v5680_v36  ;;  %v6251_v61 = vld [vmem:[%s6528_s11 + $0xb04] sm:$0xf]  ;;  %v8078_v3 = vld [vmem:[#allocation17_spill] sm:$0xff]  ;;  %v8079_v31 = vld [vmem:[#allocation18_spill] sm:$0xff] }
 0x196   : > { %3836 = vmatpush.bf16.msrb.mxu1 %v5707_v13  ;;  %v3912_v9 = vmul.f32 %v7834_v0, %v3434_v41  ;;  %3805 = vmatmul.bf16.vlgmr.msra.gmra.mxu3 %v8076_v45  ;;  %v5819_v0 = vor.u32 %v6275_v48, %v5816_v34  ;;  %v6255_v13 = vld [vmem:[%s6528_s11 + $0xb24] sm:$0xf]  ;;  %v5675_v16 = vor.u32 %v6239_v38, %v5672_v27  ;;  %v6269_v41 = vld [vmem:[%s6528_s11 + $0xb94] sm:$0xf]  ;;  %v5592_v45 = vld [vmem:[%s6528_s11 + $0xa08] sm:$0xf0] }
 0x197   : > { %3855 = vmatpush.bf16.msrb.mxu2 %v5771_v26  ;;  %v3465_v52 = vadd.f32 %v3464_v51, %v3446_v35  ;;  %v5803_v51 = vor.u32 %v6271_v24, %v5800_v17  ;;  %v5600_v35 = vld [vmem:[%s6528_s11 + $0xa18] sm:$0xf0]  ;;  %v6219_v37 = vld [vmem:[%s6528_s11 + $0xa04] sm:$0xf]  ;;  %v5723_v7 = vor.u32 %v6251_v61, %v5720_v15  ;;  %v8082_v24 = vld [vmem:[#allocation21_spill] sm:$0xff] }
 0x198   : > { %3874 = vmatpush.bf16.msrb.mxu3 %v5835_v28  ;;  %v3920_v32 = vadd.f32 %v3912_v9, %v3898_v56  ;;  %v3483_v49 = vpop.f32.mrf.mxu2  ;;  %v5736_v28 = vld [vmem:[%s6528_s11 + $0xb28] sm:$0xf0]  ;;  %v6221_v56 = vld [vmem:[%s6528_s11 + $0xa14] sm:$0xf]  ;;  %v8077_v54 = vld [vmem:[#allocation16_spill] sm:$0xff] }
 0x199   : > { %3818 = vmatpush.bf16.msrb.mxu0 %v5635_v60  ;;  %v3484_v42 = vadd.f32 %v3483_v49, %v3465_v52  ;;  %v5739_v21 = vor.u32 %v6255_v13, %v5736_v28  ;;  %v5731_v52 = vor.u32 %v6253_v59, %v5728_v62  ;;  %v5603_v6 = vor.u32 %v6221_v56, %v5600_v35  ;;  %v8081_v27 = vld [vmem:[#allocation20_spill] sm:$0xff]  ;;  %v8084_v17 = vld [vmem:[#allocation23_spill] sm:$0xff] }
 0x19a   : > { %3837 = vmatpush.bf16.msrb.mxu1 %v5699_v11  ;;  %3928 = vst [vmem:[%s7864_s14 + $0x30] sm:$0xff] %v3920_v32  ;;  %v5792_v11 = vld [vmem:[%s6528_s11 + $0xb98] sm:$0xf0]  ;;  %v5656_v32 = vld [vmem:[%s6528_s11 + $0xa88] sm:$0xf0]  ;;  %v5595_v49 = vor.u32 %v6219_v37, %v5592_v45 }
 0x19b   : > { %3856 = vmatpush.bf16.msrb.mxu2 %v5763_v55  ;;  %v3502_v10 = vpop.f32.mrf.mxu3  ;;  %v6237_v55 = vld [vmem:[%s6528_s11 + $0xa94] sm:$0xf]  ;;  %v5795_v9 = vor.u32 %v6269_v41, %v5792_v11 }
 0x19c   : > { %3875 = vmatpush.bf16.msrb.mxu3 %v5827_v18  ;;  %v3447_v19 = vpop.f32.mrf.mxu0  ;;  %v3466_v1 = vpop.f32.mrf.mxu1  ;;  %v7941_v12 = vadd.f32 %v3502_v10, %v3484_v42  ;;  %v5667_v34 = vor.u32 %v6237_v55, %v5664_v50 }
 0x19d   : > { %v3448_v26 = vadd.f32 %v3447_v19, %v7903_v30  ;;  %3819 = vmatpush.bf16.msrb.mxu0 %v5627_v53 }
 0x19e   : > { %3838 = vmatpush.bf16.msrb.mxu1 %v5691_v58  ;;  %v6267_v58 = vld [vmem:[%s6528_s11 + $0xb84] sm:$0xf] }
 0x19f   : > { %3857 = vmatpush.bf16.msrb.mxu2 %v5755_v14  ;;  %v3467_v23 = vadd.f32 %v3466_v1, %v3448_v26  ;;  %v6235_v14 = vld [vmem:[%s6528_s11 + $0xa84] sm:$0xf] }
 0x1a0   : > { %3876 = vmatpush.bf16.msrb.mxu3 %v5819_v0  ;;  %v3485_v60 = vpop.f32.mrf.mxu2  ;;  %v5784_v0 = vld [vmem:[%s6528_s11 + $0xb88] sm:$0xf0]  ;;  %v5659_v10 = vor.u32 %v6235_v14, %v5656_v32 }
 0x1a1   : > { %3820 = vmatpush.bf16.msrb.mxu0 %v5619_v44  ;;  %v3486_v18 = vadd.f32 %v3485_v60, %v3467_v23  ;;  %v5787_v36 = vor.u32 %v6267_v58, %v5784_v0 }
 0x1a2   : > { %3839 = vmatpush.bf16.msrb.mxu1 %v5683_v5 }
 0x1a3   : > { %3858 = vmatpush.bf16.msrb.mxu2 %v5747_v43  ;;  %v3504_v20 = vpop.f32.mrf.mxu3  ;;  %3753 = vmatmul.bf16.gmra.mxu0 %v8077_v54 }
 0x1a4   : > { %3877 = vmatpush.bf16.msrb.mxu3 %v5811_v29  ;;  %v3450_v22 = vpop.f32.mrf.mxu0  ;;  %v3469_v40 = vpop.f32.mrf.mxu1  ;;  %v3505_v48 = vadd.f32 %v3504_v20, %v3486_v18  ;;  %3791 = vmatmul.bf16.gmra.mxu2 %v8079_v31 }
 0x1a5   : > { %v3451_v47 = vadd.f32 %v3450_v22, %v7903_v30  ;;  %3821 = vmatpush.bf16.msrb.mxu0 %v5611_v46  ;;  %3772 = vmatmul.bf16.gmra.mxu1 %v8078_v3  ;;  %v8085_v22 = vld [vmem:[#allocation24_spill] sm:$0xff] }
 0x1a6   : > { %3840 = vmatpush.bf16.msrb.mxu1 %v5675_v16  ;;  %3810 = vmatmul.bf16.gmra.mxu3 %v8080_v39 }
 0x1a7   : > { %3859 = vmatpush.bf16.msrb.mxu2 %v5739_v21  ;;  %v3470_v53 = vadd.f32 %v3469_v40, %v3451_v47  ;;  %v8086_v40 = vld [vmem:[#allocation25_spill] sm:$0xff] }
 0x1a8   : > { %3878 = vmatpush.bf16.msrb.mxu3 %v5803_v51  ;;  %v3488_v57 = vpop.f32.mrf.mxu2 }
 0x1a9   : > { %3822 = vmatpush.bf16.msrb.mxu0 %v5603_v6  ;;  %v3489_v42 = vadd.f32 %v3488_v57, %v3470_v53 }
 0x1aa   : > { %3841 = vmatpush.bf16.msrb.mxu1 %v5667_v34 }
 0x1ab   : > { %3860 = vmatpush.bf16.msrb.mxu2 %v5731_v52  ;;  %v3507_v2 = vpop.f32.mrf.mxu3 }
 0x1ac   : > { %3879 = vmatpush.bf16.msrb.mxu3 %v5795_v9  ;;  %v3452_v19 = vpop.f32.mrf.mxu0  ;;  %v3471_v1 = vpop.f32.mrf.mxu1  ;;  %v3508_v43 = vadd.f32 %v3507_v2, %v3489_v42 }
 0x1ad   : > { %v3453_v26 = vadd.f32 %v3452_v19, %v7903_v30  ;;  %3823 = vmatpush.bf16.msrb.mxu0 %v5595_v49  ;;  %v8083_v30 = vld [vmem:[#allocation22_spill] sm:$0xff] }
 0x1ae   : > { %3842 = vmatpush.bf16.msrb.mxu1 %v5659_v10 }
 0x1af   : > { %3861 = vmatpush.bf16.msrb.mxu2 %v5723_v7  ;;  %v3472_v44 = vadd.f32 %v3471_v1, %v3453_v26 }
 0x1b0   : > { %3880 = vmatpush.bf16.msrb.mxu3 %v5787_v36  ;;  %v3490_v13 = vpop.f32.mrf.mxu2 }
 0x1b1   : > { %v3491_v5 = vadd.f32 %v3490_v13, %v3472_v44 }
 0x1b3   : > { %v3509_v28 = vpop.f32.mrf.mxu3  ;;  %3824 = vmatmul.bf16.vlgmr.msrb.gmra.mxu0 %v8081_v27 }
 0x1b4   : > { %v3521_v29 = vpop.f32.mrf.mxu0  ;;  %v3540_v8 = vpop.f32.mrf.mxu1  ;;  %v3510_v38 = vadd.f32 %v3509_v28, %v3491_v5  ;;  %3862 = vmatmul.bf16.vlgmr.msrb.gmra.mxu2 %v8083_v30 }
 0x1b5   : > { %v3522_v33 = vadd.f32 %v3521_v29, %v7941_v12  ;;  %3843 = vmatmul.bf16.vlgmr.msrb.gmra.mxu1 %v8082_v24 }
 0x1b6   : > { %3881 = vmatmul.bf16.vlgmr.msrb.gmra.mxu3 %v8084_v17 }
 0x1b7   : > { %v3541_v23 = vadd.f32 %v3540_v8, %v3522_v33 }
 0x1b8   : > { %v3559_v21 = vpop.f32.mrf.mxu2 }
 0x1b9   : > { %v3560_v59 = vadd.f32 %v3559_v21, %v3541_v23 }
 0x1bb   : > { %v3578_v46 = vpop.f32.mrf.mxu3 }
 0x1bc   : > { %v3523_v62 = vpop.f32.mrf.mxu0  ;;  %v3542_v16 = vpop.f32.mrf.mxu1  ;;  %v3579_v56 = vadd.f32 %v3578_v46, %v3560_v59 }
 0x1bd   : > { %v3524_v51 = vadd.f32 %v3523_v62, %v3505_v48 }
 0x1bf   : > { %v3543_v35 = vadd.f32 %v3542_v16, %v3524_v51 }
 0x1c0   : > { %v3561_v55 = vpop.f32.mrf.mxu2 }
 0x1c1   : > { %v3562_v60 = vadd.f32 %v3561_v55, %v3543_v35 }
 0x1c3   : > { %v3580_v12 = vpop.f32.mrf.mxu3  ;;  %3829 = vmatmul.bf16.gmra.mxu0 %v7429_v63 }
 0x1c4   : > { %v3526_v20 = vpop.f32.mrf.mxu0  ;;  %v3545_v50 = vpop.f32.mrf.mxu1  ;;  %v3581_v11 = vadd.f32 %v3580_v12, %v3562_v60  ;;  %3867 = vmatmul.bf16.gmra.mxu2 %v8085_v22 }
 0x1c5   : > { %v3527_v41 = vadd.f32 %v3526_v20, %v3508_v43  ;;  %3848 = vmatmul.bf16.gmra.mxu1 %v7431_v4 }
 0x1c6   : > { %3886 = vmatmul.bf16.gmra.mxu3 %v8086_v40 }
 0x1c7   : > { %v3546_v18 = vadd.f32 %v3545_v50, %v3527_v41 }
 0x1c8   : > { %v3564_v47 = vpop.f32.mrf.mxu2 }
 0x1c9   : > { %v3565_v6 = vadd.f32 %v3564_v47, %v3546_v18 }
 0x1cb   : > { %v3583_v52 = vpop.f32.mrf.mxu3 }
 0x1cc   : > { %v3528_v61 = vpop.f32.mrf.mxu0  ;;  %v3547_v15 = vpop.f32.mrf.mxu1  ;;  %v3584_v34 = vadd.f32 %v3583_v52, %v3565_v6 }
 0x1cd   : > { %v3529_v48 = vadd.f32 %v3528_v61, %v3510_v38 }
 0x1cf   : > { %v3548_v9 = vadd.f32 %v3547_v15, %v3529_v48 }
 0x1d0   : > { %v3566_v37 = vpop.f32.mrf.mxu2 }
 0x1d1   : > { %v3567_v14 = vadd.f32 %v3566_v37, %v3548_v9 }
 0x1d3   : > { %v3585_v45 = vpop.f32.mrf.mxu3 }
 0x1d4   : > { %v3597_v53 = vpop.f32.mrf.mxu0  ;;  %v3616_v54 = vpop.f32.mrf.mxu1  ;;  %v3586_v3 = vadd.f32 %v3585_v45, %v3567_v14 }
 0x1d5   : > { %v3598_v63 = vadd.f32 %v3597_v53, %v3579_v56 }
 0x1d7   : > { %v3617_v4 = vadd.f32 %v3616_v54, %v3598_v63 }
 0x1d8   : > { %v3635_v32 = vpop.f32.mrf.mxu2 }
 0x1d9   : > { %v3636_v0 = vadd.f32 %v3635_v32, %v3617_v4 }
 0x1db   : > { %v3654_v58 = vpop.f32.mrf.mxu3 }
 0x1dc   : > { %v3599_v31 = vpop.f32.mrf.mxu0  ;;  %v3618_v39 = vpop.f32.mrf.mxu1  ;;  %v3655_v49 = vadd.f32 %v3654_v58, %v3636_v0 }
 0x1dd   : > { %v3600_v7 = vadd.f32 %v3599_v31, %v3581_v11 }
 0x1df   : > { %v3619_v10 = vadd.f32 %v3618_v39, %v3600_v7 }
 0x1e0   : > { %v3637_v36 = vpop.f32.mrf.mxu2 }
 0x1e1   : > { %v3638_v2 = vadd.f32 %v3637_v36, %v3619_v10 }
 0x1e3   : > { %v3656_v57 = vpop.f32.mrf.mxu3 }
 0x1e4   : > { %v3602_v42 = vpop.f32.mrf.mxu0  ;;  %v3621_v19 = vpop.f32.mrf.mxu1  ;;  %v3657_v26 = vadd.f32 %v3656_v57, %v3638_v2 }
 0x1e5   : > { %v3603_v1 = vadd.f32 %v3602_v42, %v3584_v34 }
 0x1e7   : > { %v3622_v43 = vadd.f32 %v3621_v19, %v3603_v1 }
 0x1e8   : > { %v3640_v44 = vpop.f32.mrf.mxu2 }
 0x1e9   : > { %v3641_v28 = vadd.f32 %v3640_v44, %v3622_v43 }
 0x1eb   : > { %v3659_v13 = vpop.f32.mrf.mxu3 }
 0x1ec   : > { %v3604_v5 = vpop.f32.mrf.mxu0  ;;  %v3623_v29 = vpop.f32.mrf.mxu1  ;;  %v3660_v33 = vadd.f32 %v3659_v13, %v3641_v28 }
 0x1ed   : > { %v3605_v8 = vadd.f32 %v3604_v5, %v3586_v3 }
 0x1ef   : > { %v3624_v38 = vadd.f32 %v3623_v29, %v3605_v8 }
 0x1f0   : > { %v3642_v23 = vpop.f32.mrf.mxu2 }
 0x1f1   : > { %v3643_v24 = vadd.f32 %v3642_v23, %v3624_v38 }
 0x1f3   : > { %v3661_v27 = vpop.f32.mrf.mxu3 }
 0x1f4   : > { %v3673_v30 = vpop.f32.mrf.mxu0  ;;  %v3692_v17 = vpop.f32.mrf.mxu1  ;;  %v3662_v21 = vadd.f32 %v3661_v27, %v3643_v24 }
 0x1f5   : > { %v3674_v61 = vadd.f32 %v3673_v30, %v3655_v49 }
 0x1f7   : > { %v3693_v15 = vadd.f32 %v3692_v17, %v3674_v61  ;;  %v3903_v17 = vperm.slane %v7820_v25, 1 }
 0x1f8   : > { %v3711_v46 = vpop.f32.mrf.mxu2 }
 0x1f9   : > { %v3712_v9 = vadd.f32 %v3711_v46, %v3693_v15 }
 0x1fb   : > { %v3730_v59 = vpop.f32.mrf.mxu3 }
 0x1fc   : > { %v3675_v62 = vpop.f32.mrf.mxu0  ;;  %v3694_v16 = vpop.f32.mrf.mxu1  ;;  %v3731_v53 = vadd.f32 %v3730_v59, %v3712_v9 }
 0x1fd   : > { %v3676_v14 = vadd.f32 %v3675_v62, %v3657_v26 }
 0x1ff   : > { %v3695_v54 = vadd.f32 %v3694_v16, %v3676_v14 }
 0x200   : > { %v3713_v51 = vpop.f32.mrf.mxu2 }
 0x201   : > { %v3714_v32 = vadd.f32 %v3713_v51, %v3695_v54  ;;  %v3893_v51 = vld [vmem:[%s7844_s13 + $0x8] sm:$0xff] }
 0x203   : > { %v3732_v56 = vpop.f32.mrf.mxu3 }
 0x204   : > { %v3678_v35 = vpop.f32.mrf.mxu0  ;;  %v3697_v55 = vpop.f32.mrf.mxu1  ;;  %v3733_v7 = vadd.f32 %v3732_v56, %v3714_v32 }
 0x205   : > { %v3679_v31 = vadd.f32 %v3678_v35, %v3660_v33 }
 0x207   : > { %v3698_v49 = vadd.f32 %v3697_v55, %v3679_v31 }
 0x208   : > { %v3716_v12 = vpop.f32.mrf.mxu2 }
 0x209   : > { %v3717_v42 = vadd.f32 %v3716_v12, %v3698_v49  ;;  %v3899_v49 = vld [vmem:[%s7844_s13 + $0x38] sm:$0xff] }
 0x20b   : > { %v3735_v60 = vpop.f32.mrf.mxu3 }
 0x20c   : > { %v3680_v20 = vpop.f32.mrf.mxu0  ;;  %v3699_v50 = vpop.f32.mrf.mxu1  ;;  %v3736_v28 = vadd.f32 %v3735_v60, %v3717_v42 }
 0x20d   : > { %v3681_v43 = vadd.f32 %v3680_v20, %v3662_v21 }
 0x20f   : > { %v3700_v29 = vadd.f32 %v3699_v50, %v3681_v43 }
 0x210   : > { %v3718_v41 = vpop.f32.mrf.mxu2 }
 0x211   : > { %v3719_v27 = vadd.f32 %v3718_v41, %v3700_v29 }
 0x213   : > { %v3737_v11 = vpop.f32.mrf.mxu3 }
 0x214   : > { %v3749_v18 = vpop.f32.mrf.mxu0  ;;  %v3768_v22 = vpop.f32.mrf.mxu1  ;;  %v3738_v56 = vadd.f32 %v3737_v11, %v3719_v27 }
 0x215   : > { %v3750_v63 = vadd.f32 %v3749_v18, %v3731_v53 }
 0x217   : > { %v3769_v39 = vadd.f32 %v3768_v22, %v3750_v63 }
 0x218   : > { %v3787_v40 = vpop.f32.mrf.mxu2 }
 0x219   : > { %v3788_v10 = vadd.f32 %v3787_v40, %v3769_v39 }
 0x21b   : > { %v3806_v47 = vpop.f32.mrf.mxu3 }
 0x21c   : > { %v3751_v52 = vpop.f32.mrf.mxu0  ;;  %v3770_v6 = vpop.f32.mrf.mxu1  ;;  %v3807_v19 = vadd.f32 %v3806_v47, %v3788_v10 }
 0x21d   : > { %v3752_v36 = vadd.f32 %v3751_v52, %v3733_v7 }
 0x21f   : > { %v3771_v44 = vadd.f32 %v3770_v6, %v3752_v36  ;;  %v3895_v6 = vld [vmem:[%s7844_s13 + $0x18] sm:$0xff] }
 0x220   : > { %v3789_v48 = vpop.f32.mrf.mxu2 }
 0x221   : > { %v3790_v5 = vadd.f32 %v3789_v48, %v3771_v44  ;;  %v3967_v44 = vld [vmem:[%s7864_s14 + $0x30] sm:$0xff] (%p6503_p9) }
 0x222   : > { %3968 = vst [vmem:[%s3942_s15 + $0x90] sm:$0xff] (%p6503_p9), %v3967_v44 }
 0x223   : > { %v3808_v34 = vpop.f32.mrf.mxu3 }
 0x224   : > { %v3754_v37 = vpop.f32.mrf.mxu0  ;;  %v3773_v45 = vpop.f32.mrf.mxu1  ;;  %v3809_v24 = vadd.f32 %v3808_v34, %v3790_v5 }
 0x225   : > { %v3755_v8 = vadd.f32 %v3754_v37, %v3736_v28 }
 0x227   : > { %v3774_v62 = vadd.f32 %v3773_v45, %v3755_v8 }
 0x228   : > { %v3792_v3 = vpop.f32.mrf.mxu2 }
 0x229   : > { %v3793_v35 = vadd.f32 %v3792_v3, %v3774_v62  ;;  %v3897_v3 = vld [vmem:[%s7844_s13 + $0x28] sm:$0xff] }
 0x22b   : > { %v3811_v4 = vpop.f32.mrf.mxu3 }
 0x22c   : > { %v3756_v58 = vpop.f32.mrf.mxu0  ;;  %v3775_v0 = vpop.f32.mrf.mxu1  ;;  %v3812_v18 = vadd.f32 %v3811_v4, %v3793_v35 }
 0x22d   : > { %v3757_v12 = vadd.f32 %v3756_v58, %v3738_v56 }
 0x22f   : > { %v3776_v40 = vadd.f32 %v3775_v0, %v3757_v12 }
 0x230   : > { %v3794_v57 = vpop.f32.mrf.mxu2 }
 0x231   : > { %v3795_v15 = vadd.f32 %v3794_v57, %v3776_v40 }
 0x233   : > { %v3813_v2 = vpop.f32.mrf.mxu3 }
 0x234   : > { %v3825_v1 = vpop.f32.mrf.mxu0  ;;  %v3844_v26 = vpop.f32.mrf.mxu1  ;;  %v3814_v45 = vadd.f32 %v3813_v2, %v3795_v15  ;;  %v3955_v2 = vld [vmem:[%s7864_s14] sm:$0xff] (%p6503_p9) }
 0x235   : > { %v3826_v13 = vadd.f32 %v3825_v1, %v3807_v19  ;;  %v3959_v19 = vld [vmem:[%s7864_s14 + $0x10] sm:$0xff] (%p6503_p9)  ;;  %3956 = vst [vmem:[%s3942_s15] sm:$0xff] (%p6503_p9), %v3955_v2 }
 0x236   : > { %3960 = vst [vmem:[%s3942_s15 + $0x30] sm:$0xff] (%p6503_p9), %v3959_v19 }
 0x237   : > { %v3845_v33 = vadd.f32 %v3844_v26, %v3826_v13  ;;  %v3963_v26 = vld [vmem:[%s7864_s14 + $0x20] sm:$0xff] (%p6503_p9) }
 0x238   : > { %v3863_v38 = vpop.f32.mrf.mxu2  ;;  %3964 = vst [vmem:[%s3942_s15 + $0x60] sm:$0xff] (%p6503_p9), %v3963_v26 }
 0x239   : > { %v3864_v30 = vadd.f32 %v3863_v38, %v3845_v33 }
 0x23b   : > { %v3882_v23 = vpop.f32.mrf.mxu3 }
 0x23c   : > { %v3827_v46 = vpop.f32.mrf.mxu0  ;;  %v3846_v59 = vpop.f32.mrf.mxu1  ;;  %v3883_v21 = vadd.f32 %v3882_v23, %v3864_v30 }
 0x23d   : > { %v3828_v16 = vadd.f32 %v3827_v46, %v3809_v24 }
 0x23e   : > { %v3907_v55 = vmul.f32 %v3903_v17, %v3883_v21 }
 0x23f   : > { %v3847_v20 = vadd.f32 %v3846_v59, %v3828_v16 }
 0x240   : > { %v3915_v60 = vadd.f32 %v3907_v55, %v3893_v51  ;;  %v3865_v50 = vpop.f32.mrf.mxu2 }
 0x241   : > { %v3866_v25 = vadd.f32 %v3865_v50, %v3847_v20 }
 0x242   : > { %3923 = vst [vmem:[%s7864_s14 + $0x8] sm:$0xff] %v3915_v60 }
 0x243   : > { %v3884_v41 = vpop.f32.mrf.mxu3 }
 0x244   : > { %v3830_v22 = vpop.f32.mrf.mxu0  ;;  %v3885_v47 = vadd.f32 %v3884_v41, %v3866_v25  ;;  %v3849_v61 = vpop.f32.mrf.mxu1 }
 0x245   : > { %v3831_v52 = vadd.f32 %v3830_v22, %v3812_v18 }
 0x246   : > { %v3909_v11 = vmul.f32 %v3903_v17, %v3885_v47 }
 0x247   : > { %v3850_v34 = vadd.f32 %v3849_v61, %v3831_v52 }
 0x248   : > { %v3917_v48 = vadd.f32 %v3909_v11, %v3895_v6  ;;  %v3868_v9 = vpop.f32.mrf.mxu2 }
 0x249   : > { %v3869_v14 = vadd.f32 %v3868_v9, %v3850_v34  ;;  %v3957_v42 = vld [vmem:[%s7864_s14 + $0x8] sm:$0xff] (%p6503_p9) }
 0x24a   : > { %3925 = vst [vmem:[%s7864_s14 + $0x18] sm:$0xff] %v3917_v48 }
 0x24b   : > { %v3887_v37 = vpop.f32.mrf.mxu3  ;;  %3958 = vst [vmem:[%s3942_s15 + $0x8] sm:$0xff] (%p6503_p9), %v3957_v42 }
 0x24c   : > { %v3832_v53 = vpop.f32.mrf.mxu0  ;;  %v3888_v54 = vadd.f32 %v3887_v37, %v3869_v14  ;;  %v3851_v32 = vpop.f32.mrf.mxu1 }
 0x24d   : > { %v3833_v63 = vadd.f32 %v3832_v53, %v3814_v45 }
 0x24e   : > { %v3911_v4 = vmul.f32 %v3903_v17, %v3888_v54 }
 0x24f   : > { %v3852_v0 = vadd.f32 %v3851_v32, %v3833_v63 }
 0x250   : > { %v3919_v58 = vadd.f32 %v3911_v4, %v3897_v3  ;;  %v3870_v31 = vpop.f32.mrf.mxu2 }
 0x251   : > { %v3871_v39 = vadd.f32 %v3870_v31, %v3852_v0  ;;  %v3961_v1 = vld [vmem:[%s7864_s14 + $0x18] sm:$0xff] (%p6503_p9) }
 0x252   : > { %3927 = vst [vmem:[%s7864_s14 + $0x28] sm:$0xff] %v3919_v58 }
 0x253   : > { %v3889_v7 = vpop.f32.mrf.mxu3  ;;  %3962 = vst [vmem:[%s3942_s15 + $0x38] sm:$0xff] (%p6503_p9), %v3961_v1 }
 0x254   : > { %v3890_v10 = vadd.f32 %v3889_v7, %v3871_v39 }
 0x256   : > { %v3913_v36 = vmul.f32 %v3903_v17, %v3890_v10  ;;  %3936 = sbr.rel (!%p6503_p9) target bundleno = 611 (0x263), region = 71 }
 0x258   : > { %v3921_v57 = vadd.f32 %v3913_v36, %v3899_v49 }
 0x259   : > { %v3965_v43 = vld [vmem:[%s7864_s14 + $0x28] sm:$0xff] (%p6503_p9) }
 0x25a   : > { %3929 = vst [vmem:[%s7864_s14 + $0x38] sm:$0xff] %v3921_v57 }
 0x25b   : > { %3966 = vst [vmem:[%s3942_s15 + $0x68] sm:$0xff] %v3965_v43 }
 0x261   : > { %v3969_v13 = vld [vmem:[%s7864_s14 + $0x38] sm:$0xff] }
 0x262   : > { %3970 = vst [vmem:[%s3942_s15 + $0x98] sm:$0xff] %v3969_v13 }
 0x263 PF: > { %s18_s23 = sadd.s32 1, %s6418_s23   ;;  %s8087_s6 = sld [smem:[#allocation7_spill]] }
 0x264   : > { %p15_p1 = scmp.ge.s32.totalorder %s18_s23, 5   ;;  %s8088_s18 = smov %s6402_s19 }
 0x265   : > { %s8089_s19 = smov %s6406_s20  ;;  %s8090_s20 = smov %s6501_s30 }
 0x266   : > { %s8091_s21 = smov %s6414_s22  ;;  %17 = sbr.rel (!%p15_p1) target bundleno = 4 (0x4), region = 143 }
 0x269   : > { %s8092_s22 = smov %s8087_s6 }
 0x26b   :  { %3986 = vsyncpa [#allocation3], 1 }
 0x26c   :  { %3988 = vsyncpa [#allocation3 + $0x1], 1 }

</bundles_post_ra>
